<compile_context>
chip_gen: v5e
topology: v5e:2x2
jax: 0.10.0
libtpu: 0.0.40
codegen_flags: <defaults>
</compile_context>

<pallas_src>
import math

import jax
import jax.numpy as jnp
from jax import lax
from jax.experimental import pallas as pl
from jax.experimental.pallas import tpu as pltpu

KSIZE = 7
PAD = 3
EPS = 1e-6
LANE = 128
COL0 = 8                       # sublane-aligned column at which the image sits in the pad buffer


def _round_up(x, m):
    return (x + m - 1) // m * m


def _largest_divisor_leq(n, cap):
    cap = max(1, min(n, cap))
    for d in range(cap, 0, -1):
        if n % d == 0:
            return d
    return 1


def _make_block_kernel(H, W, c_real, Cp, Hd, TH):
    """Build the fused per-batch kernel (all sizes static)."""
    Hp = H + 2 * PAD
    Wbuf = W + 2 * COL0          # zero columns on both sides of the aligned image placement
    W0 = COL0 - PAD              # tap dx reads strip columns [W0+dx, W0+dx+W)
    inv_c = 1.0 / c_real
    n_blocks = H // TH
    TM = TH * W
    use_mask = Cp > c_real
    hoist_table = (KSIZE * KSIZE * Cp * 4) <= (32 * 1024)   # keep full table in vregs when small
    inv_sqrt2 = 1.0 / math.sqrt(2.0)

    def kernel(x_ref, dww_ref, dwb_ref, lnw_ref, lnb_ref,
               w1_ref, b1_ref, w2_ref, b2_ref, g_ref,
               o_ref, xp_ref):
        # ---- stage 0: zero only the halo bands, then copy the image into the padded buffer ----
        xp_ref[0:PAD, :, :] = jnp.zeros((PAD, Wbuf, Cp), jnp.float32)
        xp_ref[PAD + H:Hp, :, :] = jnp.zeros((PAD, Wbuf, Cp), jnp.float32)
        xp_ref[:, 0:COL0, :] = jnp.zeros((Hp, COL0, Cp), jnp.float32)
        xp_ref[:, COL0 + W:Wbuf, :] = jnp.zeros((Hp, COL0, Cp), jnp.float32)
        xp_ref[PAD:PAD + H, COL0:COL0 + W, :] = x_ref[...].astype(jnp.float32)
        # TODO(synk): a manual DMA (memory_space=pl.ANY for x) straight into the buffer
        # interior would remove this VMEM->VMEM copy and the double-buffered input block.

        # ---- hoisted per-channel parameters (one load each per grid step) ----
        dwb = dwb_ref[0, :].astype(jnp.float32)
        lnw = lnw_ref[0, :].astype(jnp.float32)
        lnb = lnb_ref[0, :].astype(jnp.float32)
        b1 = b1_ref[0, :].astype(jnp.float32)
        b2 = b2_ref[0, :].astype(jnp.float32)
        g = g_ref[0, :].astype(jnp.float32)
        wflat = dww_ref[...].astype(jnp.float32) if hoist_table else None   # (49, Cp)
        if use_mask:
            cmask = (lax.broadcasted_iota(jnp.int32, (1, Cp), 1) < c_real).astype(jnp.float32)

        def conv_rows(r0):
            """Depthwise 7x7 conv for output rows [r0, r0+TH); accumulator stays in vregs."""
            acc = jnp.zeros((TH, W, Cp), jnp.float32)
            for dy in range(KSIZE):                              # 7 aligned strip loads
                strip = xp_ref[pl.ds(r0 + dy, TH), :, :]         # (TH, Wbuf, Cp)
                if hoist_table:
                    wrow, base = wflat, dy * KSIZE
                else:                                            # large Cp: per-dy row group
                    wrow = dww_ref[dy * KSIZE:(dy + 1) * KSIZE, :].astype(jnp.float32)
                    base = 0
                for dx in range(KSIZE):                          # in-register column shifts
                    acc = acc + strip[:, W0 + dx:W0 + dx + W, :] * wrow[base + dx, :]
            return acc + dwb

        def mlp_rows(r0, y):
            """LN -> Linear(4x) -> GELU -> Linear -> gamma -> +residual for rows [r0, r0+TH)."""
            yt = y.reshape(TM, Cp)                               # layout-free when W % 8 == 0
            if use_mask:                                         # masked mean AND variance
                u = jnp.sum(yt * cmask, axis=-1, keepdims=True) * inv_c
                dd_mask = cmask
            else:
                u = jnp.sum(yt, axis=-1, keepdims=True) * inv_c
                dd_mask = None
            d = yt - u
            dd = d * d if dd_mask is None else d * d * dd_mask
            var = jnp.sum(dd, axis=-1, keepdims=True) * inv_c
            xn = d * lax.rsqrt(var + EPS) * lnw + lnb            # padded lanes -> 0
            h = jnp.dot(xn.astype(jnp.bfloat16), w1_ref[...],
                        preferred_element_type=jnp.float32) + b1
            h = 0.5 * h * (1.0 + lax.erf(h * inv_sqrt2))         # exact GELU (EUP erf)
            z = jnp.dot(h.astype(jnp.bfloat16), w2_ref[...],
                        preferred_element_type=jnp.float32) + b2
            z = g * z
            res = x_ref[pl.ds(r0, TH), :, :].astype(jnp.float32).reshape(TM, Cp)
            out = (res + z).astype(o_ref.dtype)
            o_ref[pl.ds(r0, TH), :, :] = out.reshape(TH, W, Cp)

        # ---- software-skewed fused pipeline over row blocks ----
        # conv(block i+1) and MLP(block i) share no data, so VPU conv FMAs can overlap
        # with MXU matmul pushes inside one loop body.
        # TODO(synk): bf16 VPU conv math (v6e/v7x only) left out to preserve f32 parity.
        y = conv_rows(0)
        if n_blocks > 1:
            def body(i, y_cur):
                y_next = conv_rows((i + 1) * TH)
                mlp_rows(i * TH, y_cur)
                return y_next
            y = lax.fori_loop(0, n_blocks - 1, body, y)
        mlp_rows((n_blocks - 1) * TH, y)

    return kernel


def convnext_block(x_nchw, params):
    """Forward pass of the ConvNeXt Block (drop_path = 0 -> Identity)."""
    B, C, H, W = x_nchw.shape
    Cp = _round_up(C, LANE)              # lane-dense channel count
    Hd = _round_up(4 * C, LANE)          # lane-dense hidden width
    Hp = H + 2 * PAD
    Wbuf = W + 2 * COL0

    # NCHW -> NHWC + channel pad (single HBM layout pass; XLA fuses the pad into the copy).
    x = jnp.pad(jnp.transpose(x_nchw, (0, 2, 3, 1)).astype(jnp.float32),
                ((0, 0), (0, 0), (0, 0), (0, Cp - C)))

    # depthwise weights: (C, 7, 7) -> (49, Cp) so channels sit on the lane axis
    dw_w = jnp.pad(params["dw_w"].transpose(1, 2, 0).reshape(KSIZE * KSIZE, C),
                   ((0, 0), (0, Cp - C))).astype(jnp.float32)
    dw_b = jnp.pad(params["dw_b"], (0, Cp - C)).reshape(1, Cp).astype(jnp.float32)
    ln_w = jnp.pad(params["ln_w"], (0, Cp - C)).reshape(1, Cp).astype(jnp.float32)
    ln_b = jnp.pad(params["ln_b"], (0, Cp - C)).reshape(1, Cp).astype(jnp.float32)
    w1 = jnp.pad(params["w1"], ((0, Cp - C), (0, Hd - 4 * C))).astype(jnp.bfloat16)
    b1 = jnp.pad(params["b1"], (0, Hd - 4 * C)).reshape(1, Hd).astype(jnp.float32)
    w2 = jnp.pad(params["w2"], ((0, Hd - 4 * C), (0, Cp - C))).astype(jnp.bfloat16)
    b2 = jnp.pad(params["b2"], (0, Cp - C)).reshape(1, Cp).astype(jnp.float32)
    gamma = jnp.pad(params["gamma"], (0, Cp - C)).reshape(1, Cp).astype(jnp.float32)

    # fused row block: ~44 vregs for (f32 acc + one halo strip), at least 2 rows
    per_row_bytes = (2 * W + 2 * COL0) * Cp * 4
    TH = _largest_divisor_leq(H, max(2, (44 * 4096) // per_row_bytes))

    # VMEM budget from actual buffers, capped below v7x's 64 MiB physical VMEM.
    out_itemsize = jnp.dtype(x_nchw.dtype).itemsize
    vmem_need = (
        Hp * Wbuf * Cp * 4                       # padded-image scratch
        + 2 * H * W * Cp * 4                     # double-buffered input block
        + 2 * H * W * Cp * out_itemsize          # double-buffered output block
        + 2 * KSIZE * KSIZE * Cp * 4             # depthwise weights
        + 2 * 2 * (Cp * Hd + Hd * Cp)            # bf16 pointwise weights
        + 2 * 8 * (5 * Cp + Hd) * 4              # small per-channel vectors
        + 2 * TH * W * Hd * 4                    # MLP hidden-tile spill headroom
    )
    vmem_limit = int(min(vmem_need * 1.25 + (6 << 20), 56 << 20))
    # TODO(synk): single-buffer the constant-index weight inputs (pipeline_mode=pl.Buffered(1))
    # to save ~half the weight VMEM on v7x once that path is exercised in this JAX version.

    kernel = _make_block_kernel(H, W, C, Cp, Hd, TH)

    out = pl.pallas_call(
        kernel,
        out_shape=jax.ShapeDtypeStruct((B, H, W, Cp), x_nchw.dtype),
        grid=(B,),
        in_specs=[
            pl.BlockSpec((pl.Squeezed(), H, W, Cp), lambda b: (b, 0, 0, 0)),
            pl.BlockSpec((KSIZE * KSIZE, Cp), lambda b: (0, 0)),
            pl.BlockSpec((1, Cp), lambda b: (0, 0)),
            pl.BlockSpec((1, Cp), lambda b: (0, 0)),
            pl.BlockSpec((1, Cp), lambda b: (0, 0)),
            pl.BlockSpec((Cp, Hd), lambda b: (0, 0)),
            pl.BlockSpec((1, Hd), lambda b: (0, 0)),
            pl.BlockSpec((Hd, Cp), lambda b: (0, 0)),
            pl.BlockSpec((1, Cp), lambda b: (0, 0)),
            pl.BlockSpec((1, Cp), lambda b: (0, 0)),
        ],
        out_specs=pl.BlockSpec((pl.Squeezed(), H, W, Cp), lambda b: (b, 0, 0, 0)),
        scratch_shapes=[
            pltpu.VMEM((Hp, Wbuf, Cp), jnp.float32),   # zero-padded input image (halo stays zero)
        ],
        compiler_params=pltpu.CompilerParams(
            dimension_semantics=("parallel",),
            vmem_limit_bytes=vmem_limit,
        ),
    )(x, dw_w, dw_b, ln_w, ln_b, w1, b1, w2, b2, gamma)

    return jnp.transpose(out[..., :C], (0, 3, 1, 2))            # drop channel pad, back to NCHW


def reference_block(x_nchw, params):
    """Pure-JAX (f32) reference mirroring the PyTorch forward."""
    B, C, H, W = x_nchw.shape
    x = jnp.transpose(x_nchw, (0, 2, 3, 1))
    rhs = params["dw_w"].transpose(1, 2, 0)[:, :, None, :]      # (7,7,1,C)
    y = lax.conv_general_dilated(
        x, rhs, window_strides=(1, 1), padding=((PAD, PAD), (PAD, PAD)),
        dimension_numbers=("NHWC", "HWIO", "NHWC"),
        feature_group_count=C) + params["dw_b"]
    u = jnp.mean(y, axis=-1, keepdims=True)
    s = jnp.mean((y - u) ** 2, axis=-1, keepdims=True)
    yn = (y - u) / jnp.sqrt(s + EPS) * params["ln_w"] + params["ln_b"]
    h = yn @ params["w1"] + params["b1"]
    h = 0.5 * h * (1.0 + lax.erf(h / math.sqrt(2.0)))
    z = params["gamma"] * (h @ params["w2"] + params["b2"])
    return (x + z).transpose(0, 3, 1, 2)


if __name__ == "__main__":
    key = jax.random.PRNGKey(0)
    B, C, H, W = 2, 32, 16, 16                    # dim=32, small spatial
    ks = jax.random.split(key, 8)
    x = jax.random.normal(ks[0], (B, C, H, W), jnp.float32)

    # deterministic parameter init (shapes per Block.__init__ / Conv2d / Linear)
    params = {
        "dw_w": 0.1 * jax.random.normal(ks[1], (C, KSIZE, KSIZE), jnp.float32),  # Conv2d(dim,dim,7,groups=dim) weight squeezed
        "dw_b": 0.1 * jax.random.normal(ks[2], (C,), jnp.float32),
        "ln_w": jnp.ones((C,), jnp.float32),
        "ln_b": jnp.zeros((C,), jnp.float32),
        "w1": 0.1 * jax.random.normal(ks[3], (C, 4 * C), jnp.float32),   # Linear(dim, 4*dim) weight^T
        "b1": 0.1 * jax.random.normal(ks[4], (4 * C,), jnp.float32),
        "w2": 0.1 * jax.random.normal(ks[5], (4 * C, C), jnp.float32),   # Linear(4*dim, dim) weight^T
        "b2": 0.1 * jax.random.normal(ks[6], (C,), jnp.float32),
        "gamma": 0.1 * jax.random.normal(ks[7], (C,), jnp.float32),      # layer scale (module inits to 1e-6*ones)
    }
    # TODO(synk): DropPath (stochastic depth) omitted — drop_path=0.0 -> nn.Identity in the module.

    out = jax.block_until_ready(convnext_block(x, params))
    ref = jax.block_until_ready(reference_block(x, params))
    assert out.shape == x.shape
    # tolerance accounts for bf16 MXU matmuls (f32 accumulation); everything else is f32
    err = float(jnp.max(jnp.abs(out - ref)))
    assert jnp.allclose(out, ref, rtol=5e-3, atol=5e-3), err
    print("KERNEL_OK")
</pallas_src>

<mosaic_0001>
module attributes {stable_mosaic.version = 11 : i64} {
  func.func @kernel(%arg0: i32, %arg1: memref<1x16x16x128xf32, #tpu.memory_space<vmem>>, %arg2: memref<49x128xf32, #tpu.memory_space<vmem>>, %arg3: memref<1x128xf32, #tpu.memory_space<vmem>>, %arg4: memref<1x128xf32, #tpu.memory_space<vmem>>, %arg5: memref<1x128xf32, #tpu.memory_space<vmem>>, %arg6: memref<128x128xbf16, #tpu.memory_space<vmem>>, %arg7: memref<1x128xf32, #tpu.memory_space<vmem>>, %arg8: memref<128x128xbf16, #tpu.memory_space<vmem>>, %arg9: memref<1x128xf32, #tpu.memory_space<vmem>>, %arg10: memref<1x128xf32, #tpu.memory_space<vmem>>, %arg11: memref<1x16x16x128xf32, #tpu.memory_space<vmem>>, %arg12: memref<22x32x128xf32, #tpu.memory_space<vmem>>) attributes {dimension_semantics = [#tpu.dimension_semantics<parallel>], iteration_bounds = array<i64: 2>, scalar_prefetch = 0 : i64, scratch_operands = 1 : i64, tpu.core_type = #tpu.core_type<tc>, window_params = [{transform_indices = @transform_0, window_bounds = array<i64: 1, 16, 16, 128>}, {pipeline_mode = #tpu.pipeline_mode<synchronous>, transform_indices = @transform_1, window_bounds = array<i64: 49, 128>}, {pipeline_mode = #tpu.pipeline_mode<synchronous>, transform_indices = @transform_2, window_bounds = array<i64: 1, 128>}, {pipeline_mode = #tpu.pipeline_mode<synchronous>, transform_indices = @transform_3, window_bounds = array<i64: 1, 128>}, {pipeline_mode = #tpu.pipeline_mode<synchronous>, transform_indices = @transform_4, window_bounds = array<i64: 1, 128>}, {pipeline_mode = #tpu.pipeline_mode<synchronous>, transform_indices = @transform_5, window_bounds = array<i64: 128, 128>}, {pipeline_mode = #tpu.pipeline_mode<synchronous>, transform_indices = @transform_6, window_bounds = array<i64: 1, 128>}, {pipeline_mode = #tpu.pipeline_mode<synchronous>, transform_indices = @transform_7, window_bounds = array<i64: 128, 128>}, {pipeline_mode = #tpu.pipeline_mode<synchronous>, transform_indices = @transform_8, window_bounds = array<i64: 1, 128>}, {pipeline_mode = #tpu.pipeline_mode<synchronous>, transform_indices = @transform_9, window_bounds = array<i64: 1, 128>}, {transform_indices = @transform_10, window_bounds = array<i64: 1, 16, 16, 128>}]} {
    %cst = arith.constant 0.000000e+00 : f32
    %0 = vector.broadcast %cst : f32 to vector<3x32x128xf32>
    %c0 = arith.constant 0 : index
    %c0_0 = arith.constant 0 : index
    %c0_1 = arith.constant 0 : index
    %1 = vector.load %arg12[%c0, %c0_0, %c0_1] : memref<22x32x128xf32, #tpu.memory_space<vmem>>, vector<3x32x128xf32>
    tpu.vector_store %arg12[%c0, %c0_0, %c0_1], %0 {strides = array<i32>} : memref<22x32x128xf32, #tpu.memory_space<vmem>>, vector<3x32x128xf32>,
    %cst_2 = arith.constant 0.000000e+00 : f32
    %2 = vector.broadcast %cst_2 : f32 to vector<3x32x128xf32>
    %c19 = arith.constant 19 : index
    %c0_3 = arith.constant 0 : index
    %c0_4 = arith.constant 0 : index
    %3 = vector.load %arg12[%c19, %c0_3, %c0_4] : memref<22x32x128xf32, #tpu.memory_space<vmem>>, vector<3x32x128xf32>
    tpu.vector_store %arg12[%c19, %c0_3, %c0_4], %2 {strides = array<i32>} : memref<22x32x128xf32, #tpu.memory_space<vmem>>, vector<3x32x128xf32>,
    %cst_5 = arith.constant 0.000000e+00 : f32
    %4 = vector.broadcast %cst_5 : f32 to vector<22x8x128xf32>
    %c0_6 = arith.constant 0 : index
    %c0_7 = arith.constant 0 : index
    %c0_8 = arith.constant 0 : index
    %5 = vector.load %arg12[%c0_6, %c0_7, %c0_8] : memref<22x32x128xf32, #tpu.memory_space<vmem>>, vector<22x8x128xf32>
    tpu.vector_store %arg12[%c0_6, %c0_7, %c0_8], %4 {strides = array<i32>} : memref<22x32x128xf32, #tpu.memory_space<vmem>>, vector<22x8x128xf32>,
    %cst_9 = arith.constant 0.000000e+00 : f32
    %6 = vector.broadcast %cst_9 : f32 to vector<22x8x128xf32>
    %c0_10 = arith.constant 0 : index
    %c24 = arith.constant 24 : index
    %c0_11 = arith.constant 0 : index
    %7 = vector.load %arg12[%c0_10, %c24, %c0_11] : memref<22x32x128xf32, #tpu.memory_space<vmem>>, vector<22x8x128xf32>
    tpu.vector_store %arg12[%c0_10, %c24, %c0_11], %6 {strides = array<i32>} : memref<22x32x128xf32, #tpu.memory_space<vmem>>, vector<22x8x128xf32>,
    %c0_12 = arith.constant 0 : index
    %c0_13 = arith.constant 0 : index
    %c0_14 = arith.constant 0 : index
    %c0_15 = arith.constant 0 : index
    %8 = vector.load %arg1[%c0_12, %c0_13, %c0_14, %c0_15] : memref<1x16x16x128xf32, #tpu.memory_space<vmem>>, vector<1x16x16x128xf32>
    %9 = vector.shape_cast %8 : vector<1x16x16x128xf32> to vector<16x16x128xf32>
    %c3 = arith.constant 3 : index
    %c8 = arith.constant 8 : index
    %c0_16 = arith.constant 0 : index
    %10 = vector.load %arg12[%c3, %c8, %c0_16] : memref<22x32x128xf32, #tpu.memory_space<vmem>>, vector<16x16x128xf32>
    tpu.vector_store %arg12[%c3, %c8, %c0_16], %9 {strides = array<i32>} : memref<22x32x128xf32, #tpu.memory_space<vmem>>, vector<16x16x128xf32>,
    %c0_17 = arith.constant 0 : index
    %c0_18 = arith.constant 0 : index
    %11 = vector.load %arg3[%c0_17, %c0_18] : memref<1x128xf32, #tpu.memory_space<vmem>>, vector<1x128xf32>
    %12 = vector.shape_cast %11 : vector<1x128xf32> to vector<128xf32>
    %c0_19 = arith.constant 0 : index
    %c0_20 = arith.constant 0 : index
    %13 = vector.load %arg4[%c0_19, %c0_20] : memref<1x128xf32, #tpu.memory_space<vmem>>, vector<1x128xf32>
    %14 = vector.shape_cast %13 : vector<1x128xf32> to vector<128xf32>
    %c0_21 = arith.constant 0 : index
    %c0_22 = arith.constant 0 : index
    %15 = vector.load %arg5[%c0_21, %c0_22] : memref<1x128xf32, #tpu.memory_space<vmem>>, vector<1x128xf32>
    %16 = vector.shape_cast %15 : vector<1x128xf32> to vector<128xf32>
    %c0_23 = arith.constant 0 : index
    %c0_24 = arith.constant 0 : index
    %17 = vector.load %arg7[%c0_23, %c0_24] : memref<1x128xf32, #tpu.memory_space<vmem>>, vector<1x128xf32>
    %18 = vector.shape_cast %17 : vector<1x128xf32> to vector<128xf32>
    %c0_25 = arith.constant 0 : index
    %c0_26 = arith.constant 0 : index
    %19 = vector.load %arg9[%c0_25, %c0_26] : memref<1x128xf32, #tpu.memory_space<vmem>>, vector<1x128xf32>
    %20 = vector.shape_cast %19 : vector<1x128xf32> to vector<128xf32>
    %c0_27 = arith.constant 0 : index
    %c0_28 = arith.constant 0 : index
    %21 = vector.load %arg10[%c0_27, %c0_28] : memref<1x128xf32, #tpu.memory_space<vmem>>, vector<1x128xf32>
    %22 = vector.shape_cast %21 : vector<1x128xf32> to vector<128xf32>
    %c0_29 = arith.constant 0 : index
    %c0_30 = arith.constant 0 : index
    %23 = vector.load %arg2[%c0_29, %c0_30] : memref<49x128xf32, #tpu.memory_space<vmem>>, vector<49x128xf32>
    %24 = tpu.iota {dimensions = array<i32: 1>} : vector<1x128xi32>
    %c32_i32 = arith.constant 32 : i32
    %25 = vector.broadcast %c32_i32 : i32 to vector<1x128xi32>
    %26 = arith.cmpi slt, %24, %25 : vector<1x128xi32>
    %27 = arith.extui %26 : vector<1x128xi1> to vector<1x128xi32>
    %28 = arith.sitofp %27 : vector<1x128xi32> to vector<1x128xf32>
    %cst_31 = arith.constant 0.000000e+00 : f32
    %29 = vector.broadcast %cst_31 : f32 to vector<4x16x128xf32>
    %c0_32 = arith.constant 0 : index
    %c0_33 = arith.constant 0 : index
    %c0_34 = arith.constant 0 : index
    %30 = vector.load %arg12[%c0_32, %c0_33, %c0_34] : memref<22x32x128xf32, #tpu.memory_space<vmem>>, vector<4x32x128xf32>
    %31 = vector.extract_strided_slice %30 {offsets = [0, 5, 0], sizes = [4, 16, 128], strides = [1, 1, 1]} : vector<4x32x128xf32> to vector<4x16x128xf32>
    %32 = vector.extract_strided_slice %23 {offsets = [0, 0], sizes = [1, 128], strides = [1, 1]} : vector<49x128xf32> to vector<1x128xf32>
    %33 = vector.shape_cast %32 : vector<1x128xf32> to vector<128xf32>
    %34 = vector.shape_cast %33 : vector<128xf32> to vector<1x1x128xf32>
    %35 = vector.broadcast %34 : vector<1x1x128xf32> to vector<4x16x128xf32>
    %36 = arith.mulf %31, %35 : vector<4x16x128xf32>
    %37 = arith.addf %29, %36 : vector<4x16x128xf32>
    %38 = vector.extract_strided_slice %30 {offsets = [0, 6, 0], sizes = [4, 16, 128], strides = [1, 1, 1]} : vector<4x32x128xf32> to vector<4x16x128xf32>
    %39 = vector.extract_strided_slice %23 {offsets = [1, 0], sizes = [1, 128], strides = [1, 1]} : vector<49x128xf32> to vector<1x128xf32>
    %40 = vector.shape_cast %39 : vector<1x128xf32> to vector<128xf32>
    %41 = vector.shape_cast %40 : vector<128xf32> to vector<1x1x128xf32>
    %42 = vector.broadcast %41 : vector<1x1x128xf32> to vector<4x16x128xf32>
    %43 = arith.mulf %38, %42 : vector<4x16x128xf32>
    %44 = arith.addf %37, %43 : vector<4x16x128xf32>
    %45 = vector.extract_strided_slice %30 {offsets = [0, 7, 0], sizes = [4, 16, 128], strides = [1, 1, 1]} : vector<4x32x128xf32> to vector<4x16x128xf32>
    %46 = vector.extract_strided_slice %23 {offsets = [2, 0], sizes = [1, 128], strides = [1, 1]} : vector<49x128xf32> to vector<1x128xf32>
    %47 = vector.shape_cast %46 : vector<1x128xf32> to vector<128xf32>
    %48 = vector.shape_cast %47 : vector<128xf32> to vector<1x1x128xf32>
    %49 = vector.broadcast %48 : vector<1x1x128xf32> to vector<4x16x128xf32>
    %50 = arith.mulf %45, %49 : vector<4x16x128xf32>
    %51 = arith.addf %44, %50 : vector<4x16x128xf32>
    %52 = vector.extract_strided_slice %30 {offsets = [0, 8, 0], sizes = [4, 16, 128], strides = [1, 1, 1]} : vector<4x32x128xf32> to vector<4x16x128xf32>
    %53 = vector.extract_strided_slice %23 {offsets = [3, 0], sizes = [1, 128], strides = [1, 1]} : vector<49x128xf32> to vector<1x128xf32>
    %54 = vector.shape_cast %53 : vector<1x128xf32> to vector<128xf32>
    %55 = vector.shape_cast %54 : vector<128xf32> to vector<1x1x128xf32>
    %56 = vector.broadcast %55 : vector<1x1x128xf32> to vector<4x16x128xf32>
    %57 = arith.mulf %52, %56 : vector<4x16x128xf32>
    %58 = arith.addf %51, %57 : vector<4x16x128xf32>
    %59 = vector.extract_strided_slice %30 {offsets = [0, 9, 0], sizes = [4, 16, 128], strides = [1, 1, 1]} : vector<4x32x128xf32> to vector<4x16x128xf32>
    %60 = vector.extract_strided_slice %23 {offsets = [4, 0], sizes = [1, 128], strides = [1, 1]} : vector<49x128xf32> to vector<1x128xf32>
    %61 = vector.shape_cast %60 : vector<1x128xf32> to vector<128xf32>
    %62 = vector.shape_cast %61 : vector<128xf32> to vector<1x1x128xf32>
    %63 = vector.broadcast %62 : vector<1x1x128xf32> to vector<4x16x128xf32>
    %64 = arith.mulf %59, %63 : vector<4x16x128xf32>
    %65 = arith.addf %58, %64 : vector<4x16x128xf32>
    %66 = vector.extract_strided_slice %30 {offsets = [0, 10, 0], sizes = [4, 16, 128], strides = [1, 1, 1]} : vector<4x32x128xf32> to vector<4x16x128xf32>
    %67 = vector.extract_strided_slice %23 {offsets = [5, 0], sizes = [1, 128], strides = [1, 1]} : vector<49x128xf32> to vector<1x128xf32>
    %68 = vector.shape_cast %67 : vector<1x128xf32> to vector<128xf32>
    %69 = vector.shape_cast %68 : vector<128xf32> to vector<1x1x128xf32>
    %70 = vector.broadcast %69 : vector<1x1x128xf32> to vector<4x16x128xf32>
    %71 = arith.mulf %66, %70 : vector<4x16x128xf32>
    %72 = arith.addf %65, %71 : vector<4x16x128xf32>
    %73 = vector.extract_strided_slice %30 {offsets = [0, 11, 0], sizes = [4, 16, 128], strides = [1, 1, 1]} : vector<4x32x128xf32> to vector<4x16x128xf32>
    %74 = vector.extract_strided_slice %23 {offsets = [6, 0], sizes = [1, 128], strides = [1, 1]} : vector<49x128xf32> to vector<1x128xf32>
    %75 = vector.shape_cast %74 : vector<1x128xf32> to vector<128xf32>
    %76 = vector.shape_cast %75 : vector<128xf32> to vector<1x1x128xf32>
    %77 = vector.broadcast %76 : vector<1x1x128xf32> to vector<4x16x128xf32>
    %78 = arith.mulf %73, %77 : vector<4x16x128xf32>
    %79 = arith.addf %72, %78 : vector<4x16x128xf32>
    %c1 = arith.constant 1 : index
    %c0_35 = arith.constant 0 : index
    %c0_36 = arith.constant 0 : index
    %80 = vector.load %arg12[%c1, %c0_35, %c0_36] : memref<22x32x128xf32, #tpu.memory_space<vmem>>, vector<4x32x128xf32>
    %81 = vector.extract_strided_slice %80 {offsets = [0, 5, 0], sizes = [4, 16, 128], strides = [1, 1, 1]} : vector<4x32x128xf32> to vector<4x16x128xf32>
    %82 = vector.extract_strided_slice %23 {offsets = [7, 0], sizes = [1, 128], strides = [1, 1]} : vector<49x128xf32> to vector<1x128xf32>
    %83 = vector.shape_cast %82 : vector<1x128xf32> to vector<128xf32>
    %84 = vector.shape_cast %83 : vector<128xf32> to vector<1x1x128xf32>
    %85 = vector.broadcast %84 : vector<1x1x128xf32> to vector<4x16x128xf32>
    %86 = arith.mulf %81, %85 : vector<4x16x128xf32>
    %87 = arith.addf %79, %86 : vector<4x16x128xf32>
    %88 = vector.extract_strided_slice %80 {offsets = [0, 6, 0], sizes = [4, 16, 128], strides = [1, 1, 1]} : vector<4x32x128xf32> to vector<4x16x128xf32>
    %89 = vector.extract_strided_slice %23 {offsets = [8, 0], sizes = [1, 128], strides = [1, 1]} : vector<49x128xf32> to vector<1x128xf32>
    %90 = vector.shape_cast %89 : vector<1x128xf32> to vector<128xf32>
    %91 = vector.shape_cast %90 : vector<128xf32> to vector<1x1x128xf32>
    %92 = vector.broadcast %91 : vector<1x1x128xf32> to vector<4x16x128xf32>
    %93 = arith.mulf %88, %92 : vector<4x16x128xf32>
    %94 = arith.addf %87, %93 : vector<4x16x128xf32>
    %95 = vector.extract_strided_slice %80 {offsets = [0, 7, 0], sizes = [4, 16, 128], strides = [1, 1, 1]} : vector<4x32x128xf32> to vector<4x16x128xf32>
    %96 = vector.extract_strided_slice %23 {offsets = [9, 0], sizes = [1, 128], strides = [1, 1]} : vector<49x128xf32> to vector<1x128xf32>
    %97 = vector.shape_cast %96 : vector<1x128xf32> to vector<128xf32>
    %98 = vector.shape_cast %97 : vector<128xf32> to vector<1x1x128xf32>
    %99 = vector.broadcast %98 : vector<1x1x128xf32> to vector<4x16x128xf32>
    %100 = arith.mulf %95, %99 : vector<4x16x128xf32>
    %101 = arith.addf %94, %100 : vector<4x16x128xf32>
    %102 = vector.extract_strided_slice %80 {offsets = [0, 8, 0], sizes = [4, 16, 128], strides = [1, 1, 1]} : vector<4x32x128xf32> to vector<4x16x128xf32>
    %103 = vector.extract_strided_slice %23 {offsets = [10, 0], sizes = [1, 128], strides = [1, 1]} : vector<49x128xf32> to vector<1x128xf32>
    %104 = vector.shape_cast %103 : vector<1x128xf32> to vector<128xf32>
    %105 = vector.shape_cast %104 : vector<128xf32> to vector<1x1x128xf32>
    %106 = vector.broadcast %105 : vector<1x1x128xf32> to vector<4x16x128xf32>
    %107 = arith.mulf %102, %106 : vector<4x16x128xf32>
    %108 = arith.addf %101, %107 : vector<4x16x128xf32>
    %109 = vector.extract_strided_slice %80 {offsets = [0, 9, 0], sizes = [4, 16, 128], strides = [1, 1, 1]} : vector<4x32x128xf32> to vector<4x16x128xf32>
    %110 = vector.extract_strided_slice %23 {offsets = [11, 0], sizes = [1, 128], strides = [1, 1]} : vector<49x128xf32> to vector<1x128xf32>
    %111 = vector.shape_cast %110 : vector<1x128xf32> to vector<128xf32>
    %112 = vector.shape_cast %111 : vector<128xf32> to vector<1x1x128xf32>
    %113 = vector.broadcast %112 : vector<1x1x128xf32> to vector<4x16x128xf32>
    %114 = arith.mulf %109, %113 : vector<4x16x128xf32>
    %115 = arith.addf %108, %114 : vector<4x16x128xf32>
    %116 = vector.extract_strided_slice %80 {offsets = [0, 10, 0], sizes = [4, 16, 128], strides = [1, 1, 1]} : vector<4x32x128xf32> to vector<4x16x128xf32>
    %117 = vector.extract_strided_slice %23 {offsets = [12, 0], sizes = [1, 128], strides = [1, 1]} : vector<49x128xf32> to vector<1x128xf32>
    %118 = vector.shape_cast %117 : vector<1x128xf32> to vector<128xf32>
    %119 = vector.shape_cast %118 : vector<128xf32> to vector<1x1x128xf32>
    %120 = vector.broadcast %119 : vector<1x1x128xf32> to vector<4x16x128xf32>
    %121 = arith.mulf %116, %120 : vector<4x16x128xf32>
    %122 = arith.addf %115, %121 : vector<4x16x128xf32>
    %123 = vector.extract_strided_slice %80 {offsets = [0, 11, 0], sizes = [4, 16, 128], strides = [1, 1, 1]} : vector<4x32x128xf32> to vector<4x16x128xf32>
    %124 = vector.extract_strided_slice %23 {offsets = [13, 0], sizes = [1, 128], strides = [1, 1]} : vector<49x128xf32> to vector<1x128xf32>
    %125 = vector.shape_cast %124 : vector<1x128xf32> to vector<128xf32>
    %126 = vector.shape_cast %125 : vector<128xf32> to vector<1x1x128xf32>
    %127 = vector.broadcast %126 : vector<1x1x128xf32> to vector<4x16x128xf32>
    %128 = arith.mulf %123, %127 : vector<4x16x128xf32>
    %129 = arith.addf %122, %128 : vector<4x16x128xf32>
    %c2 = arith.constant 2 : index
    %c0_37 = arith.constant 0 : index
    %c0_38 = arith.constant 0 : index
    %130 = vector.load %arg12[%c2, %c0_37, %c0_38] : memref<22x32x128xf32, #tpu.memory_space<vmem>>, vector<4x32x128xf32>
    %131 = vector.extract_strided_slice %130 {offsets = [0, 5, 0], sizes = [4, 16, 128], strides = [1, 1, 1]} : vector<4x32x128xf32> to vector<4x16x128xf32>
    %132 = vector.extract_strided_slice %23 {offsets = [14, 0], sizes = [1, 128], strides = [1, 1]} : vector<49x128xf32> to vector<1x128xf32>
    %133 = vector.shape_cast %132 : vector<1x128xf32> to vector<128xf32>
    %134 = vector.shape_cast %133 : vector<128xf32> to vector<1x1x128xf32>
    %135 = vector.broadcast %134 : vector<1x1x128xf32> to vector<4x16x128xf32>
    %136 = arith.mulf %131, %135 : vector<4x16x128xf32>
    %137 = arith.addf %129, %136 : vector<4x16x128xf32>
    %138 = vector.extract_strided_slice %130 {offsets = [0, 6, 0], sizes = [4, 16, 128], strides = [1, 1, 1]} : vector<4x32x128xf32> to vector<4x16x128xf32>
    %139 = vector.extract_strided_slice %23 {offsets = [15, 0], sizes = [1, 128], strides = [1, 1]} : vector<49x128xf32> to vector<1x128xf32>
    %140 = vector.shape_cast %139 : vector<1x128xf32> to vector<128xf32>
    %141 = vector.shape_cast %140 : vector<128xf32> to vector<1x1x128xf32>
    %142 = vector.broadcast %141 : vector<1x1x128xf32> to vector<4x16x128xf32>
    %143 = arith.mulf %138, %142 : vector<4x16x128xf32>
    %144 = arith.addf %137, %143 : vector<4x16x128xf32>
    %145 = vector.extract_strided_slice %130 {offsets = [0, 7, 0], sizes = [4, 16, 128], strides = [1, 1, 1]} : vector<4x32x128xf32> to vector<4x16x128xf32>
    %146 = vector.extract_strided_slice %23 {offsets = [16, 0], sizes = [1, 128], strides = [1, 1]} : vector<49x128xf32> to vector<1x128xf32>
    %147 = vector.shape_cast %146 : vector<1x128xf32> to vector<128xf32>
    %148 = vector.shape_cast %147 : vector<128xf32> to vector<1x1x128xf32>
    %149 = vector.broadcast %148 : vector<1x1x128xf32> to vector<4x16x128xf32>
    %150 = arith.mulf %145, %149 : vector<4x16x128xf32>
    %151 = arith.addf %144, %150 : vector<4x16x128xf32>
    %152 = vector.extract_strided_slice %130 {offsets = [0, 8, 0], sizes = [4, 16, 128], strides = [1, 1, 1]} : vector<4x32x128xf32> to vector<4x16x128xf32>
    %153 = vector.extract_strided_slice %23 {offsets = [17, 0], sizes = [1, 128], strides = [1, 1]} : vector<49x128xf32> to vector<1x128xf32>
    %154 = vector.shape_cast %153 : vector<1x128xf32> to vector<128xf32>
    %155 = vector.shape_cast %154 : vector<128xf32> to vector<1x1x128xf32>
    %156 = vector.broadcast %155 : vector<1x1x128xf32> to vector<4x16x128xf32>
    %157 = arith.mulf %152, %156 : vector<4x16x128xf32>
    %158 = arith.addf %151, %157 : vector<4x16x128xf32>
    %159 = vector.extract_strided_slice %130 {offsets = [0, 9, 0], sizes = [4, 16, 128], strides = [1, 1, 1]} : vector<4x32x128xf32> to vector<4x16x128xf32>
    %160 = vector.extract_strided_slice %23 {offsets = [18, 0], sizes = [1, 128], strides = [1, 1]} : vector<49x128xf32> to vector<1x128xf32>
    %161 = vector.shape_cast %160 : vector<1x128xf32> to vector<128xf32>
    %162 = vector.shape_cast %161 : vector<128xf32> to vector<1x1x128xf32>
    %163 = vector.broadcast %162 : vector<1x1x128xf32> to vector<4x16x128xf32>
    %164 = arith.mulf %159, %163 : vector<4x16x128xf32>
    %165 = arith.addf %158, %164 : vector<4x16x128xf32>
    %166 = vector.extract_strided_slice %130 {offsets = [0, 10, 0], sizes = [4, 16, 128], strides = [1, 1, 1]} : vector<4x32x128xf32> to vector<4x16x128xf32>
    %167 = vector.extract_strided_slice %23 {offsets = [19, 0], sizes = [1, 128], strides = [1, 1]} : vector<49x128xf32> to vector<1x128xf32>
    %168 = vector.shape_cast %167 : vector<1x128xf32> to vector<128xf32>
    %169 = vector.shape_cast %168 : vector<128xf32> to vector<1x1x128xf32>
    %170 = vector.broadcast %169 : vector<1x1x128xf32> to vector<4x16x128xf32>
    %171 = arith.mulf %166, %170 : vector<4x16x128xf32>
    %172 = arith.addf %165, %171 : vector<4x16x128xf32>
    %173 = vector.extract_strided_slice %130 {offsets = [0, 11, 0], sizes = [4, 16, 128], strides = [1, 1, 1]} : vector<4x32x128xf32> to vector<4x16x128xf32>
    %174 = vector.extract_strided_slice %23 {offsets = [20, 0], sizes = [1, 128], strides = [1, 1]} : vector<49x128xf32> to vector<1x128xf32>
    %175 = vector.shape_cast %174 : vector<1x128xf32> to vector<128xf32>
    %176 = vector.shape_cast %175 : vector<128xf32> to vector<1x1x128xf32>
    %177 = vector.broadcast %176 : vector<1x1x128xf32> to vector<4x16x128xf32>
    %178 = arith.mulf %173, %177 : vector<4x16x128xf32>
    %179 = arith.addf %172, %178 : vector<4x16x128xf32>
    %c3_39 = arith.constant 3 : index
    %c0_40 = arith.constant 0 : index
    %c0_41 = arith.constant 0 : index
    %180 = vector.load %arg12[%c3_39, %c0_40, %c0_41] : memref<22x32x128xf32, #tpu.memory_space<vmem>>, vector<4x32x128xf32>
    %181 = vector.extract_strided_slice %180 {offsets = [0, 5, 0], sizes = [4, 16, 128], strides = [1, 1, 1]} : vector<4x32x128xf32> to vector<4x16x128xf32>
    %182 = vector.extract_strided_slice %23 {offsets = [21, 0], sizes = [1, 128], strides = [1, 1]} : vector<49x128xf32> to vector<1x128xf32>
    %183 = vector.shape_cast %182 : vector<1x128xf32> to vector<128xf32>
    %184 = vector.shape_cast %183 : vector<128xf32> to vector<1x1x128xf32>
    %185 = vector.broadcast %184 : vector<1x1x128xf32> to vector<4x16x128xf32>
    %186 = arith.mulf %181, %185 : vector<4x16x128xf32>
    %187 = arith.addf %179, %186 : vector<4x16x128xf32>
    %188 = vector.extract_strided_slice %180 {offsets = [0, 6, 0], sizes = [4, 16, 128], strides = [1, 1, 1]} : vector<4x32x128xf32> to vector<4x16x128xf32>
    %189 = vector.extract_strided_slice %23 {offsets = [22, 0], sizes = [1, 128], strides = [1, 1]} : vector<49x128xf32> to vector<1x128xf32>
    %190 = vector.shape_cast %189 : vector<1x128xf32> to vector<128xf32>
    %191 = vector.shape_cast %190 : vector<128xf32> to vector<1x1x128xf32>
    %192 = vector.broadcast %191 : vector<1x1x128xf32> to vector<4x16x128xf32>
    %193 = arith.mulf %188, %192 : vector<4x16x128xf32>
    %194 = arith.addf %187, %193 : vector<4x16x128xf32>
    %195 = vector.extract_strided_slice %180 {offsets = [0, 7, 0], sizes = [4, 16, 128], strides = [1, 1, 1]} : vector<4x32x128xf32> to vector<4x16x128xf32>
    %196 = vector.extract_strided_slice %23 {offsets = [23, 0], sizes = [1, 128], strides = [1, 1]} : vector<49x128xf32> to vector<1x128xf32>
    %197 = vector.shape_cast %196 : vector<1x128xf32> to vector<128xf32>
    %198 = vector.shape_cast %197 : vector<128xf32> to vector<1x1x128xf32>
    %199 = vector.broadcast %198 : vector<1x1x128xf32> to vector<4x16x128xf32>
    %200 = arith.mulf %195, %199 : vector<4x16x128xf32>
    %201 = arith.addf %194, %200 : vector<4x16x128xf32>
    %202 = vector.extract_strided_slice %180 {offsets = [0, 8, 0], sizes = [4, 16, 128], strides = [1, 1, 1]} : vector<4x32x128xf32> to vector<4x16x128xf32>
    %203 = vector.extract_strided_slice %23 {offsets = [24, 0], sizes = [1, 128], strides = [1, 1]} : vector<49x128xf32> to vector<1x128xf32>
    %204 = vector.shape_cast %203 : vector<1x128xf32> to vector<128xf32>
    %205 = vector.shape_cast %204 : vector<128xf32> to vector<1x1x128xf32>
    %206 = vector.broadcast %205 : vector<1x1x128xf32> to vector<4x16x128xf32>
    %207 = arith.mulf %202, %206 : vector<4x16x128xf32>
    %208 = arith.addf %201, %207 : vector<4x16x128xf32>
    %209 = vector.extract_strided_slice %180 {offsets = [0, 9, 0], sizes = [4, 16, 128], strides = [1, 1, 1]} : vector<4x32x128xf32> to vector<4x16x128xf32>
    %210 = vector.extract_strided_slice %23 {offsets = [25, 0], sizes = [1, 128], strides = [1, 1]} : vector<49x128xf32> to vector<1x128xf32>
    %211 = vector.shape_cast %210 : vector<1x128xf32> to vector<128xf32>
    %212 = vector.shape_cast %211 : vector<128xf32> to vector<1x1x128xf32>
    %213 = vector.broadcast %212 : vector<1x1x128xf32> to vector<4x16x128xf32>
    %214 = arith.mulf %209, %213 : vector<4x16x128xf32>
    %215 = arith.addf %208, %214 : vector<4x16x128xf32>
    %216 = vector.extract_strided_slice %180 {offsets = [0, 10, 0], sizes = [4, 16, 128], strides = [1, 1, 1]} : vector<4x32x128xf32> to vector<4x16x128xf32>
    %217 = vector.extract_strided_slice %23 {offsets = [26, 0], sizes = [1, 128], strides = [1, 1]} : vector<49x128xf32> to vector<1x128xf32>
    %218 = vector.shape_cast %217 : vector<1x128xf32> to vector<128xf32>
    %219 = vector.shape_cast %218 : vector<128xf32> to vector<1x1x128xf32>
    %220 = vector.broadcast %219 : vector<1x1x128xf32> to vector<4x16x128xf32>
    %221 = arith.mulf %216, %220 : vector<4x16x128xf32>
    %222 = arith.addf %215, %221 : vector<4x16x128xf32>
    %223 = vector.extract_strided_slice %180 {offsets = [0, 11, 0], sizes = [4, 16, 128], strides = [1, 1, 1]} : vector<4x32x128xf32> to vector<4x16x128xf32>
    %224 = vector.extract_strided_slice %23 {offsets = [27, 0], sizes = [1, 128], strides = [1, 1]} : vector<49x128xf32> to vector<1x128xf32>
    %225 = vector.shape_cast %224 : vector<1x128xf32> to vector<128xf32>
    %226 = vector.shape_cast %225 : vector<128xf32> to vector<1x1x128xf32>
    %227 = vector.broadcast %226 : vector<1x1x128xf32> to vector<4x16x128xf32>
    %228 = arith.mulf %223, %227 : vector<4x16x128xf32>
    %229 = arith.addf %222, %228 : vector<4x16x128xf32>
    %c4 = arith.constant 4 : index
    %c0_42 = arith.constant 0 : index
    %c0_43 = arith.constant 0 : index
    %230 = vector.load %arg12[%c4, %c0_42, %c0_43] : memref<22x32x128xf32, #tpu.memory_space<vmem>>, vector<4x32x128xf32>
    %231 = vector.extract_strided_slice %230 {offsets = [0, 5, 0], sizes = [4, 16, 128], strides = [1, 1, 1]} : vector<4x32x128xf32> to vector<4x16x128xf32>
    %232 = vector.extract_strided_slice %23 {offsets = [28, 0], sizes = [1, 128], strides = [1, 1]} : vector<49x128xf32> to vector<1x128xf32>
    %233 = vector.shape_cast %232 : vector<1x128xf32> to vector<128xf32>
    %234 = vector.shape_cast %233 : vector<128xf32> to vector<1x1x128xf32>
    %235 = vector.broadcast %234 : vector<1x1x128xf32> to vector<4x16x128xf32>
    %236 = arith.mulf %231, %235 : vector<4x16x128xf32>
    %237 = arith.addf %229, %236 : vector<4x16x128xf32>
    %238 = vector.extract_strided_slice %230 {offsets = [0, 6, 0], sizes = [4, 16, 128], strides = [1, 1, 1]} : vector<4x32x128xf32> to vector<4x16x128xf32>
    %239 = vector.extract_strided_slice %23 {offsets = [29, 0], sizes = [1, 128], strides = [1, 1]} : vector<49x128xf32> to vector<1x128xf32>
    %240 = vector.shape_cast %239 : vector<1x128xf32> to vector<128xf32>
    %241 = vector.shape_cast %240 : vector<128xf32> to vector<1x1x128xf32>
    %242 = vector.broadcast %241 : vector<1x1x128xf32> to vector<4x16x128xf32>
    %243 = arith.mulf %238, %242 : vector<4x16x128xf32>
    %244 = arith.addf %237, %243 : vector<4x16x128xf32>
    %245 = vector.extract_strided_slice %230 {offsets = [0, 7, 0], sizes = [4, 16, 128], strides = [1, 1, 1]} : vector<4x32x128xf32> to vector<4x16x128xf32>
    %246 = vector.extract_strided_slice %23 {offsets = [30, 0], sizes = [1, 128], strides = [1, 1]} : vector<49x128xf32> to vector<1x128xf32>
    %247 = vector.shape_cast %246 : vector<1x128xf32> to vector<128xf32>
    %248 = vector.shape_cast %247 : vector<128xf32> to vector<1x1x128xf32>
    %249 = vector.broadcast %248 : vector<1x1x128xf32> to vector<4x16x128xf32>
    %250 = arith.mulf %245, %249 : vector<4x16x128xf32>
    %251 = arith.addf %244, %250 : vector<4x16x128xf32>
    %252 = vector.extract_strided_slice %230 {offsets = [0, 8, 0], sizes = [4, 16, 128], strides = [1, 1, 1]} : vector<4x32x128xf32> to vector<4x16x128xf32>
    %253 = vector.extract_strided_slice %23 {offsets = [31, 0], sizes = [1, 128], strides = [1, 1]} : vector<49x128xf32> to vector<1x128xf32>
    %254 = vector.shape_cast %253 : vector<1x128xf32> to vector<128xf32>
    %255 = vector.shape_cast %254 : vector<128xf32> to vector<1x1x128xf32>
    %256 = vector.broadcast %255 : vector<1x1x128xf32> to vector<4x16x128xf32>
    %257 = arith.mulf %252, %256 : vector<4x16x128xf32>
    %258 = arith.addf %251, %257 : vector<4x16x128xf32>
    %259 = vector.extract_strided_slice %230 {offsets = [0, 9, 0], sizes = [4, 16, 128], strides = [1, 1, 1]} : vector<4x32x128xf32> to vector<4x16x128xf32>
    %260 = vector.extract_strided_slice %23 {offsets = [32, 0], sizes = [1, 128], strides = [1, 1]} : vector<49x128xf32> to vector<1x128xf32>
    %261 = vector.shape_cast %260 : vector<1x128xf32> to vector<128xf32>
    %262 = vector.shape_cast %261 : vector<128xf32> to vector<1x1x128xf32>
    %263 = vector.broadcast %262 : vector<1x1x128xf32> to vector<4x16x128xf32>
    %264 = arith.mulf %259, %263 : vector<4x16x128xf32>
    %265 = arith.addf %258, %264 : vector<4x16x128xf32>
    %266 = vector.extract_strided_slice %230 {offsets = [0, 10, 0], sizes = [4, 16, 128], strides = [1, 1, 1]} : vector<4x32x128xf32> to vector<4x16x128xf32>
    %267 = vector.extract_strided_slice %23 {offsets = [33, 0], sizes = [1, 128], strides = [1, 1]} : vector<49x128xf32> to vector<1x128xf32>
    %268 = vector.shape_cast %267 : vector<1x128xf32> to vector<128xf32>
    %269 = vector.shape_cast %268 : vector<128xf32> to vector<1x1x128xf32>
    %270 = vector.broadcast %269 : vector<1x1x128xf32> to vector<4x16x128xf32>
    %271 = arith.mulf %266, %270 : vector<4x16x128xf32>
    %272 = arith.addf %265, %271 : vector<4x16x128xf32>
    %273 = vector.extract_strided_slice %230 {offsets = [0, 11, 0], sizes = [4, 16, 128], strides = [1, 1, 1]} : vector<4x32x128xf32> to vector<4x16x128xf32>
    %274 = vector.extract_strided_slice %23 {offsets = [34, 0], sizes = [1, 128], strides = [1, 1]} : vector<49x128xf32> to vector<1x128xf32>
    %275 = vector.shape_cast %274 : vector<1x128xf32> to vector<128xf32>
    %276 = vector.shape_cast %275 : vector<128xf32> to vector<1x1x128xf32>
    %277 = vector.broadcast %276 : vector<1x1x128xf32> to vector<4x16x128xf32>
    %278 = arith.mulf %273, %277 : vector<4x16x128xf32>
    %279 = arith.addf %272, %278 : vector<4x16x128xf32>
    %c5 = arith.constant 5 : index
    %c0_44 = arith.constant 0 : index
    %c0_45 = arith.constant 0 : index
    %280 = vector.load %arg12[%c5, %c0_44, %c0_45] : memref<22x32x128xf32, #tpu.memory_space<vmem>>, vector<4x32x128xf32>
    %281 = vector.extract_strided_slice %280 {offsets = [0, 5, 0], sizes = [4, 16, 128], strides = [1, 1, 1]} : vector<4x32x128xf32> to vector<4x16x128xf32>
    %282 = vector.extract_strided_slice %23 {offsets = [35, 0], sizes = [1, 128], strides = [1, 1]} : vector<49x128xf32> to vector<1x128xf32>
    %283 = vector.shape_cast %282 : vector<1x128xf32> to vector<128xf32>
    %284 = vector.shape_cast %283 : vector<128xf32> to vector<1x1x128xf32>
    %285 = vector.broadcast %284 : vector<1x1x128xf32> to vector<4x16x128xf32>
    %286 = arith.mulf %281, %285 : vector<4x16x128xf32>
    %287 = arith.addf %279, %286 : vector<4x16x128xf32>
    %288 = vector.extract_strided_slice %280 {offsets = [0, 6, 0], sizes = [4, 16, 128], strides = [1, 1, 1]} : vector<4x32x128xf32> to vector<4x16x128xf32>
    %289 = vector.extract_strided_slice %23 {offsets = [36, 0], sizes = [1, 128], strides = [1, 1]} : vector<49x128xf32> to vector<1x128xf32>
    %290 = vector.shape_cast %289 : vector<1x128xf32> to vector<128xf32>
    %291 = vector.shape_cast %290 : vector<128xf32> to vector<1x1x128xf32>
    %292 = vector.broadcast %291 : vector<1x1x128xf32> to vector<4x16x128xf32>
    %293 = arith.mulf %288, %292 : vector<4x16x128xf32>
    %294 = arith.addf %287, %293 : vector<4x16x128xf32>
    %295 = vector.extract_strided_slice %280 {offsets = [0, 7, 0], sizes = [4, 16, 128], strides = [1, 1, 1]} : vector<4x32x128xf32> to vector<4x16x128xf32>
    %296 = vector.extract_strided_slice %23 {offsets = [37, 0], sizes = [1, 128], strides = [1, 1]} : vector<49x128xf32> to vector<1x128xf32>
    %297 = vector.shape_cast %296 : vector<1x128xf32> to vector<128xf32>
    %298 = vector.shape_cast %297 : vector<128xf32> to vector<1x1x128xf32>
    %299 = vector.broadcast %298 : vector<1x1x128xf32> to vector<4x16x128xf32>
    %300 = arith.mulf %295, %299 : vector<4x16x128xf32>
    %301 = arith.addf %294, %300 : vector<4x16x128xf32>
    %302 = vector.extract_strided_slice %280 {offsets = [0, 8, 0], sizes = [4, 16, 128], strides = [1, 1, 1]} : vector<4x32x128xf32> to vector<4x16x128xf32>
    %303 = vector.extract_strided_slice %23 {offsets = [38, 0], sizes = [1, 128], strides = [1, 1]} : vector<49x128xf32> to vector<1x128xf32>
    %304 = vector.shape_cast %303 : vector<1x128xf32> to vector<128xf32>
    %305 = vector.shape_cast %304 : vector<128xf32> to vector<1x1x128xf32>
    %306 = vector.broadcast %305 : vector<1x1x128xf32> to vector<4x16x128xf32>
    %307 = arith.mulf %302, %306 : vector<4x16x128xf32>
    %308 = arith.addf %301, %307 : vector<4x16x128xf32>
    %309 = vector.extract_strided_slice %280 {offsets = [0, 9, 0], sizes = [4, 16, 128], strides = [1, 1, 1]} : vector<4x32x128xf32> to vector<4x16x128xf32>
    %310 = vector.extract_strided_slice %23 {offsets = [39, 0], sizes = [1, 128], strides = [1, 1]} : vector<49x128xf32> to vector<1x128xf32>
    %311 = vector.shape_cast %310 : vector<1x128xf32> to vector<128xf32>
    %312 = vector.shape_cast %311 : vector<128xf32> to vector<1x1x128xf32>
    %313 = vector.broadcast %312 : vector<1x1x128xf32> to vector<4x16x128xf32>
    %314 = arith.mulf %309, %313 : vector<4x16x128xf32>
    %315 = arith.addf %308, %314 : vector<4x16x128xf32>
    %316 = vector.extract_strided_slice %280 {offsets = [0, 10, 0], sizes = [4, 16, 128], strides = [1, 1, 1]} : vector<4x32x128xf32> to vector<4x16x128xf32>
    %317 = vector.extract_strided_slice %23 {offsets = [40, 0], sizes = [1, 128], strides = [1, 1]} : vector<49x128xf32> to vector<1x128xf32>
    %318 = vector.shape_cast %317 : vector<1x128xf32> to vector<128xf32>
    %319 = vector.shape_cast %318 : vector<128xf32> to vector<1x1x128xf32>
    %320 = vector.broadcast %319 : vector<1x1x128xf32> to vector<4x16x128xf32>
    %321 = arith.mulf %316, %320 : vector<4x16x128xf32>
    %322 = arith.addf %315, %321 : vector<4x16x128xf32>
    %323 = vector.extract_strided_slice %280 {offsets = [0, 11, 0], sizes = [4, 16, 128], strides = [1, 1, 1]} : vector<4x32x128xf32> to vector<4x16x128xf32>
    %324 = vector.extract_strided_slice %23 {offsets = [41, 0], sizes = [1, 128], strides = [1, 1]} : vector<49x128xf32> to vector<1x128xf32>
    %325 = vector.shape_cast %324 : vector<1x128xf32> to vector<128xf32>
    %326 = vector.shape_cast %325 : vector<128xf32> to vector<1x1x128xf32>
    %327 = vector.broadcast %326 : vector<1x1x128xf32> to vector<4x16x128xf32>
    %328 = arith.mulf %323, %327 : vector<4x16x128xf32>
    %329 = arith.addf %322, %328 : vector<4x16x128xf32>
    %c6 = arith.constant 6 : index
    %c0_46 = arith.constant 0 : index
    %c0_47 = arith.constant 0 : index
    %330 = vector.load %arg12[%c6, %c0_46, %c0_47] : memref<22x32x128xf32, #tpu.memory_space<vmem>>, vector<4x32x128xf32>
    %331 = vector.extract_strided_slice %330 {offsets = [0, 5, 0], sizes = [4, 16, 128], strides = [1, 1, 1]} : vector<4x32x128xf32> to vector<4x16x128xf32>
    %332 = vector.extract_strided_slice %23 {offsets = [42, 0], sizes = [1, 128], strides = [1, 1]} : vector<49x128xf32> to vector<1x128xf32>
    %333 = vector.shape_cast %332 : vector<1x128xf32> to vector<128xf32>
    %334 = vector.shape_cast %333 : vector<128xf32> to vector<1x1x128xf32>
    %335 = vector.broadcast %334 : vector<1x1x128xf32> to vector<4x16x128xf32>
    %336 = arith.mulf %331, %335 : vector<4x16x128xf32>
    %337 = arith.addf %329, %336 : vector<4x16x128xf32>
    %338 = vector.extract_strided_slice %330 {offsets = [0, 6, 0], sizes = [4, 16, 128], strides = [1, 1, 1]} : vector<4x32x128xf32> to vector<4x16x128xf32>
    %339 = vector.extract_strided_slice %23 {offsets = [43, 0], sizes = [1, 128], strides = [1, 1]} : vector<49x128xf32> to vector<1x128xf32>
    %340 = vector.shape_cast %339 : vector<1x128xf32> to vector<128xf32>
    %341 = vector.shape_cast %340 : vector<128xf32> to vector<1x1x128xf32>
    %342 = vector.broadcast %341 : vector<1x1x128xf32> to vector<4x16x128xf32>
    %343 = arith.mulf %338, %342 : vector<4x16x128xf32>
    %344 = arith.addf %337, %343 : vector<4x16x128xf32>
    %345 = vector.extract_strided_slice %330 {offsets = [0, 7, 0], sizes = [4, 16, 128], strides = [1, 1, 1]} : vector<4x32x128xf32> to vector<4x16x128xf32>
    %346 = vector.extract_strided_slice %23 {offsets = [44, 0], sizes = [1, 128], strides = [1, 1]} : vector<49x128xf32> to vector<1x128xf32>
    %347 = vector.shape_cast %346 : vector<1x128xf32> to vector<128xf32>
    %348 = vector.shape_cast %347 : vector<128xf32> to vector<1x1x128xf32>
    %349 = vector.broadcast %348 : vector<1x1x128xf32> to vector<4x16x128xf32>
    %350 = arith.mulf %345, %349 : vector<4x16x128xf32>
    %351 = arith.addf %344, %350 : vector<4x16x128xf32>
    %352 = vector.extract_strided_slice %330 {offsets = [0, 8, 0], sizes = [4, 16, 128], strides = [1, 1, 1]} : vector<4x32x128xf32> to vector<4x16x128xf32>
    %353 = vector.extract_strided_slice %23 {offsets = [45, 0], sizes = [1, 128], strides = [1, 1]} : vector<49x128xf32> to vector<1x128xf32>
    %354 = vector.shape_cast %353 : vector<1x128xf32> to vector<128xf32>
    %355 = vector.shape_cast %354 : vector<128xf32> to vector<1x1x128xf32>
    %356 = vector.broadcast %355 : vector<1x1x128xf32> to vector<4x16x128xf32>
    %357 = arith.mulf %352, %356 : vector<4x16x128xf32>
    %358 = arith.addf %351, %357 : vector<4x16x128xf32>
    %359 = vector.extract_strided_slice %330 {offsets = [0, 9, 0], sizes = [4, 16, 128], strides = [1, 1, 1]} : vector<4x32x128xf32> to vector<4x16x128xf32>
    %360 = vector.extract_strided_slice %23 {offsets = [46, 0], sizes = [1, 128], strides = [1, 1]} : vector<49x128xf32> to vector<1x128xf32>
    %361 = vector.shape_cast %360 : vector<1x128xf32> to vector<128xf32>
    %362 = vector.shape_cast %361 : vector<128xf32> to vector<1x1x128xf32>
    %363 = vector.broadcast %362 : vector<1x1x128xf32> to vector<4x16x128xf32>
    %364 = arith.mulf %359, %363 : vector<4x16x128xf32>
    %365 = arith.addf %358, %364 : vector<4x16x128xf32>
    %366 = vector.extract_strided_slice %330 {offsets = [0, 10, 0], sizes = [4, 16, 128], strides = [1, 1, 1]} : vector<4x32x128xf32> to vector<4x16x128xf32>
    %367 = vector.extract_strided_slice %23 {offsets = [47, 0], sizes = [1, 128], strides = [1, 1]} : vector<49x128xf32> to vector<1x128xf32>
    %368 = vector.shape_cast %367 : vector<1x128xf32> to vector<128xf32>
    %369 = vector.shape_cast %368 : vector<128xf32> to vector<1x1x128xf32>
    %370 = vector.broadcast %369 : vector<1x1x128xf32> to vector<4x16x128xf32>
    %371 = arith.mulf %366, %370 : vector<4x16x128xf32>
    %372 = arith.addf %365, %371 : vector<4x16x128xf32>
    %373 = vector.extract_strided_slice %330 {offsets = [0, 11, 0], sizes = [4, 16, 128], strides = [1, 1, 1]} : vector<4x32x128xf32> to vector<4x16x128xf32>
    %374 = vector.extract_strided_slice %23 {offsets = [48, 0], sizes = [1, 128], strides = [1, 1]} : vector<49x128xf32> to vector<1x128xf32>
    %375 = vector.shape_cast %374 : vector<1x128xf32> to vector<128xf32>
    %376 = vector.shape_cast %375 : vector<128xf32> to vector<1x1x128xf32>
    %377 = vector.broadcast %376 : vector<1x1x128xf32> to vector<4x16x128xf32>
    %378 = arith.mulf %373, %377 : vector<4x16x128xf32>
    %379 = arith.addf %372, %378 : vector<4x16x128xf32>
    %380 = vector.shape_cast %12 : vector<128xf32> to vector<1x1x128xf32>
    %381 = vector.broadcast %380 : vector<1x1x128xf32> to vector<4x16x128xf32>
    %382 = arith.addf %379, %381 : vector<4x16x128xf32>
    %c0_i32 = arith.constant 0 : i32
    %c3_i32 = arith.constant 3 : i32
    %383 = arith.addi %c0_i32, %c3_i32 : i32
    %c1_i32 = arith.constant 1 : i32
    %384 = scf.for %arg13 = %c0_i32 to %383 step %c1_i32 iter_args(%arg14 = %382) -> (vector<4x16x128xf32>)  : i32 {
      %c1_i32_70 = arith.constant 1 : i32
      %443 = arith.addi %arg13, %c1_i32_70 : i32
      %c4_i32 = arith.constant 4 : i32
      %444 = arith.muli %443, %c4_i32 : i32
      %cst_71 = arith.constant 0.000000e+00 : f32
      %445 = vector.broadcast %cst_71 : f32 to vector<4x16x128xf32>
      %c0_i32_72 = arith.constant 0 : i32
      %446 = arith.addi %444, %c0_i32_72 : i32
      %447 = arith.index_cast %446 : i32 to index
      %c0_73 = arith.constant 0 : index
      %c0_74 = arith.constant 0 : index
      %448 = vector.load %arg12[%447, %c0_73, %c0_74] : memref<22x32x128xf32, #tpu.memory_space<vmem>>, vector<4x32x128xf32>
      %449 = vector.extract_strided_slice %448 {offsets = [0, 5, 0], sizes = [4, 16, 128], strides = [1, 1, 1]} : vector<4x32x128xf32> to vector<4x16x128xf32>
      %450 = vector.extract_strided_slice %23 {offsets = [0, 0], sizes = [1, 128], strides = [1, 1]} : vector<49x128xf32> to vector<1x128xf32>
      %451 = vector.shape_cast %450 : vector<1x128xf32> to vector<128xf32>
      %452 = vector.shape_cast %451 : vector<128xf32> to vector<1x1x128xf32>
      %453 = vector.broadcast %452 : vector<1x1x128xf32> to vector<4x16x128xf32>
      %454 = arith.mulf %449, %453 : vector<4x16x128xf32>
      %455 = arith.addf %445, %454 : vector<4x16x128xf32>
      %456 = vector.extract_strided_slice %448 {offsets = [0, 6, 0], sizes = [4, 16, 128], strides = [1, 1, 1]} : vector<4x32x128xf32> to vector<4x16x128xf32>
      %457 = vector.extract_strided_slice %23 {offsets = [1, 0], sizes = [1, 128], strides = [1, 1]} : vector<49x128xf32> to vector<1x128xf32>
      %458 = vector.shape_cast %457 : vector<1x128xf32> to vector<128xf32>
      %459 = vector.shape_cast %458 : vector<128xf32> to vector<1x1x128xf32>
      %460 = vector.broadcast %459 : vector<1x1x128xf32> to vector<4x16x128xf32>
      %461 = arith.mulf %456, %460 : vector<4x16x128xf32>
      %462 = arith.addf %455, %461 : vector<4x16x128xf32>
      %463 = vector.extract_strided_slice %448 {offsets = [0, 7, 0], sizes = [4, 16, 128], strides = [1, 1, 1]} : vector<4x32x128xf32> to vector<4x16x128xf32>
      %464 = vector.extract_strided_slice %23 {offsets = [2, 0], sizes = [1, 128], strides = [1, 1]} : vector<49x128xf32> to vector<1x128xf32>
      %465 = vector.shape_cast %464 : vector<1x128xf32> to vector<128xf32>
      %466 = vector.shape_cast %465 : vector<128xf32> to vector<1x1x128xf32>
      %467 = vector.broadcast %466 : vector<1x1x128xf32> to vector<4x16x128xf32>
      %468 = arith.mulf %463, %467 : vector<4x16x128xf32>
      %469 = arith.addf %462, %468 : vector<4x16x128xf32>
      %470 = vector.extract_strided_slice %448 {offsets = [0, 8, 0], sizes = [4, 16, 128], strides = [1, 1, 1]} : vector<4x32x128xf32> to vector<4x16x128xf32>
      %471 = vector.extract_strided_slice %23 {offsets = [3, 0], sizes = [1, 128], strides = [1, 1]} : vector<49x128xf32> to vector<1x128xf32>
      %472 = vector.shape_cast %471 : vector<1x128xf32> to vector<128xf32>
      %473 = vector.shape_cast %472 : vector<128xf32> to vector<1x1x128xf32>
      %474 = vector.broadcast %473 : vector<1x1x128xf32> to vector<4x16x128xf32>
      %475 = arith.mulf %470, %474 : vector<4x16x128xf32>
      %476 = arith.addf %469, %475 : vector<4x16x128xf32>
      %477 = vector.extract_strided_slice %448 {offsets = [0, 9, 0], sizes = [4, 16, 128], strides = [1, 1, 1]} : vector<4x32x128xf32> to vector<4x16x128xf32>
      %478 = vector.extract_strided_slice %23 {offsets = [4, 0], sizes = [1, 128], strides = [1, 1]} : vector<49x128xf32> to vector<1x128xf32>
      %479 = vector.shape_cast %478 : vector<1x128xf32> to vector<128xf32>
      %480 = vector.shape_cast %479 : vector<128xf32> to vector<1x1x128xf32>
      %481 = vector.broadcast %480 : vector<1x1x128xf32> to vector<4x16x128xf32>
      %482 = arith.mulf %477, %481 : vector<4x16x128xf32>
      %483 = arith.addf %476, %482 : vector<4x16x128xf32>
      %484 = vector.extract_strided_slice %448 {offsets = [0, 10, 0], sizes = [4, 16, 128], strides = [1, 1, 1]} : vector<4x32x128xf32> to vector<4x16x128xf32>
      %485 = vector.extract_strided_slice %23 {offsets = [5, 0], sizes = [1, 128], strides = [1, 1]} : vector<49x128xf32> to vector<1x128xf32>
      %486 = vector.shape_cast %485 : vector<1x128xf32> to vector<128xf32>
      %487 = vector.shape_cast %486 : vector<128xf32> to vector<1x1x128xf32>
      %488 = vector.broadcast %487 : vector<1x1x128xf32> to vector<4x16x128xf32>
      %489 = arith.mulf %484, %488 : vector<4x16x128xf32>
      %490 = arith.addf %483, %489 : vector<4x16x128xf32>
      %491 = vector.extract_strided_slice %448 {offsets = [0, 11, 0], sizes = [4, 16, 128], strides = [1, 1, 1]} : vector<4x32x128xf32> to vector<4x16x128xf32>
      %492 = vector.extract_strided_slice %23 {offsets = [6, 0], sizes = [1, 128], strides = [1, 1]} : vector<49x128xf32> to vector<1x128xf32>
      %493 = vector.shape_cast %492 : vector<1x128xf32> to vector<128xf32>
      %494 = vector.shape_cast %493 : vector<128xf32> to vector<1x1x128xf32>
      %495 = vector.broadcast %494 : vector<1x1x128xf32> to vector<4x16x128xf32>
      %496 = arith.mulf %491, %495 : vector<4x16x128xf32>
      %497 = arith.addf %490, %496 : vector<4x16x128xf32>
      %c1_i32_75 = arith.constant 1 : i32
      %498 = arith.addi %444, %c1_i32_75 : i32
      %499 = arith.index_cast %498 : i32 to index
      %c0_76 = arith.constant 0 : index
      %c0_77 = arith.constant 0 : index
      %500 = vector.load %arg12[%499, %c0_76, %c0_77] : memref<22x32x128xf32, #tpu.memory_space<vmem>>, vector<4x32x128xf32>
      %501 = vector.extract_strided_slice %500 {offsets = [0, 5, 0], sizes = [4, 16, 128], strides = [1, 1, 1]} : vector<4x32x128xf32> to vector<4x16x128xf32>
      %502 = vector.extract_strided_slice %23 {offsets = [7, 0], sizes = [1, 128], strides = [1, 1]} : vector<49x128xf32> to vector<1x128xf32>
      %503 = vector.shape_cast %502 : vector<1x128xf32> to vector<128xf32>
      %504 = vector.shape_cast %503 : vector<128xf32> to vector<1x1x128xf32>
      %505 = vector.broadcast %504 : vector<1x1x128xf32> to vector<4x16x128xf32>
      %506 = arith.mulf %501, %505 : vector<4x16x128xf32>
      %507 = arith.addf %497, %506 : vector<4x16x128xf32>
      %508 = vector.extract_strided_slice %500 {offsets = [0, 6, 0], sizes = [4, 16, 128], strides = [1, 1, 1]} : vector<4x32x128xf32> to vector<4x16x128xf32>
      %509 = vector.extract_strided_slice %23 {offsets = [8, 0], sizes = [1, 128], strides = [1, 1]} : vector<49x128xf32> to vector<1x128xf32>
      %510 = vector.shape_cast %509 : vector<1x128xf32> to vector<128xf32>
      %511 = vector.shape_cast %510 : vector<128xf32> to vector<1x1x128xf32>
      %512 = vector.broadcast %511 : vector<1x1x128xf32> to vector<4x16x128xf32>
      %513 = arith.mulf %508, %512 : vector<4x16x128xf32>
      %514 = arith.addf %507, %513 : vector<4x16x128xf32>
      %515 = vector.extract_strided_slice %500 {offsets = [0, 7, 0], sizes = [4, 16, 128], strides = [1, 1, 1]} : vector<4x32x128xf32> to vector<4x16x128xf32>
      %516 = vector.extract_strided_slice %23 {offsets = [9, 0], sizes = [1, 128], strides = [1, 1]} : vector<49x128xf32> to vector<1x128xf32>
      %517 = vector.shape_cast %516 : vector<1x128xf32> to vector<128xf32>
      %518 = vector.shape_cast %517 : vector<128xf32> to vector<1x1x128xf32>
      %519 = vector.broadcast %518 : vector<1x1x128xf32> to vector<4x16x128xf32>
      %520 = arith.mulf %515, %519 : vector<4x16x128xf32>
      %521 = arith.addf %514, %520 : vector<4x16x128xf32>
      %522 = vector.extract_strided_slice %500 {offsets = [0, 8, 0], sizes = [4, 16, 128], strides = [1, 1, 1]} : vector<4x32x128xf32> to vector<4x16x128xf32>
      %523 = vector.extract_strided_slice %23 {offsets = [10, 0], sizes = [1, 128], strides = [1, 1]} : vector<49x128xf32> to vector<1x128xf32>
      %524 = vector.shape_cast %523 : vector<1x128xf32> to vector<128xf32>
      %525 = vector.shape_cast %524 : vector<128xf32> to vector<1x1x128xf32>
      %526 = vector.broadcast %525 : vector<1x1x128xf32> to vector<4x16x128xf32>
      %527 = arith.mulf %522, %526 : vector<4x16x128xf32>
      %528 = arith.addf %521, %527 : vector<4x16x128xf32>
      %529 = vector.extract_strided_slice %500 {offsets = [0, 9, 0], sizes = [4, 16, 128], strides = [1, 1, 1]} : vector<4x32x128xf32> to vector<4x16x128xf32>
      %530 = vector.extract_strided_slice %23 {offsets = [11, 0], sizes = [1, 128], strides = [1, 1]} : vector<49x128xf32> to vector<1x128xf32>
      %531 = vector.shape_cast %530 : vector<1x128xf32> to vector<128xf32>
      %532 = vector.shape_cast %531 : vector<128xf32> to vector<1x1x128xf32>
      %533 = vector.broadcast %532 : vector<1x1x128xf32> to vector<4x16x128xf32>
      %534 = arith.mulf %529, %533 : vector<4x16x128xf32>
      %535 = arith.addf %528, %534 : vector<4x16x128xf32>
      %536 = vector.extract_strided_slice %500 {offsets = [0, 10, 0], sizes = [4, 16, 128], strides = [1, 1, 1]} : vector<4x32x128xf32> to vector<4x16x128xf32>
      %537 = vector.extract_strided_slice %23 {offsets = [12, 0], sizes = [1, 128], strides = [1, 1]} : vector<49x128xf32> to vector<1x128xf32>
      %538 = vector.shape_cast %537 : vector<1x128xf32> to vector<128xf32>
      %539 = vector.shape_cast %538 : vector<128xf32> to vector<1x1x128xf32>
      %540 = vector.broadcast %539 : vector<1x1x128xf32> to vector<4x16x128xf32>
      %541 = arith.mulf %536, %540 : vector<4x16x128xf32>
      %542 = arith.addf %535, %541 : vector<4x16x128xf32>
      %543 = vector.extract_strided_slice %500 {offsets = [0, 11, 0], sizes = [4, 16, 128], strides = [1, 1, 1]} : vector<4x32x128xf32> to vector<4x16x128xf32>
      %544 = vector.extract_strided_slice %23 {offsets = [13, 0], sizes = [1, 128], strides = [1, 1]} : vector<49x128xf32> to vector<1x128xf32>
      %545 = vector.shape_cast %544 : vector<1x128xf32> to vector<128xf32>
      %546 = vector.shape_cast %545 : vector<128xf32> to vector<1x1x128xf32>
      %547 = vector.broadcast %546 : vector<1x1x128xf32> to vector<4x16x128xf32>
      %548 = arith.mulf %543, %547 : vector<4x16x128xf32>
      %549 = arith.addf %542, %548 : vector<4x16x128xf32>
      %c2_i32 = arith.constant 2 : i32
      %550 = arith.addi %444, %c2_i32 : i32
      %551 = arith.index_cast %550 : i32 to index
      %c0_78 = arith.constant 0 : index
      %c0_79 = arith.constant 0 : index
      %552 = vector.load %arg12[%551, %c0_78, %c0_79] : memref<22x32x128xf32, #tpu.memory_space<vmem>>, vector<4x32x128xf32>
      %553 = vector.extract_strided_slice %552 {offsets = [0, 5, 0], sizes = [4, 16, 128], strides = [1, 1, 1]} : vector<4x32x128xf32> to vector<4x16x128xf32>
      %554 = vector.extract_strided_slice %23 {offsets = [14, 0], sizes = [1, 128], strides = [1, 1]} : vector<49x128xf32> to vector<1x128xf32>
      %555 = vector.shape_cast %554 : vector<1x128xf32> to vector<128xf32>
      %556 = vector.shape_cast %555 : vector<128xf32> to vector<1x1x128xf32>
      %557 = vector.broadcast %556 : vector<1x1x128xf32> to vector<4x16x128xf32>
      %558 = arith.mulf %553, %557 : vector<4x16x128xf32>
      %559 = arith.addf %549, %558 : vector<4x16x128xf32>
      %560 = vector.extract_strided_slice %552 {offsets = [0, 6, 0], sizes = [4, 16, 128], strides = [1, 1, 1]} : vector<4x32x128xf32> to vector<4x16x128xf32>
      %561 = vector.extract_strided_slice %23 {offsets = [15, 0], sizes = [1, 128], strides = [1, 1]} : vector<49x128xf32> to vector<1x128xf32>
      %562 = vector.shape_cast %561 : vector<1x128xf32> to vector<128xf32>
      %563 = vector.shape_cast %562 : vector<128xf32> to vector<1x1x128xf32>
      %564 = vector.broadcast %563 : vector<1x1x128xf32> to vector<4x16x128xf32>
      %565 = arith.mulf %560, %564 : vector<4x16x128xf32>
      %566 = arith.addf %559, %565 : vector<4x16x128xf32>
      %567 = vector.extract_strided_slice %552 {offsets = [0, 7, 0], sizes = [4, 16, 128], strides = [1, 1, 1]} : vector<4x32x128xf32> to vector<4x16x128xf32>
      %568 = vector.extract_strided_slice %23 {offsets = [16, 0], sizes = [1, 128], strides = [1, 1]} : vector<49x128xf32> to vector<1x128xf32>
      %569 = vector.shape_cast %568 : vector<1x128xf32> to vector<128xf32>
      %570 = vector.shape_cast %569 : vector<128xf32> to vector<1x1x128xf32>
      %571 = vector.broadcast %570 : vector<1x1x128xf32> to vector<4x16x128xf32>
      %572 = arith.mulf %567, %571 : vector<4x16x128xf32>
      %573 = arith.addf %566, %572 : vector<4x16x128xf32>
      %574 = vector.extract_strided_slice %552 {offsets = [0, 8, 0], sizes = [4, 16, 128], strides = [1, 1, 1]} : vector<4x32x128xf32> to vector<4x16x128xf32>
      %575 = vector.extract_strided_slice %23 {offsets = [17, 0], sizes = [1, 128], strides = [1, 1]} : vector<49x128xf32> to vector<1x128xf32>
      %576 = vector.shape_cast %575 : vector<1x128xf32> to vector<128xf32>
      %577 = vector.shape_cast %576 : vector<128xf32> to vector<1x1x128xf32>
      %578 = vector.broadcast %577 : vector<1x1x128xf32> to vector<4x16x128xf32>
      %579 = arith.mulf %574, %578 : vector<4x16x128xf32>
      %580 = arith.addf %573, %579 : vector<4x16x128xf32>
      %581 = vector.extract_strided_slice %552 {offsets = [0, 9, 0], sizes = [4, 16, 128], strides = [1, 1, 1]} : vector<4x32x128xf32> to vector<4x16x128xf32>
      %582 = vector.extract_strided_slice %23 {offsets = [18, 0], sizes = [1, 128], strides = [1, 1]} : vector<49x128xf32> to vector<1x128xf32>
      %583 = vector.shape_cast %582 : vector<1x128xf32> to vector<128xf32>
      %584 = vector.shape_cast %583 : vector<128xf32> to vector<1x1x128xf32>
      %585 = vector.broadcast %584 : vector<1x1x128xf32> to vector<4x16x128xf32>
      %586 = arith.mulf %581, %585 : vector<4x16x128xf32>
      %587 = arith.addf %580, %586 : vector<4x16x128xf32>
      %588 = vector.extract_strided_slice %552 {offsets = [0, 10, 0], sizes = [4, 16, 128], strides = [1, 1, 1]} : vector<4x32x128xf32> to vector<4x16x128xf32>
      %589 = vector.extract_strided_slice %23 {offsets = [19, 0], sizes = [1, 128], strides = [1, 1]} : vector<49x128xf32> to vector<1x128xf32>
      %590 = vector.shape_cast %589 : vector<1x128xf32> to vector<128xf32>
      %591 = vector.shape_cast %590 : vector<128xf32> to vector<1x1x128xf32>
      %592 = vector.broadcast %591 : vector<1x1x128xf32> to vector<4x16x128xf32>
      %593 = arith.mulf %588, %592 : vector<4x16x128xf32>
      %594 = arith.addf %587, %593 : vector<4x16x128xf32>
      %595 = vector.extract_strided_slice %552 {offsets = [0, 11, 0], sizes = [4, 16, 128], strides = [1, 1, 1]} : vector<4x32x128xf32> to vector<4x16x128xf32>
      %596 = vector.extract_strided_slice %23 {offsets = [20, 0], sizes = [1, 128], strides = [1, 1]} : vector<49x128xf32> to vector<1x128xf32>
      %597 = vector.shape_cast %596 : vector<1x128xf32> to vector<128xf32>
      %598 = vector.shape_cast %597 : vector<128xf32> to vector<1x1x128xf32>
      %599 = vector.broadcast %598 : vector<1x1x128xf32> to vector<4x16x128xf32>
      %600 = arith.mulf %595, %599 : vector<4x16x128xf32>
      %601 = arith.addf %594, %600 : vector<4x16x128xf32>
      %c3_i32_80 = arith.constant 3 : i32
      %602 = arith.addi %444, %c3_i32_80 : i32
      %603 = arith.index_cast %602 : i32 to index
      %c0_81 = arith.constant 0 : index
      %c0_82 = arith.constant 0 : index
      %604 = vector.load %arg12[%603, %c0_81, %c0_82] : memref<22x32x128xf32, #tpu.memory_space<vmem>>, vector<4x32x128xf32>
      %605 = vector.extract_strided_slice %604 {offsets = [0, 5, 0], sizes = [4, 16, 128], strides = [1, 1, 1]} : vector<4x32x128xf32> to vector<4x16x128xf32>
      %606 = vector.extract_strided_slice %23 {offsets = [21, 0], sizes = [1, 128], strides = [1, 1]} : vector<49x128xf32> to vector<1x128xf32>
      %607 = vector.shape_cast %606 : vector<1x128xf32> to vector<128xf32>
      %608 = vector.shape_cast %607 : vector<128xf32> to vector<1x1x128xf32>
      %609 = vector.broadcast %608 : vector<1x1x128xf32> to vector<4x16x128xf32>
      %610 = arith.mulf %605, %609 : vector<4x16x128xf32>
      %611 = arith.addf %601, %610 : vector<4x16x128xf32>
      %612 = vector.extract_strided_slice %604 {offsets = [0, 6, 0], sizes = [4, 16, 128], strides = [1, 1, 1]} : vector<4x32x128xf32> to vector<4x16x128xf32>
      %613 = vector.extract_strided_slice %23 {offsets = [22, 0], sizes = [1, 128], strides = [1, 1]} : vector<49x128xf32> to vector<1x128xf32>
      %614 = vector.shape_cast %613 : vector<1x128xf32> to vector<128xf32>
      %615 = vector.shape_cast %614 : vector<128xf32> to vector<1x1x128xf32>
      %616 = vector.broadcast %615 : vector<1x1x128xf32> to vector<4x16x128xf32>
      %617 = arith.mulf %612, %616 : vector<4x16x128xf32>
      %618 = arith.addf %611, %617 : vector<4x16x128xf32>
      %619 = vector.extract_strided_slice %604 {offsets = [0, 7, 0], sizes = [4, 16, 128], strides = [1, 1, 1]} : vector<4x32x128xf32> to vector<4x16x128xf32>
      %620 = vector.extract_strided_slice %23 {offsets = [23, 0], sizes = [1, 128], strides = [1, 1]} : vector<49x128xf32> to vector<1x128xf32>
      %621 = vector.shape_cast %620 : vector<1x128xf32> to vector<128xf32>
      %622 = vector.shape_cast %621 : vector<128xf32> to vector<1x1x128xf32>
      %623 = vector.broadcast %622 : vector<1x1x128xf32> to vector<4x16x128xf32>
      %624 = arith.mulf %619, %623 : vector<4x16x128xf32>
      %625 = arith.addf %618, %624 : vector<4x16x128xf32>
      %626 = vector.extract_strided_slice %604 {offsets = [0, 8, 0], sizes = [4, 16, 128], strides = [1, 1, 1]} : vector<4x32x128xf32> to vector<4x16x128xf32>
      %627 = vector.extract_strided_slice %23 {offsets = [24, 0], sizes = [1, 128], strides = [1, 1]} : vector<49x128xf32> to vector<1x128xf32>
      %628 = vector.shape_cast %627 : vector<1x128xf32> to vector<128xf32>
      %629 = vector.shape_cast %628 : vector<128xf32> to vector<1x1x128xf32>
      %630 = vector.broadcast %629 : vector<1x1x128xf32> to vector<4x16x128xf32>
      %631 = arith.mulf %626, %630 : vector<4x16x128xf32>
      %632 = arith.addf %625, %631 : vector<4x16x128xf32>
      %633 = vector.extract_strided_slice %604 {offsets = [0, 9, 0], sizes = [4, 16, 128], strides = [1, 1, 1]} : vector<4x32x128xf32> to vector<4x16x128xf32>
      %634 = vector.extract_strided_slice %23 {offsets = [25, 0], sizes = [1, 128], strides = [1, 1]} : vector<49x128xf32> to vector<1x128xf32>
      %635 = vector.shape_cast %634 : vector<1x128xf32> to vector<128xf32>
      %636 = vector.shape_cast %635 : vector<128xf32> to vector<1x1x128xf32>
      %637 = vector.broadcast %636 : vector<1x1x128xf32> to vector<4x16x128xf32>
      %638 = arith.mulf %633, %637 : vector<4x16x128xf32>
      %639 = arith.addf %632, %638 : vector<4x16x128xf32>
      %640 = vector.extract_strided_slice %604 {offsets = [0, 10, 0], sizes = [4, 16, 128], strides = [1, 1, 1]} : vector<4x32x128xf32> to vector<4x16x128xf32>
      %641 = vector.extract_strided_slice %23 {offsets = [26, 0], sizes = [1, 128], strides = [1, 1]} : vector<49x128xf32> to vector<1x128xf32>
      %642 = vector.shape_cast %641 : vector<1x128xf32> to vector<128xf32>
      %643 = vector.shape_cast %642 : vector<128xf32> to vector<1x1x128xf32>
      %644 = vector.broadcast %643 : vector<1x1x128xf32> to vector<4x16x128xf32>
      %645 = arith.mulf %640, %644 : vector<4x16x128xf32>
      %646 = arith.addf %639, %645 : vector<4x16x128xf32>
      %647 = vector.extract_strided_slice %604 {offsets = [0, 11, 0], sizes = [4, 16, 128], strides = [1, 1, 1]} : vector<4x32x128xf32> to vector<4x16x128xf32>
      %648 = vector.extract_strided_slice %23 {offsets = [27, 0], sizes = [1, 128], strides = [1, 1]} : vector<49x128xf32> to vector<1x128xf32>
      %649 = vector.shape_cast %648 : vector<1x128xf32> to vector<128xf32>
      %650 = vector.shape_cast %649 : vector<128xf32> to vector<1x1x128xf32>
      %651 = vector.broadcast %650 : vector<1x1x128xf32> to vector<4x16x128xf32>
      %652 = arith.mulf %647, %651 : vector<4x16x128xf32>
      %653 = arith.addf %646, %652 : vector<4x16x128xf32>
      %c4_i32_83 = arith.constant 4 : i32
      %654 = arith.addi %444, %c4_i32_83 : i32
      %655 = arith.index_cast %654 : i32 to index
      %c0_84 = arith.constant 0 : index
      %c0_85 = arith.constant 0 : index
      %656 = vector.load %arg12[%655, %c0_84, %c0_85] : memref<22x32x128xf32, #tpu.memory_space<vmem>>, vector<4x32x128xf32>
      %657 = vector.extract_strided_slice %656 {offsets = [0, 5, 0], sizes = [4, 16, 128], strides = [1, 1, 1]} : vector<4x32x128xf32> to vector<4x16x128xf32>
      %658 = vector.extract_strided_slice %23 {offsets = [28, 0], sizes = [1, 128], strides = [1, 1]} : vector<49x128xf32> to vector<1x128xf32>
      %659 = vector.shape_cast %658 : vector<1x128xf32> to vector<128xf32>
      %660 = vector.shape_cast %659 : vector<128xf32> to vector<1x1x128xf32>
      %661 = vector.broadcast %660 : vector<1x1x128xf32> to vector<4x16x128xf32>
      %662 = arith.mulf %657, %661 : vector<4x16x128xf32>
      %663 = arith.addf %653, %662 : vector<4x16x128xf32>
      %664 = vector.extract_strided_slice %656 {offsets = [0, 6, 0], sizes = [4, 16, 128], strides = [1, 1, 1]} : vector<4x32x128xf32> to vector<4x16x128xf32>
      %665 = vector.extract_strided_slice %23 {offsets = [29, 0], sizes = [1, 128], strides = [1, 1]} : vector<49x128xf32> to vector<1x128xf32>
      %666 = vector.shape_cast %665 : vector<1x128xf32> to vector<128xf32>
      %667 = vector.shape_cast %666 : vector<128xf32> to vector<1x1x128xf32>
      %668 = vector.broadcast %667 : vector<1x1x128xf32> to vector<4x16x128xf32>
      %669 = arith.mulf %664, %668 : vector<4x16x128xf32>
      %670 = arith.addf %663, %669 : vector<4x16x128xf32>
      %671 = vector.extract_strided_slice %656 {offsets = [0, 7, 0], sizes = [4, 16, 128], strides = [1, 1, 1]} : vector<4x32x128xf32> to vector<4x16x128xf32>
      %672 = vector.extract_strided_slice %23 {offsets = [30, 0], sizes = [1, 128], strides = [1, 1]} : vector<49x128xf32> to vector<1x128xf32>
      %673 = vector.shape_cast %672 : vector<1x128xf32> to vector<128xf32>
      %674 = vector.shape_cast %673 : vector<128xf32> to vector<1x1x128xf32>
      %675 = vector.broadcast %674 : vector<1x1x128xf32> to vector<4x16x128xf32>
      %676 = arith.mulf %671, %675 : vector<4x16x128xf32>
      %677 = arith.addf %670, %676 : vector<4x16x128xf32>
      %678 = vector.extract_strided_slice %656 {offsets = [0, 8, 0], sizes = [4, 16, 128], strides = [1, 1, 1]} : vector<4x32x128xf32> to vector<4x16x128xf32>
      %679 = vector.extract_strided_slice %23 {offsets = [31, 0], sizes = [1, 128], strides = [1, 1]} : vector<49x128xf32> to vector<1x128xf32>
      %680 = vector.shape_cast %679 : vector<1x128xf32> to vector<128xf32>
      %681 = vector.shape_cast %680 : vector<128xf32> to vector<1x1x128xf32>
      %682 = vector.broadcast %681 : vector<1x1x128xf32> to vector<4x16x128xf32>
      %683 = arith.mulf %678, %682 : vector<4x16x128xf32>
      %684 = arith.addf %677, %683 : vector<4x16x128xf32>
      %685 = vector.extract_strided_slice %656 {offsets = [0, 9, 0], sizes = [4, 16, 128], strides = [1, 1, 1]} : vector<4x32x128xf32> to vector<4x16x128xf32>
      %686 = vector.extract_strided_slice %23 {offsets = [32, 0], sizes = [1, 128], strides = [1, 1]} : vector<49x128xf32> to vector<1x128xf32>
      %687 = vector.shape_cast %686 : vector<1x128xf32> to vector<128xf32>
      %688 = vector.shape_cast %687 : vector<128xf32> to vector<1x1x128xf32>
      %689 = vector.broadcast %688 : vector<1x1x128xf32> to vector<4x16x128xf32>
      %690 = arith.mulf %685, %689 : vector<4x16x128xf32>
      %691 = arith.addf %684, %690 : vector<4x16x128xf32>
      %692 = vector.extract_strided_slice %656 {offsets = [0, 10, 0], sizes = [4, 16, 128], strides = [1, 1, 1]} : vector<4x32x128xf32> to vector<4x16x128xf32>
      %693 = vector.extract_strided_slice %23 {offsets = [33, 0], sizes = [1, 128], strides = [1, 1]} : vector<49x128xf32> to vector<1x128xf32>
      %694 = vector.shape_cast %693 : vector<1x128xf32> to vector<128xf32>
      %695 = vector.shape_cast %694 : vector<128xf32> to vector<1x1x128xf32>
      %696 = vector.broadcast %695 : vector<1x1x128xf32> to vector<4x16x128xf32>
      %697 = arith.mulf %692, %696 : vector<4x16x128xf32>
      %698 = arith.addf %691, %697 : vector<4x16x128xf32>
      %699 = vector.extract_strided_slice %656 {offsets = [0, 11, 0], sizes = [4, 16, 128], strides = [1, 1, 1]} : vector<4x32x128xf32> to vector<4x16x128xf32>
      %700 = vector.extract_strided_slice %23 {offsets = [34, 0], sizes = [1, 128], strides = [1, 1]} : vector<49x128xf32> to vector<1x128xf32>
      %701 = vector.shape_cast %700 : vector<1x128xf32> to vector<128xf32>
      %702 = vector.shape_cast %701 : vector<128xf32> to vector<1x1x128xf32>
      %703 = vector.broadcast %702 : vector<1x1x128xf32> to vector<4x16x128xf32>
      %704 = arith.mulf %699, %703 : vector<4x16x128xf32>
      %705 = arith.addf %698, %704 : vector<4x16x128xf32>
      %c5_i32 = arith.constant 5 : i32
      %706 = arith.addi %444, %c5_i32 : i32
      %707 = arith.index_cast %706 : i32 to index
      %c0_86 = arith.constant 0 : index
      %c0_87 = arith.constant 0 : index
      %708 = vector.load %arg12[%707, %c0_86, %c0_87] : memref<22x32x128xf32, #tpu.memory_space<vmem>>, vector<4x32x128xf32>
      %709 = vector.extract_strided_slice %708 {offsets = [0, 5, 0], sizes = [4, 16, 128], strides = [1, 1, 1]} : vector<4x32x128xf32> to vector<4x16x128xf32>
      %710 = vector.extract_strided_slice %23 {offsets = [35, 0], sizes = [1, 128], strides = [1, 1]} : vector<49x128xf32> to vector<1x128xf32>
      %711 = vector.shape_cast %710 : vector<1x128xf32> to vector<128xf32>
      %712 = vector.shape_cast %711 : vector<128xf32> to vector<1x1x128xf32>
      %713 = vector.broadcast %712 : vector<1x1x128xf32> to vector<4x16x128xf32>
      %714 = arith.mulf %709, %713 : vector<4x16x128xf32>
      %715 = arith.addf %705, %714 : vector<4x16x128xf32>
      %716 = vector.extract_strided_slice %708 {offsets = [0, 6, 0], sizes = [4, 16, 128], strides = [1, 1, 1]} : vector<4x32x128xf32> to vector<4x16x128xf32>
      %717 = vector.extract_strided_slice %23 {offsets = [36, 0], sizes = [1, 128], strides = [1, 1]} : vector<49x128xf32> to vector<1x128xf32>
      %718 = vector.shape_cast %717 : vector<1x128xf32> to vector<128xf32>
      %719 = vector.shape_cast %718 : vector<128xf32> to vector<1x1x128xf32>
      %720 = vector.broadcast %719 : vector<1x1x128xf32> to vector<4x16x128xf32>
      %721 = arith.mulf %716, %720 : vector<4x16x128xf32>
      %722 = arith.addf %715, %721 : vector<4x16x128xf32>
      %723 = vector.extract_strided_slice %708 {offsets = [0, 7, 0], sizes = [4, 16, 128], strides = [1, 1, 1]} : vector<4x32x128xf32> to vector<4x16x128xf32>
      %724 = vector.extract_strided_slice %23 {offsets = [37, 0], sizes = [1, 128], strides = [1, 1]} : vector<49x128xf32> to vector<1x128xf32>
      %725 = vector.shape_cast %724 : vector<1x128xf32> to vector<128xf32>
      %726 = vector.shape_cast %725 : vector<128xf32> to vector<1x1x128xf32>
      %727 = vector.broadcast %726 : vector<1x1x128xf32> to vector<4x16x128xf32>
      %728 = arith.mulf %723, %727 : vector<4x16x128xf32>
      %729 = arith.addf %722, %728 : vector<4x16x128xf32>
      %730 = vector.extract_strided_slice %708 {offsets = [0, 8, 0], sizes = [4, 16, 128], strides = [1, 1, 1]} : vector<4x32x128xf32> to vector<4x16x128xf32>
      %731 = vector.extract_strided_slice %23 {offsets = [38, 0], sizes = [1, 128], strides = [1, 1]} : vector<49x128xf32> to vector<1x128xf32>
      %732 = vector.shape_cast %731 : vector<1x128xf32> to vector<128xf32>
      %733 = vector.shape_cast %732 : vector<128xf32> to vector<1x1x128xf32>
      %734 = vector.broadcast %733 : vector<1x1x128xf32> to vector<4x16x128xf32>
      %735 = arith.mulf %730, %734 : vector<4x16x128xf32>
      %736 = arith.addf %729, %735 : vector<4x16x128xf32>
      %737 = vector.extract_strided_slice %708 {offsets = [0, 9, 0], sizes = [4, 16, 128], strides = [1, 1, 1]} : vector<4x32x128xf32> to vector<4x16x128xf32>
      %738 = vector.extract_strided_slice %23 {offsets = [39, 0], sizes = [1, 128], strides = [1, 1]} : vector<49x128xf32> to vector<1x128xf32>
      %739 = vector.shape_cast %738 : vector<1x128xf32> to vector<128xf32>
      %740 = vector.shape_cast %739 : vector<128xf32> to vector<1x1x128xf32>
      %741 = vector.broadcast %740 : vector<1x1x128xf32> to vector<4x16x128xf32>
      %742 = arith.mulf %737, %741 : vector<4x16x128xf32>
      %743 = arith.addf %736, %742 : vector<4x16x128xf32>
      %744 = vector.extract_strided_slice %708 {offsets = [0, 10, 0], sizes = [4, 16, 128], strides = [1, 1, 1]} : vector<4x32x128xf32> to vector<4x16x128xf32>
      %745 = vector.extract_strided_slice %23 {offsets = [40, 0], sizes = [1, 128], strides = [1, 1]} : vector<49x128xf32> to vector<1x128xf32>
      %746 = vector.shape_cast %745 : vector<1x128xf32> to vector<128xf32>
      %747 = vector.shape_cast %746 : vector<128xf32> to vector<1x1x128xf32>
      %748 = vector.broadcast %747 : vector<1x1x128xf32> to vector<4x16x128xf32>
      %749 = arith.mulf %744, %748 : vector<4x16x128xf32>
      %750 = arith.addf %743, %749 : vector<4x16x128xf32>
      %751 = vector.extract_strided_slice %708 {offsets = [0, 11, 0], sizes = [4, 16, 128], strides = [1, 1, 1]} : vector<4x32x128xf32> to vector<4x16x128xf32>
      %752 = vector.extract_strided_slice %23 {offsets = [41, 0], sizes = [1, 128], strides = [1, 1]} : vector<49x128xf32> to vector<1x128xf32>
      %753 = vector.shape_cast %752 : vector<1x128xf32> to vector<128xf32>
      %754 = vector.shape_cast %753 : vector<128xf32> to vector<1x1x128xf32>
      %755 = vector.broadcast %754 : vector<1x1x128xf32> to vector<4x16x128xf32>
      %756 = arith.mulf %751, %755 : vector<4x16x128xf32>
      %757 = arith.addf %750, %756 : vector<4x16x128xf32>
      %c6_i32 = arith.constant 6 : i32
      %758 = arith.addi %444, %c6_i32 : i32
      %759 = arith.index_cast %758 : i32 to index
      %c0_88 = arith.constant 0 : index
      %c0_89 = arith.constant 0 : index
      %760 = vector.load %arg12[%759, %c0_88, %c0_89] : memref<22x32x128xf32, #tpu.memory_space<vmem>>, vector<4x32x128xf32>
      %761 = vector.extract_strided_slice %760 {offsets = [0, 5, 0], sizes = [4, 16, 128], strides = [1, 1, 1]} : vector<4x32x128xf32> to vector<4x16x128xf32>
      %762 = vector.extract_strided_slice %23 {offsets = [42, 0], sizes = [1, 128], strides = [1, 1]} : vector<49x128xf32> to vector<1x128xf32>
      %763 = vector.shape_cast %762 : vector<1x128xf32> to vector<128xf32>
      %764 = vector.shape_cast %763 : vector<128xf32> to vector<1x1x128xf32>
      %765 = vector.broadcast %764 : vector<1x1x128xf32> to vector<4x16x128xf32>
      %766 = arith.mulf %761, %765 : vector<4x16x128xf32>
      %767 = arith.addf %757, %766 : vector<4x16x128xf32>
      %768 = vector.extract_strided_slice %760 {offsets = [0, 6, 0], sizes = [4, 16, 128], strides = [1, 1, 1]} : vector<4x32x128xf32> to vector<4x16x128xf32>
      %769 = vector.extract_strided_slice %23 {offsets = [43, 0], sizes = [1, 128], strides = [1, 1]} : vector<49x128xf32> to vector<1x128xf32>
      %770 = vector.shape_cast %769 : vector<1x128xf32> to vector<128xf32>
      %771 = vector.shape_cast %770 : vector<128xf32> to vector<1x1x128xf32>
      %772 = vector.broadcast %771 : vector<1x1x128xf32> to vector<4x16x128xf32>
      %773 = arith.mulf %768, %772 : vector<4x16x128xf32>
      %774 = arith.addf %767, %773 : vector<4x16x128xf32>
      %775 = vector.extract_strided_slice %760 {offsets = [0, 7, 0], sizes = [4, 16, 128], strides = [1, 1, 1]} : vector<4x32x128xf32> to vector<4x16x128xf32>
      %776 = vector.extract_strided_slice %23 {offsets = [44, 0], sizes = [1, 128], strides = [1, 1]} : vector<49x128xf32> to vector<1x128xf32>
      %777 = vector.shape_cast %776 : vector<1x128xf32> to vector<128xf32>
      %778 = vector.shape_cast %777 : vector<128xf32> to vector<1x1x128xf32>
      %779 = vector.broadcast %778 : vector<1x1x128xf32> to vector<4x16x128xf32>
      %780 = arith.mulf %775, %779 : vector<4x16x128xf32>
      %781 = arith.addf %774, %780 : vector<4x16x128xf32>
      %782 = vector.extract_strided_slice %760 {offsets = [0, 8, 0], sizes = [4, 16, 128], strides = [1, 1, 1]} : vector<4x32x128xf32> to vector<4x16x128xf32>
      %783 = vector.extract_strided_slice %23 {offsets = [45, 0], sizes = [1, 128], strides = [1, 1]} : vector<49x128xf32> to vector<1x128xf32>
      %784 = vector.shape_cast %783 : vector<1x128xf32> to vector<128xf32>
      %785 = vector.shape_cast %784 : vector<128xf32> to vector<1x1x128xf32>
      %786 = vector.broadcast %785 : vector<1x1x128xf32> to vector<4x16x128xf32>
      %787 = arith.mulf %782, %786 : vector<4x16x128xf32>
      %788 = arith.addf %781, %787 : vector<4x16x128xf32>
      %789 = vector.extract_strided_slice %760 {offsets = [0, 9, 0], sizes = [4, 16, 128], strides = [1, 1, 1]} : vector<4x32x128xf32> to vector<4x16x128xf32>
      %790 = vector.extract_strided_slice %23 {offsets = [46, 0], sizes = [1, 128], strides = [1, 1]} : vector<49x128xf32> to vector<1x128xf32>
      %791 = vector.shape_cast %790 : vector<1x128xf32> to vector<128xf32>
      %792 = vector.shape_cast %791 : vector<128xf32> to vector<1x1x128xf32>
      %793 = vector.broadcast %792 : vector<1x1x128xf32> to vector<4x16x128xf32>
      %794 = arith.mulf %789, %793 : vector<4x16x128xf32>
      %795 = arith.addf %788, %794 : vector<4x16x128xf32>
      %796 = vector.extract_strided_slice %760 {offsets = [0, 10, 0], sizes = [4, 16, 128], strides = [1, 1, 1]} : vector<4x32x128xf32> to vector<4x16x128xf32>
      %797 = vector.extract_strided_slice %23 {offsets = [47, 0], sizes = [1, 128], strides = [1, 1]} : vector<49x128xf32> to vector<1x128xf32>
      %798 = vector.shape_cast %797 : vector<1x128xf32> to vector<128xf32>
      %799 = vector.shape_cast %798 : vector<128xf32> to vector<1x1x128xf32>
      %800 = vector.broadcast %799 : vector<1x1x128xf32> to vector<4x16x128xf32>
      %801 = arith.mulf %796, %800 : vector<4x16x128xf32>
      %802 = arith.addf %795, %801 : vector<4x16x128xf32>
      %803 = vector.extract_strided_slice %760 {offsets = [0, 11, 0], sizes = [4, 16, 128], strides = [1, 1, 1]} : vector<4x32x128xf32> to vector<4x16x128xf32>
      %804 = vector.extract_strided_slice %23 {offsets = [48, 0], sizes = [1, 128], strides = [1, 1]} : vector<49x128xf32> to vector<1x128xf32>
      %805 = vector.shape_cast %804 : vector<1x128xf32> to vector<128xf32>
      %806 = vector.shape_cast %805 : vector<128xf32> to vector<1x1x128xf32>
      %807 = vector.broadcast %806 : vector<1x1x128xf32> to vector<4x16x128xf32>
      %808 = arith.mulf %803, %807 : vector<4x16x128xf32>
      %809 = arith.addf %802, %808 : vector<4x16x128xf32>
      %810 = vector.shape_cast %12 : vector<128xf32> to vector<1x1x128xf32>
      %811 = vector.broadcast %810 : vector<1x1x128xf32> to vector<4x16x128xf32>
      %812 = arith.addf %809, %811 : vector<4x16x128xf32>
      %c4_i32_90 = arith.constant 4 : i32
      %813 = arith.muli %arg13, %c4_i32_90 : i32
      %814 = vector.shape_cast %arg14 : vector<4x16x128xf32> to vector<64x128xf32>
      %815 = vector.broadcast %28 : vector<1x128xf32> to vector<64x128xf32>
      %816 = arith.mulf %814, %815 : vector<64x128xf32>
      %cst_91 = arith.constant dense<0.000000e+00> : vector<64xf32>
      %817 = vector.multi_reduction <add>, %816, %cst_91 [1] : vector<64x128xf32> to vector<64xf32>
      %818 = vector.shape_cast %817 : vector<64xf32> to vector<64x1xf32>
      %cst_92 = arith.constant 3.125000e-02 : f32
      %819 = vector.broadcast %cst_92 : f32 to vector<64x1xf32>
      %820 = arith.mulf %818, %819 : vector<64x1xf32>
      %821 = vector.broadcast %820 : vector<64x1xf32> to vector<64x128xf32>
      %822 = arith.subf %814, %821 : vector<64x128xf32>
      %823 = arith.mulf %822, %822 : vector<64x128xf32>
      %824 = vector.broadcast %28 : vector<1x128xf32> to vector<64x128xf32>
      %825 = arith.mulf %823, %824 : vector<64x128xf32>
      %cst_93 = arith.constant dense<0.000000e+00> : vector<64xf32>
      %826 = vector.multi_reduction <add>, %825, %cst_93 [1] : vector<64x128xf32> to vector<64xf32>
      %827 = vector.shape_cast %826 : vector<64xf32> to vector<64x1xf32>
      %cst_94 = arith.constant 3.125000e-02 : f32
      %828 = vector.broadcast %cst_94 : f32 to vector<64x1xf32>
      %829 = arith.mulf %827, %828 : vector<64x1xf32>
      %cst_95 = arith.constant 9.99999997E-7 : f32
      %830 = vector.broadcast %cst_95 : f32 to vector<64x1xf32>
      %831 = arith.addf %829, %830 : vector<64x1xf32>
      %832 = math.rsqrt %831 : vector<64x1xf32>
      %833 = vector.broadcast %832 : vector<64x1xf32> to vector<64x128xf32>
      %834 = arith.mulf %822, %833 : vector<64x128xf32>
      %835 = vector.shape_cast %14 : vector<128xf32> to vector<1x128xf32>
      %836 = vector.broadcast %835 : vector<1x128xf32> to vector<64x128xf32>
      %837 = arith.mulf %834, %836 : vector<64x128xf32>
      %838 = vector.shape_cast %16 : vector<128xf32> to vector<1x128xf32>
      %839 = vector.broadcast %838 : vector<1x128xf32> to vector<64x128xf32>
      %840 = arith.addf %837, %839 : vector<64x128xf32>
      %841 = arith.truncf %840 : vector<64x128xf32> to vector<64x128xbf16>
      %c0_96 = arith.constant 0 : index
      %c0_97 = arith.constant 0 : index
      %842 = vector.load %arg6[%c0_96, %c0_97] : memref<128x128xbf16, #tpu.memory_space<vmem>>, vector<128x128xbf16>
      %cst_98 = arith.constant dense<0.000000e+00> : vector<64x128xf32>
      %843 = tpu.matmul %841, %842, %cst_98 {dimension_numbers = #tpu.dot_dimension_numbers<[1], [0], [0], [1], [0, 0, 1, 1], [], []>} : vector<64x128xbf16>, vector<128x128xbf16>, vector<64x128xf32> -> vector<64x128xf32>
      %844 = vector.shape_cast %18 : vector<128xf32> to vector<1x128xf32>
      %845 = vector.broadcast %844 : vector<1x128xf32> to vector<64x128xf32>
      %846 = arith.addf %843, %845 : vector<64x128xf32>
      %cst_99 = arith.constant 5.000000e-01 : f32
      %847 = vector.broadcast %cst_99 : f32 to vector<64x128xf32>
      %848 = arith.mulf %847, %846 : vector<64x128xf32>
      %cst_100 = arith.constant 0.707106769 : f32
      %849 = vector.broadcast %cst_100 : f32 to vector<64x128xf32>
      %850 = arith.mulf %846, %849 : vector<64x128xf32>
      %851 = math.erf %850 : vector<64x128xf32>
      %cst_101 = arith.constant 1.000000e+00 : f32
      %852 = vector.broadcast %cst_101 : f32 to vector<64x128xf32>
      %853 = arith.addf %852, %851 : vector<64x128xf32>
      %854 = arith.mulf %848, %853 : vector<64x128xf32>
      %855 = arith.truncf %854 : vector<64x128xf32> to vector<64x128xbf16>
      %c0_102 = arith.constant 0 : index
      %c0_103 = arith.constant 0 : index
      %856 = vector.load %arg8[%c0_102, %c0_103] : memref<128x128xbf16, #tpu.memory_space<vmem>>, vector<128x128xbf16>
      %cst_104 = arith.constant dense<0.000000e+00> : vector<64x128xf32>
      %857 = tpu.matmul %855, %856, %cst_104 {dimension_numbers = #tpu.dot_dimension_numbers<[1], [0], [0], [1], [0, 0, 1, 1], [], []>} : vector<64x128xbf16>, vector<128x128xbf16>, vector<64x128xf32> -> vector<64x128xf32>
      %858 = vector.shape_cast %20 : vector<128xf32> to vector<1x128xf32>
      %859 = vector.broadcast %858 : vector<1x128xf32> to vector<64x128xf32>
      %860 = arith.addf %857, %859 : vector<64x128xf32>
      %861 = vector.shape_cast %22 : vector<128xf32> to vector<1x128xf32>
      %862 = vector.broadcast %861 : vector<1x128xf32> to vector<64x128xf32>
      %863 = arith.mulf %862, %860 : vector<64x128xf32>
      %c0_105 = arith.constant 0 : index
      %864 = arith.index_cast %813 : i32 to index
      %c0_106 = arith.constant 0 : index
      %c0_107 = arith.constant 0 : index
      %865 = vector.load %arg1[%c0_105, %864, %c0_106, %c0_107] : memref<1x16x16x128xf32, #tpu.memory_space<vmem>>, vector<1x4x16x128xf32>
      %866 = vector.shape_cast %865 : vector<1x4x16x128xf32> to vector<4x16x128xf32>
      %867 = vector.shape_cast %866 : vector<4x16x128xf32> to vector<64x128xf32>
      %868 = arith.addf %867, %863 : vector<64x128xf32>
      %869 = vector.shape_cast %868 : vector<64x128xf32> to vector<4x16x128xf32>
      %c0_108 = arith.constant 0 : index
      %870 = arith.index_cast %813 : i32 to index
      %c0_109 = arith.constant 0 : index
      %c0_110 = arith.constant 0 : index
      %871 = vector.load %arg11[%c0_108, %870, %c0_109, %c0_110] : memref<1x16x16x128xf32, #tpu.memory_space<vmem>>, vector<1x4x16x128xf32>
      %872 = vector.shape_cast %871 : vector<1x4x16x128xf32> to vector<4x16x128xf32>
      %873 = vector.shape_cast %869 : vector<4x16x128xf32> to vector<1x4x16x128xf32>
      tpu.vector_store %arg11[%c0_108, %870, %c0_109, %c0_110], %873 {strides = array<i32>} : memref<1x16x16x128xf32, #tpu.memory_space<vmem>>, vector<1x4x16x128xf32>,
      scf.yield %812 : vector<4x16x128xf32>
    }
    %c3_i32_48 = arith.constant 3 : i32
    %385 = vector.shape_cast %384 : vector<4x16x128xf32> to vector<64x128xf32>
    %386 = vector.broadcast %28 : vector<1x128xf32> to vector<64x128xf32>
    %387 = arith.mulf %385, %386 : vector<64x128xf32>
    %cst_49 = arith.constant dense<0.000000e+00> : vector<64xf32>
    %388 = vector.multi_reduction <add>, %387, %cst_49 [1] : vector<64x128xf32> to vector<64xf32>
    %389 = vector.shape_cast %388 : vector<64xf32> to vector<64x1xf32>
    %cst_50 = arith.constant 3.125000e-02 : f32
    %390 = vector.broadcast %cst_50 : f32 to vector<64x1xf32>
    %391 = arith.mulf %389, %390 : vector<64x1xf32>
    %392 = vector.broadcast %391 : vector<64x1xf32> to vector<64x128xf32>
    %393 = arith.subf %385, %392 : vector<64x128xf32>
    %394 = arith.mulf %393, %393 : vector<64x128xf32>
    %395 = vector.broadcast %28 : vector<1x128xf32> to vector<64x128xf32>
    %396 = arith.mulf %394, %395 : vector<64x128xf32>
    %cst_51 = arith.constant dense<0.000000e+00> : vector<64xf32>
    %397 = vector.multi_reduction <add>, %396, %cst_51 [1] : vector<64x128xf32> to vector<64xf32>
    %398 = vector.shape_cast %397 : vector<64xf32> to vector<64x1xf32>
    %cst_52 = arith.constant 3.125000e-02 : f32
    %399 = vector.broadcast %cst_52 : f32 to vector<64x1xf32>
    %400 = arith.mulf %398, %399 : vector<64x1xf32>
    %cst_53 = arith.constant 9.99999997E-7 : f32
    %401 = vector.broadcast %cst_53 : f32 to vector<64x1xf32>
    %402 = arith.addf %400, %401 : vector<64x1xf32>
    %403 = math.rsqrt %402 : vector<64x1xf32>
    %404 = vector.broadcast %403 : vector<64x1xf32> to vector<64x128xf32>
    %405 = arith.mulf %393, %404 : vector<64x128xf32>
    %406 = vector.shape_cast %14 : vector<128xf32> to vector<1x128xf32>
    %407 = vector.broadcast %406 : vector<1x128xf32> to vector<64x128xf32>
    %408 = arith.mulf %405, %407 : vector<64x128xf32>
    %409 = vector.shape_cast %16 : vector<128xf32> to vector<1x128xf32>
    %410 = vector.broadcast %409 : vector<1x128xf32> to vector<64x128xf32>
    %411 = arith.addf %408, %410 : vector<64x128xf32>
    %412 = arith.truncf %411 : vector<64x128xf32> to vector<64x128xbf16>
    %c0_54 = arith.constant 0 : index
    %c0_55 = arith.constant 0 : index
    %413 = vector.load %arg6[%c0_54, %c0_55] : memref<128x128xbf16, #tpu.memory_space<vmem>>, vector<128x128xbf16>
    %cst_56 = arith.constant dense<0.000000e+00> : vector<64x128xf32>
    %414 = tpu.matmul %412, %413, %cst_56 {dimension_numbers = #tpu.dot_dimension_numbers<[1], [0], [0], [1], [0, 0, 1, 1], [], []>} : vector<64x128xbf16>, vector<128x128xbf16>, vector<64x128xf32> -> vector<64x128xf32>
    %415 = vector.shape_cast %18 : vector<128xf32> to vector<1x128xf32>
    %416 = vector.broadcast %415 : vector<1x128xf32> to vector<64x128xf32>
    %417 = arith.addf %414, %416 : vector<64x128xf32>
    %cst_57 = arith.constant 5.000000e-01 : f32
    %418 = vector.broadcast %cst_57 : f32 to vector<64x128xf32>
    %419 = arith.mulf %418, %417 : vector<64x128xf32>
    %cst_58 = arith.constant 0.707106769 : f32
    %420 = vector.broadcast %cst_58 : f32 to vector<64x128xf32>
    %421 = arith.mulf %417, %420 : vector<64x128xf32>
    %422 = math.erf %421 : vector<64x128xf32>
    %cst_59 = arith.constant 1.000000e+00 : f32
    %423 = vector.broadcast %cst_59 : f32 to vector<64x128xf32>
    %424 = arith.addf %423, %422 : vector<64x128xf32>
    %425 = arith.mulf %419, %424 : vector<64x128xf32>
    %426 = arith.truncf %425 : vector<64x128xf32> to vector<64x128xbf16>
    %c0_60 = arith.constant 0 : index
    %c0_61 = arith.constant 0 : index
    %427 = vector.load %arg8[%c0_60, %c0_61] : memref<128x128xbf16, #tpu.memory_space<vmem>>, vector<128x128xbf16>
    %cst_62 = arith.constant dense<0.000000e+00> : vector<64x128xf32>
    %428 = tpu.matmul %426, %427, %cst_62 {dimension_numbers = #tpu.dot_dimension_numbers<[1], [0], [0], [1], [0, 0, 1, 1], [], []>} : vector<64x128xbf16>, vector<128x128xbf16>, vector<64x128xf32> -> vector<64x128xf32>
    %429 = vector.shape_cast %20 : vector<128xf32> to vector<1x128xf32>
    %430 = vector.broadcast %429 : vector<1x128xf32> to vector<64x128xf32>
    %431 = arith.addf %428, %430 : vector<64x128xf32>
    %432 = vector.shape_cast %22 : vector<128xf32> to vector<1x128xf32>
    %433 = vector.broadcast %432 : vector<1x128xf32> to vector<64x128xf32>
    %434 = arith.mulf %433, %431 : vector<64x128xf32>
    %c0_63 = arith.constant 0 : index
    %c12 = arith.constant 12 : index
    %c0_64 = arith.constant 0 : index
    %c0_65 = arith.constant 0 : index
    %435 = vector.load %arg1[%c0_63, %c12, %c0_64, %c0_65] : memref<1x16x16x128xf32, #tpu.memory_space<vmem>>, vector<1x4x16x128xf32>
    %436 = vector.shape_cast %435 : vector<1x4x16x128xf32> to vector<4x16x128xf32>
    %437 = vector.shape_cast %436 : vector<4x16x128xf32> to vector<64x128xf32>
    %438 = arith.addf %437, %434 : vector<64x128xf32>
    %439 = vector.shape_cast %438 : vector<64x128xf32> to vector<4x16x128xf32>
    %c0_66 = arith.constant 0 : index
    %c12_67 = arith.constant 12 : index
    %c0_68 = arith.constant 0 : index
    %c0_69 = arith.constant 0 : index
    %440 = vector.load %arg11[%c0_66, %c12_67, %c0_68, %c0_69] : memref<1x16x16x128xf32, #tpu.memory_space<vmem>>, vector<1x4x16x128xf32>
    %441 = vector.shape_cast %440 : vector<1x4x16x128xf32> to vector<4x16x128xf32>
    %442 = vector.shape_cast %439 : vector<4x16x128xf32> to vector<1x4x16x128xf32>
    tpu.vector_store %arg11[%c0_66, %c12_67, %c0_68, %c0_69], %442 {strides = array<i32>} : memref<1x16x16x128xf32, #tpu.memory_space<vmem>>, vector<1x4x16x128xf32>,
    return
  }
  func.func @transform_0(%arg0: i32) -> (i32, i32, i32, i32) {
    %c0_i32 = arith.constant 0 : i32
    %c0_i32_0 = arith.constant 0 : i32
    %c0_i32_1 = arith.constant 0 : i32
    %c0_i32_2 = arith.constant 0 : i32
    return %arg0, %c0_i32, %c0_i32_0, %c0_i32_1 : i32, i32, i32, i32
  }
  func.func @transform_1(%arg0: i32) -> (i32, i32) {
    %c0_i32 = arith.constant 0 : i32
    %c0_i32_0 = arith.constant 0 : i32
    %c0_i32_1 = arith.constant 0 : i32
    return %c0_i32, %c0_i32_0 : i32, i32
  }
  func.func @transform_2(%arg0: i32) -> (i32, i32) {
    %c0_i32 = arith.constant 0 : i32
    %c0_i32_0 = arith.constant 0 : i32
    %c0_i32_1 = arith.constant 0 : i32
    return %c0_i32, %c0_i32_0 : i32, i32
  }
  func.func @transform_3(%arg0: i32) -> (i32, i32) {
    %c0_i32 = arith.constant 0 : i32
    %c0_i32_0 = arith.constant 0 : i32
    %c0_i32_1 = arith.constant 0 : i32
    return %c0_i32, %c0_i32_0 : i32, i32
  }
  func.func @transform_4(%arg0: i32) -> (i32, i32) {
    %c0_i32 = arith.constant 0 : i32
    %c0_i32_0 = arith.constant 0 : i32
    %c0_i32_1 = arith.constant 0 : i32
    return %c0_i32, %c0_i32_0 : i32, i32
  }
  func.func @transform_5(%arg0: i32) -> (i32, i32) {
    %c0_i32 = arith.constant 0 : i32
    %c0_i32_0 = arith.constant 0 : i32
    %c0_i32_1 = arith.constant 0 : i32
    return %c0_i32, %c0_i32_0 : i32, i32
  }
  func.func @transform_6(%arg0: i32) -> (i32, i32) {
    %c0_i32 = arith.constant 0 : i32
    %c0_i32_0 = arith.constant 0 : i32
    %c0_i32_1 = arith.constant 0 : i32
    return %c0_i32, %c0_i32_0 : i32, i32
  }
  func.func @transform_7(%arg0: i32) -> (i32, i32) {
    %c0_i32 = arith.constant 0 : i32
    %c0_i32_0 = arith.constant 0 : i32
    %c0_i32_1 = arith.constant 0 : i32
    return %c0_i32, %c0_i32_0 : i32, i32
  }
  func.func @transform_8(%arg0: i32) -> (i32, i32) {
    %c0_i32 = arith.constant 0 : i32
    %c0_i32_0 = arith.constant 0 : i32
    %c0_i32_1 = arith.constant 0 : i32
    return %c0_i32, %c0_i32_0 : i32, i32
  }
  func.func @transform_9(%arg0: i32) -> (i32, i32) {
    %c0_i32 = arith.constant 0 : i32
    %c0_i32_0 = arith.constant 0 : i32
    %c0_i32_1 = arith.constant 0 : i32
    return %c0_i32, %c0_i32_0 : i32, i32
  }
  func.func @transform_10(%arg0: i32) -> (i32, i32, i32, i32) {
    %c0_i32 = arith.constant 0 : i32
    %c0_i32_0 = arith.constant 0 : i32
    %c0_i32_1 = arith.constant 0 : i32
    %c0_i32_2 = arith.constant 0 : i32
    return %arg0, %c0_i32, %c0_i32_0, %c0_i32_1 : i32, i32, i32, i32
  }
}

</mosaic_0001>

<bundles_post_ra>
// kernel: tpu_custom_call.1
= control target key start
LH: loop header
LB: loop body
LE: loop exit
PB: predicated region body
PF: predicated region fallthrough
CT: control target
= control target key end

     0   :  { %s15568_s0 = inlined_call_operand.hbm [shape: f32[2,16,16,128], index: 0, kind: input, shape index: {}]   ;;  %s15569_s1 = inlined_call_operand.hbm [shape: f32[49,128], index: 1, kind: input, shape index: {}]   ;;  %s15570_s2 = inlined_call_operand.vmem [shape: f32[1,128], index: 2, kind: input, shape index: {}]   ;;  %s15571_s3 = inlined_call_operand.vmem [shape: f32[1,128], index: 3, kind: input, shape index: {}]   ;;  %s15572_s4 = inlined_call_operand.vmem [shape: f32[1,128], index: 4, kind: input, shape index: {}]   ;;  %s15573_s5 = inlined_call_operand.hbm [shape: bf16[128,128], index: 5, kind: input, shape index: {}]   ;;  %s15574_s6 = inlined_call_operand.vmem [shape: f32[1,128], index: 6, kind: input, shape index: {}]   ;;  %s15575_s7 = inlined_call_operand.hbm [shape: bf16[128,128], index: 7, kind: input, shape index: {}]   ;;  %s15576_s8 = inlined_call_operand.vmem [shape: f32[1,128], index: 8, kind: input, shape index: {}]   ;;  %s15577_s9 = inlined_call_operand.vmem [shape: f32[1,128], index: 9, kind: input, shape index: {}]   ;;  %s15578_s10 = inlined_call_operand.hbm [shape: f32[2,16,16,128], index: 10, kind: output, shape index: {}]  }
   0x1   :  { %15877 = sst [smem:[#allocation134_spill]] %s15569_s1 }
   0x2   :  { %15878 = sst [smem:[#allocation135_spill]] %s15573_s5 }
   0x3   :  { %15879 = sst [smem:[#allocation136_spill]] %s15575_s7 }
   0x4   :  { %15 = vsyncpa [#allocation4], 0 }
   0x5   :  { %17 = vsyncpa [#allocation4 + $0x1], 0 }
   0x6   :  { %18 = vsyncpa [#allocation7], 0 }
   0x7   :  { %19 = vsyncpa [#allocation10], 0 }
   0x8   :  { %20 = vsyncpa [#allocation5], 0 }
   0x9   :  { %22 = vsyncpa [#allocation5 + $0x1], 0  ;;  %s9633_s13 = smov 0   ;;  %s9635_s14 = smov 0  }
   0xa   :  { %s9637_s15 = smov 0   ;;  %s9639_s16 = smov 0  }
   0xb LB: > { %s9654_s17 = sadd.s32 4294967295, %s9514_s16   ;;  %s8603_s18 = sadd.s32 4294967294, %s9514_s16   ;;  %s9514_s16 = sphi %s9639_s16, %s16758_s16   ;;  %s9510_s15 = sphi %s9637_s15, %s16757_s15   ;;  %s9506_s14 = sphi %s9635_s14, %s16756_s14   ;;  %s9502_s13 = sphi %s9633_s13, %s16755_s13  }
   0xc   : > { %p48_p0 = scmp.ne.s32.totalorder %s9506_s14, %s9502_s13  ;;  %p49_p1 = scmp.eq.s32.totalorder %s9654_s17, 0 }
   0xd   : > { %p261_p2 = scmp.eq.s32.totalorder %s9654_s17, 1  ;;  %p267_p3 = scmp.eq.s32.totalorder %s8603_s18, 1 }
   0xe   : > { %p9663_p4 = por %p49_p1, %p48_p0  ;;  %p8604_p5 = scmp.ge.s32.totalorder %s9514_s16, 1 }
   0xf   : > { %p9668_p6 = por %p267_p3, %p48_p0  ;;  %p274_p7 = scmp.lt.s32.totalorder %s9514_s16, 3 }
  0x10   : > { %s15882_s1 = sld [smem:[#allocation134_spill]]  ;;  %s9568_s25 = smov [#allocation6]  }
  0x11   : > { %p9676_p8 = pnand %p8604_p5, %p274_p7  ;;  %s287_s26 = sshll.u32 %s9568_s25, 4  ;;  %s288_s26 = int_to_ptr.vmem [resolvable:$true] %s287_s26 }
  0x12   : > { %s15885_s5 = sld [smem:[#allocation135_spill]]  ;;  %s15579_s11 = smov 128  }
  0x13   : > { %p9000_p9 = pneg %p9676_p8  ;;  %s15580_s12 = smov 8  }
  0x14   : > { %s9571_s18 = smov [#allocation8]   ;;  %s9572_s22 = smov 64  }
  0x15   : > { %p9684_p10 = pnand %p9000_p9, %p49_p1  ;;  %s310_s21 = sshll.u32 %s9571_s18, 4  ;;  %s311_s21 = int_to_ptr.vmem [resolvable:$true] %s310_s21 }
  0x16   : > { %s285_s23 = sshll.u32 %s15882_s1, 4  ;;  %s9573_s25 = smov 4   ;;  %s286_s23 = int_to_ptr.hbm [resolvable:$true] %s285_s23 }
  0x17   : > { %9003 = dma.hbm_to_vmem [thread:$0]  (!%p9684_p10), %s286_s23, 896, %s288_s26, [#allocation7], %s15579_s11, %s15579_s11, %s15580_s12  }
  0x18   : > { %s308_s30 = sshll.u32 %s15885_s5, 4  ;;  %s15886_s7 = sld [smem:[#allocation136_spill]]  ;;  %s309_s30 = int_to_ptr.hbm [resolvable:$true] %s308_s30 }
  0x19   : > { %9006 = dma.hbm_to_vmem [thread:$0]  (!%p9684_p10), %s309_s30, 1024, %s311_s21, [#allocation7], %s9572_s22, %s9572_s22, %s9573_s25  }
  0x1a   : > { %s9574_s23 = smov [#allocation9]   ;;  %s9705_s18 = sadd.s32 1, %s9514_s16  }
  0x1b   : > { %s327_s26 = sshll.u32 %s9574_s23, 4  ;;  %s32_s11 = ssub.s32 %s9514_s16, %s9705_s18  ;;  %s328_s26 = int_to_ptr.vmem [resolvable:$true] %s327_s26 }
  0x1c   : > { %s35_s12 = sadd.s32 1, %s9510_s15  ;;  %p33_p12 = scmp.eq.s32.totalorder %s32_s11, 0 }
  0x1d   : > { %p42_p13 = scmp.ne.s32.totalorder %s9510_s15, %s9506_s14  ;;  %p43_p0 = scmp.eq.s32.totalorder %s9514_s16, 0 }
  0x1e   : > { %s325_s1 = sshll.u32 %s15886_s7, 4  ;;  %p9021_p5 = scmp.lt.s32.totalorder %s9514_s16, 2  ;;  %s326_s1 = int_to_ptr.hbm [resolvable:$true] %s325_s1 }
  0x1f   : > { %9009 = dma.hbm_to_vmem [thread:$0]  (!%p9684_p10), %s326_s1, 1024, %s328_s26, [#allocation10], %s9572_s22, %s9572_s22, %s9573_s25  }
  0x20   : > { %s9714_s30 = scalar_select %p33_p12, %s9510_s15, %s35_s12  }
  0x21   : > { %p9718_p3 = por %p261_p2, %p42_p13  ;;  %s347_s28 = sand.u32 1, %s9510_s15  }
  0x22   : > { %15887 = sst [smem:[#allocation16_spill]] %s9714_s30  ;;  %s8911_s29 = sshll.u32 %s9514_s16, 8 }
  0x23   : > { %p44_p7 = por %p43_p0, %p42_p13  ;;  %s8609_s1 = sshll.u32 %s347_s28, 8 }
  0x24   : > { %s356_s25 = scalar_lea.hbm %s15568_s0, %s8911_s29  ;;  %s351_s11 = scalar_lea.vmem [#allocation3], %s8609_s1 }
  0x25   : > { %s357_s23 = sshll.u32 %s356_s25, 4  ;;  %s359_s26 = sshll.u32 %s351_s11, 4  ;;  %s358_s23 = int_to_ptr.hbm [resolvable:$true] %s357_s23  ;;  %s360_s26 = int_to_ptr.vmem [resolvable:$true] %s359_s26 }
  0x26   : > { %p9728_p9 = pnand %p9021_p5, %p44_p7  ;;  %s348_s5 = scalar_lea.sflag [#allocation4], %s347_s28 }
  0x27   : > { %s9358_s7 = sshra.s32 %s358_s23, 4  ;;  %s9365_s1 = scalar_lea.hbm %s15568_s0, 512  ;;  %s9359_s7 = int_to_ptr.hbm [resolvable:$true] %s9358_s7 }
  0x28   : > { %s9360_s30 = scalar_lea.hbm %s9359_s7, 256  ;;  %p9362_p10 = pneg %p9728_p9 }
  0x29   : > { %p9361_p2 = scmp.ne.s32.totalorder %s9359_s7, %s9360_s30  ;;  %p9366_p0 = scmp.lt.s32.totalorder %s9359_s7, %s15568_s0 }
  0x2a   : > { %p9367_p5 = scmp.lt.s32.totalorder %s9365_s1, %s9360_s30 }
  0x2b   : > { %p9363_p12 = pnand %p9362_p10, %p9361_p2 }
  0x2c   : > { %p9368_p7 = por %p9367_p5, %p9366_p0 }
  0x2d   : > { %p9364_p13 = pneg %p9363_p12 }
  0x2f   : > { %p9369_p11 = pnand %p9368_p7, %p9364_p13 }
  0x31   : > { %9372 = shalt.err (!%p9369_p11)
}
  0x32   : > { %s15890_s28 = smov 8   ;;  %s15891_s11 = smov 128  }
  0x33   : > { %9013 = dma.hbm_to_vmem [thread:$0]  (!%p9728_p9), %s358_s23, 4096, %s360_s26, %s348_s5, %s15891_s11, %s15891_s11, %s15890_s28  }
  0x34   : > { %371 = sbr.rel (%p9676_p8) target bundleno = 2280 (0x8e8), region = 60 }
  0x39   : > { %s9748_s29 = sand.u32 1, %s9506_s14  }
  0x3a   : > { %s8613_s7 = sshll.u32 %s9748_s29, 8  ;;  %s374_s30 = scalar_lea.sflag [#allocation4], %s9748_s29 }
  0x3b   : > { %s9754_s27 = scalar_lea.vmem [#allocation3], %s8613_s7 }
  0x3c   : > { %9485 = dma.done.wait (%p9663_p4), %s374_s30, 4096  }
  0x3d   : > { %9487 = vsyncadd (%p9663_p4), %s374_s30, 4294963200 }
  0x3e   : > { %9489 = dma.done.wait (%p49_p1), [#allocation7], 1920  }
  0x3f   : > { %9491 = vsyncadd (%p49_p1), [#allocation7], 4294965376 }
  0x40   : > { %9493 = dma.done.wait (%p49_p1), [#allocation10], 1024  }
  0x41   : > { %9495 = vsyncadd (%p49_p1), [#allocation10], 4294966272  ;;  %v9575_v0 = vmov 0.0   ;;  %v9777_v1 = vld [vmem:[%s15571_s3] sm:$0x1]  ;;  %v9803_v7 = vld [vmem:[#allocation6 + $0x8] sm:$0xff]  ;;  %v577_v23 = vlaneseq }
  0x42   : > { %431 = vst [vmem:[#allocation2 + $0x8] sm:$0xff] %v9575_v0  ;;  %v9782_v2 = vld [vmem:[%s15572_s4] sm:$0x1]  ;;  %vm648_vm0 = vcmask 1046528   ;;  %v9826_v14 = vperm.slane %v9803_v7, 0  ;;  %v9829_v15 = vperm.slane %v9803_v7, 1 }
  0x43   : > { %432 = vst [vmem:[#allocation2 + $0x10] sm:$0xff] %v9575_v0  ;;  %v9787_v3 = vld [vmem:[%s15574_s6] sm:$0x1]  ;;  %vm718_vm1 = vcmask 1045504   ;;  %v9856_v28 = vld [vmem:[#allocation6 + $0x10] sm:$0xff]  ;;  %v9861_v31 = vperm.slane %v9803_v7, 2 }
  0x44   : > { %435 = vst [vmem:[#allocation2 + $0x28] sm:$0xff] %v9575_v0  ;;  %v9792_v4 = vld [vmem:[%s15576_s8] sm:$0x1]  ;;  %v1072_v22 = vmul.f32 0.0, %v9826_v14  ;;  %v1141_v26 = vmul.f32 0.0, %v9829_v15  ;;  %v578_v33 = vand.u32 127, %v577_v23 }
  0x45   : > { %436 = vst [vmem:[#allocation2 + $0x30] sm:$0xff] %v9575_v0  ;;  %v9797_v5 = vld [vmem:[%s15577_s9] sm:$0x1]  ;;  %v9875_v36 = vperm.slane %v9803_v7, 3  ;;  %v9878_v37 = vperm.slane %v9803_v7, 6  ;;  %v9882_v38 = vperm.slane %v9803_v7, 7 }
  0x46   : > { %439 = vst [vmem:[#allocation2 + $0x48] sm:$0xff] %v9575_v0  ;;  %v9800_v6 = vld [vmem:[#allocation6] sm:$0xff]  ;;  %v9872_v35 = vrot.slane %v1072_v22, 1  ;;  %vm579_vm2 = vcmp.lt.s32.totalorder %v578_v33, 32  ;;  %v9885_v39 = vperm.slane %v9856_v28, 0  ;;  %v9888_v40 = vperm.slane %v9856_v28, 1 }
  0x47   : > { %440 = vst [vmem:[#allocation2 + $0x50] sm:$0xff] %v9575_v0  ;;  %v9806_v8 = vperm.slane %v9800_v6, 0  ;;  %v9810_v9 = vperm.slane %v9800_v6, 1  ;;  %v9813_v10 = vperm.slane %v9800_v6, 2  ;;  %v9816_v11 = vperm.slane %v9800_v6, 3  ;;  %v9853_v27 = vld [vmem:[%s9754_s27] sm:$0xff] }
  0x48   : > { %15892 = vst [vmem:[#allocation17_spill] sm:$0xff] %v9777_v1  ;;  %v9819_v12 = vperm.slane %v9800_v6, 4  ;;  %v9823_v13 = vperm.slane %v9800_v6, 7  ;;  %v9892_v41 = vsel %vm579_vm2, 1.0, %v9575_v0  ;;  %v9896_v43 = vrot.slane %v1141_v26, 2  ;;  %v9920_v53 = vld [vmem:[#allocation6 + $0x18] sm:$0xff] }
  0x49   : > { %15893 = vst [vmem:[#allocation18_spill] sm:$0xff] %v9782_v2  ;;  %v9833_v16 = vmul.f32 0.0, %v9810_v9  ;;  %v9836_v17 = vmul.f32 0.0, %v9813_v10  ;;  %v764_v18 = vmul.f32 0.0, %v9816_v11  ;;  %v9842_v20 = vmul.f32 0.0, %v9806_v8  ;;  %s12697_s24 = scalar_lea.vmem [#allocation11], %s8613_s7 }
  0x4a   : > { %15894 = vst [vmem:[#allocation19_spill] sm:$0xff] %v9787_v3  ;;  %v818_v19 = vmul.f32 0.0, %v9819_v12  ;;  %v9845_v21 = vmul.f32 0.0, %v9823_v13  ;;  %v9865_v32 = vmul.f32 %v9806_v8, %v9853_v27  ;;  %v1261_v44 = vmul.f32 0.0, %v9875_v36  ;;  %v575_v3 = vld [vmem:[#allocation6 + $0x28] sm:$0xff]  ;;  %s12732_s7 = smov 0  }
  0x4b   : > { %15895 = vst [vmem:[#allocation20_spill] sm:$0xff] %v9792_v4  ;;  %v15582_v24 = vrot.slane %v9833_v16, 1  ;;  %v15581_v25 = vrot.slane %v9836_v17, 2  ;;  %v781_v29 = vrot.slane %v764_v18, 3  ;;  %v9901_v45 = vmul.f32 0.0, %v9861_v31  ;;  %v574_v18 = vld [vmem:[#allocation6 + $0x20] sm:$0xff] }
  0x4c   : > { %15896 = vst [vmem:[#allocation21_spill] sm:$0xff] %v9797_v5  ;;  %v9858_v30 = vrot.slane %v818_v19, 4  ;;  %v1512_v46 = vmul.f32 0.0, %v9882_v38  ;;  %v1581_v47 = vmul.f32 0.0, %v9885_v39  ;;  %v9906_v48 = vperm.slane %v9856_v28, 2 }
  0x4d   : > { %444 = vst [vmem:[#allocation2 + $0x268] sm:$0xff] %v9575_v0  ;;  %v681_v34 = vadd.f32 %v15582_v24, %v9842_v20  ;;  %v9911_v50 = vrot.slane %v1261_v44, 4  ;;  %v9914_v51 = vmul.f32 0.0, %v9878_v37  ;;  %v9917_v52 = vmul.f32 0.0, %v9888_v40 }
  0x4e   : > { %445 = vst [vmem:[#allocation2 + $0x270] sm:$0xff] %v9575_v0  ;;  %v1701_v54 = vmul.f32 0.0, %v9906_v48  ;;  %v9924_v55 = vperm.slane %v9856_v28, 5  ;;  %v9928_v56 = vperm.slane %v9856_v28, 6  ;;  %v9931_v57 = vperm.slane %v9856_v28, 7 }
  0x4f   : > { %15897 = vst [vmem:[#allocation22_spill] sm:$0xff] %v9806_v8  ;;  %v751_v42 = vadd.f32 %v15581_v25, %v681_v34  ;;  %v9934_v58 = vperm.slane %v9920_v53, 1  ;;  %v9937_v59 = vperm.slane %v9920_v53, 2  ;;  %v9940_v60 = vrot.slane %v1512_v46, 1 }
  0x50   : > { %448 = vst [vmem:[#allocation2 + $0x288] sm:$0xff] %v9575_v0  ;;  %v9942_v61 = vrot.slane %v1581_v47, 2  ;;  %v9945_v62 = vperm.slane %v9920_v53, 3  ;;  %v9948_v63 = vperm.slane %v9920_v53, 4  ;;  %v9951_v19 = vrot.slane %v1701_v54, 4 }
  0x51   : > { %15898 = vst [vmem:[#allocation23_spill] sm:$0xff] %v9810_v9  ;;  %v9909_v49 = vadd.f32 %v781_v29, %v751_v42  ;;  %v1949_v22 = vmul.f32 0.0, %v9928_v56  ;;  %v2018_v23 = vmul.f32 0.0, %v9931_v57  ;;  %v2142_v26 = vmul.f32 0.0, %v9934_v58 }
  0x52   : > { %15899 = vst [vmem:[#allocation24_spill] sm:$0xff] %v9813_v10  ;;  %v2211_v29 = vmul.f32 0.0, %v9937_v59  ;;  %v2280_v33 = vmul.f32 0.0, %v9945_v62  ;;  %v9960_v34 = vperm.slane %v9920_v53, 5  ;;  %v9963_v42 = vperm.slane %v9920_v53, 6 }
  0x53   : > { %15900 = vst [vmem:[#allocation25_spill] sm:$0xff] %v9816_v11  ;;  %v9967_v44 = vmul.f32 0.0, %v9924_v55  ;;  %v9969_v46 = vrot.slane %v1949_v22, 1  ;;  %v9971_v47 = vrot.slane %v2018_v23, 2  ;;  %v9974_v54 = vmul.f32 0.0, %v9948_v63 }
  0x54   : > { %15901 = vst [vmem:[#allocation26_spill] sm:$0xff] %v9819_v12  ;;  %v9977_v25 = vrot.slane %v2142_v26, 4  ;;  %v2389_v24 = vmul.f32 0.0, %v9960_v34  ;;  %v2458_v5 = vmul.f32 0.0, %v9963_v42  ;;  %v9981_v4 = vperm.slane %v574_v18, 0 }
  0x55   : > { %449 = vst [vmem:[#allocation2 + $0x290] sm:$0xff] %v9575_v0  ;;  %v9984_v22 = vperm.slane %v574_v18, 1  ;;  %v9986_v23 = vperm.slane %v574_v18, 2  ;;  %v9988_v2 = vperm.slane %v574_v18, 3  ;;  %v9990_v1 = vperm.slane %v574_v18, 4 }
  0x56   : > { %15902 = vst [vmem:[#allocation27_spill] sm:$0xff] %v9823_v13  ;;  %v9993_v26 = vrot.slane %v2211_v29, 5  ;;  %vm780_vm3 = vcmask 1044480   ;;  %vm842_vm4 = vcmask 1043456   ;;  %vm912_vm5 = vcmask 1042432  }
  0x57   : > { %15903 = vst [vmem:[#allocation28_spill] sm:$0xff] %v9826_v14  ;;  %v2829_v29 = vmul.f32 0.0, %v9990_v1  ;;  %vm982_vm6 = vcmask 1041408  }
  0x58   : > { %15904 = vst [vmem:[#allocation29_spill] sm:$0xff] %v9829_v15 }
  0x59   : > { %452 = vst [vmem:[#allocation2 + $0x2a8] sm:$0xff] %v9575_v0 }
  0x5a   : > { %453 = vst [vmem:[#allocation2 + $0x2b0] sm:$0xff] %v9575_v0 }
  0x5b   : > { %15905 = vst [vmem:[#allocation30_spill] sm:$0xff] %v9842_v20  ;;  %v2651_v20 = vmul.f32 0.0, %v9984_v22 }
  0x5c   : > { %15906 = vst [vmem:[#allocation31_spill] sm:$0xff] %v9845_v21 }
  0x5d   : > { %455 = vst [vmem:[#allocation2] sm:$0xff] %v9575_v0 }
  0x5e   : > { %458 = vst [vmem:[#allocation2 + $0x60] sm:$0xff] %v9575_v0 }
  0x5f   : > { %15907 = vst [vmem:[#allocation32_spill] sm:$0xff] %v9858_v30 }
  0x60   : > { %15908 = vst [vmem:[#allocation33_spill] sm:$0xff] %v9861_v31 }
  0x61   : > { %459 = vst [vmem:[#allocation2 + $0x80] sm:$0xff] %v9575_v0 }
  0x62   : > { %460 = vst [vmem:[#allocation2 + $0xa0] sm:$0xff] %v9575_v0 }
  0x63   : > { %15909 = vst [vmem:[#allocation34_spill] sm:$0xff] %v9872_v35 }
  0x64   : > { %15910 = vst [vmem:[#allocation35_spill] sm:$0xff] %v9875_v36 }
  0x65   : > { %15911 = vst [vmem:[#allocation36_spill] sm:$0xff] %v9878_v37 }
  0x66   : > { %461 = vst [vmem:[#allocation2 + $0xc0] sm:$0xff] %v9575_v0 }
  0x67   : > { %15912 = vst [vmem:[#allocation37_spill] sm:$0xff] %v9882_v38 }
  0x68   : > { %15913 = vst [vmem:[#allocation38_spill] sm:$0xff] %v9885_v39 }
  0x69   : > { %15914 = vst [vmem:[#allocation39_spill] sm:$0xff] %v9888_v40 }
  0x6a   : > { %462 = vst [vmem:[#allocation2 + $0xe0] sm:$0xff] %v9575_v0 }
  0x6b   : > { %15915 = vst [vmem:[#allocation40_spill] sm:$0xff] %v9892_v41  ;;  %v9995_v41 = vrot.slane %v2280_v33, 6 }
  0x6c   : > { %15916 = vst [vmem:[#allocation41_spill] sm:$0xff] %v9896_v43 }
  0x6d   : > { %463 = vst [vmem:[#allocation2 + $0x100] sm:$0xff] %v9575_v0 }
  0x6e   : > { %15917 = vst [vmem:[#allocation42_spill] sm:$0xff] %v9906_v48 }
  0x6f   : > { %464 = vst [vmem:[#allocation2 + $0x120] sm:$0xff] %v9575_v0 }
  0x70   : > { %15918 = vst [vmem:[#allocation43_spill] sm:$0xff] %v9911_v50 }
  0x71   : > { %15919 = vst [vmem:[#allocation44_spill] sm:$0xff] %v9914_v51 }
  0x72   : > { %465 = vst [vmem:[#allocation2 + $0x140] sm:$0xff] %v9575_v0 }
  0x73   : > { %15920 = vst [vmem:[#allocation45_spill] sm:$0xff] %v9924_v55 }
  0x74   : > { %466 = vst [vmem:[#allocation2 + $0x160] sm:$0xff] %v9575_v0 }
  0x75   : > { %15921 = vst [vmem:[#allocation46_spill] sm:$0xff] %v9928_v56 }
  0x76   : > { %15922 = vst [vmem:[#allocation47_spill] sm:$0xff] %v9931_v57 }
  0x77   : > { %15923 = vst [vmem:[#allocation48_spill] sm:$0xff] %v9934_v58 }
  0x78   : > { %15924 = vst [vmem:[#allocation49_spill] sm:$0xff] %v9937_v59 }
  0x79   : > { %467 = vst [vmem:[#allocation2 + $0x180] sm:$0xff] %v9575_v0 }
  0x7a   : > { %15925 = vst [vmem:[#allocation50_spill] sm:$0xff] %v9940_v60 }
  0x7b   : > { %15926 = vst [vmem:[#allocation51_spill] sm:$0xff] %v9942_v61 }
  0x7c   : > { %15927 = vst [vmem:[#allocation52_spill] sm:$0xff] %v9945_v62 }
  0x7d   : > { %15928 = vst [vmem:[#allocation53_spill] sm:$0xff] %v9948_v63  ;;  %v10001_v63 = vrot.slane %v2389_v24, 1 }
  0x7e   : > { %468 = vst [vmem:[#allocation2 + $0x1a0] sm:$0xff] %v9575_v0 }
  0x7f   : > { %15929 = vst [vmem:[#allocation54_spill] sm:$0xff] %v9951_v19 }
  0x80   : > { %469 = vst [vmem:[#allocation2 + $0x1c0] sm:$0xff] %v9575_v0 }
  0x81   : > { %15930 = vst [vmem:[#allocation55_spill] sm:$0xff] %v9960_v34  ;;  %v9998_v34 = vperm.slane %v574_v18, 5 }
  0x82   : > { %15931 = vst [vmem:[#allocation56_spill] sm:$0xff] %v9963_v42  ;;  %v2582_v42 = vmul.f32 0.0, %v9981_v4 }
  0x83   : > { %470 = vst [vmem:[#allocation2 + $0x1e0] sm:$0xff] %v9575_v0  ;;  %v2898_v33 = vmul.f32 0.0, %v9998_v34 }
  0x84   : > { %15932 = vst [vmem:[#allocation57_spill] sm:$0xff] %v9967_v44  ;;  %v10015_v24 = vrot.slane %v2582_v42, 4  ;;  %v10033_v42 = vperm.slane %v575_v3, 3 }
  0x85   : > { %15933 = vst [vmem:[#allocation58_spill] sm:$0xff] %v9969_v46 }
  0x86   : > { %15934 = vst [vmem:[#allocation59_spill] sm:$0xff] %v9971_v47 }
  0x87   : > { %15935 = vst [vmem:[#allocation60_spill] sm:$0xff] %v9974_v54  ;;  %v10003_v54 = vrot.slane %v2458_v5, 2  ;;  %v10017_v5 = vrot.slane %v2651_v20, 5 }
  0x88   : > { %471 = vst [vmem:[#allocation2 + $0x200] sm:$0xff] %v9575_v0 }
  0x89   : > { %15936 = vst [vmem:[#allocation61_spill] sm:$0xff] %v9977_v25  ;;  %v2720_v25 = vmul.f32 0.0, %v9986_v23 }
  0x8a   : > { %15937 = vst [vmem:[#allocation62_spill] sm:$0xff] %v9981_v4  ;;  %v10012_v4 = vperm.slane %v575_v3, 0 }
  0x8b   : > { %472 = vst [vmem:[#allocation2 + $0x220] sm:$0xff] %v9575_v0 }
  0x8c   : > { %15938 = vst [vmem:[#allocation63_spill] sm:$0xff] %v9984_v22  ;;  %v10020_v22 = vmul.f32 0.0, %v9988_v2 }
  0x8d   : > { %15939 = vst [vmem:[#allocation64_spill] sm:$0xff] %v9986_v23  ;;  %v10022_v23 = vperm.slane %v575_v3, 1 }
  0x8e   : > { %15940 = vst [vmem:[#allocation65_spill] sm:$0xff] %v9988_v2  ;;  %v10035_v2 = vperm.slane %v575_v3, 4 }
  0x8f   : > { %15941 = vst [vmem:[#allocation66_spill] sm:$0xff] %v9990_v1  ;;  %v10025_v1 = vrot.slane %v2720_v25, 6  ;;  %v3160_v20 = vmul.f32 0.0, %v10022_v23  ;;  %v10042_v25 = vrot.slane %v2829_v29, 1 }
  0x90   : > { %473 = vst [vmem:[#allocation2 + $0x240] sm:$0xff] %v9575_v0 }
  0x91   : > { %15942 = vst [vmem:[#allocation67_spill] sm:$0xff] %v9993_v26 }
  0x92   : > { %15943 = vst [vmem:[#allocation68_spill] sm:$0xff] %v9995_v41  ;;  %v10010_v41 = vperm.slane %v574_v18, 7 }
  0x93   : > { %15944 = vst [vmem:[#allocation69_spill] sm:$0xff] %v9998_v34  ;;  %v3091_v34 = vmul.f32 0.0, %v10012_v4 }
  0x94   : > { %480 = vst [vmem:[#allocation2 + $0x78] sm:$0xff] %v9575_v0  ;;  %v3022_v18 = vmul.f32 0.0, %v10010_v41 }
  0x95   : > { %15945 = vst [vmem:[#allocation70_spill] sm:$0xff] %v10001_v63  ;;  %v3338_v63 = vmul.f32 0.0, %v10035_v2 }
  0x96   : > { %15946 = vst [vmem:[#allocation71_spill] sm:$0xff] %v10003_v54  ;;  %v10029_v54 = vperm.slane %v575_v3, 2 }
  0x97   : > { %481 = vst [vmem:[#allocation2 + $0x98] sm:$0xff] %v9575_v0 }
  0x98   : > { %15947 = vst [vmem:[#allocation72_spill] sm:$0xff] %v10010_v41  ;;  %v10048_v41 = vperm.slane %v575_v3, 7  ;;  %v10058_v29 = vmul.f32 0.0, %v10029_v54 }
  0x99   : > { %15948 = vst [vmem:[#allocation73_spill] sm:$0xff] %v10012_v4  ;;  %v10046_v4 = vrot.slane %v3022_v18, 4 }
  0x9a   : > { %482 = vst [vmem:[#allocation2 + $0xb8] sm:$0xff] %v9575_v0 }
  0x9b   : > { %15949 = vst [vmem:[#allocation74_spill] sm:$0xff] %v10015_v24  ;;  %v3269_v24 = vmul.f32 0.0, %v10033_v42 }
  0x9c   : > { %15950 = vst [vmem:[#allocation75_spill] sm:$0xff] %v10017_v5  ;;  %v10039_v5 = vld [vmem:[#allocation6 + $0x30] ss:$0 sm:$0xff] }
  0x9d   : > { %15951 = vst [vmem:[#allocation76_spill] sm:$0xff] %v10020_v22  ;;  %v10037_v22 = vperm.slane %v575_v3, 6  ;;  %v10062_v3 = vrot.slane %v3160_v20, 6  ;;  %v10064_v18 = vrot.slane %v3269_v24, 1  ;;  %v855_v24 = vsel %vm842_vm4, %v9858_v30, %v9858_v30 }
  0x9e   : > { %15952 = vst [vmem:[#allocation77_spill] sm:$0xff] %v10022_v23  ;;  %v10051_v23 = vrot.slane %v3091_v34, 5  ;;  %v3600_v34 = vmul.f32 0.0, %v10039_v5  ;;  %v10086_v20 = vperm.slane %v9800_v6, 5 }
  0x9f   : > { %483 = vst [vmem:[#allocation2 + $0xd8] sm:$0xff] %v9575_v0  ;;  %v3462_v26 = vmul.f32 0.0, %v10037_v22 }
  0xa0   : > { %15953 = vst [vmem:[#allocation78_spill] sm:$0xff] %v10025_v1  ;;  %v10044_v1 = vrot.slane %v2898_v33, 2  ;;  %v3531_v33 = vmul.f32 0.0, %v10048_v41 }
  0xa1   : > { %15954 = vst [vmem:[#allocation79_spill] sm:$0xff] %v10029_v54  ;;  %v10142_v54 = vld [vmem:[%s9754_s27 + $0x8] sm:$0xff] }
  0xa2   : > { %484 = vst [vmem:[#allocation2 + $0xf8] sm:$0xff] %v9575_v0 }
  0xa3   : > { %15955 = vst [vmem:[#allocation80_spill] sm:$0xff] %v10033_v42 }
  0xa4   : > { %15956 = vst [vmem:[#allocation81_spill] sm:$0xff] %v10035_v2  ;;  %v10068_v2 = vrot.slane %v3338_v63, 2  ;;  %v10081_v63 = vrot.slane %v3600_v34, 6 }
  0xa5   : > { %15957 = vst [vmem:[#allocation82_spill] sm:$0xff] %v10037_v22  ;;  %v10070_v22 = vrot.slane %v3462_v26, 4  ;;  %v875_v26 = vadd.f32 %v9858_v30, %v9909_v49 }
  0xa6   : > { %15958 = vst [vmem:[#allocation83_spill] sm:$0xff] %v10039_v5  ;;  %v888_v5 = vmul.f32 0.0, %v10086_v20 }
  0xa7   : > { %485 = vst [vmem:[#allocation2 + $0x118] sm:$0xff] %v9575_v0 }
  0xa8   : > { %15959 = vst [vmem:[#allocation84_spill] sm:$0xff] %v10042_v25  ;;  %v10097_v34 = vrot.slane %v888_v5, 5 }
  0xa9   : > { %15960 = vst [vmem:[#allocation85_spill] sm:$0xff] %v10044_v1 }
  0xaa   : > { %15961 = vst [vmem:[#allocation86_spill] sm:$0xff] %v10046_v4 }
  0xab   : > { %15962 = vst [vmem:[#allocation87_spill] sm:$0xff] %v10048_v41  ;;  %v10074_v41 = vrot.slane %v3531_v33, 5  ;;  %v882_v33 = vadd.f32 %v855_v24, %v9909_v49  ;;  %v1170_v49 = vsel %vm718_vm1, %v9896_v43, %v9896_v43  ;;  %v1224_v24 = vrot.slane %v9901_v45, 3 }
  0xac   : > { %486 = vst [vmem:[#allocation2 + $0x138] sm:$0xff] %v9575_v0 }
  0xad   : > { %15963 = vst [vmem:[#allocation88_spill] sm:$0xff] %v10051_v23  ;;  %v952_v5 = vadd.f32 %v10097_v34, %v882_v33 }
  0xae   : > { %487 = vst [vmem:[#allocation2 + $0x158] sm:$0xff] %v9575_v0 }
  0xaf   : > { %15964 = vst [vmem:[#allocation89_spill] sm:$0xff] %v10058_v29 }
  0xb0   : > { %488 = vst [vmem:[#allocation2 + $0x178] sm:$0xff] %v9575_v0 }
  0xb1   : > { %15965 = vst [vmem:[#allocation90_spill] sm:$0xff] %v10062_v3 }
  0xb2   : > { %15966 = vst [vmem:[#allocation91_spill] sm:$0xff] %v10064_v18 }
  0xb3   : > { %489 = vst [vmem:[#allocation2 + $0x198] sm:$0xff] %v9575_v0 }
  0xb4   : > { %15967 = vst [vmem:[#allocation92_spill] sm:$0xff] %v10068_v2  ;;  %v10116_v2 = vperm.slane %v9803_v7, 4 }
  0xb5   : > { %15968 = vst [vmem:[#allocation93_spill] sm:$0xff] %v10070_v22 }
  0xb6   : > { %490 = vst [vmem:[#allocation2 + $0x1b8] sm:$0xff] %v9575_v0  ;;  %v1330_v33 = vmul.f32 0.0, %v10116_v2 }
  0xb7   : > { %491 = vst [vmem:[#allocation2 + $0x1d8] sm:$0xff] %v9575_v0 }
  0xb8   : > { %15969 = vst [vmem:[#allocation94_spill] sm:$0xff] %v10074_v41  ;;  %v10093_v41 = vperm.slane %v9800_v6, 6  ;;  %v945_v6 = vadd.f32 %v10097_v34, %v875_v26  ;;  %v10145_v4 = vrot.slane %v1330_v33, 5 }
  0xb9   : > { %492 = vst [vmem:[#allocation2 + $0x1f8] sm:$0xff] %v9575_v0 }
  0xba   : > { %493 = vst [vmem:[#allocation2 + $0x218] sm:$0xff] %v9575_v0 }
  0xbb   : > { %15970 = vst [vmem:[#allocation95_spill] sm:$0xff] %v10081_v63  ;;  %v958_v63 = vmul.f32 0.0, %v10093_v41 }
  0xbc   : > { %15971 = vst [vmem:[#allocation96_spill] sm:$0xff] %v10086_v20 }
  0xbd   : > { %494 = vst [vmem:[#allocation2 + $0x238] sm:$0xff] %v9575_v0  ;;  %v10107_v22 = vrot.slane %v958_v63, 6 }
  0xbe   : > { %495 = vst [vmem:[#allocation2 + $0x258] sm:$0xff] %v9575_v0 }
  0xbf   : > { %15972 = vst [vmem:[#allocation97_spill] sm:$0xff] %v10093_v41  ;;  %v10113_v3 = vadd.f32 %v10107_v22, %v945_v6  ;;  %v10121_v45 = vadd.f32 %v10107_v22, %v952_v5  ;;  %v10133_v6 = vperm.slane %v9803_v7, 5  ;;  %v1287_v5 = vsel %vm842_vm4, %v9911_v50, %v9911_v50 }
  0xc0   : > { %456 = vst [vmem:[#allocation2 + $0x20] sm:$0xff] %v9575_v0 }
  0xc1   : > { %457 = vst [vmem:[#allocation2 + $0x40] sm:$0xff] %v9575_v0  ;;  %v10125_v63 = vadd.f32 %v9845_v21, %v10113_v3  ;;  %v1399_v7 = vmul.f32 0.0, %v10133_v6 }
  0xc2   : > { %15973 = vst [vmem:[#allocation98_spill] sm:$0xff] %v10097_v34  ;;  %v1489_v34 = vmul.f32 %v9878_v37, %v9853_v27 }
  0xc3   : > { %474 = vst [vmem:[#allocation2 + $0x260] sm:$0xff] %v9575_v0  ;;  %v1126_v26 = vadd.f32 %v9872_v35, %v10125_v63  ;;  %v10150_v25 = vrot.slane %v1399_v7, 6 }
  0xc4   : > { %475 = vst [vmem:[#allocation2 + $0x280] sm:$0xff] %v9575_v0 }
  0xc5   : > { %15974 = vst [vmem:[#allocation99_spill] sm:$0xff] %v10107_v22  ;;  %v1195_v18 = vadd.f32 %v9896_v43, %v1126_v26  ;;  %v1198_v42 = vadd.f32 %v1170_v49, %v1126_v26 }
  0xc6   : > { %476 = vst [vmem:[#allocation2 + $0x2a0] sm:$0xff] %v9575_v0 }
  0xc7   : > { %477 = vst [vmem:[#allocation2 + $0x18] sm:$0xff] %v9575_v0  ;;  %v1248_v29 = vadd.f32 %v1224_v24, %v1195_v18  ;;  %v1251_v23 = vadd.f32 %v1224_v24, %v1198_v42 }
  0xc8   : > { %15975 = vst [vmem:[#allocation100_spill] sm:$0xff] %v10116_v2 }
  0xc9   : > { %478 = vst [vmem:[#allocation2 + $0x38] sm:$0xff] %v9575_v0  ;;  %v1320_v1 = vadd.f32 %v9911_v50, %v1251_v23  ;;  %v1318_v22 = vadd.f32 %v1287_v5, %v1248_v29  ;;  %v1321_v49 = vadd.f32 %v1287_v5, %v1251_v23  ;;  %v1607_v5 = vsel %vm718_vm1, %v9942_v61, %v9942_v61 }
  0xca   : > { %479 = vst [vmem:[#allocation2 + $0x58] sm:$0xff] %v9575_v0 }
  0xcb   : > { %15976 = vst [vmem:[#allocation101_spill] sm:$0xff] %v10125_v63  ;;  %v1389_v21 = vadd.f32 %v10145_v4, %v1320_v1  ;;  %v1387_v63 = vadd.f32 %v10145_v4, %v1318_v22  ;;  %v1390_v42 = vadd.f32 %v10145_v4, %v1321_v49  ;;  %v1664_v1 = vrot.slane %v9917_v52, 3 }
  0xcc   : > { %496 = vst [vmem:[#allocation2 + $0x278] sm:$0xff] %v9575_v0  ;;  %v1538_v22 = vsel %vm648_vm0, %v9940_v60, %v9940_v60  ;;  %v10177_v49 = vperm.slane %v9856_v28, 4  ;;  %v10181_v52 = vmul.f32 %v9810_v9, %v9853_v27 }
  0xcd   : > { %497 = vst [vmem:[#allocation2 + $0x298] sm:$0xff] %v9575_v0  ;;  %v1456_v24 = vadd.f32 %v10150_v25, %v1387_v63  ;;  %v1458_v33 = vadd.f32 %v10150_v25, %v1389_v21  ;;  %v1459_v7 = vadd.f32 %v10150_v25, %v1390_v42 }
  0xce   : > { %15977 = vst [vmem:[#allocation102_spill] sm:$0xff] %v10133_v6 }
  0xcf   : > { %498 = vst [vmem:[#allocation2 + $0x2b8] sm:$0xff] %v9575_v0  ;;  %v1317_v0 = vadd.f32 %v9911_v50, %v1248_v29  ;;  %v1498_v29 = vadd.f32 %v9914_v51, %v1456_v24  ;;  %v10186_v24 = vmul.f32 %v9813_v10, %v9853_v27 }
  0xd0   : > { %532 = vst [vmem:[#allocation2 + $0x68] sm:$0xff] %v9853_v27 }
  0xd1   : > { %533 = vst [vmem:[#allocation2 + $0x70] sm:$0xff] %v10142_v54  ;;  %v1386_v26 = vadd.f32 %v10145_v4, %v1317_v0  ;;  %v1567_v21 = vadd.f32 %v1538_v22, %v1498_v29  ;;  %v10174_v0 = vperm.slane %v9856_v28, 3  ;;  %v1839_v28 = vmul.f32 0.0, %v10177_v49 }
  0xd2   : > { %15978 = vst [vmem:[#allocation103_spill] sm:$0xff] %v10145_v4 }
  0xd3   : > { %15979 = vst [vmem:[#allocation104_spill] sm:$0xff] %v10150_v25  ;;  %v10157_v18 = vadd.f32 %v10150_v25, %v1386_v26  ;;  %v1636_v42 = vadd.f32 %v1607_v5, %v1567_v21  ;;  %v1770_v29 = vmul.f32 0.0, %v10174_v0  ;;  %v10198_v5 = vrot.slane %v1839_v28, 6 }
  0xd4   : > { %15981 = vst [vmem:[#allocation106_spill] sm:$0xff] %v10174_v0  ;;  %v10226_v28 = vmul.f32 %v9861_v31, %v9853_v27 }
  0xd5   : > { %15980 = vst [vmem:[#allocation105_spill] sm:$0xff] %v10157_v18  ;;  %v1497_v23 = vadd.f32 %v9914_v51, %v10157_v18  ;;  %v1689_v25 = vadd.f32 %v1664_v1, %v1636_v42  ;;  %v10194_v18 = vadd.f32 %v9914_v51, %v1458_v33  ;;  %v10196_v4 = vrot.slane %v1770_v29, 5 }
  0xd6   : > { %15982 = vst [vmem:[#allocation107_spill] sm:$0xff] %v10177_v49  ;;  %v10213_v42 = vmul.f32 %v9826_v14, %v9853_v27  ;;  %v10237_v29 = vmul.f32 %v9875_v36, %v9853_v27  ;;  %v10244_v51 = vmul.f32 %v9882_v38, %v9853_v27 }
  0xd7   : > { %v1566_v63 = vadd.f32 %v9940_v60, %v1497_v23  ;;  %v1727_v23 = vsel %vm842_vm4, %v9951_v19, %v9951_v19  ;;  %15983 = vst [vmem:[#allocation108_spill] sm:$0xff] %v10194_v18  ;;  %v10270_v18 = vadd.f32 %v1489_v34, %v1459_v7 }
  0xd8   : > { %15984 = vst [vmem:[#allocation109_spill] sm:$0xff] %v10196_v4  ;;  %v1758_v50 = vadd.f32 %v1727_v23, %v1689_v25  ;;  %v10218_v25 = vmul.f32 %v9819_v12, %v9853_v27  ;;  %v10222_v23 = vmul.f32 %v9829_v15, %v9853_v27 }
  0xd9   : > { %v1635_v26 = vadd.f32 %v9942_v61, %v1566_v63  ;;  %15985 = vst [vmem:[#allocation110_spill] sm:$0xff] %v10198_v5  ;;  %v10202_v63 = vmul.f32 %v9816_v11, %v9853_v27 }
  0xdb   : > { %v1688_v22 = vadd.f32 %v1664_v1, %v1635_v26  ;;  %v1052_v1 = vmul.f32 %v9823_v13, %v9853_v27  ;;  %v1827_v26 = vadd.f32 %v10196_v4, %v1758_v50 }
  0xdd   : > { %v1757_v21 = vadd.f32 %v9951_v19, %v1688_v22  ;;  %v1896_v22 = vadd.f32 %v10198_v5, %v1827_v26  ;;  %v10268_v26 = vmul.f32 %v9928_v56, %v9853_v27  ;;  %v10275_v19 = vmul.f32 %v9931_v57, %v9853_v27 }
  0xde   : > { %v10333_v56 = vmul.f32 %v10116_v2, %v9853_v27 }
  0xdf   : > { %v1826_v33 = vadd.f32 %v10196_v4, %v1757_v21  ;;  %v10233_v21 = vadd.f32 %v1052_v1, %v10121_v45  ;;  %v10250_v45 = vmul.f32 %v9885_v39, %v9853_v27  ;;  %v10254_v1 = vmul.f32 %v9888_v40, %v9853_v27 }
  0xe0   : > { %v10292_v4 = vmul.f32 %v9934_v58, %v9853_v27  ;;  %v10315_v58 = vmul.f32 %v10093_v41, %v9853_v27 }
  0xe1   : > { %v10229_v50 = vadd.f32 %v10198_v5, %v1826_v33  ;;  %v10262_v5 = vmul.f32 %v9906_v48, %v9853_v27  ;;  %v1925_v33 = vmul.f32 %v9924_v55, %v9853_v27 }
  0xe2   : > { %15990 = vst [vmem:[#allocation115_spill] sm:$0xff] %v10292_v4 }
  0xe3   : > { %15986 = vst [vmem:[#allocation111_spill] sm:$0xff] %v10229_v50  ;;  %v10258_v30 = vadd.f32 %v9967_v44, %v10229_v50  ;;  %v10278_v44 = vperm.slane %v9920_v53, 0  ;;  %v10282_v55 = vadd.f32 %v1925_v33, %v1896_v22  ;;  %v15991_v53 = vrot.slane %v10181_v52, 1 }
  0xe4   : > { %v15993_v22 = vrot.slane %v10186_v24, 2  ;;  %v15994_v33 = vrot.slane %v9836_v17, 2 }
  0xe5   : > { %15987 = vst [vmem:[#allocation112_spill] sm:$0xff] %v10258_v30  ;;  %v10288_v7 = vmul.f32 %v10278_v44, %v9853_v27  ;;  %v15992_v30 = vrot.slane %v9833_v16, 1  ;;  %v10337_v16 = vmul.f32 %v10133_v6, %v9853_v27 }
  0xe6   : > { %15988 = vst [vmem:[#allocation113_spill] sm:$0xff] %v10278_v44  ;;  %v10306_v34 = vsel %vm718_vm1, %v15994_v33, %v15993_v22 }
  0xe7   : > { %15989 = vst [vmem:[#allocation114_spill] sm:$0xff] %v10282_v55  ;;  %v10299_v50 = vsel %vm648_vm0, %v15992_v30, %v15991_v53  ;;  %v10311_v55 = vmul.f32 %v10086_v20, %v9853_v27  ;;  %v15996_v30 = vrot.slane %v10213_v42, 1  ;;  %v15997_v53 = vrot.slane %v10222_v23, 2 }
  0xe8   : > { %15995 = vst [vmem:[#allocation116_spill] sm:$0xff] %v10306_v34  ;;  %v16000_v34 = vrot.slane %v10244_v51, 1 }
  0xe9   : > { %v10322_v17 = vsel %vm648_vm0, %v9872_v35, %v15996_v30  ;;  %v10328_v22 = vsel %vm718_vm1, %v9896_v43, %v15997_v53  ;;  %15999 = vst [vmem:[#allocation118_spill] sm:$0xff] %v10337_v16  ;;  %v16001_v35 = vrot.slane %v10250_v45, 2  ;;  %v10354_v43 = vmul.f32 %v10174_v0, %v9853_v27 }
  0xea   : > { %15998 = vst [vmem:[#allocation117_spill] sm:$0xff] %v10328_v22  ;;  %v10343_v30 = vsel %vm648_vm0, %v9940_v60, %v16000_v34  ;;  %v10358_v22 = vmul.f32 %v10177_v49, %v9853_v27  ;;  %v16004_v16 = vrot.slane %v10268_v26, 1  ;;  %v16006_v60 = vrot.slane %v10275_v19, 2 }
  0xeb   : > { %v10349_v53 = vsel %vm718_vm1, %v9942_v61, %v16001_v35  ;;  %v610_v61 = vmul.f32 %v9806_v8, %v10142_v54  ;;  %v10391_v8 = vmul.f32 %v10093_v41, %v10142_v54 }
  0xec   : > { %16002 = vst [vmem:[#allocation119_spill] sm:$0xff] %v10349_v53  ;;  %v10364_v34 = vsel %vm648_vm0, %v9969_v46, %v16004_v16  ;;  %v10370_v35 = vsel %vm718_vm1, %v9971_v47, %v16006_v60  ;;  %v635_v53 = vmul.f32 %v9810_v9, %v10142_v54  ;;  %v771_v16 = vmul.f32 %v9816_v11, %v10142_v54 }
  0xed   : > { %16003 = vst [vmem:[#allocation120_spill] sm:$0xff] %v10358_v22  ;;  %v705_v22 = vmul.f32 %v9813_v10, %v10142_v54  ;;  %v10383_v46 = vmul.f32 %v9819_v12, %v10142_v54  ;;  %v10387_v60 = vmul.f32 %v10086_v20, %v10142_v54  ;;  %v1053_v10 = vmul.f32 %v9823_v13, %v10142_v54 }
  0xee   : > { %16005 = vst [vmem:[#allocation121_spill] sm:$0xff] %v10364_v34  ;;  %v667_v33 = vrot.slane %v635_v53, 1  ;;  %v1078_v9 = vmul.f32 %v9826_v14, %v10142_v54  ;;  %v10399_v11 = vmul.f32 %v9937_v59, %v9853_v27  ;;  %v10403_v12 = vmul.f32 %v9945_v62, %v9853_v27  ;;  %v10411_v14 = vld [vmem:[%s9754_s27 + $0x10] sm:$0xff] }
  0xef   : > { %16007 = vst [vmem:[#allocation122_spill] sm:$0xff] %v10370_v35  ;;  %v737_v20 = vrot.slane %v705_v22, 2  ;;  %v791_v53 = vrot.slane %v771_v16, 3  ;;  %v16009_v47 = vrot.slane %v10181_v52, 1  ;;  %v15735_v13 = vrot.slane %v10383_v46, 4  ;;  %v16013_v16 = vld [vmem:[#allocation32_spill] sm:$0xff] }
  0xf0   : > { %16008 = vst [vmem:[#allocation123_spill] sm:$0xff] %v10399_v11  ;;  %v692_v35 = vadd.f32 %v667_v33, %v610_v61  ;;  %v1065_v4 = vadd.f32 %v1053_v10, %v10113_v3  ;;  %v16010_v11 = vrot.slane %v10186_v24, 2  ;;  %v16011_v61 = vrot.slane %v10202_v63, 3 }
  0xf1   : > { %v668_v41 = vsel %vm648_vm0, %v16009_v47, %v667_v33  ;;  %534 = vst [vmem:[#allocation2 + $0x88] sm:$0xff] %v10411_v14  ;;  %v1107_v10 = vrot.slane %v1078_v9, 1  ;;  %v1147_v3 = vmul.f32 %v9829_v15, %v10142_v54  ;;  %v10433_v24 = vmul.f32 %v10116_v2, %v10142_v54 }
  0xf2   : > { %v691_v34 = vadd.f32 %v668_v41, %v9865_v32  ;;  %v738_v27 = vsel %vm718_vm1, %v16010_v11, %v737_v20  ;;  %v762_v47 = vadd.f32 %v737_v20, %v692_v35  ;;  %v792_v52 = vsel %vm780_vm3, %v16011_v61, %v791_v53 }
  0xf3   : > { %v1213_v41 = vmul.f32 %v9861_v31, %v10142_v54  ;;  %v10429_v11 = vmul.f32 %v9875_v36, %v10142_v54  ;;  %v16012_v33 = vrot.slane %v10213_v42, 1  ;;  %v1134_v35 = vadd.f32 %v1107_v10, %v1065_v4  ;;  %v16014_v31 = vld [vmem:[#allocation98_spill] sm:$0xff] }
  0xf4   : > { %v761_v32 = vadd.f32 %v738_v27, %v691_v34  ;;  %v816_v20 = vadd.f32 %v791_v53, %v762_v47  ;;  %v1176_v61 = vrot.slane %v1147_v3, 2  ;;  %v862_v34 = vsel %vm842_vm4, %v15735_v13, %v16013_v16 }
  0xf5   : > { %v1108_v9 = vsel %vm648_vm0, %v16012_v33, %v1107_v10  ;;  %v1231_v22 = vrot.slane %v1213_v41, 3  ;;  %v15733_v36 = vrot.slane %v10429_v11, 4  ;;  %v16015_v2 = vrot.slane %v10387_v60, 5 }
  0xf6   : > { %v1133_v27 = vadd.f32 %v1108_v9, %v10233_v21  ;;  %v16017_v42 = vrot.slane %v10222_v23, 2  ;;  %v1203_v47 = vadd.f32 %v1176_v61, %v1134_v35  ;;  %v15734_v10 = vrot.slane %v10433_v24, 5  ;;  %v16021_v35 = vld [vmem:[#allocation103_spill] sm:$0xff] }
  0xf7   : > { %v10448_v53 = vsel %vm912_vm5, %v16015_v2, %v16014_v31  ;;  %v10454_v16 = vadd.f32 %v792_v52, %v761_v32  ;;  %v16018_v3 = vrot.slane %v10226_v28, 3  ;;  %v10461_v33 = vmul.f32 %v10133_v6, %v10142_v54  ;;  %v16020_v31 = vld [vmem:[#allocation43_spill] sm:$0xff] }
  0xf8   : > { %16016 = vst [vmem:[#allocation32_spill] sm:$0xff] %v10448_v53  ;;  %v1177_v4 = vsel %vm718_vm1, %v16017_v42, %v1176_v61  ;;  %v10463_v2 = vadd.f32 %v862_v34, %v816_v20  ;;  %v1299_v23 = vsel %vm842_vm4, %v15733_v36, %v16020_v31  ;;  %v1490_v52 = vmul.f32 %v9878_v37, %v10142_v54 }
  0xf9   : > { %v1202_v21 = vadd.f32 %v1177_v4, %v1133_v27  ;;  %v1232_v41 = vsel %vm780_vm3, %v16018_v3, %v1231_v22  ;;  %v1515_v32 = vmul.f32 %v9882_v38, %v10142_v54  ;;  %v1256_v9 = vadd.f32 %v1231_v22, %v1203_v47  ;;  %v10484_v27 = vld [vmem:[%s9754_s27 + $0x18] sm:$0xff] }
  0xfa   : > { %16019 = vst [vmem:[#allocation98_spill] sm:$0xff] %v10463_v2  ;;  %v10477_v61 = vsel %vm912_vm5, %v15734_v10, %v16021_v35  ;;  %v1584_v20 = vmul.f32 %v9885_v39, %v10142_v54  ;;  %v1651_v34 = vmul.f32 %v9888_v40, %v10142_v54  ;;  %v16024_v4 = vld [vmem:[#allocation105_spill] sm:$0xff]  ;;  %v1705_v22 = vmul.f32 %v9906_v48, %v10142_v54 }
  0xfb   : > { %16022 = vst [vmem:[#allocation124_spill] sm:$0xff] %v10477_v61  ;;  %v10486_v42 = vadd.f32 %v1232_v41, %v1202_v21  ;;  %v1502_v3 = vadd.f32 %v1490_v52, %v16024_v4  ;;  %v1542_v36 = vrot.slane %v1515_v32, 1  ;;  %v10495_v35 = vmul.f32 %v10174_v0, %v10142_v54  ;;  %v16026_v32 = vld [vmem:[#allocation45_spill] sm:$0xff] }
  0xfc   : > { %16023 = vst [vmem:[#allocation125_spill] sm:$0xff] %v10484_v27  ;;  %v1611_v10 = vrot.slane %v1584_v20, 2  ;;  %v1668_v13 = vrot.slane %v1651_v34, 3  ;;  %v16025_v31 = vrot.slane %v10244_v51, 1  ;;  %v1731_v52 = vrot.slane %v1705_v22, 4 }
  0xfd   : > { %535 = vst [vmem:[#allocation2 + $0x90] sm:$0xff] %v10484_v27  ;;  %v1571_v41 = vadd.f32 %v1542_v36, %v1502_v3  ;;  %v1926_v4 = vmul.f32 %v16026_v32, %v10142_v54  ;;  %v10502_v61 = vadd.f32 %v1299_v23, %v1256_v9  ;;  %v16028_v20 = vrot.slane %v10250_v45, 2  ;;  %v16030_v3 = vld [vmem:[#allocation54_spill] sm:$0xff] }
  0xfe   : > { %v1543_v21 = vsel %vm648_vm0, %v16025_v31, %v1542_v36  ;;  %v10510_v47 = vmul.f32 %v10177_v49, %v10142_v54  ;;  %v16029_v31 = vrot.slane %v10254_v1, 3  ;;  %v1734_v22 = vsel %vm842_vm4, %v1731_v52, %v16030_v3  ;;  %v16032_v45 = vld [vmem:[#allocation46_spill] sm:$0xff] }
  0xff   : > { %16027 = vst [vmem:[#allocation105_spill] sm:$0xff] %v10502_v61  ;;  %v1570_v27 = vadd.f32 %v1543_v21, %v10270_v18  ;;  %v1612_v34 = vsel %vm718_vm1, %v16028_v20, %v1611_v10  ;;  %v1640_v51 = vadd.f32 %v1611_v10, %v1571_v41  ;;  %v1800_v23 = vrot.slane %v10495_v35, 5  ;;  %v16031_v18 = vld [vmem:[#allocation111_spill] sm:$0xff]  ;;  %v16033_v41 = vld [vmem:[#allocation48_spill] sm:$0xff] }
 0x100   : > { %v1669_v36 = vsel %vm780_vm3, %v16029_v31, %v1668_v13  ;;  %v1938_v21 = vadd.f32 %v1926_v4, %v16031_v18  ;;  %v1951_v20 = vmul.f32 %v16032_v45, %v10142_v54  ;;  %v2020_v61 = vmul.f32 %v9931_v57, %v10142_v54  ;;  %v16034_v18 = vld [vmem:[#allocation109_spill] sm:$0xff] }
 0x101   : > { %v1639_v9 = vadd.f32 %v1612_v34, %v1570_v27  ;;  %v1693_v53 = vadd.f32 %v1668_v13, %v1640_v51  ;;  %v2088_v10 = vmul.f32 %v10278_v44, %v10142_v54  ;;  %v2141_v31 = vmul.f32 %v16033_v41, %v10142_v54 }
 0x102   : > { %v10529_v3 = vmul.f32 %v9937_v59, %v10142_v54  ;;  %v1976_v27 = vrot.slane %v1951_v20, 1  ;;  %v2045_v4 = vrot.slane %v2020_v61, 2  ;;  %v10534_v34 = vmul.f32 %v9945_v62, %v10142_v54  ;;  %v16037_v62 = vld [vmem:[#allocation114_spill] sm:$0xff] }
 0x103   : > { %v10538_v13 = vsel %vm912_vm5, %v1800_v23, %v16034_v18  ;;  %v2104_v51 = vrot.slane %v2088_v10, 3  ;;  %v2165_v2 = vrot.slane %v2141_v31, 4  ;;  %v1692_v0 = vadd.f32 %v1669_v36, %v1639_v9  ;;  %v16039_v9 = vld [vmem:[#allocation61_spill] sm:$0xff] }
 0x104   : > { %v2234_v49 = vrot.slane %v10529_v3, 5  ;;  %v16035_v59 = vrot.slane %v10268_v26, 1  ;;  %v2007_v35 = vadd.f32 %v1976_v27, %v1938_v21  ;;  %v16036_v61 = vrot.slane %v10275_v19, 2  ;;  %v16041_v19 = vld [vmem:[#allocation30_spill] sm:$0xff] }
 0x105   : > { %v10547_v54 = vadd.f32 %v1734_v22, %v1693_v53  ;;  %v16038_v18 = vrot.slane %v10288_v7, 3  ;;  %v2168_v26 = vsel %vm842_vm4, %v2165_v2, %v16039_v9  ;;  %v690_v53 = vadd.f32 %v10299_v50, %v16041_v19 }
 0x106   : > { %v1977_v6 = vsel %vm648_vm0, %v16035_v59, %v1976_v27  ;;  %v2046_v20 = vsel %vm718_vm1, %v16036_v61, %v2045_v4  ;;  %v2076_v36 = vadd.f32 %v2045_v4, %v2007_v35  ;;  %v16040_v59 = vld [vmem:[#allocation67_spill] sm:$0xff]  ;;  %v928_v27 = vrot.slane %v10311_v55, 5 }
 0x107   : > { %v2006_v41 = vadd.f32 %v1977_v6, %v16037_v62  ;;  %v2105_v10 = vsel %vm780_vm3, %v16038_v18, %v2104_v51  ;;  %v10558_v21 = vsel %vm912_vm5, %v2234_v49, %v16040_v59  ;;  %v16042_v62 = vrot.slane %v10383_v46, 4  ;;  %v16044_v18 = vld [vmem:[#allocation101_spill] sm:$0xff] }
 0x108   : > { %v16043_v6 = vrot.slane %v10218_v25, 4  ;;  %v998_v35 = vrot.slane %v10315_v58, 6  ;;  %v2129_v4 = vadd.f32 %v2104_v51, %v2076_v36  ;;  %v1132_v61 = vadd.f32 %v10322_v17, %v16044_v18  ;;  %v16051_v18 = vld [vmem:[#allocation112_spill] sm:$0xff] }
 0x109   : > { %v2075_v22 = vadd.f32 %v2046_v20, %v2006_v41  ;;  %v16045_v3 = vrot.slane %v10429_v11, 4  ;;  %v16046_v59 = vrot.slane %v10237_v29, 4  ;;  %v1364_v46 = vrot.slane %v10333_v56, 5  ;;  %v16047_v20 = vld [vmem:[#allocation118_spill] sm:$0xff]  ;;  %v16050_v11 = vld [vmem:[#allocation120_spill] sm:$0xff]  ;;  %v16053_v56 = vld [vmem:[#allocation115_spill] sm:$0xff] }
 0x10a   : > { %v860_v31 = vsel %vm842_vm4, %v16043_v6, %v16042_v62  ;;  %v1433_v19 = vrot.slane %v16047_v20, 6  ;;  %v16048_v62 = vld [vmem:[#allocation108_spill] sm:$0xff]  ;;  %v16049_v58 = vrot.slane %v10262_v5, 4  ;;  %v10583_v36 = vadd.f32 %v2168_v26, %v2129_v4  ;;  %v16057_v26 = vld [vmem:[#allocation123_spill] sm:$0xff] }
 0x10b   : > { %v1297_v50 = vsel %vm842_vm4, %v16046_v59, %v16045_v3  ;;  %v2128_v41 = vadd.f32 %v2105_v10, %v2075_v22  ;;  %v1569_v55 = vadd.f32 %v10343_v30, %v16048_v62  ;;  %v1799_v17 = vrot.slane %v10354_v43, 5  ;;  %v16052_v3 = vld [vmem:[#allocation121_spill] sm:$0xff]  ;;  %v16055_v20 = vld [vmem:[#allocation116_spill] sm:$0xff] }
 0x10c   : > { %v1732_v51 = vsel %vm842_vm4, %v16049_v58, %v1731_v52  ;;  %v1868_v6 = vrot.slane %v16050_v11, 6  ;;  %v2005_v59 = vadd.f32 %v16052_v3, %v16051_v18  ;;  %v16054_v10 = vrot.slane %v16053_v56, 4  ;;  %v16058_v43 = vld [vmem:[#allocation117_spill] sm:$0xff] }
 0x10d   : > { %v760_v9 = vadd.f32 %v16055_v20, %v690_v53  ;;  %v885_v30 = vadd.f32 %v860_v31, %v10454_v16  ;;  %v16056_v62 = vrot.slane %v10387_v60, 5  ;;  %v2233_v4 = vrot.slane %v16057_v26, 5  ;;  %v16062_v31 = vld [vmem:[#allocation119_spill] sm:$0xff] }
 0x10e   : > { %v2166_v22 = vsel %vm842_vm4, %v16054_v10, %v2165_v2  ;;  %v1201_v58 = vadd.f32 %v16058_v43, %v1132_v61  ;;  %v1324_v11 = vadd.f32 %v1297_v50, %v10486_v42  ;;  %v16059_v18 = vrot.slane %v10433_v24, 5 }
 0x10f   : > { %v930_v52 = vsel %vm912_vm5, %v928_v27, %v16056_v62  ;;  %v16060_v2 = vrot.slane %v10202_v63, 3  ;;  %v16061_v16 = vrot.slane %v10391_v8, 6  ;;  %v1638_v20 = vadd.f32 %v16062_v31, %v1569_v55 }
 0x110   : > { %v1366_v3 = vsel %vm912_vm5, %v1364_v46, %v16059_v18  ;;  %v955_v53 = vadd.f32 %v930_v52, %v885_v30  ;;  %v2302_v62 = vrot.slane %v10403_v12, 6  ;;  %v16063_v61 = vrot.slane %v10226_v28, 3 }
 0x111   : > { %v814_v10 = vadd.f32 %v16060_v2, %v760_v9  ;;  %v1000_v60 = vsel %vm982_vm6, %v998_v35, %v16061_v16  ;;  %v1761_v42 = vadd.f32 %v1732_v51, %v1692_v0  ;;  %v1801_v24 = vsel %vm912_vm5, %v1799_v17, %v1800_v23 }
 0x112   : > { %v1254_v26 = vadd.f32 %v16063_v61, %v1201_v58  ;;  %v16064_v50 = vrot.slane %v10218_v25, 4  ;;  %v1393_v63 = vadd.f32 %v1366_v3, %v1324_v11  ;;  %v16065_v9 = vrot.slane %v10461_v33, 6  ;;  %v16068_v58 = vld [vmem:[#allocation122_spill] sm:$0xff]  ;;  %v16075_v61 = vld [vmem:[#allocation28_spill] sm:$0xff] }
 0x113   : > { %v16066_v52 = vrot.slane %v10254_v1, 3  ;;  %v1025_v55 = vadd.f32 %v1000_v60, %v955_v53  ;;  %v16067_v12 = vrot.slane %v10237_v29, 4  ;;  %v1830_v28 = vadd.f32 %v1801_v24, %v1761_v42 }
 0x114   : > { %v884_v43 = vadd.f32 %v16064_v50, %v814_v10  ;;  %v1435_v30 = vsel %vm982_vm6, %v1433_v19, %v16065_v9  ;;  %v2074_v0 = vadd.f32 %v16068_v58, %v2005_v59  ;;  %v16069_v23 = vrot.slane %v10262_v5, 4  ;;  %v16073_v5 = vld [vmem:[#allocation27_spill] sm:$0xff] }
 0x115   : > { %v1691_v18 = vadd.f32 %v16066_v52, %v1638_v20  ;;  %v1323_v2 = vadd.f32 %v16067_v12, %v1254_v26  ;;  %v2197_v10 = vadd.f32 %v2166_v22, %v2128_v41  ;;  %v2235_v11 = vsel %vm912_vm5, %v2233_v4, %v2234_v49  ;;  %v16076_v50 = vld [vmem:[#allocation31_spill] sm:$0xff] }
 0x116   : > { %v954_v51 = vadd.f32 %v928_v27, %v884_v43  ;;  %v16070_v16 = vrot.slane %v10510_v47, 6  ;;  %v16071_v53 = vrot.slane %v10288_v7, 3  ;;  %v16072_v29 = vrot.slane %v10534_v34, 6 }
 0x117   : > { %v1760_v25 = vadd.f32 %v16069_v23, %v1691_v18  ;;  %v1392_v3 = vadd.f32 %v1364_v46, %v1323_v2  ;;  %v2266_v20 = vadd.f32 %v2235_v11, %v2197_v10  ;;  %v1055_v41 = vmul.f32 %v16073_v5, %v10411_v14  ;;  %v16080_v2 = vld [vmem:[#allocation33_spill] sm:$0xff]  ;;  %v16085_v10 = vld [vmem:[#allocation60_spill] sm:$0xff] }
 0x118   : > { %v1870_v1 = vsel %vm982_vm6, %v1868_v6, %v16070_v16  ;;  %v2127_v60 = vadd.f32 %v16071_v53, %v2074_v0  ;;  %v2304_v31 = vsel %vm982_vm6, %v2302_v62, %v16072_v29  ;;  %v1024_v59 = vadd.f32 %v998_v35, %v954_v51  ;;  %v16083_v0 = vld [vmem:[#allocation35_spill] sm:$0xff] }
 0x119   : > { %v1829_v27 = vadd.f32 %v1799_v17, %v1760_v25  ;;  %v1461_v22 = vadd.f32 %v1433_v19, %v1392_v3  ;;  %v16074_v49 = vrot.slane %v16053_v56, 4  ;;  %v10640_v26 = vmul.f32 %v16075_v61, %v10411_v14  ;;  %v16078_v19 = vld [vmem:[#allocation44_spill] sm:$0xff] }
 0x11a   : > { %v10644_v7 = vmul.f32 %v9829_v15, %v10411_v14  ;;  %v1462_v42 = vadd.f32 %v1435_v30, %v1393_v63  ;;  %v1899_v35 = vadd.f32 %v1870_v1, %v1830_v28  ;;  %v10646_v17 = vadd.f32 %v1055_v41, %v1025_v55  ;;  %v16081_v63 = vld [vmem:[#allocation57_spill] sm:$0xff]  ;;  %v16089_v41 = vld [vmem:[#allocation55_spill] sm:$0xff] }
 0x11b   : > { %v2196_v46 = vadd.f32 %v16074_v49, %v2127_v60  ;;  %v1898_v24 = vadd.f32 %v1868_v6, %v1829_v27  ;;  %v10649_v43 = vadd.f32 %v16076_v50, %v1024_v59  ;;  %v10652_v9 = vadd.f32 %v16078_v19, %v1461_v22  ;;  %v16088_v27 = vld [vmem:[#allocation53_spill] sm:$0xff]  ;;  %v16090_v49 = vld [vmem:[#allocation56_spill] sm:$0xff] }
 0x11c   : > { %v2335_v52 = vadd.f32 %v2304_v31, %v2266_v20  ;;  %v15753_v18 = vrot.slane %v10640_v26, 1  ;;  %v10658_v58 = vmul.f32 %v16080_v2, %v10411_v14  ;;  %v1492_v6 = vmul.f32 %v9878_v37, %v10411_v14  ;;  %v16103_v59 = vld [vmem:[#allocation100_spill] sm:$0xff] }
 0x11d   : > { %16077 = vst [vmem:[#allocation111_spill] sm:$0xff] %v10649_v43  ;;  %v2265_v56 = vadd.f32 %v2233_v4, %v2196_v46  ;;  %v10663_v30 = vadd.f32 %v16081_v63, %v1898_v24  ;;  %v10667_v28 = vmul.f32 %v9882_v38, %v10411_v14  ;;  %v10671_v4 = vmul.f32 %v9885_v39, %v10411_v14  ;;  %v16096_v24 = vld [vmem:[#allocation62_spill] sm:$0xff]  ;;  %v16135_v43 = vld [vmem:[#allocation99_spill] sm:$0xff] }
 0x11e   : > { %16079 = vst [vmem:[#allocation114_spill] sm:$0xff] %v10652_v9  ;;  %v10675_v51 = vmul.f32 %v16083_v0, %v10411_v14  ;;  %v10677_v23 = vadd.f32 %v1492_v6, %v1462_v42  ;;  %v10681_v25 = vmul.f32 %v9888_v40, %v10411_v14  ;;  %v10692_v1 = vmul.f32 %v9906_v48, %v10411_v14  ;;  %v16105_v63 = vld [vmem:[#allocation102_spill] sm:$0xff] }
 0x11f   : > { %16082 = vst [vmem:[#allocation30_spill] sm:$0xff] %v10663_v30  ;;  %v2334_v55 = vadd.f32 %v2302_v62, %v2265_v56  ;;  %v1928_v62 = vmul.f32 %v16026_v32, %v10411_v14  ;;  %v10698_v60 = vmul.f32 %v16032_v45, %v10411_v14  ;;  %v10702_v29 = vmul.f32 %v9931_v57, %v10411_v14  ;;  %v9174_v56 = vld [vmem:[#allocation6 + $0x18] sm:$0xff]  ;;  %v16113_v9 = vld [vmem:[#allocation106_spill] sm:$0xff] }
 0x120   : > { %16084 = vst [vmem:[#allocation101_spill] sm:$0xff] %v10675_v51  ;;  %v10706_v31 = vmul.f32 %v10278_v44, %v10411_v14  ;;  %v2365_v20 = vmul.f32 %v16088_v27, %v10411_v14  ;;  %v10713_v22 = vmul.f32 %v16089_v41, %v10411_v14  ;;  %v10717_v46 = vmul.f32 %v16090_v49, %v10411_v14 }
 0x121   : > { %v10686_v11 = vadd.f32 %v16085_v10, %v2334_v55  ;;  %16087 = vst [vmem:[#allocation108_spill] sm:$0xff] %v10692_v1  ;;  %v10694_v53 = vadd.f32 %v1928_v62, %v1899_v35  ;;  %v16091_v35 = vld [vmem:[#allocation48_spill] sm:$0xff]  ;;  %v10725_v6 = vperm.slane %v9174_v56, 7  ;;  %v10739_v12 = vmul.f32 %v16096_v24, %v10411_v14  ;;  %v16098_v56 = vld [vmem:[#allocation34_spill] sm:$0xff] }
 0x122   : > { %v10723_v50 = vmul.f32 %v16091_v35, %v10411_v14  ;;  %v10729_v3 = vadd.f32 %v2365_v20, %v2335_v52  ;;  %v10745_v55 = vsel %vm648_vm0, %v16098_v56, %v15753_v18  ;;  %v16100_v52 = vrot.slane %v10644_v7, 2  ;;  %v16101_v20 = vld [vmem:[#allocation41_spill] sm:$0xff]  ;;  %v16108_v18 = vld [vmem:[#allocation50_spill] sm:$0xff] }
 0x123   : > { %16086 = vst [vmem:[#allocation118_spill] sm:$0xff] %v10686_v11  ;;  %v10735_v42 = vmul.f32 %v10725_v6, %v10411_v14  ;;  %v10756_v10 = vmul.f32 %v16103_v59, %v10411_v14  ;;  %v10760_v19 = vmul.f32 %v16105_v63, %v10411_v14  ;;  %v16107_v56 = vrot.slane %v10667_v28, 1  ;;  %v16115_v11 = vld [vmem:[#allocation107_spill] sm:$0xff] }
 0x124   : > { %16092 = vst [vmem:[#allocation120_spill] sm:$0xff] %v10723_v50  ;;  %v10751_v62 = vsel %vm718_vm1, %v16101_v20, %v16100_v52  ;;  %v16110_v52 = vrot.slane %v10671_v4, 2  ;;  %v16111_v20 = vld [vmem:[#allocation51_spill] sm:$0xff]  ;;  %v16117_v51 = vrot.slane %v10698_v60, 1 }
 0x125   : > { %16093 = vst [vmem:[#allocation112_spill] sm:$0xff] %v10725_v6  ;;  %v10767_v30 = vsel %vm648_vm0, %v16108_v18, %v16107_v56  ;;  %v16118_v56 = vld [vmem:[#allocation58_spill] sm:$0xff] }
 0x126   : > { %16094 = vst [vmem:[#allocation121_spill] sm:$0xff] %v10729_v3  ;;  %v10773_v16 = vsel %vm718_vm1, %v16111_v20, %v16110_v52  ;;  %v10788_v18 = vsel %vm648_vm0, %v16118_v56, %v16117_v51  ;;  %v16121_v52 = vld [vmem:[#allocation59_spill] sm:$0xff]  ;;  %v16128_v51 = vld [vmem:[#allocation70_spill] sm:$0xff]  ;;  %v16137_v3 = vld [vmem:[#allocation125_spill] sm:$0xff] }
 0x127   : > { %16095 = vst [vmem:[#allocation115_spill] sm:$0xff] %v10735_v42 }
 0x128   : > { %16097 = vst [vmem:[#allocation116_spill] sm:$0xff] %v10739_v12 }
 0x129   : > { %16099 = vst [vmem:[#allocation123_spill] sm:$0xff] %v10745_v55  ;;  %v16127_v55 = vrot.slane %v10713_v22, 1 }
 0x12a   : > { %16102 = vst [vmem:[#allocation117_spill] sm:$0xff] %v10751_v62  ;;  %v1215_v62 = vmul.f32 %v16080_v2, %v16137_v3  ;;  %v16142_v2 = vld [vmem:[#allocation64_spill] sm:$0xff] }
 0x12b   : > { %16104 = vst [vmem:[#allocation119_spill] sm:$0xff] %v10756_v10  ;;  %v10778_v10 = vmul.f32 %v16113_v9, %v10411_v14  ;;  %v10809_v56 = vsel %vm648_vm0, %v16128_v51, %v16127_v55  ;;  %v1056_v55 = vmul.f32 %v16073_v5, %v16137_v3  ;;  %v1081_v51 = vmul.f32 %v16075_v61, %v16137_v3 }
 0x12c   : > { %16106 = vst [vmem:[#allocation122_spill] sm:$0xff] %v10760_v19  ;;  %v10782_v19 = vmul.f32 %v16115_v11, %v10411_v14  ;;  %v10842_v5 = vmul.f32 %v16103_v59, %v16137_v3 }
 0x12d   : > { %16109 = vst [vmem:[#allocation31_spill] sm:$0xff] %v10767_v30  ;;  %v16120_v30 = vrot.slane %v10702_v29, 2  ;;  %v1112_v61 = vrot.slane %v1081_v51, 1  ;;  %v16145_v51 = vrot.slane %v10640_v26, 1  ;;  %v16149_v26 = vld [vmem:[#allocation43_spill] sm:$0xff] }
 0x12e   : > { %16112 = vst [vmem:[#allocation34_spill] sm:$0xff] %v10773_v16  ;;  %v16123_v16 = vld [vmem:[#allocation49_spill] sm:$0xff] }
 0x12f   : > { %16114 = vst [vmem:[#allocation41_spill] sm:$0xff] %v10778_v10  ;;  %v10794_v20 = vsel %vm718_vm1, %v16121_v52, %v16120_v30  ;;  %v10799_v10 = vmul.f32 %v16123_v16, %v10411_v14  ;;  %v16131_v30 = vld [vmem:[#allocation71_spill] sm:$0xff] }
 0x130   : > { %16116 = vst [vmem:[#allocation126_spill] sm:$0xff] %v10782_v19  ;;  %v16125_v19 = vld [vmem:[#allocation52_spill] sm:$0xff] }
 0x131   : > { %16119 = vst [vmem:[#allocation127_spill] sm:$0xff] %v10788_v18  ;;  %v10803_v1 = vmul.f32 %v16125_v19, %v10411_v14  ;;  %v16130_v18 = vrot.slane %v10717_v46, 2 }
 0x132   : > { %16122 = vst [vmem:[#allocation128_spill] sm:$0xff] %v10794_v20  ;;  %v16133_v20 = vld [vmem:[#allocation98_spill] sm:$0xff] }
 0x133   : > { %16124 = vst [vmem:[#allocation129_spill] sm:$0xff] %v10799_v10  ;;  %v10815_v52 = vsel %vm718_vm1, %v16131_v30, %v16130_v18  ;;  %v16134_v10 = vld [vmem:[#allocation32_spill] sm:$0xff]  ;;  %v1150_v18 = vmul.f32 %v9829_v15, %v16137_v3  ;;  %v16138_v30 = vld [vmem:[#allocation63_spill] sm:$0xff]  ;;  %v16140_v15 = vld [vmem:[#allocation105_spill] sm:$0xff] }
 0x134   : > { %16126 = vst [vmem:[#allocation130_spill] sm:$0xff] %v10803_v1  ;;  %v956_v50 = vadd.f32 %v16134_v10, %v16133_v20  ;;  %v16136_v1 = vrot.slane %v10391_v8, 6  ;;  %v10834_v10 = vmul.f32 %v16138_v30, %v10411_v14  ;;  %v10838_v8 = vmul.f32 %v16083_v0, %v16137_v3  ;;  %v16143_v0 = vld [vmem:[#allocation104_spill] sm:$0xff] }
 0x135   : > { %16129 = vst [vmem:[#allocation131_spill] sm:$0xff] %v10809_v56  ;;  %v10848_v56 = vmul.f32 %v16142_v2, %v10411_v14  ;;  %v10892_v14 = vmul.f32 %v16113_v9, %v16137_v3 }
 0x136   : > { %16132 = vst [vmem:[#allocation132_spill] sm:$0xff] %v10815_v52  ;;  %v1002_v42 = vsel %vm982_vm6, %v16136_v1, %v16135_v43  ;;  %v1181_v43 = vrot.slane %v1150_v18, 2  ;;  %v1234_v1 = vrot.slane %v1215_v62, 3  ;;  %v16141_v52 = vld [vmem:[#allocation124_spill] sm:$0xff]  ;;  %v1113_v62 = vsel %vm648_vm0, %v16145_v51, %v1112_v61 }
 0x137   : > { %16139 = vst [vmem:[#allocation98_spill] sm:$0xff] %v10834_v10  ;;  %v1026_v20 = vadd.f32 %v1002_v42, %v956_v50  ;;  %v1394_v12 = vadd.f32 %v16141_v52, %v16140_v15  ;;  %v15766_v50 = vrot.slane %v10838_v8, 4  ;;  %v16144_v10 = vrot.slane %v10461_v33, 6 }
 0x138   : > { %v16146_v18 = vrot.slane %v10644_v7, 2  ;;  %v10864_v52 = vmul.f32 %v16105_v63, %v16137_v3  ;;  %v16148_v33 = vrot.slane %v10658_v58, 3  ;;  %v1518_v63 = vmul.f32 %v9882_v38, %v16137_v3 }
 0x139   : > { %v1068_v42 = vadd.f32 %v1056_v55, %v1026_v20  ;;  %v1437_v59 = vsel %vm982_vm6, %v16144_v10, %v16143_v0  ;;  %v1136_v55 = vadd.f32 %v1113_v62, %v10646_v17  ;;  %v1304_v7 = vsel %vm842_vm4, %v15766_v50, %v16149_v26 }
 0x13a   : > { %v1182_v15 = vsel %vm718_vm1, %v16146_v18, %v1181_v43  ;;  %16147 = vst [vmem:[#allocation32_spill] sm:$0xff] %v10864_v52  ;;  %v1235_v10 = vsel %vm780_vm3, %v16148_v33, %v1234_v1  ;;  %v1463_v51 = vadd.f32 %v1437_v59, %v1394_v12  ;;  %v1493_v18 = vmul.f32 %v9878_v37, %v16137_v3 }
 0x13b   : > { %v1137_v20 = vadd.f32 %v1112_v61, %v1068_v42  ;;  %v1587_v17 = vmul.f32 %v9885_v39, %v16137_v3  ;;  %v10881_v61 = vld [vmem:[%s9754_s27 + $0x20] sm:$0xff]  ;;  %v1205_v42 = vadd.f32 %v1182_v15, %v1136_v55  ;;  %v1653_v33 = vmul.f32 %v9888_v40, %v16137_v3 }
 0x13c   : > { %v10887_v26 = vmul.f32 %v9906_v48, %v16137_v3  ;;  %536 = vst [vmem:[#allocation2 + $0xa8] sm:$0xff] %v10881_v61  ;;  %v1505_v12 = vadd.f32 %v1493_v18, %v1463_v51  ;;  %v1547_v59 = vrot.slane %v1518_v63, 1  ;;  %v16150_v48 = vrot.slane %v10667_v28, 1 }
 0x13d   : > { %v1206_v62 = vadd.f32 %v1181_v43, %v1137_v20  ;;  %v1616_v50 = vrot.slane %v1587_v17, 2  ;;  %v10894_v0 = vadd.f32 %v1235_v10, %v1205_v42  ;;  %v1671_v43 = vrot.slane %v1653_v33, 3  ;;  %v16153_v17 = vld [vmem:[#allocation103_spill] sm:$0xff]  ;;  %v16157_v33 = vld [vmem:[#allocation54_spill] sm:$0xff] }
 0x13e   : > { %v15776_v55 = vrot.slane %v10887_v26, 4  ;;  %v1548_v40 = vsel %vm648_vm0, %v16150_v48, %v1547_v59  ;;  %v1574_v39 = vadd.f32 %v1547_v59, %v1505_v12  ;;  %v16151_v51 = vrot.slane %v10671_v4, 2 }
 0x13f   : > { %v1259_v15 = vadd.f32 %v1234_v1, %v1206_v62  ;;  %v16154_v10 = vrot.slane %v10842_v5, 5  ;;  %v1573_v42 = vadd.f32 %v1548_v40, %v10677_v23  ;;  %v15777_v62 = vrot.slane %v10892_v14, 5 }
 0x140   : > { %v1617_v18 = vsel %vm718_vm1, %v16151_v51, %v1616_v50  ;;  %v1643_v28 = vadd.f32 %v1616_v50, %v1574_v39  ;;  %v16156_v48 = vrot.slane %v10681_v25, 3  ;;  %v1831_v12 = vadd.f32 %v10538_v13, %v10547_v54 }
 0x141   : > { %v10904_v63 = vadd.f32 %v1304_v7, %v1259_v15  ;;  %v10910_v1 = vsel %vm912_vm5, %v16154_v10, %v16153_v17  ;;  %v1739_v7 = vsel %vm842_vm4, %v15776_v55, %v16157_v33  ;;  %v1642_v59 = vadd.f32 %v1617_v18, %v1573_v42  ;;  %v16158_v15 = vld [vmem:[#allocation110_spill] sm:$0xff] }
 0x142   : > { %16155 = vst [vmem:[#allocation125_spill] sm:$0xff] %v10910_v1  ;;  %v1672_v4 = vsel %vm780_vm3, %v16156_v48, %v1671_v43  ;;  %v16159_v40 = vrot.slane %v10510_v47, 6  ;;  %v1929_v39 = vmul.f32 %v16026_v32, %v16137_v3  ;;  %v1954_v50 = vmul.f32 %v16032_v45, %v16137_v3  ;;  %v10946_v48 = vld [vmem:[%s9754_s27 + $0x28] sm:$0xff]  ;;  %v16189_v1 = vld [vmem:[#allocation108_spill] sm:$0xff] }
 0x143   : > { %16152 = vst [vmem:[#allocation99_spill] sm:$0xff] %v10904_v63  ;;  %v1696_v51 = vadd.f32 %v1671_v43, %v1643_v28  ;;  %v10933_v17 = vmul.f32 %v16115_v11, %v16137_v3  ;;  %v2023_v13 = vmul.f32 %v9931_v57, %v16137_v3  ;;  %v10937_v54 = vadd.f32 %v1672_v4, %v1642_v59  ;;  %v16161_v43 = vld [vmem:[#allocation109_spill] sm:$0xff] }
 0x144   : > { %v1872_v23 = vsel %vm982_vm6, %v16159_v40, %v16158_v15  ;;  %v1981_v47 = vrot.slane %v1954_v50, 1  ;;  %v2090_v18 = vmul.f32 %v10278_v44, %v16137_v3  ;;  %v10943_v42 = vmul.f32 %v16091_v35, %v16137_v3  ;;  %16160 = vst [vmem:[#allocation105_spill] sm:$0xff] %v10946_v48 }
 0x145   : > { %v1900_v10 = vadd.f32 %v1872_v23, %v1831_v12  ;;  %v10952_v28 = vsel %vm912_vm5, %v15777_v62, %v16161_v43  ;;  %v2050_v40 = vrot.slane %v2023_v13, 2  ;;  %v10956_v4 = vmul.f32 %v16123_v16, %v16137_v3  ;;  %537 = vst [vmem:[#allocation2 + $0xb0] sm:$0xff] %v10946_v48  ;;  %v16200_v16 = vld [vmem:[#allocation131_spill] sm:$0xff] }
 0x146   : > { %16162 = vst [vmem:[#allocation124_spill] sm:$0xff] %v10952_v28  ;;  %v16163_v59 = vrot.slane %v10698_v60, 1  ;;  %v2107_v50 = vrot.slane %v2090_v18, 3  ;;  %v2170_v20 = vrot.slane %v10943_v42, 4  ;;  %v2267_v55 = vadd.f32 %v10558_v21, %v10583_v36  ;;  %v16178_v28 = vld [vmem:[#allocation74_spill] sm:$0xff] }
 0x147   : > { %v1941_v12 = vadd.f32 %v1929_v39, %v1900_v10  ;;  %v16164_v13 = vrot.slane %v10702_v29, 2  ;;  %v10970_v33 = vadd.f32 %v1739_v7, %v1696_v51  ;;  %v16166_v60 = vrot.slane %v10706_v31, 3 }
 0x148   : > { %v1982_v23 = vsel %vm648_vm0, %v16163_v59, %v1981_v47  ;;  %v15778_v42 = vrot.slane %v10956_v4, 5  ;;  %v16167_v59 = vld [vmem:[#allocation68_spill] sm:$0xff]  ;;  %v16168_v21 = vrot.slane %v10534_v34, 6  ;;  %v10984_v7 = vmul.f32 %v16125_v19, %v16137_v3  ;;  %v16199_v19 = vld [vmem:[#allocation118_spill] sm:$0xff] }
 0x149   : > { %v2009_v39 = vadd.f32 %v1982_v23, %v10694_v53  ;;  %v2010_v10 = vadd.f32 %v1981_v47, %v1941_v12  ;;  %v2051_v43 = vsel %vm718_vm1, %v16164_v13, %v2050_v40  ;;  %16165 = vst [vmem:[#allocation43_spill] sm:$0xff] %v10970_v33  ;;  %v2108_v18 = vsel %vm780_vm3, %v16166_v60, %v2107_v50  ;;  %v16169_v47 = vld [vmem:[#allocation61_spill] sm:$0xff]  ;;  %v16186_v33 = vld [vmem:[#allocation114_spill] sm:$0xff] }
 0x14a   : > { %v2306_v36 = vsel %vm982_vm6, %v16168_v21, %v16167_v59  ;;  %v2173_v29 = vsel %vm842_vm4, %v2170_v20, %v16169_v47  ;;  %v2366_v51 = vmul.f32 %v16088_v27, %v16137_v3  ;;  %v2391_v23 = vmul.f32 %v16089_v41, %v16137_v3 }
 0x14b   : > { %v2078_v62 = vadd.f32 %v2051_v43, %v2009_v39  ;;  %v2079_v53 = vadd.f32 %v2050_v40, %v2010_v10  ;;  %v2336_v12 = vadd.f32 %v2306_v36, %v2267_v55  ;;  %v2460_v34 = vmul.f32 %v16090_v49, %v16137_v3  ;;  %v16170_v36 = vld [vmem:[#allocation67_spill] sm:$0xff] }
 0x14c   : > { %v2528_v40 = vmul.f32 %v10725_v6, %v16137_v3  ;;  %v2581_v55 = vmul.f32 %v16096_v24, %v16137_v3  ;;  %v2416_v10 = vrot.slane %v2391_v23, 1  ;;  %v10998_v21 = vmul.f32 %v16138_v30, %v16137_v3  ;;  %v16195_v30 = vld [vmem:[#allocation120_spill] sm:$0xff] }
 0x14d   : > { %v2131_v13 = vadd.f32 %v2108_v18, %v2078_v62  ;;  %v2132_v43 = vadd.f32 %v2107_v50, %v2079_v53  ;;  %v2378_v39 = vadd.f32 %v2366_v51, %v2336_v12  ;;  %v2485_v60 = vrot.slane %v2460_v34, 2 }
 0x14e   : > { %v11004_v59 = vsel %vm912_vm5, %v15778_v42, %v16170_v36  ;;  %v2544_v62 = vrot.slane %v2528_v40, 3  ;;  %v2605_v50 = vrot.slane %v2581_v55, 4  ;;  %v11008_v18 = vmul.f32 %v16142_v2, %v16137_v3  ;;  %v16175_v42 = vld [vmem:[#allocation121_spill] sm:$0xff]  ;;  %v16176_v55 = vld [vmem:[#allocation115_spill] sm:$0xff] }
 0x14f   : > { %16171 = vst [vmem:[#allocation103_spill] sm:$0xff] %v11004_v59  ;;  %v16172_v12 = vrot.slane %v10713_v22, 1  ;;  %v2447_v23 = vadd.f32 %v2416_v10, %v2378_v39  ;;  %v16173_v34 = vrot.slane %v10717_v46, 2  ;;  %v11017_v15 = vadd.f32 %v2173_v29, %v2132_v43  ;;  %v16179_v46 = vld [vmem:[#allocation111_spill] sm:$0xff] }
 0x150   : > { %v16177_v36 = vrot.slane %v16176_v55, 3  ;;  %v2674_v59 = vrot.slane %v10998_v21, 5  ;;  %v11026_v22 = vsel %vm842_vm4, %v2605_v50, %v16178_v28  ;;  %v16181_v43 = vrot.slane %v10838_v8, 4  ;;  %v16185_v21 = vld [vmem:[#allocation122_spill] sm:$0xff]  ;;  %v16187_v28 = vld [vmem:[#allocation31_spill] sm:$0xff] }
 0x151   : > { %v2417_v51 = vsel %vm648_vm0, %v16172_v12, %v2416_v10  ;;  %v2486_v47 = vsel %vm718_vm1, %v16173_v34, %v2485_v60  ;;  %16174 = vst [vmem:[#allocation133_spill] sm:$0xff] %v11017_v15  ;;  %v2516_v53 = vadd.f32 %v2485_v60, %v2447_v23  ;;  %v16180_v10 = vld [vmem:[#allocation123_spill] sm:$0xff]  ;;  %v1438_v60 = vrot.slane %v16185_v21, 6 }
 0x152   : > { %v2446_v40 = vadd.f32 %v2417_v51, %v16175_v42  ;;  %v2545_v3 = vsel %vm780_vm3, %v16177_v36, %v2544_v62  ;;  %v1135_v12 = vadd.f32 %v16180_v10, %v16179_v46  ;;  %v16182_v42 = vld [vmem:[#allocation101_spill] sm:$0xff]  ;;  %v16184_v36 = vld [vmem:[#allocation119_spill] sm:$0xff]  ;;  %v1572_v48 = vadd.f32 %v16187_v28, %v16186_v33  ;;  %v16192_v10 = vld [vmem:[#allocation126_spill] sm:$0xff] }
 0x153   : > { %v16183_v51 = vrot.slane %v16182_v42, 4  ;;  %v1369_v15 = vrot.slane %v16184_v36, 5  ;;  %v2569_v23 = vadd.f32 %v2544_v62, %v2516_v53  ;;  %v16188_v39 = vrot.slane %v10887_v26, 4  ;;  %v16197_v53 = vld [vmem:[#allocation129_spill] sm:$0xff]  ;;  %v16198_v28 = vld [vmem:[#allocation130_spill] sm:$0xff] }
 0x154   : > { %v2515_v29 = vadd.f32 %v2486_v47, %v2446_v40  ;;  %v16190_v63 = vrot.slane %v16189_v1, 4  ;;  %v16191_v40 = vld [vmem:[#allocation41_spill] sm:$0xff]  ;;  %v1873_v2 = vrot.slane %v16192_v10, 6  ;;  %v16196_v21 = vrot.slane %v16195_v30, 4 }
 0x155   : > { %v1302_v34 = vsel %vm842_vm4, %v16183_v51, %v16181_v43  ;;  %v1804_v8 = vrot.slane %v16191_v40, 5  ;;  %v16193_v43 = vld [vmem:[#allocation30_spill] sm:$0xff]  ;;  %v16194_v51 = vld [vmem:[#allocation127_spill] sm:$0xff]  ;;  %v2238_v33 = vrot.slane %v16197_v53, 5  ;;  %v2307_v26 = vrot.slane %v16198_v28, 6 }
 0x156   : > { %v1737_v47 = vsel %vm842_vm4, %v16190_v63, %v16188_v39  ;;  %v2568_v46 = vadd.f32 %v2545_v3, %v2515_v29  ;;  %v2008_v36 = vadd.f32 %v16194_v51, %v16193_v43  ;;  %v2171_v62 = vsel %vm842_vm4, %v16196_v21, %v2170_v20  ;;  %v16201_v63 = vld [vmem:[#allocation116_spill] sm:$0xff]  ;;  %v16203_v29 = vld [vmem:[#allocation98_spill] sm:$0xff]  ;;  %v16204_v43 = vld [vmem:[#allocation117_spill] sm:$0xff] }
 0x157   : > { %v2445_v11 = vadd.f32 %v16200_v16, %v16199_v19  ;;  %v16202_v39 = vrot.slane %v16201_v63, 4  ;;  %v2673_v40 = vrot.slane %v16203_v29, 5  ;;  %v2742_v10 = vrot.slane %v10848_v56, 6  ;;  %v16207_v16 = vld [vmem:[#allocation34_spill] sm:$0xff] }
 0x158   : > { %v1204_v51 = vadd.f32 %v16204_v43, %v1135_v12  ;;  %v1327_v9 = vadd.f32 %v1302_v34, %v10894_v0  ;;  %v16205_v20 = vrot.slane %v10842_v5, 5  ;;  %v16206_v53 = vrot.slane %v10864_v52, 6  ;;  %v16212_v52 = vld [vmem:[#allocation128_spill] sm:$0xff] }
 0x159   : > { %v2606_v3 = vsel %vm842_vm4, %v16202_v39, %v2605_v50  ;;  %v1641_v28 = vadd.f32 %v16207_v16, %v1572_v48  ;;  %v1764_v50 = vadd.f32 %v1737_v47, %v10937_v54  ;;  %v16208_v39 = vrot.slane %v10658_v58, 3 }
 0x15a   : > { %v1371_v21 = vsel %vm912_vm5, %v1369_v15, %v16205_v20  ;;  %v1440_v19 = vsel %vm982_vm6, %v1438_v60, %v16206_v53  ;;  %v16209_v12 = vrot.slane %v10892_v14, 5  ;;  %v16210_v5 = vrot.slane %v10933_v17, 6 }
 0x15b   : > { %v1257_v29 = vadd.f32 %v16208_v39, %v1204_v51  ;;  %v1396_v56 = vadd.f32 %v1371_v21, %v1327_v9  ;;  %v16211_v43 = vrot.slane %v10681_v25, 3  ;;  %v2077_v48 = vadd.f32 %v16212_v52, %v2008_v36 }
 0x15c   : > { %v1806_v0 = vsel %vm912_vm5, %v1804_v8, %v16209_v12  ;;  %v1875_v34 = vsel %vm982_vm6, %v1873_v2, %v16210_v5  ;;  %v2200_v16 = vadd.f32 %v2171_v62, %v2131_v13  ;;  %v16213_v54 = vrot.slane %v16182_v42, 4  ;;  %v16218_v42 = vld [vmem:[#allocation132_spill] sm:$0xff] }
 0x15d   : > { %v1694_v20 = vadd.f32 %v16211_v43, %v1641_v28  ;;  %v1833_v53 = vadd.f32 %v1806_v0, %v1764_v50  ;;  %v1465_v47 = vadd.f32 %v1440_v19, %v1396_v56  ;;  %v16214_v9 = vrot.slane %v10956_v4, 5 }
 0x15e   : > { %v1326_v58 = vadd.f32 %v16213_v54, %v1257_v29  ;;  %v16215_v51 = vrot.slane %v10984_v7, 6  ;;  %v16216_v39 = vrot.slane %v16189_v1, 4  ;;  %v16217_v50 = vrot.slane %v10706_v31, 3 }
 0x15f   : > { %v2240_v14 = vsel %vm912_vm5, %v2238_v33, %v16214_v9  ;;  %v1902_v28 = vadd.f32 %v1875_v34, %v1833_v53  ;;  %v2514_v62 = vadd.f32 %v16218_v42, %v2445_v11  ;;  %v2637_v19 = vadd.f32 %v2606_v3, %v2568_v46  ;;  %v16223_v53 = vld [vmem:[#allocation75_spill] sm:$0xff]  ;;  %v16227_v9 = vld [vmem:[#allocation57_spill] sm:$0xff] }
 0x160   : > { %v2309_v21 = vsel %vm982_vm6, %v2307_v26, %v16215_v51  ;;  %v1763_v25 = vadd.f32 %v16216_v39, %v1694_v20  ;;  %v2130_v52 = vadd.f32 %v16217_v50, %v2077_v48  ;;  %v2269_v13 = vadd.f32 %v2240_v14, %v2200_v16  ;;  %v16229_v39 = vld [vmem:[#allocation39_spill] sm:$0xff] }
 0x161   : > { %v1395_v36 = vadd.f32 %v1369_v15, %v1326_v58  ;;  %v2675_v4 = vsel %vm912_vm5, %v2673_v40, %v2674_v59  ;;  %v16219_v56 = vrot.slane %v16195_v30, 4  ;;  %v16220_v5 = vrot.slane %v11008_v18, 6  ;;  %v16222_v30 = vld [vmem:[#allocation38_spill] sm:$0xff] }
 0x162   : > { %v1832_v29 = vadd.f32 %v1804_v8, %v1763_v25  ;;  %v2338_v0 = vadd.f32 %v2309_v21, %v2269_v13  ;;  %v16221_v31 = vrot.slane %v16176_v55, 3  ;;  %v2706_v20 = vadd.f32 %v2675_v4, %v2637_v19  ;;  %v16232_v13 = vld [vmem:[#allocation42_spill] sm:$0xff]  ;;  %v16250_v19 = vld [vmem:[#allocation107_spill] sm:$0xff] }
 0x163   : > { %v2199_v12 = vadd.f32 %v16219_v56, %v2130_v52  ;;  %v2744_v1 = vsel %vm982_vm6, %v2742_v10, %v16220_v5  ;;  %v1464_v34 = vadd.f32 %v1438_v60, %v1395_v36  ;;  %v1495_v11 = vmul.f32 %v9878_v37, %v10881_v61  ;;  %v16243_v56 = vld [vmem:[#allocation50_spill] sm:$0xff] }
 0x164   : > { %v2567_v43 = vadd.f32 %v16221_v31, %v2514_v62  ;;  %v1901_v15 = vadd.f32 %v1873_v2, %v1832_v29  ;;  %v11107_v8 = vmul.f32 %v9882_v38, %v10881_v61  ;;  %v11111_v3 = vmul.f32 %v16222_v30, %v10881_v61  ;;  %v16241_v62 = vld [vmem:[#allocation72_spill] sm:$0xff]  ;;  %v16248_v5 = vld [vmem:[#allocation106_spill] sm:$0xff] }
 0x165   : > { %v2268_v46 = vadd.f32 %v2238_v33, %v2199_v12  ;;  %v11115_v60 = vsel %vm912_vm5, %v2674_v59, %v16223_v53  ;;  %v16224_v55 = vrot.slane %v16201_v63, 4  ;;  %v2775_v16 = vadd.f32 %v2744_v1, %v2706_v20  ;;  %v16225_v33 = vld [vmem:[#allocation44_spill] sm:$0xff] }
 0x166   : > { %v11119_v54 = vadd.f32 %v1495_v11, %v1465_v47  ;;  %v11122_v2 = vadd.f32 %v11026_v22, %v2569_v23  ;;  %v11125_v58 = vadd.f32 %v16225_v33, %v1464_v34  ;;  %v11128_v14 = vadd.f32 %v16227_v9, %v1901_v15  ;;  %v16235_v34 = vld [vmem:[#allocation65_spill] sm:$0xff]  ;;  %v16237_v11 = vld [vmem:[#allocation76_spill] sm:$0xff] }
 0x167   : > { %v2636_v48 = vadd.f32 %v16224_v55, %v2567_v43  ;;  %v2337_v51 = vadd.f32 %v2307_v26, %v2268_v46  ;;  %v15788_v59 = vrot.slane %v11107_v8, 1  ;;  %v11133_v63 = vmul.f32 %v16229_v39, %v10881_v61  ;;  %v16236_v43 = vld [vmem:[#allocation66_spill] sm:$0xff] }
 0x168   : > { %16226 = vst [vmem:[#allocation121_spill] sm:$0xff] %v11125_v58  ;;  %v1931_v47 = vmul.f32 %v16026_v32, %v10881_v61  ;;  %v15789_v22 = vrot.slane %v11111_v3, 2  ;;  %v11140_v23 = vmul.f32 %v16032_v45, %v10881_v61  ;;  %v11144_v25 = vmul.f32 %v9931_v57, %v10881_v61 }
 0x169   : > { %16228 = vst [vmem:[#allocation115_spill] sm:$0xff] %v11128_v14  ;;  %v2705_v21 = vadd.f32 %v2673_v40, %v2636_v48  ;;  %v11148_v26 = vmul.f32 %v10278_v44, %v10881_v61  ;;  %v16230_v40 = vld [vmem:[#allocation60_spill] sm:$0xff]  ;;  %v11155_v36 = vmul.f32 %v16232_v13, %v10881_v61  ;;  %v11163_v4 = vmul.f32 %v16091_v35, %v10881_v61  ;;  %v16240_v48 = vld [vmem:[#allocation69_spill] sm:$0xff] }
 0x16a   : > { %v11151_v50 = vadd.f32 %v16230_v40, %v2337_v51  ;;  %v11157_v42 = vadd.f32 %v1931_v47, %v1902_v28  ;;  %v2368_v29 = vmul.f32 %v16088_v27, %v10881_v61  ;;  %v11174_v28 = vmul.f32 %v16090_v49, %v10881_v61  ;;  %v9175_v47 = vld [vmem:[#allocation6 + $0x20] sm:$0xff]  ;;  %v16260_v14 = vld [vmem:[#allocation52_spill] sm:$0xff] }
 0x16b   : > { %v2774_v52 = vadd.f32 %v2742_v10, %v2705_v21  ;;  %16233 = vst [vmem:[#allocation123_spill] sm:$0xff] %v11155_v36  ;;  %v11170_v10 = vmul.f32 %v16089_v41, %v10881_v61  ;;  %v11178_v12 = vmul.f32 %v10725_v6, %v10881_v61  ;;  %v2805_v31 = vmul.f32 %v16235_v34, %v10881_v61  ;;  %v16280_v36 = vld [vmem:[#allocation104_spill] sm:$0xff] }
 0x16c   : > { %16231 = vst [vmem:[#allocation111_spill] sm:$0xff] %v11151_v50  ;;  %v11181_v1 = vadd.f32 %v2368_v29, %v2338_v0  ;;  %v11187_v20 = vmul.f32 %v16236_v43, %v10881_v61  ;;  %v11195_v55 = vmul.f32 %v16096_v24, %v10881_v61  ;;  %v11199_v0 = vmul.f32 %v16240_v48, %v10881_v61 }
 0x16d   : > { %16234 = vst [vmem:[#allocation101_spill] sm:$0xff] %v11163_v4  ;;  %v11190_v15 = vadd.f32 %v16237_v11, %v2774_v52  ;;  %v11203_v21 = vadd.f32 %v2805_v31, %v2775_v16  ;;  %v11205_v29 = vperm.slane %v9175_v47, 6  ;;  %v11211_v46 = vmul.f32 %v16241_v62, %v10881_v61  ;;  %v16246_v31 = vld [vmem:[#allocation51_spill] sm:$0xff]  ;;  %v16253_v11 = vld [vmem:[#allocation58_spill] sm:$0xff] }
 0x16e   : > { %16239 = vst [vmem:[#allocation122_spill] sm:$0xff] %v11195_v55  ;;  %v11217_v33 = vsel %vm648_vm0, %v16243_v56, %v15788_v59  ;;  %v11227_v47 = vsel %vm718_vm1, %v16246_v31, %v15789_v22  ;;  %v11232_v52 = vmul.f32 %v16248_v5, %v10881_v61  ;;  %v11236_v56 = vmul.f32 %v16250_v19, %v10881_v61  ;;  %v16256_v31 = vld [vmem:[#allocation59_spill] sm:$0xff] }
 0x16f   : > { %16238 = vst [vmem:[#allocation119_spill] sm:$0xff] %v11190_v15  ;;  %v11221_v16 = vmul.f32 %v11205_v29, %v10881_v61  ;;  %v16252_v59 = vrot.slane %v11140_v23, 1  ;;  %v16255_v9 = vrot.slane %v11144_v25, 2  ;;  %v16258_v15 = vld [vmem:[#allocation49_spill] sm:$0xff] }
 0x170   : > { %16242 = vst [vmem:[#allocation114_spill] sm:$0xff] %v11211_v46  ;;  %v11254_v50 = vmul.f32 %v16258_v15, %v10881_v61 }
 0x171   : > { %16244 = vst [vmem:[#allocation31_spill] sm:$0xff] %v11217_v33  ;;  %v11242_v40 = vsel %vm648_vm0, %v16253_v11, %v16252_v59  ;;  %v11248_v22 = vsel %vm718_vm1, %v16256_v31, %v16255_v9  ;;  %v16262_v59 = vrot.slane %v11170_v10, 1  ;;  %v16263_v11 = vld [vmem:[#allocation70_spill] sm:$0xff]  ;;  %v16265_v9 = vrot.slane %v11174_v28, 2  ;;  %v16266_v31 = vld [vmem:[#allocation71_spill] sm:$0xff]  ;;  %v16281_v33 = vld [vmem:[#allocation32_spill] sm:$0xff] }
 0x172   : > { %16245 = vst [vmem:[#allocation108_spill] sm:$0xff] %v11221_v16  ;;  %v16283_v16 = vld [vmem:[#allocation105_spill] sm:$0xff] }
 0x173   : > { %16247 = vst [vmem:[#allocation41_spill] sm:$0xff] %v11227_v47  ;;  %v11270_v51 = vsel %vm718_vm1, %v16266_v31, %v16265_v9  ;;  %v16276_v9 = vld [vmem:[#allocation85_spill] sm:$0xff]  ;;  %v1655_v47 = vmul.f32 %v16229_v39, %v16283_v16 }
 0x174   : > { %16249 = vst [vmem:[#allocation126_spill] sm:$0xff] %v11232_v52  ;;  %v16272_v52 = vrot.slane %v11187_v20, 1 }
 0x175   : > { %16251 = vst [vmem:[#allocation30_spill] sm:$0xff] %v11236_v56  ;;  %v11258_v56 = vmul.f32 %v16260_v14, %v10881_v61 }
 0x176   : > { %16254 = vst [vmem:[#allocation127_spill] sm:$0xff] %v11242_v40  ;;  %v11264_v40 = vsel %vm648_vm0, %v16263_v11, %v16262_v59  ;;  %v16273_v59 = vld [vmem:[#allocation84_spill] sm:$0xff] }
 0x177   : > { %16257 = vst [vmem:[#allocation120_spill] sm:$0xff] %v11248_v22  ;;  %v16268_v22 = vld [vmem:[#allocation63_spill] sm:$0xff]  ;;  %v11285_v11 = vsel %vm648_vm0, %v16273_v59, %v16272_v52  ;;  %v1496_v52 = vmul.f32 %v9878_v37, %v16283_v16  ;;  %v1521_v59 = vmul.f32 %v9882_v38, %v16283_v16 }
 0x178   : > { %16259 = vst [vmem:[#allocation129_spill] sm:$0xff] %v11254_v50  ;;  %v11275_v50 = vmul.f32 %v16268_v22, %v10881_v61  ;;  %v16286_v37 = vld [vmem:[#allocation43_spill] sm:$0xff] }
 0x179   : > { %16261 = vst [vmem:[#allocation130_spill] sm:$0xff] %v11258_v56  ;;  %v16270_v56 = vld [vmem:[#allocation64_spill] sm:$0xff] }
 0x17a   : > { %16264 = vst [vmem:[#allocation118_spill] sm:$0xff] %v11264_v40  ;;  %v11279_v4 = vmul.f32 %v16270_v56, %v10881_v61  ;;  %v16275_v40 = vrot.slane %v11199_v0, 2 }
 0x17b   : > { %16267 = vst [vmem:[#allocation131_spill] sm:$0xff] %v11270_v51  ;;  %v16278_v51 = vld [vmem:[#allocation99_spill] sm:$0xff] }
 0x17c   : > { %16269 = vst [vmem:[#allocation116_spill] sm:$0xff] %v11275_v50  ;;  %v11291_v31 = vsel %vm718_vm1, %v16276_v9, %v16275_v40  ;;  %v16279_v50 = vld [vmem:[#allocation125_spill] sm:$0xff]  ;;  %v1590_v40 = vmul.f32 %v16222_v30, %v16283_v16  ;;  %v16287_v30 = vld [vmem:[#allocation124_spill] sm:$0xff] }
 0x17d   : > { %16271 = vst [vmem:[#allocation98_spill] sm:$0xff] %v11279_v4  ;;  %v1397_v55 = vadd.f32 %v16279_v50, %v16278_v51  ;;  %v16282_v4 = vrot.slane %v16281_v33, 6  ;;  %v11310_v50 = vmul.f32 %v16232_v13, %v16283_v16  ;;  %v1552_v51 = vrot.slane %v1521_v59, 1 }
 0x17e   : > { %16274 = vst [vmem:[#allocation117_spill] sm:$0xff] %v11285_v11  ;;  %v1621_v38 = vrot.slane %v1590_v40, 2  ;;  %v16292_v40 = vld [vmem:[#allocation110_spill] sm:$0xff] }
 0x17f   : > { %16277 = vst [vmem:[#allocation34_spill] sm:$0xff] %v11291_v31  ;;  %v1442_v58 = vsel %vm982_vm6, %v16282_v4, %v16280_v36  ;;  %v11314_v36 = vmul.f32 %v16248_v5, %v16283_v16  ;;  %v16284_v4 = vld [vmem:[#allocation73_spill] sm:$0xff]  ;;  %v1674_v31 = vrot.slane %v1655_v47, 3  ;;  %v15804_v46 = vrot.slane %v11310_v50, 4 }
 0x180   : > { %v1466_v9 = vadd.f32 %v1442_v58, %v1397_v55  ;;  %v11318_v33 = vmul.f32 %v16284_v4, %v10881_v61  ;;  %v1834_v58 = vadd.f32 %v16287_v30, %v16286_v37  ;;  %v16288_v55 = vld [vmem:[#allocation77_spill] sm:$0xff]  ;;  %v16289_v5 = vrot.slane %v11107_v8, 1 }
 0x181   : > { %v11324_v39 = vmul.f32 %v16288_v55, %v10881_v61  ;;  %v11335_v37 = vmul.f32 %v16250_v19, %v16283_v16  ;;  %v16293_v61 = vrot.slane %v10933_v17, 6  ;;  %v16294_v8 = vrot.slane %v11133_v63, 3 }
 0x182   : > { %16285 = vst [vmem:[#allocation128_spill] sm:$0xff] %v11318_v33  ;;  %v1508_v13 = vadd.f32 %v1496_v52, %v1466_v9  ;;  %v1553_v11 = vsel %vm648_vm0, %v16289_v5, %v1552_v51  ;;  %v16290_v33 = vrot.slane %v11111_v3, 2  ;;  %v16295_v5 = vld [vmem:[#allocation54_spill] sm:$0xff]  ;;  %v1932_v17 = vmul.f32 %v16026_v32, %v16283_v16 }
 0x183   : > { %16291 = vst [vmem:[#allocation132_spill] sm:$0xff] %v11335_v37  ;;  %v1877_v9 = vsel %vm982_vm6, %v16293_v61, %v16292_v40  ;;  %v1576_v47 = vadd.f32 %v1553_v11, %v11119_v54  ;;  %v1675_v30 = vsel %vm780_vm3, %v16294_v8, %v1674_v31  ;;  %v1744_v19 = vsel %vm842_vm4, %v15804_v46, %v16295_v5  ;;  %v11355_v54 = vld [vmem:[%s9754_s27 + $0x30] sm:$0xff] }
 0x184   : > { %v1622_v59 = vsel %vm718_vm1, %v16290_v33, %v1621_v38  ;;  %v1577_v52 = vadd.f32 %v1552_v51, %v1508_v13  ;;  %v1903_v33 = vadd.f32 %v1877_v9, %v1834_v58  ;;  %v1957_v61 = vmul.f32 %v16032_v45, %v16283_v16  ;;  %538 = vst [vmem:[#allocation2 + $0xc8] sm:$0xff] %v11355_v54 }
 0x185   : > { %v1645_v11 = vadd.f32 %v1622_v59, %v1576_v47  ;;  %v2026_v13 = vmul.f32 %v9931_v57, %v16283_v16  ;;  %v2092_v8 = vmul.f32 %v10278_v44, %v16283_v16  ;;  %v11364_v9 = vmul.f32 %v16091_v35, %v16283_v16  ;;  %v16297_v35 = vld [vmem:[#allocation109_spill] sm:$0xff] }
 0x186   : > { %v1646_v51 = vadd.f32 %v1621_v38, %v1577_v52  ;;  %v1944_v5 = vadd.f32 %v1932_v17, %v1903_v33  ;;  %v1986_v58 = vrot.slane %v1957_v61, 1  ;;  %v11368_v46 = vmul.f32 %v16258_v15, %v16283_v16 }
 0x187   : > { %v11370_v59 = vadd.f32 %v1675_v30, %v1645_v11  ;;  %v2055_v47 = vrot.slane %v2026_v13, 2  ;;  %v2110_v52 = vrot.slane %v2092_v8, 3  ;;  %v16296_v40 = vrot.slane %v11140_v23, 1 }
 0x188   : > { %v1699_v38 = vadd.f32 %v1674_v31, %v1646_v51  ;;  %v2013_v17 = vadd.f32 %v1986_v58, %v1944_v5  ;;  %v15810_v61 = vrot.slane %v11364_v9, 4  ;;  %v16298_v44 = vrot.slane %v11314_v36, 5  ;;  %v16303_v5 = vld [vmem:[#allocation133_spill] sm:$0xff] }
 0x189   : > { %v1987_v33 = vsel %vm648_vm0, %v16296_v40, %v1986_v58  ;;  %v16300_v31 = vrot.slane %v11144_v25, 2  ;;  %v15811_v51 = vrot.slane %v11368_v46, 5  ;;  %v16302_v13 = vrot.slane %v11148_v26, 3  ;;  %v16304_v58 = vld [vmem:[#allocation103_spill] sm:$0xff] }
 0x18a   : > { %v11381_v15 = vsel %vm912_vm5, %v16298_v44, %v16297_v35  ;;  %v2012_v30 = vadd.f32 %v1987_v33, %v11157_v42  ;;  %v11388_v23 = vadd.f32 %v1744_v19, %v1699_v38  ;;  %v2082_v40 = vadd.f32 %v2055_v47, %v2013_v17  ;;  %v16305_v35 = vld [vmem:[#allocation61_spill] sm:$0xff]  ;;  %v16306_v42 = vld [vmem:[#allocation68_spill] sm:$0xff] }
 0x18b   : > { %16299 = vst [vmem:[#allocation44_spill] sm:$0xff] %v11381_v15  ;;  %v2056_v11 = vsel %vm718_vm1, %v16300_v31, %v2055_v47  ;;  %v2111_v8 = vsel %vm780_vm3, %v16302_v13, %v2110_v52  ;;  %v2270_v3 = vadd.f32 %v16304_v58, %v16303_v5  ;;  %v2178_v25 = vsel %vm842_vm4, %v15810_v61, %v16305_v35  ;;  %v16308_v58 = vld [vmem:[#allocation67_spill] sm:$0xff] }
 0x18c   : > { %16301 = vst [vmem:[#allocation50_spill] sm:$0xff] %v11388_v23  ;;  %v2081_v44 = vadd.f32 %v2056_v11, %v2012_v30  ;;  %v16307_v33 = vrot.slane %v10984_v7, 6  ;;  %v2369_v38 = vmul.f32 %v16088_v27, %v16283_v16  ;;  %v11407_v47 = vmul.f32 %v16260_v14, %v16283_v16  ;;  %v16343_v23 = vld [vmem:[#allocation116_spill] sm:$0xff] }
 0x18d   : > { %v2394_v30 = vmul.f32 %v16089_v41, %v16283_v16  ;;  %v2463_v31 = vmul.f32 %v16090_v49, %v16283_v16  ;;  %v2135_v13 = vadd.f32 %v2110_v52, %v2082_v40  ;;  %v2530_v7 = vmul.f32 %v10725_v6, %v16283_v16 }
 0x18e   : > { %v2311_v19 = vsel %vm982_vm6, %v16307_v33, %v16306_v42  ;;  %v11413_v11 = vadd.f32 %v2111_v8, %v2081_v44  ;;  %v11419_v5 = vmul.f32 %v16096_v24, %v16283_v16  ;;  %v11428_v42 = vld [vmem:[%s9754_s27 + $0x38] sm:$0xff]  ;;  %v11433_v40 = vmul.f32 %v16268_v22, %v16283_v16 }
 0x18f   : > { %v2339_v17 = vadd.f32 %v2311_v19, %v2270_v3  ;;  %v11425_v3 = vsel %vm912_vm5, %v15811_v51, %v16308_v58  ;;  %v2421_v19 = vrot.slane %v2394_v30, 1  ;;  %v2490_v61 = vrot.slane %v2463_v31, 2  ;;  %16310 = vst [vmem:[#allocation99_spill] sm:$0xff] %v11428_v42  ;;  %v16315_v51 = vld [vmem:[#allocation74_spill] sm:$0xff]  ;;  %v16346_v22 = vld [vmem:[#allocation117_spill] sm:$0xff] }
 0x190   : > { %16309 = vst [vmem:[#allocation51_spill] sm:$0xff] %v11425_v3  ;;  %v2547_v8 = vrot.slane %v2530_v7, 3  ;;  %v2610_v52 = vrot.slane %v11419_v5, 4  ;;  %v2707_v44 = vadd.f32 %v11115_v60, %v11122_v2  ;;  %v16312_v31 = vrot.slane %v11174_v28, 2 }
 0x191   : > { %v2381_v33 = vadd.f32 %v2369_v38, %v2339_v17  ;;  %539 = vst [vmem:[#allocation2 + $0xd0] sm:$0xff] %v11428_v42  ;;  %v16311_v38 = vrot.slane %v11170_v10, 1  ;;  %v11445_v5 = vadd.f32 %v2178_v25, %v2135_v13  ;;  %v16314_v35 = vrot.slane %v11178_v12, 3  ;;  %v16338_v42 = vld [vmem:[#allocation130_spill] sm:$0xff] }
 0x192   : > { %v2491_v7 = vsel %vm718_vm1, %v16312_v31, %v2490_v61  ;;  %v11453_v2 = vmul.f32 %v16270_v56, %v16283_v16  ;;  %v16317_v28 = vrot.slane %v11008_v18, 6  ;;  %v3021_v18 = vmul.f32 %v16241_v62, %v16283_v16  ;;  %v16345_v56 = vld [vmem:[#allocation119_spill] sm:$0xff] }
 0x193   : > { %v2422_v17 = vsel %vm648_vm0, %v16311_v38, %v2421_v19  ;;  %v2450_v30 = vadd.f32 %v2421_v19, %v2381_v33  ;;  %16313 = vst [vmem:[#allocation125_spill] sm:$0xff] %v11445_v5  ;;  %v2548_v60 = vsel %vm780_vm3, %v16314_v35, %v2547_v8  ;;  %v2613_v33 = vsel %vm842_vm4, %v2610_v52, %v16315_v51  ;;  %v16316_v19 = vld [vmem:[#allocation78_spill] sm:$0xff]  ;;  %v16332_v5 = vld [vmem:[#allocation115_spill] sm:$0xff] }
 0x194   : > { %v2449_v58 = vadd.f32 %v2422_v17, %v11181_v1  ;;  %v2746_v25 = vsel %vm982_vm6, %v16317_v28, %v16316_v19  ;;  %v2806_v1 = vmul.f32 %v16235_v34, %v16283_v16  ;;  %v2679_v38 = vrot.slane %v11433_v40, 5  ;;  %v16322_v40 = vld [vmem:[#allocation108_spill] sm:$0xff] }
 0x195   : > { %v2519_v10 = vadd.f32 %v2490_v61, %v2450_v30  ;;  %v2776_v35 = vadd.f32 %v2746_v25, %v2707_v44  ;;  %v2831_v17 = vmul.f32 %v16236_v43, %v16283_v16  ;;  %v2900_v61 = vmul.f32 %v16240_v48, %v16283_v16 }
 0x196   : > { %v2518_v13 = vadd.f32 %v2491_v7, %v2449_v58  ;;  %v2968_v30 = vmul.f32 %v11205_v29, %v16283_v16  ;;  %v11474_v58 = vmul.f32 %v16284_v4, %v16283_v16  ;;  %v3045_v7 = vrot.slane %v3021_v18, 4 }
 0x197   : > { %v2572_v31 = vadd.f32 %v2547_v8, %v2519_v10  ;;  %v2818_v19 = vadd.f32 %v2806_v1, %v2776_v35  ;;  %v2856_v51 = vrot.slane %v2831_v17, 1  ;;  %v2925_v44 = vrot.slane %v2900_v61, 2 }
 0x198   : > { %v2571_v28 = vadd.f32 %v2548_v60, %v2518_v13  ;;  %v2984_v8 = vrot.slane %v2968_v30, 3  ;;  %v11479_v10 = vsel %vm912_vm5, %v2679_v38, %v16223_v53  ;;  %v16319_v25 = vrot.slane %v11187_v20, 1  ;;  %v16326_v53 = vld [vmem:[#allocation31_spill] sm:$0xff] }
 0x199   : > { %16318 = vst [vmem:[#allocation104_spill] sm:$0xff] %v11479_v10  ;;  %v2887_v60 = vadd.f32 %v2856_v51, %v2818_v19  ;;  %v11486_v1 = vmul.f32 %v16288_v55, %v16283_v16  ;;  %v11488_v13 = vadd.f32 %v2613_v33, %v2572_v31  ;;  %v16321_v17 = vrot.slane %v11199_v0, 2  ;;  %v16325_v16 = vld [vmem:[#allocation121_spill] sm:$0xff]  ;;  %v16333_v55 = vld [vmem:[#allocation127_spill] sm:$0xff] }
 0x19a   : > { %v2857_v3 = vsel %vm648_vm0, %v16319_v25, %v2856_v51  ;;  %v3114_v30 = vrot.slane %v11474_v58, 5  ;;  %v16323_v20 = vrot.slane %v16322_v40, 3  ;;  %v16324_v51 = vld [vmem:[#allocation86_spill] sm:$0xff]  ;;  %v1575_v33 = vadd.f32 %v16326_v53, %v16325_v16  ;;  %v16335_v53 = vld [vmem:[#allocation101_spill] sm:$0xff] }
 0x19b   : > { %16320 = vst [vmem:[#allocation32_spill] sm:$0xff] %v11488_v13  ;;  %v2886_v35 = vadd.f32 %v2857_v3, %v11203_v21  ;;  %v2926_v61 = vsel %vm718_vm1, %v16321_v17, %v2925_v44  ;;  %v2956_v18 = vadd.f32 %v2925_v44, %v2887_v60  ;;  %v3048_v19 = vsel %vm842_vm4, %v3045_v7, %v16324_v51  ;;  %v16328_v3 = vld [vmem:[#allocation123_spill] sm:$0xff]  ;;  %v16330_v44 = vld [vmem:[#allocation126_spill] sm:$0xff] }
 0x19c   : > { %v2985_v25 = vsel %vm780_vm3, %v16323_v20, %v2984_v8  ;;  %v16327_v0 = vrot.slane %v11310_v50, 4  ;;  %v16329_v17 = vrot.slane %v16328_v3, 4  ;;  %v1809_v60 = vrot.slane %v16330_v44, 5  ;;  %v16331_v13 = vld [vmem:[#allocation30_spill] sm:$0xff]  ;;  %v16337_v50 = vld [vmem:[#allocation129_spill] sm:$0xff] }
 0x19d   : > { %v2955_v31 = vadd.f32 %v2926_v61, %v2886_v35  ;;  %v3009_v10 = vadd.f32 %v2984_v8, %v2956_v18  ;;  %v1878_v20 = vrot.slane %v16331_v13, 6  ;;  %v2011_v51 = vadd.f32 %v16333_v55, %v16332_v5  ;;  %v16341_v8 = vld [vmem:[#allocation122_spill] sm:$0xff] }
 0x19e   : > { %v1742_v58 = vsel %vm842_vm4, %v16329_v17, %v16327_v0  ;;  %v16334_v4 = vrot.slane %v11364_v9, 4  ;;  %v16336_v35 = vrot.slane %v16335_v53, 4  ;;  %v2243_v21 = vrot.slane %v16337_v50, 5  ;;  %v16339_v0 = vld [vmem:[#allocation111_spill] sm:$0xff]  ;;  %v16340_v17 = vld [vmem:[#allocation118_spill] sm:$0xff] }
 0x19f   : > { %v3008_v16 = vadd.f32 %v2985_v25, %v2955_v31  ;;  %v2312_v15 = vrot.slane %v16338_v42, 6  ;;  %v2448_v44 = vadd.f32 %v16340_v17, %v16339_v0  ;;  %v16342_v18 = vrot.slane %v16341_v8, 4  ;;  %v16344_v5 = vld [vmem:[#allocation98_spill] sm:$0xff]  ;;  %v16350_v0 = vld [vmem:[#allocation41_spill] sm:$0xff] }
 0x1a0   : > { %v2176_v61 = vsel %vm842_vm4, %v16336_v35, %v16334_v4  ;;  %v2678_v55 = vrot.slane %v16343_v23, 5  ;;  %v2747_v9 = vrot.slane %v16344_v5, 6  ;;  %v2885_v14 = vadd.f32 %v16346_v22, %v16345_v56  ;;  %v16347_v4 = vld [vmem:[#allocation114_spill] sm:$0xff]  ;;  %v16349_v35 = vld [vmem:[#allocation128_spill] sm:$0xff] }
 0x1a1   : > { %v2611_v13 = vsel %vm842_vm4, %v16342_v18, %v2610_v52  ;;  %v16348_v25 = vrot.slane %v16347_v4, 4  ;;  %v3113_v42 = vrot.slane %v16349_v35, 5  ;;  %v3182_v50 = vrot.slane %v11324_v39, 6  ;;  %v16353_v56 = vld [vmem:[#allocation120_spill] sm:$0xff] }
 0x1a2   : > { %v1644_v17 = vadd.f32 %v16350_v0, %v1575_v33  ;;  %v1767_v62 = vadd.f32 %v1742_v58, %v11370_v59  ;;  %v16351_v52 = vrot.slane %v11314_v36, 5  ;;  %v16352_v18 = vrot.slane %v11335_v37, 6 }
 0x1a3   : > { %v3046_v31 = vsel %vm842_vm4, %v16348_v25, %v3045_v7  ;;  %v2080_v5 = vadd.f32 %v16353_v56, %v2011_v51  ;;  %v16354_v7 = vrot.slane %v11133_v63, 3  ;;  %v2203_v35 = vadd.f32 %v2176_v61, %v11413_v11 }
 0x1a4   : > { %v1811_v23 = vsel %vm912_vm5, %v1809_v60, %v16351_v52  ;;  %v1880_v22 = vsel %vm982_vm6, %v1878_v20, %v16352_v18  ;;  %v16355_v39 = vrot.slane %v11368_v46, 5  ;;  %v16356_v59 = vrot.slane %v11407_v47, 6  ;;  %v16358_v18 = vld [vmem:[#allocation131_spill] sm:$0xff] }
 0x1a5   : > { %v1697_v25 = vadd.f32 %v16354_v7, %v1644_v17  ;;  %v1836_v58 = vadd.f32 %v1811_v23, %v1767_v62  ;;  %v16357_v0 = vrot.slane %v11148_v26, 3  ;;  %v2517_v37 = vadd.f32 %v16358_v18, %v2448_v44 }
 0x1a6   : > { %v2245_v33 = vsel %vm912_vm5, %v2243_v21, %v16355_v39  ;;  %v2314_v36 = vsel %vm982_vm6, %v2312_v15, %v16356_v59  ;;  %v2640_v51 = vadd.f32 %v2611_v13, %v2571_v28  ;;  %v16359_v63 = vrot.slane %v16328_v3, 4  ;;  %v16363_v13 = vld [vmem:[#allocation34_spill] sm:$0xff] }
 0x1a7   : > { %v2133_v52 = vadd.f32 %v16357_v0, %v2080_v5  ;;  %v2272_v56 = vadd.f32 %v2245_v33, %v2203_v35  ;;  %v2680_v11 = vsel %vm912_vm5, %v2678_v55, %v2679_v38  ;;  %v16360_v46 = vrot.slane %v11453_v2, 6 }
 0x1a8   : > { %v1766_v17 = vadd.f32 %v16359_v63, %v1697_v25  ;;  %v1905_v7 = vadd.f32 %v1880_v22, %v1836_v58  ;;  %v16361_v39 = vrot.slane %v16335_v53, 4  ;;  %v16362_v26 = vrot.slane %v11178_v12, 3 }
 0x1a9   : > { %v2749_v61 = vsel %vm982_vm6, %v2747_v9, %v16360_v46  ;;  %v2709_v5 = vadd.f32 %v2680_v11, %v2640_v51  ;;  %v2341_v28 = vadd.f32 %v2314_v36, %v2272_v56  ;;  %v2954_v3 = vadd.f32 %v16363_v13, %v2885_v14  ;;  %v16371_v56 = vld [vmem:[#allocation60_spill] sm:$0xff]  ;;  %v16373_v46 = vld [vmem:[#allocation113_spill] sm:$0xff] }
 0x1aa   : > { %v2202_v62 = vadd.f32 %v16361_v39, %v2133_v52  ;;  %v2570_v23 = vadd.f32 %v16362_v26, %v2517_v37  ;;  %v1835_v44 = vadd.f32 %v1809_v60, %v1766_v17  ;;  %v3077_v25 = vadd.f32 %v3046_v31, %v3008_v16  ;;  %v16367_v16 = vld [vmem:[#allocation88_spill] sm:$0xff] }
 0x1ab   : > { %v16364_v38 = vrot.slane %v16341_v8, 4  ;;  %v2778_v59 = vadd.f32 %v2749_v61, %v2709_v5  ;;  %v3115_v0 = vsel %vm912_vm5, %v3113_v42, %v3114_v30  ;;  %v16365_v53 = vrot.slane %v16322_v40, 3  ;;  %v16376_v26 = vld [vmem:[#allocation48_spill] sm:$0xff] }
 0x1ac   : > { %v2271_v35 = vadd.f32 %v2243_v21, %v2202_v62  ;;  %v1904_v22 = vadd.f32 %v1878_v20, %v1835_v44  ;;  %v3146_v52 = vadd.f32 %v3115_v0, %v3077_v25  ;;  %v16366_v12 = vrot.slane %v11486_v1, 6  ;;  %v16390_v44 = vld [vmem:[#allocation87_spill] sm:$0xff] }
 0x1ad   : > { %v2639_v33 = vadd.f32 %v16364_v38, %v2570_v23  ;;  %v3007_v58 = vadd.f32 %v16365_v53, %v2954_v3  ;;  %v1934_v14 = vmul.f32 %v16026_v32, %v11355_v54  ;;  %v11577_v21 = vmul.f32 %v16032_v45, %v11355_v54  ;;  %v11682_v38 = vld [vmem:[#allocation6 + $0x30] ss:$0 sm:$0xff] }
 0x1ae   : > { %v3184_v37 = vsel %vm982_vm6, %v3182_v50, %v16366_v12  ;;  %v2340_v60 = vadd.f32 %v2312_v15, %v2271_v35  ;;  %v11581_v20 = vsel %vm912_vm5, %v3114_v30, %v16367_v16  ;;  %v16368_v40 = vrot.slane %v16347_v4, 4  ;;  %16391 = vst [vmem:[#allocation123_spill] sm:$0xff] %v11682_v38  ;;  %v16392_v4 = vld [vmem:[#allocation91_spill] sm:$0xff]  ;;  %v16396_v16 = vld [vmem:[#allocation58_spill] sm:$0xff] }
 0x1af   : > { %v2708_v36 = vadd.f32 %v2678_v55, %v2639_v33  ;;  %v3215_v31 = vadd.f32 %v3184_v37, %v3146_v52  ;;  %v11587_v18 = vmul.f32 %v9931_v57, %v11355_v54  ;;  %v11589_v15 = vadd.f32 %v3048_v19, %v3009_v10  ;;  %v16369_v55 = vld [vmem:[#allocation57_spill] sm:$0xff]  ;;  %v16381_v37 = vld [vmem:[#allocation72_spill] sm:$0xff] }
 0x1b0   : > { %v3076_v8 = vadd.f32 %v16368_v40, %v3007_v58  ;;  %v11592_v51 = vadd.f32 %v16369_v55, %v1904_v22  ;;  %v11594_v17 = vadd.f32 %v1934_v14, %v1905_v7  ;;  %v11597_v11 = vadd.f32 %v16371_v56, %v2340_v60  ;;  %v16380_v58 = vld [vmem:[#allocation79_spill] sm:$0xff]  ;;  %v16385_v14 = vld [vmem:[#allocation81_spill] sm:$0xff] }
 0x1b1   : > { %v2777_v63 = vadd.f32 %v2747_v9, %v2708_v36  ;;  %v11602_v61 = vmul.f32 %v16373_v46, %v11355_v54  ;;  %v2371_v10 = vmul.f32 %v16088_v27, %v11355_v54  ;;  %v11609_v19 = vmul.f32 %v16089_v41, %v11355_v54 }
 0x1b2   : > { %16370 = vst [vmem:[#allocation105_spill] sm:$0xff] %v11592_v51  ;;  %v3145_v30 = vadd.f32 %v3113_v42, %v3076_v8  ;;  %v11613_v9 = vmul.f32 %v16090_v49, %v11355_v54  ;;  %v16374_v42 = vld [vmem:[#allocation76_spill] sm:$0xff]  ;;  %v11620_v23 = vmul.f32 %v16376_v26, %v11355_v54  ;;  %v11624_v5 = vmul.f32 %v10725_v6, %v11355_v54 }
 0x1b3   : > { %16372 = vst [vmem:[#allocation43_spill] sm:$0xff] %v11597_v11  ;;  %v11616_v7 = vadd.f32 %v16374_v42, %v2777_v63  ;;  %v11627_v13 = vadd.f32 %v2371_v10, %v2341_v28  ;;  %v11631_v3 = vmul.f32 %v16096_v24, %v11355_v54  ;;  %v2808_v25 = vmul.f32 %v16235_v34, %v11355_v54  ;;  %v9176_v63 = vld [vmem:[#allocation6 + $0x28] sm:$0xff]  ;;  %v16389_v10 = vld [vmem:[#allocation82_spill] sm:$0xff]  ;;  %v16394_v42 = vld [vmem:[#allocation92_spill] sm:$0xff] }
 0x1b4   : > { %v3214_v62 = vadd.f32 %v3182_v50, %v3145_v30  ;;  %16377 = vst [vmem:[#allocation54_spill] sm:$0xff] %v11620_v23  ;;  %v16379_v50 = vld [vmem:[#allocation89_spill] sm:$0xff]  ;;  %v11640_v0 = vmul.f32 %v16236_v43, %v11355_v54  ;;  %v11646_v28 = vmul.f32 %v16240_v48, %v11355_v54  ;;  %v11650_v53 = vmul.f32 %v11205_v29, %v11355_v54  ;;  %v16399_v11 = vld [vmem:[#allocation59_spill] sm:$0xff] }
 0x1b5   : > { %16375 = vst [vmem:[#allocation124_spill] sm:$0xff] %v11616_v7  ;;  %v11642_v22 = vadd.f32 %v2808_v25, %v2778_v59  ;;  %v3245_v52 = vmul.f32 %v16380_v58, %v11355_v54  ;;  %v11657_v60 = vmul.f32 %v16381_v37, %v11355_v54  ;;  %v16383_v59 = vld [vmem:[#allocation80_spill] sm:$0xff]  ;;  %v11665_v40 = vmul.f32 %v16385_v14, %v11355_v54 }
 0x1b6   : > { %16378 = vst [vmem:[#allocation109_spill] sm:$0xff] %v11631_v3  ;;  %v3256_v35 = vadd.f32 %v16379_v50, %v3214_v62  ;;  %v11661_v36 = vmul.f32 %v16383_v59, %v11355_v54  ;;  %v11670_v30 = vperm.slane %v9176_v63, 5  ;;  %v11674_v62 = vmul.f32 %v16389_v10, %v11355_v54  ;;  %v16422_v3 = vld [vmem:[#allocation50_spill] sm:$0xff] }
 0x1b7   : > { %16382 = vst [vmem:[#allocation133_spill] sm:$0xff] %v11657_v60  ;;  %v11668_v55 = vadd.f32 %v3245_v52, %v3215_v31  ;;  %v11680_v33 = vmul.f32 %v16390_v44, %v11355_v54  ;;  %v11686_v31 = vmul.f32 %v11682_v38, %v11355_v54  ;;  %v16393_v50 = vrot.slane %v11665_v40, 2 }
 0x1b8   : > { %16384 = vst [vmem:[#allocation103_spill] sm:$0xff] %v11661_v36  ;;  %v15822_v25 = vrot.slane %v11661_v36, 1  ;;  %v11692_v8 = vmul.f32 %v11670_v30, %v11355_v54  ;;  %v16395_v52 = vrot.slane %v11577_v21, 1  ;;  %v16398_v7 = vrot.slane %v11587_v18, 2  ;;  %v16425_v36 = vld [vmem:[#allocation132_spill] sm:$0xff] }
 0x1b9   : > { %16386 = vst [vmem:[#allocation108_spill] sm:$0xff] %v11665_v40  ;;  %v3364_v56 = vsel %vm718_vm1, %v16394_v42, %v16393_v50  ;;  %v16401_v42 = vld [vmem:[#allocation49_spill] sm:$0xff]  ;;  %v16426_v38 = vrot.slane %v16425_v36, 6  ;;  %v16428_v36 = vrot.slane %v11674_v62, 4 }
 0x1ba   : > { %16387 = vst [vmem:[#allocation121_spill] sm:$0xff] %v11668_v55  ;;  %v3295_v12 = vsel %vm648_vm0, %v16392_v4, %v15822_v25  ;;  %v11707_v63 = vsel %vm648_vm0, %v16396_v16, %v16395_v52  ;;  %v11713_v39 = vsel %vm718_vm1, %v16399_v11, %v16398_v7  ;;  %v11721_v40 = vmul.f32 %v16401_v42, %v11355_v54  ;;  %v16403_v16 = vld [vmem:[#allocation52_spill] sm:$0xff]  ;;  %v16406_v7 = vld [vmem:[#allocation70_spill] sm:$0xff]  ;;  %v16409_v55 = vld [vmem:[#allocation71_spill] sm:$0xff] }
 0x1bb   : > { %16388 = vst [vmem:[#allocation31_spill] sm:$0xff] %v11670_v30  ;;  %v3325_v51 = vadd.f32 %v3295_v12, %v3256_v35  ;;  %v11725_v52 = vmul.f32 %v16403_v16, %v11355_v54  ;;  %v16405_v11 = vrot.slane %v11609_v19, 1  ;;  %v16408_v4 = vrot.slane %v11613_v9, 2 }
 0x1bc   : > { %16397 = vst [vmem:[#allocation126_spill] sm:$0xff] %v11707_v63  ;;  %v16424_v63 = vld [vmem:[#allocation110_spill] sm:$0xff] }
 0x1bd   : > { %16400 = vst [vmem:[#allocation30_spill] sm:$0xff] %v11713_v39  ;;  %v11731_v35 = vsel %vm648_vm0, %v16406_v7, %v16405_v11  ;;  %v3394_v12 = vadd.f32 %v3364_v56, %v3325_v51  ;;  %v11737_v50 = vsel %vm718_vm1, %v16409_v55, %v16408_v4  ;;  %v16411_v39 = vld [vmem:[#allocation63_spill] sm:$0xff]  ;;  %v16415_v11 = vrot.slane %v11640_v0, 1  ;;  %v16416_v7 = vld [vmem:[#allocation84_spill] sm:$0xff]  ;;  %v16419_v4 = vld [vmem:[#allocation85_spill] sm:$0xff] }
 0x1be   : > { %16402 = vst [vmem:[#allocation115_spill] sm:$0xff] %v11721_v40  ;;  %v11742_v40 = vmul.f32 %v16411_v39, %v11355_v54  ;;  %v16418_v56 = vrot.slane %v11646_v28, 2 }
 0x1bf   : > { %16404 = vst [vmem:[#allocation127_spill] sm:$0xff] %v11725_v52  ;;  %v16413_v52 = vld [vmem:[#allocation64_spill] sm:$0xff]  ;;  %v11752_v51 = vsel %vm648_vm0, %v16416_v7, %v16415_v11  ;;  %v1882_v11 = vsel %vm982_vm6, %v16426_v38, %v16424_v63  ;;  %v16427_v7 = vld [vmem:[#allocation99_spill] sm:$0xff]  ;;  %v16429_v38 = vld [vmem:[#allocation73_spill] sm:$0xff] }
 0x1c0   : > { %16407 = vst [vmem:[#allocation101_spill] sm:$0xff] %v11731_v35  ;;  %v11746_v23 = vmul.f32 %v16413_v52, %v11355_v54  ;;  %v11758_v55 = vsel %vm718_vm1, %v16419_v4, %v16418_v56  ;;  %v16423_v35 = vld [vmem:[#allocation44_spill] sm:$0xff]  ;;  %v1960_v56 = vmul.f32 %v16032_v45, %v16427_v7  ;;  %v2029_v25 = vmul.f32 %v9931_v57, %v16427_v7 }
 0x1c1   : > { %16410 = vst [vmem:[#allocation129_spill] sm:$0xff] %v11737_v50  ;;  %v16421_v50 = vrot.slane %v11692_v8, 3  ;;  %v11785_v63 = vmul.f32 %v16429_v38, %v11355_v54  ;;  %v11789_v45 = vmul.f32 %v16401_v42, %v16427_v7  ;;  %v16434_v42 = vld [vmem:[#allocation125_spill] sm:$0xff]  ;;  %v11814_v60 = vmul.f32 %v16403_v16, %v16427_v7 }
 0x1c2   : > { %16412 = vst [vmem:[#allocation130_spill] sm:$0xff] %v11742_v40  ;;  %v2060_v57 = vrot.slane %v2029_v25, 2  ;;  %v16436_v25 = vrot.slane %v11577_v21, 1  ;;  %v16439_v21 = vrot.slane %v11602_v61, 3 }
 0x1c3   : > { %16414 = vst [vmem:[#allocation111_spill] sm:$0xff] %v11746_v23  ;;  %v3447_v40 = vadd.f32 %v16421_v50, %v3394_v12  ;;  %v1837_v23 = vadd.f32 %v16423_v35, %v16422_v3  ;;  %v2094_v50 = vmul.f32 %v16373_v46, %v16427_v7  ;;  %v11779_v3 = vmul.f32 %v16376_v26, %v16427_v7 }
 0x1c4   : > { %16417 = vst [vmem:[#allocation118_spill] sm:$0xff] %v11752_v51  ;;  %v1935_v51 = vmul.f32 %v16026_v32, %v16427_v7  ;;  %v1991_v12 = vrot.slane %v1960_v56, 1  ;;  %v16431_v26 = vrot.slane %v11680_v33, 5  ;;  %v16437_v46 = vrot.slane %v11587_v18, 2  ;;  %v16440_v18 = vld [vmem:[#allocation61_spill] sm:$0xff] }
 0x1c5   : > { %16420 = vst [vmem:[#allocation122_spill] sm:$0xff] %v11758_v55  ;;  %v3516_v35 = vadd.f32 %v16428_v36, %v3447_v40  ;;  %v1906_v32 = vadd.f32 %v1882_v11, %v1837_v23  ;;  %v2113_v4 = vrot.slane %v2094_v50, 3  ;;  %v11797_v40 = vld [vmem:[%s15570_s2] ss:$0 sm:$0xff]  ;;  %v16432_v36 = vld [vmem:[#allocation77_spill] sm:$0xff] }
 0x1c6   : > { %16430 = vst [vmem:[#allocation116_spill] sm:$0xff] %v11785_v63  ;;  %v11801_v23 = vmul.f32 %v16432_v36, %v11355_v54  ;;  %v16435_v63 = vld [vmem:[#allocation51_spill] sm:$0xff]  ;;  %v1992_v50 = vsel %vm648_vm0, %v16436_v25, %v1991_v12  ;;  %v16438_v54 = vrot.slane %v11686_v31, 6  ;;  %v16441_v25 = vrot.slane %v11779_v3, 4 }
 0x1c7   : > { %v3585_v55 = vadd.f32 %v16431_v26, %v3516_v35  ;;  %v1947_v11 = vadd.f32 %v1935_v51, %v1906_v32  ;;  %v2273_v56 = vadd.f32 %v16435_v63, %v16434_v42  ;;  %v2061_v35 = vsel %vm718_vm1, %v16437_v46, %v2060_v57  ;;  %v16442_v26 = vld [vmem:[#allocation68_spill] sm:$0xff] }
 0x1c8   : > { %16433 = vst [vmem:[#allocation98_spill] sm:$0xff] %v11801_v23  ;;  %v2015_v63 = vadd.f32 %v1992_v50, %v11594_v17  ;;  %v2114_v42 = vsel %vm780_vm3, %v16439_v21, %v2113_v4  ;;  %v2183_v46 = vsel %vm842_vm4, %v16441_v25, %v16440_v18  ;;  %v16443_v23 = vrot.slane %v11407_v47, 6  ;;  %v11838_v21 = vld [vmem:[%s9754_s27 + $0x40] sm:$0xff] }
 0x1c9   : > { %v3654_v51 = vadd.f32 %v16438_v54, %v3585_v55  ;;  %v2016_v32 = vadd.f32 %v1991_v12, %v1947_v11  ;;  %v2372_v55 = vmul.f32 %v16088_v27, %v16427_v7  ;;  %v2397_v17 = vmul.f32 %v16089_v41, %v16427_v7  ;;  %540 = vst [vmem:[#allocation2 + $0xe8] sm:$0xff] %v11838_v21 }
 0x1ca   : > { %v2316_v16 = vsel %vm982_vm6, %v16443_v23, %v16442_v26  ;;  %v2084_v11 = vadd.f32 %v2061_v35, %v2015_v63  ;;  %v2466_v47 = vmul.f32 %v16090_v49, %v16427_v7  ;;  %v2532_v23 = vmul.f32 %v10725_v6, %v16427_v7  ;;  %v16446_v26 = vld [vmem:[#allocation67_spill] sm:$0xff] }
 0x1cb   : > { %v11835_v12 = vadd.f32 %v11797_v40, %v3654_v51   ;;  %v2085_v50 = vadd.f32 %v2060_v57, %v2016_v32  ;;  %v2342_v54 = vadd.f32 %v2316_v16, %v2273_v56  ;;  %v2426_v18 = vrot.slane %v2397_v17, 1 }
 0x1cc   : > { %v11846_v25 = vmul.f32 %v16096_v24, %v16427_v7  ;;  %v11849_v51 = vadd.f32 %v2114_v42, %v2084_v11  ;;  %v11853_v56 = vmul.f32 %v16411_v39, %v16427_v7  ;;  %v16445_v63 = vrot.slane %v11609_v19, 1 }
 0x1cd   : > { %16444 = vst [vmem:[#allocation119_spill] sm:$0xff] %v11835_v12  ;;  %v2138_v35 = vadd.f32 %v2113_v4, %v2085_v50  ;;  %v2384_v57 = vadd.f32 %v2372_v55, %v2342_v54  ;;  %v2495_v16 = vrot.slane %v2466_v47, 2  ;;  %v2550_v17 = vrot.slane %v2532_v23, 3  ;;  %v16453_v12 = vld [vmem:[#allocation104_spill] sm:$0xff] }
 0x1ce   : > { %v2427_v32 = vsel %vm648_vm0, %v16445_v63, %v2426_v18  ;;  %v16447_v24 = vrot.slane %v11789_v45, 5  ;;  %v16450_v19 = vrot.slane %v11613_v9, 2  ;;  %v16451_v47 = vrot.slane %v11624_v5, 3  ;;  %v16452_v63 = vld [vmem:[#allocation32_spill] sm:$0xff]  ;;  %v16457_v9 = vld [vmem:[#allocation78_spill] sm:$0xff] }
 0x1cf   : > { %v2452_v55 = vadd.f32 %v2427_v32, %v11627_v13  ;;  %v2453_v11 = vadd.f32 %v2426_v18, %v2384_v57  ;;  %v11867_v50 = vadd.f32 %v2183_v46, %v2138_v35  ;;  %v2710_v39 = vadd.f32 %v16453_v12, %v16452_v63  ;;  %v11883_v18 = vld [vmem:[%s9754_s27 + $0x48] sm:$0xff] }
 0x1d0   : > { %v11863_v42 = vsel %vm912_vm5, %v16447_v24, %v16446_v26  ;;  %v2496_v54 = vsel %vm718_vm1, %v16450_v19, %v2495_v16  ;;  %v2551_v23 = vsel %vm780_vm3, %v16451_v47, %v2550_v17  ;;  %v16455_v4 = vrot.slane %v11846_v25, 4  ;;  %16456 = vst [vmem:[#allocation128_spill] sm:$0xff] %v11883_v18 }
 0x1d1   : > { %16448 = vst [vmem:[#allocation117_spill] sm:$0xff] %v11863_v42  ;;  %v2521_v24 = vadd.f32 %v2496_v54, %v2452_v55  ;;  %v2522_v26 = vadd.f32 %v2495_v16, %v2453_v11  ;;  %v16454_v42 = vld [vmem:[#allocation74_spill] sm:$0xff]  ;;  %v15837_v46 = vrot.slane %v11853_v56, 5  ;;  %v16458_v35 = vrot.slane %v11453_v2, 6 }
 0x1d2   : > { %16449 = vst [vmem:[#allocation114_spill] sm:$0xff] %v11867_v50  ;;  %v2618_v13 = vsel %vm842_vm4, %v16455_v4, %v16454_v42  ;;  %v2809_v32 = vmul.f32 %v16235_v34, %v16427_v7  ;;  %v2834_v12 = vmul.f32 %v16236_v43, %v16427_v7  ;;  %v2903_v16 = vmul.f32 %v16240_v48, %v16427_v7 }
 0x1d3   : > { %v2751_v57 = vsel %vm982_vm6, %v16458_v35, %v16457_v9  ;;  %541 = vst [vmem:[#allocation2 + $0xf0] sm:$0xff] %v11883_v18  ;;  %v11896_v4 = vadd.f32 %v2551_v23, %v2521_v24  ;;  %v2575_v55 = vadd.f32 %v2550_v17, %v2522_v26  ;;  %v11900_v11 = vmul.f32 %v16413_v52, %v16427_v7  ;;  %v16459_v35 = vld [vmem:[#allocation75_spill] sm:$0xff] }
 0x1d4   : > { %v2779_v2 = vadd.f32 %v2751_v57, %v2710_v39  ;;  %v2861_v19 = vrot.slane %v2834_v12, 1  ;;  %v2930_v54 = vrot.slane %v2903_v16, 2  ;;  %v2970_v47 = vmul.f32 %v11205_v29, %v16427_v7 }
 0x1d5   : > { %v11906_v63 = vmul.f32 %v16381_v37, %v16427_v7  ;;  %v11912_v23 = vsel %vm912_vm5, %v15837_v46, %v16459_v35  ;;  %v11916_v24 = vmul.f32 %v16429_v38, %v16427_v7  ;;  %v3147_v39 = vadd.f32 %v11581_v20, %v11589_v15 }
 0x1d6   : > { %16460 = vst [vmem:[#allocation41_spill] sm:$0xff] %v11912_v23  ;;  %v2821_v17 = vadd.f32 %v2809_v32, %v2779_v2  ;;  %v16461_v26 = vrot.slane %v11640_v0, 1  ;;  %v16462_v12 = vrot.slane %v11646_v28, 2  ;;  %v2987_v42 = vrot.slane %v2970_v47, 3  ;;  %v16465_v28 = vld [vmem:[#allocation90_spill] sm:$0xff] }
 0x1d7   : > { %v3050_v46 = vrot.slane %v11906_v63, 4  ;;  %v11931_v9 = vmul.f32 %v16432_v36, %v16427_v7  ;;  %v11933_v20 = vadd.f32 %v2618_v13, %v2575_v55  ;;  %v16464_v15 = vrot.slane %v11650_v53, 3  ;;  %v16468_v36 = vld [vmem:[#allocation123_spill] sm:$0xff] }
 0x1d8   : > { %v2862_v57 = vsel %vm648_vm0, %v16461_v26, %v2861_v19  ;;  %v2931_v16 = vsel %vm718_vm1, %v16462_v12, %v2930_v54  ;;  %v2890_v35 = vadd.f32 %v2861_v19, %v2821_v17  ;;  %v16466_v47 = vrot.slane %v11486_v1, 6  ;;  %v16467_v17 = vld [vmem:[#allocation86_spill] sm:$0xff] }
 0x1d9   : > { %v2889_v2 = vadd.f32 %v2862_v57, %v11642_v22  ;;  %16463 = vst [vmem:[#allocation120_spill] sm:$0xff] %v11933_v20  ;;  %v2988_v0 = vsel %vm780_vm3, %v16464_v15, %v2987_v42  ;;  %v3246_v26 = vmul.f32 %v16380_v58, %v16427_v7  ;;  %v11946_v57 = vsel %vm842_vm4, %v3050_v46, %v16467_v17  ;;  %v16471_v20 = vld [vmem:[#allocation108_spill] sm:$0xff] }
 0x1da   : > { %v3186_v63 = vsel %vm982_vm6, %v16466_v47, %v16465_v28  ;;  %v2959_v19 = vadd.f32 %v2930_v54, %v2890_v35  ;;  %v3271_v12 = vmul.f32 %v16383_v59, %v16427_v7  ;;  %v3340_v1 = vmul.f32 %v16385_v14, %v16427_v7 }
 0x1db   : > { %v2958_v22 = vadd.f32 %v2931_v16, %v2889_v2  ;;  %v3216_v55 = vadd.f32 %v3186_v63, %v3147_v39  ;;  %v3408_v15 = vmul.f32 %v11670_v30, %v16427_v7  ;;  %v3461_v35 = vmul.f32 %v16389_v10, %v16427_v7  ;;  %v16497_v10 = vld [vmem:[#allocation133_spill] sm:$0xff]  ;;  %v16501_v30 = vld [vmem:[#allocation30_spill] sm:$0xff] }
 0x1dc   : > { %v3530_v16 = vmul.f32 %v16390_v44, %v16427_v7  ;;  %v3296_v2 = vrot.slane %v3271_v12, 1  ;;  %v3365_v63 = vrot.slane %v3340_v1, 2  ;;  %v11962_v32 = vadd.f32 %v2987_v42, %v2959_v19  ;;  %v16474_v42 = vld [vmem:[#allocation121_spill] sm:$0xff] }
 0x1dd   : > { %v11955_v47 = vadd.f32 %v2988_v0, %v2958_v22  ;;  %v3258_v39 = vadd.f32 %v3246_v26, %v3216_v55  ;;  %v3424_v13 = vrot.slane %v3408_v15, 3  ;;  %v3485_v28 = vrot.slane %v3461_v35, 4  ;;  %v16469_v22 = vld [vmem:[#allocation103_spill] sm:$0xff] }
 0x1de   : > { %v3554_v17 = vrot.slane %v3530_v16, 5  ;;  %v3599_v0 = vmul.f32 %v16468_v36, %v16427_v7  ;;  %v16470_v38 = vrot.slane %v16469_v22, 1  ;;  %v16472_v18 = vrot.slane %v16471_v20, 2  ;;  %v16476_v7 = vld [vmem:[#allocation93_spill] sm:$0xff]  ;;  %v16478_v16 = vld [vmem:[#allocation94_spill] sm:$0xff]  ;;  %v16495_v36 = vld [vmem:[#allocation124_spill] sm:$0xff] }
 0x1df   : > { %v3327_v23 = vadd.f32 %v3296_v2, %v3258_v39  ;;  %v16473_v26 = vrot.slane %v11692_v8, 3  ;;  %v16475_v12 = vrot.slane %v11674_v62, 4  ;;  %v3488_v15 = vsel %vm842_vm4, %v3485_v28, %v16476_v7  ;;  %v16479_v39 = vld [vmem:[#allocation105_spill] sm:$0xff] }
 0x1e0   : > { %v3297_v54 = vsel %vm648_vm0, %v16470_v38, %v3296_v2  ;;  %v3366_v50 = vsel %vm718_vm1, %v16472_v18, %v3365_v63  ;;  %v16477_v38 = vrot.slane %v11680_v33, 5  ;;  %v3557_v18 = vsel %vm912_vm5, %v3554_v17, %v16478_v16  ;;  %v16480_v2 = vld [vmem:[#allocation126_spill] sm:$0xff]  ;;  %v16485_v33 = vld [vmem:[#allocation127_spill] sm:$0xff]  ;;  %v16491_v16 = vld [vmem:[#allocation109_spill] sm:$0xff] }
 0x1e1   : > { %v3425_v55 = vsel %vm780_vm3, %v16473_v26, %v3424_v13  ;;  %v3326_v19 = vadd.f32 %v3297_v54, %v16474_v42  ;;  %v3486_v1 = vsel %vm842_vm4, %v16475_v12, %v3485_v28  ;;  %v3396_v20 = vadd.f32 %v3365_v63, %v3327_v23  ;;  %v16482_v26 = vld [vmem:[#allocation54_spill] sm:$0xff]  ;;  %v16484_v28 = vld [vmem:[#allocation115_spill] sm:$0xff] }
 0x1e2   : > { %v3555_v35 = vsel %vm912_vm5, %v16477_v38, %v3554_v17  ;;  %v3623_v8 = vrot.slane %v3599_v0, 6  ;;  %v2014_v22 = vadd.f32 %v16480_v2, %v16479_v39  ;;  %v16481_v62 = vrot.slane %v11779_v3, 4  ;;  %v16487_v63 = vld [vmem:[#allocation95_spill] sm:$0xff] }
 0x1e3   : > { %v3395_v54 = vadd.f32 %v3366_v50, %v3326_v19  ;;  %v16483_v42 = vrot.slane %v16482_v26, 4  ;;  %v2248_v7 = vrot.slane %v16484_v28, 5  ;;  %v2317_v52 = vrot.slane %v16485_v33, 6  ;;  %v16488_v39 = vld [vmem:[#allocation43_spill] sm:$0xff]  ;;  %v16489_v50 = vld [vmem:[#allocation101_spill] sm:$0xff]  ;;  %v16493_v28 = vld [vmem:[#allocation130_spill] sm:$0xff] }
 0x1e4   : > { %v3449_v38 = vadd.f32 %v3424_v13, %v3396_v20  ;;  %v16486_v23 = vrot.slane %v11686_v31, 6  ;;  %v3626_v0 = vsel %vm982_vm6, %v3623_v8, %v16487_v63  ;;  %v2451_v19 = vadd.f32 %v16489_v50, %v16488_v39  ;;  %v16494_v13 = vld [vmem:[#allocation111_spill] sm:$0xff]  ;;  %v16499_v39 = vld [vmem:[#allocation116_spill] sm:$0xff] }
 0x1e5   : > { %v2181_v12 = vsel %vm842_vm4, %v16483_v42, %v16481_v62  ;;  %v3448_v3 = vadd.f32 %v3425_v55, %v3395_v54  ;;  %v16490_v2 = vrot.slane %v11846_v25, 4  ;;  %v16492_v62 = vrot.slane %v16491_v16, 4  ;;  %v16500_v25 = vld [vmem:[#allocation98_spill] sm:$0xff] }
 0x1e6   : > { %v3624_v17 = vsel %vm982_vm6, %v16486_v23, %v3623_v8  ;;  %v2683_v33 = vrot.slane %v16493_v28, 5  ;;  %v2752_v20 = vrot.slane %v16494_v13, 6  ;;  %v3518_v31 = vadd.f32 %v3488_v15, %v3449_v38  ;;  %v16496_v23 = vld [vmem:[#allocation118_spill] sm:$0xff]  ;;  %v16504_v13 = vld [vmem:[#allocation129_spill] sm:$0xff] }
 0x1e7   : > { %v2616_v42 = vsel %vm842_vm4, %v16492_v62, %v16490_v2  ;;  %v2888_v44 = vadd.f32 %v16496_v23, %v16495_v36  ;;  %v16498_v8 = vrot.slane %v16497_v10, 4  ;;  %v3118_v55 = vrot.slane %v16499_v39, 5 }
 0x1e8   : > { %v3517_v54 = vadd.f32 %v3486_v1, %v3448_v3  ;;  %v3187_v50 = vrot.slane %v16500_v25, 6  ;;  %v2083_v14 = vadd.f32 %v16501_v30, %v2014_v22  ;;  %v2206_v2 = vadd.f32 %v2181_v12, %v11849_v51 }
 0x1e9   : > { %v3051_v63 = vsel %vm842_vm4, %v16498_v8, %v3050_v46  ;;  %v3587_v62 = vadd.f32 %v3557_v18, %v3518_v31  ;;  %v16502_v28 = vrot.slane %v11789_v45, 5  ;;  %v16503_v36 = vrot.slane %v11814_v60, 6 }
 0x1ea   : > { %v2520_v46 = vadd.f32 %v16504_v13, %v2451_v19  ;;  %v3586_v23 = vadd.f32 %v3555_v35, %v3517_v54  ;;  %v16505_v1 = vrot.slane %v11602_v61, 3  ;;  %v2643_v30 = vadd.f32 %v2616_v42, %v11896_v4  ;;  %v16512_v42 = vld [vmem:[#allocation122_spill] sm:$0xff] }
 0x1eb   : > { %v2250_v15 = vsel %vm912_vm5, %v2248_v7, %v16502_v28  ;;  %v2319_v38 = vsel %vm982_vm6, %v2317_v52, %v16503_v36  ;;  %v3656_v22 = vadd.f32 %v3626_v0, %v3587_v62  ;;  %v16506_v51 = vrot.slane %v11624_v5, 3 }
 0x1ec   : > { %v2136_v3 = vadd.f32 %v16505_v1, %v2083_v14  ;;  %v2275_v8 = vadd.f32 %v2250_v15, %v2206_v2  ;;  %v16507_v45 = vrot.slane %v11853_v56, 5  ;;  %v16508_v31 = vrot.slane %v11900_v11, 6 }
 0x1ed   : > { %v2573_v18 = vadd.f32 %v16506_v51, %v2520_v46  ;;  %v3655_v19 = vadd.f32 %v3624_v17, %v3586_v23  ;;  %v16509_v35 = vrot.slane %v16482_v26, 4  ;;  %v12039_v4 = vadd.f32 %v11797_v40, %v3656_v22   ;;  %v16521_v51 = vld [vmem:[#allocation60_spill] sm:$0xff] }
 0x1ee   : > { %v2685_v12 = vsel %vm912_vm5, %v2683_v33, %v16507_v45  ;;  %v2754_v39 = vsel %vm982_vm6, %v2752_v20, %v16508_v31  ;;  %v2344_v14 = vadd.f32 %v2319_v38, %v2275_v8  ;;  %v16511_v5 = vrot.slane %v16491_v16, 4  ;;  %v16519_v8 = vld [vmem:[#allocation88_spill] sm:$0xff] }
 0x1ef   : > { %v2205_v61 = vadd.f32 %v16509_v35, %v2136_v3  ;;  %v2712_v54 = vadd.f32 %v2685_v12, %v2643_v30  ;;  %16510 = vst [vmem:[#allocation131_spill] sm:$0xff] %v12039_v4  ;;  %v2957_v56 = vadd.f32 %v16512_v42, %v2888_v44  ;;  %v3080_v25 = vadd.f32 %v3051_v63, %v11955_v47  ;;  %v16544_v4 = vld [vmem:[#allocation117_spill] sm:$0xff] }
 0x1f0   : > { %v2642_v0 = vadd.f32 %v16511_v5, %v2573_v18  ;;  %v12046_v2 = vadd.f32 %v11797_v40, %v3655_v19   ;;  %v16514_v26 = vrot.slane %v11916_v24, 5  ;;  %v16515_v36 = vrot.slane %v11650_v53, 3  ;;  %v16522_v18 = vld [vmem:[#allocation76_spill] sm:$0xff] }
 0x1f1   : > { %v2274_v62 = vadd.f32 %v2248_v7, %v2205_v61  ;;  %v2781_v17 = vadd.f32 %v2754_v39, %v2712_v54  ;;  %v16516_v16 = vrot.slane %v11931_v9, 6  ;;  %v2374_v47 = vmul.f32 %v16088_v27, %v11838_v21  ;;  %v16523_v54 = vld [vmem:[#allocation62_spill] sm:$0xff] }
 0x1f2   : > { %16513 = vst [vmem:[#allocation34_spill] sm:$0xff] %v12046_v2  ;;  %v3120_v28 = vsel %vm912_vm5, %v3118_v55, %v16514_v26  ;;  %v2711_v15 = vadd.f32 %v2683_v33, %v2642_v0  ;;  %v3010_v38 = vadd.f32 %v16515_v36, %v2957_v56  ;;  %v12060_v7 = vmul.f32 %v16089_v41, %v11838_v21  ;;  %v16524_v56 = vld [vmem:[#allocation89_spill] sm:$0xff]  ;;  %v16526_v36 = vld [vmem:[#allocation31_spill] sm:$0xff]  ;;  %v16538_v2 = vld [vmem:[#allocation84_spill] sm:$0xff] }
 0x1f3   : > { %v3149_v13 = vadd.f32 %v3120_v28, %v3080_v25  ;;  %v3189_v44 = vsel %vm982_vm6, %v3187_v50, %v16516_v16  ;;  %v2343_v46 = vadd.f32 %v2317_v52, %v2274_v62  ;;  %v12064_v63 = vmul.f32 %v16090_v49, %v11838_v21  ;;  %v16525_v28 = vld [vmem:[#allocation81_spill] sm:$0xff]  ;;  %v16528_v16 = vld [vmem:[#allocation87_spill] sm:$0xff] }
 0x1f4   : > { %v2780_v33 = vadd.f32 %v2752_v20, %v2711_v15  ;;  %v16517_v53 = vrot.slane %v16497_v10, 4  ;;  %v12070_v3 = vmul.f32 %v10725_v6, %v11838_v21  ;;  %v12074_v52 = vadd.f32 %v11946_v57, %v11962_v32  ;;  %v16543_v57 = vld [vmem:[#allocation114_spill] sm:$0xff] }
 0x1f5   : > { %v3218_v1 = vadd.f32 %v3189_v44, %v3149_v13  ;;  %v16520_v30 = vmov %v16514_v26  ;;  %v12083_v20 = vadd.f32 %v16521_v51, %v2343_v46  ;;  %v12085_v10 = vadd.f32 %v2374_v47, %v2344_v14  ;;  %v16529_v46 = vld [vmem:[#allocation123_spill] sm:$0xff] }
 0x1f6   : > { %v3079_v23 = vadd.f32 %v16517_v53, %v3010_v38  ;;  %16518 = vst [vmem:[#allocation57_spill] sm:$0xff] %v12070_v3  ;;  %v12080_v22 = vsel %vm912_vm5, %v16520_v30, %v16519_v8  ;;  %v12088_v45 = vadd.f32 %v16522_v18, %v2780_v33  ;;  %v15850_v31 = vrot.slane %v12060_v7, 1  ;;  %v16527_v38 = vld [vmem:[#allocation82_spill] sm:$0xff]  ;;  %v16547_v8 = vld [vmem:[#allocation68_spill] sm:$0xff] }
 0x1f7   : > { %v15851_v32 = vrot.slane %v12064_v63, 2  ;;  %v2811_v24 = vmul.f32 %v16235_v34, %v11838_v21  ;;  %v12097_v39 = vmul.f32 %v16236_v43, %v11838_v21  ;;  %v12101_v19 = vmul.f32 %v16240_v48, %v11838_v21 }
 0x1f8   : > { %v3148_v12 = vadd.f32 %v3118_v55, %v3079_v23  ;;  %v12105_v55 = vmul.f32 %v11205_v29, %v11838_v21  ;;  %v3248_v61 = vmul.f32 %v16380_v58, %v11838_v21  ;;  %v12111_v14 = vmul.f32 %v16383_v59, %v11838_v21  ;;  %v16530_v23 = vld [vmem:[#allocation91_spill] sm:$0xff] }
 0x1f9   : > { %v12115_v5 = vmul.f32 %v16523_v54, %v11838_v21  ;;  %v12117_v0 = vadd.f32 %v2811_v24, %v2781_v17  ;;  %v12130_v15 = vmul.f32 %v16525_v28, %v11838_v21  ;;  %v12134_v17 = vmul.f32 %v16526_v36, %v11838_v21  ;;  %v16531_v24 = vld [vmem:[#allocation70_spill] sm:$0xff] }
 0x1fa   : > { %v3217_v35 = vadd.f32 %v3187_v50, %v3148_v12  ;;  %v12122_v50 = vmul.f32 %v16381_v37, %v11838_v21  ;;  %v12125_v62 = vadd.f32 %v3248_v61, %v3218_v1  ;;  %v15849_v26 = vrot.slane %v12111_v14, 1  ;;  %v16532_v61 = vld [vmem:[#allocation71_spill] sm:$0xff] }
 0x1fb   : > { %v12138_v13 = vmul.f32 %v16527_v38, %v11838_v21  ;;  %v12142_v44 = vmul.f32 %v16528_v16, %v11838_v21  ;;  %v12146_v47 = vmul.f32 %v16529_v46, %v11838_v21  ;;  %v15852_v30 = vrot.slane %v12130_v15, 2 }
 0x1fc   : > { %v3259_v25 = vadd.f32 %v16524_v56, %v3217_v35  ;;  %v3300_v1 = vsel %vm648_vm0, %v16530_v23, %v15849_v26  ;;  %v12160_v35 = vsel %vm648_vm0, %v16531_v24, %v15850_v31  ;;  %v12166_v53 = vsel %vm718_vm1, %v16532_v61, %v15851_v32  ;;  %v16534_v26 = vld [vmem:[#allocation92_spill] sm:$0xff]  ;;  %v16535_v31 = vld [vmem:[#allocation63_spill] sm:$0xff] }
 0x1fd   : > { %16533 = vst [vmem:[#allocation58_spill] sm:$0xff] %v12166_v53  ;;  %v12178_v42 = vmul.f32 %v16535_v31, %v11838_v21  ;;  %v16536_v61 = vld [vmem:[#allocation64_spill] sm:$0xff]  ;;  %v16540_v12 = vrot.slane %v12101_v19, 2  ;;  %v16546_v56 = vrot.slane %v12134_v17, 3 }
 0x1fe   : > { %v3328_v51 = vadd.f32 %v3300_v1, %v3259_v25  ;;  %v3369_v25 = vsel %vm718_vm1, %v16534_v26, %v15852_v30  ;;  %v12182_v32 = vmul.f32 %v16536_v61, %v11838_v21  ;;  %v16537_v30 = vrot.slane %v12097_v39, 1  ;;  %v12200_v23 = vld [vmem:[%s9754_s27 + $0x50] sm:$0xff] }
 0x1ff   : > { %v2276_v26 = vadd.f32 %v16544_v4, %v16543_v57  ;;  %16545 = vst [vmem:[#allocation44_spill] sm:$0xff] %v12200_v23  ;;  %v16549_v53 = vld [vmem:[#allocation128_spill] sm:$0xff] }
 0x200   : > { %v3397_v33 = vadd.f32 %v3369_v25, %v3328_v51  ;;  %v12188_v1 = vsel %vm648_vm0, %v16538_v2, %v16537_v30  ;;  %v16541_v51 = vld [vmem:[#allocation85_spill] sm:$0xff]  ;;  %v16548_v30 = vrot.slane %v11814_v60, 6  ;;  %542 = vst [vmem:[#allocation2 + $0x108] sm:$0xff] %v12200_v23  ;;  %v2469_v4 = vmul.f32 %v16090_v49, %v16549_v53 }
 0x201   : > { %16539 = vst [vmem:[#allocation59_spill] sm:$0xff] %v12188_v1  ;;  %v12194_v25 = vsel %vm718_vm1, %v16541_v51, %v16540_v12  ;;  %v2375_v1 = vmul.f32 %v16088_v27, %v16549_v53  ;;  %v2400_v12 = vmul.f32 %v16089_v41, %v16549_v53  ;;  %v2534_v57 = vmul.f32 %v10725_v6, %v16549_v53 }
 0x202   : > { %16542 = vst [vmem:[#allocation50_spill] sm:$0xff] %v12194_v25  ;;  %v3450_v18 = vadd.f32 %v16546_v56, %v3397_v33  ;;  %v2321_v2 = vsel %vm982_vm6, %v16548_v30, %v16547_v8  ;;  %v12219_v60 = vmul.f32 %v16523_v54, %v16549_v53  ;;  %v12222_v8 = vld [vmem:[%s9754_s27 + $0x58] sm:$0xff]  ;;  %v16551_v27 = vrot.slane %v12138_v13, 4 }
 0x203   : > { %v2345_v24 = vadd.f32 %v2321_v2, %v2276_v26  ;;  %16550 = vst [vmem:[#allocation110_spill] sm:$0xff] %v12222_v8  ;;  %v2431_v33 = vrot.slane %v2400_v12, 1  ;;  %v12228_v41 = vmul.f32 %v16535_v31, %v16549_v53  ;;  %v16552_v2 = vld [vmem:[#allocation120_spill] sm:$0xff]  ;;  %v16553_v26 = vld [vmem:[#allocation41_spill] sm:$0xff]  ;;  %v2500_v6 = vrot.slane %v2469_v4, 2 }
 0x204   : > { %v3519_v56 = vadd.f32 %v16551_v27, %v3450_v18  ;;  %v2713_v49 = vadd.f32 %v16553_v26, %v16552_v2  ;;  %543 = vst [vmem:[#allocation2 + $0x110] sm:$0xff] %v12222_v8  ;;  %v2553_v51 = vrot.slane %v2534_v57, 3  ;;  %v16554_v23 = vrot.slane %v12142_v44, 5  ;;  %v16555_v18 = vld [vmem:[#allocation73_spill] sm:$0xff] }
 0x205   : > { %v2387_v30 = vadd.f32 %v2375_v1, %v2345_v24  ;;  %v12238_v12 = vmul.f32 %v16555_v18, %v11838_v21  ;;  %v16556_v31 = vld [vmem:[#allocation77_spill] sm:$0xff]  ;;  %v16557_v2 = vrot.slane %v12060_v7, 1  ;;  %v16558_v4 = vrot.slane %v12064_v63, 2 }
 0x206   : > { %v3588_v25 = vadd.f32 %v16554_v23, %v3519_v56  ;;  %v12242_v27 = vmul.f32 %v16556_v31, %v11838_v21  ;;  %v16559_v23 = vrot.slane %v12070_v3, 3  ;;  %v16560_v54 = vrot.slane %v12146_v47, 6 }
 0x207   : > { %v2432_v26 = vsel %vm648_vm0, %v16557_v2, %v2431_v33  ;;  %v2456_v24 = vadd.f32 %v2431_v33, %v2387_v30  ;;  %v2501_v57 = vsel %vm718_vm1, %v16558_v4, %v2500_v6  ;;  %v12259_v7 = vmul.f32 %v16536_v61, %v16549_v53  ;;  %v16561_v2 = vld [vmem:[#allocation78_spill] sm:$0xff] }
 0x208   : > { %v2455_v1 = vadd.f32 %v2432_v26, %v12085_v10  ;;  %v2554_v56 = vsel %vm780_vm3, %v16559_v23, %v2553_v51  ;;  %v3657_v8 = vadd.f32 %v16560_v54, %v3588_v25  ;;  %v16562_v10 = vrot.slane %v11900_v11, 6  ;;  %v16563_v26 = vld [vmem:[#allocation74_spill] sm:$0xff] }
 0x209   : > { %v2525_v30 = vadd.f32 %v2500_v6, %v2456_v24  ;;  %v16564_v4 = vrot.slane %v12219_v60, 4  ;;  %v2812_v61 = vmul.f32 %v16235_v34, %v16549_v53  ;;  %v2837_v54 = vmul.f32 %v16236_v43, %v16549_v53 }
 0x20a   : > { %v2756_v63 = vsel %vm982_vm6, %v16562_v10, %v16561_v2  ;;  %v2524_v33 = vadd.f32 %v2501_v57, %v2455_v1  ;;  %v12270_v25 = vadd.f32 %v11797_v40, %v3657_v8   ;;  %v2906_v11 = vmul.f32 %v16240_v48, %v16549_v53 }
 0x20b   : > { %v2623_v23 = vsel %vm842_vm4, %v16564_v4, %v16563_v26  ;;  %v2782_v3 = vadd.f32 %v2756_v63, %v2713_v49  ;;  %v2578_v6 = vadd.f32 %v2553_v51, %v2525_v30  ;;  %v2972_v24 = vmul.f32 %v11205_v29, %v16549_v53 }
 0x20c   : > { %16565 = vst [vmem:[#allocation132_spill] sm:$0xff] %v12270_v25  ;;  %v12278_v1 = vadd.f32 %v2554_v56, %v2524_v33  ;;  %v3027_v49 = vmul.f32 %v16381_v37, %v16549_v53  ;;  %v2866_v57 = vrot.slane %v2837_v54, 1  ;;  %v2935_v10 = vrot.slane %v2906_v11, 2 }
 0x20d   : > { %v2824_v8 = vadd.f32 %v2812_v61, %v2782_v3  ;;  %v12286_v63 = vmul.f32 %v16555_v18, %v16549_v53  ;;  %v12288_v26 = vadd.f32 %v2623_v23, %v2578_v6  ;;  %v2990_v4 = vrot.slane %v2972_v24, 3 }
 0x20e   : > { %v3055_v21 = vrot.slane %v3027_v49, 4  ;;  %v3150_v51 = vadd.f32 %v12080_v22, %v12074_v52  ;;  %v16566_v33 = vrot.slane %v12097_v39, 1  ;;  %v16567_v61 = vrot.slane %v12101_v19, 2  ;;  %v16569_v39 = vld [vmem:[#allocation86_spill] sm:$0xff] }
 0x20f   : > { %v2893_v3 = vadd.f32 %v2866_v57, %v2824_v8  ;;  %v16568_v23 = vrot.slane %v12105_v55, 3  ;;  %v12306_v52 = vmul.f32 %v16556_v31, %v16549_v53  ;;  %v16570_v8 = vld [vmem:[#allocation90_spill] sm:$0xff]  ;;  %v16571_v19 = vrot.slane %v11931_v9, 6 }
 0x210   : > { %v2867_v30 = vsel %vm648_vm0, %v16566_v33, %v2866_v57  ;;  %v2936_v54 = vsel %vm718_vm1, %v16567_v61, %v2935_v10  ;;  %v3058_v49 = vsel %vm842_vm4, %v3055_v21, %v16569_v39  ;;  %v3464_v9 = vmul.f32 %v16527_v38, %v16549_v53 }
 0x211   : > { %v2892_v11 = vadd.f32 %v2867_v30, %v12117_v0  ;;  %v2991_v6 = vsel %vm780_vm3, %v16568_v23, %v2990_v4  ;;  %v2962_v22 = vadd.f32 %v2935_v10, %v2893_v3  ;;  %v3191_v57 = vsel %vm982_vm6, %v16571_v19, %v16570_v8 }
 0x212   : > { %v3249_v0 = vmul.f32 %v16380_v58, %v16549_v53  ;;  %v3219_v61 = vadd.f32 %v3191_v57, %v3150_v51  ;;  %v3274_v23 = vmul.f32 %v16383_v59, %v16549_v53  ;;  %v3343_v10 = vmul.f32 %v16525_v28, %v16549_v53 }
 0x213   : > { %v2961_v33 = vadd.f32 %v2936_v54, %v2892_v11  ;;  %v3015_v24 = vadd.f32 %v2990_v4, %v2962_v22  ;;  %v3410_v3 = vmul.f32 %v16526_v36, %v16549_v53  ;;  %v3533_v54 = vmul.f32 %v16528_v16, %v16549_v53 }
 0x214   : > { %v3261_v56 = vadd.f32 %v3249_v0, %v3219_v61  ;;  %v3301_v25 = vrot.slane %v3274_v23, 1  ;;  %v3370_v11 = vrot.slane %v3343_v10, 2  ;;  %v3490_v4 = vrot.slane %v3464_v9, 4 }
 0x215   : > { %v3014_v19 = vadd.f32 %v2991_v6, %v2961_v33  ;;  %v12327_v51 = vadd.f32 %v3058_v49, %v3015_v24  ;;  %v3427_v57 = vrot.slane %v3410_v3, 3  ;;  %v16572_v22 = vrot.slane %v12111_v14, 1 }
 0x216   : > { %v3330_v39 = vadd.f32 %v3301_v25, %v3261_v56  ;;  %v3559_v8 = vrot.slane %v3533_v54, 5  ;;  %v3602_v31 = vmul.f32 %v16529_v46, %v16549_v53  ;;  %v16573_v0 = vrot.slane %v12130_v15, 2 }
 0x217   : > { %v3302_v30 = vsel %vm648_vm0, %v16572_v22, %v3301_v25  ;;  %v16574_v24 = vrot.slane %v12134_v17, 3  ;;  %v16575_v61 = vrot.slane %v12138_v13, 4  ;;  %v16576_v25 = vld [vmem:[#allocation93_spill] sm:$0xff]  ;;  %v16577_v53 = vrot.slane %v12142_v44, 5 }
 0x218   : > { %v3329_v6 = vadd.f32 %v3302_v30, %v12125_v62  ;;  %v3371_v33 = vsel %vm718_vm1, %v16573_v0, %v3370_v11  ;;  %v3399_v23 = vadd.f32 %v3370_v11, %v3330_v39  ;;  %v3493_v56 = vsel %vm842_vm4, %v3490_v4, %v16576_v25  ;;  %v16578_v30 = vld [vmem:[#allocation94_spill] sm:$0xff] }
 0x219   : > { %v3428_v49 = vsel %vm780_vm3, %v16574_v24, %v3427_v57  ;;  %v3491_v14 = vsel %vm842_vm4, %v16575_v61, %v3490_v4  ;;  %v3560_v62 = vsel %vm912_vm5, %v16577_v53, %v3559_v8  ;;  %v3562_v15 = vsel %vm912_vm5, %v3559_v8, %v16578_v30  ;;  %v16581_v4 = vld [vmem:[#allocation59_spill] sm:$0xff] }
 0x21a   : > { %v3398_v10 = vadd.f32 %v3371_v33, %v3329_v6  ;;  %v3628_v3 = vrot.slane %v3602_v31, 6  ;;  %v2454_v17 = vadd.f32 %v12160_v35, %v12083_v20  ;;  %v16579_v13 = vrot.slane %v12219_v60, 4  ;;  %v16583_v20 = vld [vmem:[#allocation95_spill] sm:$0xff]  ;;  %v16585_v33 = vld [vmem:[#allocation58_spill] sm:$0xff] }
 0x21b   : > { %v16580_v9 = vrot.slane %v12115_v5, 4  ;;  %v3452_v54 = vadd.f32 %v3427_v57, %v3399_v23  ;;  %v2688_v11 = vrot.slane %v12178_v42, 5  ;;  %v2757_v44 = vrot.slane %v12182_v32, 6 }
 0x21c   : > { %v2891_v22 = vadd.f32 %v16581_v4, %v12088_v45  ;;  %v3451_v8 = vadd.f32 %v3428_v49, %v3398_v10  ;;  %v16582_v31 = vrot.slane %v12146_v47, 6  ;;  %v3631_v35 = vsel %vm982_vm6, %v3628_v3, %v16583_v20 }
 0x21d   : > { %v2621_v39 = vsel %vm842_vm4, %v16580_v9, %v16579_v13  ;;  %v16584_v60 = vrot.slane %v12122_v50, 4  ;;  %v3521_v57 = vadd.f32 %v3493_v56, %v3452_v54  ;;  %v3123_v42 = vrot.slane %v12238_v12, 5  ;;  %v16590_v12 = vld [vmem:[#allocation50_spill] sm:$0xff] }
 0x21e   : > { %v3629_v6 = vsel %vm982_vm6, %v16582_v31, %v3628_v3  ;;  %v3192_v32 = vrot.slane %v12242_v27, 6  ;;  %v2523_v24 = vadd.f32 %v16585_v33, %v2454_v17  ;;  %v3520_v45 = vadd.f32 %v3491_v14, %v3451_v8 }
 0x21f   : > { %v3056_v0 = vsel %vm842_vm4, %v16584_v60, %v3055_v21  ;;  %v2646_v49 = vadd.f32 %v2621_v39, %v12278_v1  ;;  %v16586_v47 = vrot.slane %v12228_v41, 5  ;;  %v16587_v23 = vrot.slane %v12259_v7, 6  ;;  %v16588_v21 = vld [vmem:[#allocation57_spill] sm:$0xff] }
 0x220   : > { %v3590_v10 = vadd.f32 %v3562_v15, %v3521_v57  ;;  %v16589_v56 = vrot.slane %v16588_v21, 3  ;;  %v2960_v13 = vadd.f32 %v16590_v12, %v2891_v22  ;;  %v3083_v27 = vadd.f32 %v3056_v0, %v3014_v19  ;;  %v16595_v0 = vld [vmem:[#allocation44_spill] sm:$0xff]  ;;  %v12418_v21 = vld [vmem:[%s9754_s27 + $0x60] sm:$0xff]  ;;  %v12423_v12 = vld [vmem:[%s9754_s27 + $0x68] sm:$0xff] }
 0x221   : > { %v2690_v61 = vsel %vm912_vm5, %v2688_v11, %v16586_v47  ;;  %v2759_v53 = vsel %vm982_vm6, %v2757_v44, %v16587_v23  ;;  %v3589_v9 = vadd.f32 %v3560_v62, %v3520_v45  ;;  %v16591_v14 = vrot.slane %v12286_v63, 5  ;;  %544 = vst [vmem:[#allocation2 + $0x128] sm:$0xff] %v12418_v21 }
 0x222   : > { %v2576_v3 = vadd.f32 %v16589_v56, %v2523_v24  ;;  %v2715_v17 = vadd.f32 %v2690_v61, %v2646_v49  ;;  %v16592_v39 = vrot.slane %v12306_v52, 6  ;;  %v3659_v4 = vadd.f32 %v3631_v35, %v3590_v10  ;;  %v16597_v49 = vld [vmem:[#allocation75_spill] sm:$0xff]  ;;  %v16599_v61 = vld [vmem:[#allocation88_spill] sm:$0xff]  ;;  %545 = vst [vmem:[#allocation2 + $0x130] sm:$0xff] %v12423_v12 }
 0x223   : > { %v3125_v1 = vsel %vm912_vm5, %v3123_v42, %v16591_v14  ;;  %v16593_v8 = vrot.slane %v12115_v5, 4  ;;  %v16594_v31 = vrot.slane %v12105_v55, 3  ;;  %v3658_v19 = vadd.f32 %v3629_v6, %v3589_v9 }
 0x224   : > { %v3194_v54 = vsel %vm982_vm6, %v3192_v32, %v16592_v39  ;;  %v3152_v22 = vadd.f32 %v3125_v1, %v3083_v27  ;;  %v2784_v62 = vadd.f32 %v2759_v53, %v2715_v17  ;;  %v2814_v57 = vmul.f32 %v16235_v34, %v16595_v0 }
 0x225   : > { %v2645_v15 = vadd.f32 %v16593_v8, %v2576_v3  ;;  %v3013_v60 = vadd.f32 %v16594_v31, %v2960_v13  ;;  %v12397_v33 = vmul.f32 %v16236_v43, %v16595_v0  ;;  %v12400_v35 = vadd.f32 %v11797_v40, %v3659_v4  }
 0x226   : > { %v16596_v24 = vrot.slane %v12122_v50, 4  ;;  %v3221_v55 = vadd.f32 %v3194_v54, %v3152_v22  ;;  %v16598_v6 = vmov %v16586_v47  ;;  %v16600_v23 = vmov %v16591_v14 }
 0x227   : > { %v2714_v5 = vadd.f32 %v2688_v11, %v2645_v15  ;;  %v2692_v47 = vsel %vm912_vm5, %v16598_v6, %v16597_v49  ;;  %v3127_v53 = vsel %vm912_vm5, %v16600_v23, %v16599_v61  ;;  %v12413_v10 = vadd.f32 %v11797_v40, %v3658_v19   ;;  %v16602_v15 = vld [vmem:[#allocation89_spill] sm:$0xff]  ;;  %v16605_v6 = vld [vmem:[#allocation84_spill] sm:$0xff] }
 0x228   : > { %v3082_v45 = vadd.f32 %v16596_v24, %v3013_v60  ;;  %v2908_v11 = vmul.f32 %v16240_v48, %v16595_v0  ;;  %v2826_v3 = vadd.f32 %v2814_v57, %v2784_v62  ;;  %v2869_v41 = vrot.slane %v12397_v33, 1  ;;  %v16603_v62 = vld [vmem:[#allocation91_spill] sm:$0xff]  ;;  %v16604_v33 = vld [vmem:[#allocation92_spill] sm:$0xff] }
 0x229   : > { %v2783_v50 = vadd.f32 %v2757_v44, %v2714_v5  ;;  %v12427_v63 = vmul.f32 %v11205_v29, %v16595_v0  ;;  %v3251_v13 = vmul.f32 %v16380_v58, %v16595_v0  ;;  %v12433_v27 = vmul.f32 %v16383_v59, %v16595_v0 }
 0x22a   : > { %v3151_v56 = vadd.f32 %v3123_v42, %v3082_v45  ;;  %v12437_v44 = vmul.f32 %v16525_v28, %v16595_v0  ;;  %v2938_v9 = vrot.slane %v2908_v11, 2  ;;  %v12442_v17 = vmul.f32 %v16381_v37, %v16595_v0 }
 0x22b   : > { %v12446_v14 = vmul.f32 %v16526_v36, %v16595_v0  ;;  %v12448_v1 = vadd.f32 %v3251_v13, %v3221_v55  ;;  %v15862_v39 = vrot.slane %v12433_v27, 1  ;;  %v12454_v4 = vmul.f32 %v16527_v38, %v16595_v0 }
 0x22c   : > { %v3220_v42 = vadd.f32 %v3192_v32, %v3151_v56  ;;  %v15861_v54 = vrot.slane %v12437_v44, 2  ;;  %v16601_v32 = vld [vmem:[#allocation76_spill] sm:$0xff]  ;;  %v12462_v60 = vmul.f32 %v16528_v16, %v16595_v0  ;;  %v12466_v22 = vmul.f32 %v16529_v46, %v16595_v0 }
 0x22d   : > { %v12457_v8 = vadd.f32 %v16601_v32, %v2783_v50  ;;  %v15863_v19 = vrot.slane %v12427_v63, 3  ;;  %v3305_v57 = vsel %vm648_vm0, %v16603_v62, %v15862_v39  ;;  %v3429_v24 = vrot.slane %v12446_v14, 3  ;;  %v16606_v50 = vld [vmem:[#allocation85_spill] sm:$0xff]  ;;  %v519_v14 = vld [vmem:[%s9754_s27 + $0xa0] sm:$0xff] }
 0x22e   : > { %v3262_v31 = vadd.f32 %v16602_v15, %v3220_v42  ;;  %v3374_v5 = vsel %vm718_vm1, %v16604_v33, %v15861_v54  ;;  %v15865_v55 = vrot.slane %v12454_v4, 4  ;;  %v15864_v49 = vrot.slane %v12462_v60, 5  ;;  %v16608_v54 = vld [vmem:[#allocation110_spill] sm:$0xff]  ;;  %552 = vst [vmem:[#allocation2 + $0x1a8] sm:$0xff] %v519_v14 }
 0x22f   : > { %v12482_v23 = vsel %vm648_vm0, %v16605_v6, %v2869_v41  ;;  %v12487_v56 = vsel %vm718_vm1, %v16606_v50, %v2938_v9  ;;  %v2716_v42 = vadd.f32 %v2692_v47, %v12288_v26  ;;  %v2815_v6 = vmul.f32 %v16235_v34, %v16608_v54 }
 0x230   : > { %v3331_v45 = vadd.f32 %v3305_v57, %v3262_v31  ;;  %v16607_v31 = vrot.slane %v12259_v7, 6  ;;  %v2840_v39 = vmul.f32 %v16236_v43, %v16608_v54  ;;  %v2909_v50 = vmul.f32 %v16240_v48, %v16608_v54 }
 0x231   : > { %v2974_v13 = vmul.f32 %v11205_v29, %v16608_v54  ;;  %v12505_v26 = vmul.f32 %v16381_v37, %v16608_v54  ;;  %v12511_v34 = vmul.f32 %v16555_v18, %v16608_v54  ;;  %v3153_v43 = vadd.f32 %v3127_v53, %v12327_v51 }
 0x232   : > { %v3400_v32 = vadd.f32 %v3374_v5, %v3331_v45  ;;  %v2761_v57 = vsel %vm982_vm6, %v16607_v31, %v16561_v2  ;;  %v2871_v2 = vrot.slane %v2840_v39, 1  ;;  %v2940_v5 = vrot.slane %v2909_v50, 2  ;;  %v16609_v39 = vld [vmem:[#allocation77_spill] sm:$0xff] }
 0x233   : > { %v2785_v11 = vadd.f32 %v2761_v57, %v2716_v42  ;;  %v2993_v48 = vrot.slane %v2974_v13, 3  ;;  %v3060_v45 = vrot.slane %v12505_v26, 4  ;;  %v12519_v37 = vmul.f32 %v16555_v18, %v16595_v0  ;;  %v16612_v26 = vld [vmem:[#allocation86_spill] sm:$0xff] }
 0x234   : > { %v3453_v7 = vadd.f32 %v3429_v24, %v3400_v32  ;;  %v12523_v32 = vmul.f32 %v16609_v39, %v16595_v0  ;;  %v2872_v31 = vsel %vm648_vm0, %v2869_v41, %v2871_v2  ;;  %v2941_v53 = vsel %vm718_vm1, %v2938_v9, %v2940_v5 }
 0x235   : > { %v2827_v47 = vadd.f32 %v2815_v6, %v2785_v11  ;;  %v2895_v57 = vadd.f32 %v2872_v31, %v2826_v3  ;;  %v12529_v11 = vmul.f32 %v16609_v39, %v16608_v54  ;;  %v2994_v18 = vsel %vm780_vm3, %v15863_v19, %v2993_v48  ;;  %v16610_v6 = vld [vmem:[#allocation90_spill] sm:$0xff] }
 0x236   : > { %v3522_v42 = vadd.f32 %v15865_v55, %v3453_v7  ;;  %v16611_v41 = vrot.slane %v12306_v52, 6  ;;  %v12543_v7 = vsel %vm842_vm4, %v3060_v45, %v16612_v26  ;;  %v3252_v39 = vmul.f32 %v16380_v58, %v16608_v54  ;;  %v513_v26 = vld [vmem:[%s9754_s27 + $0x70] sm:$0xff]  ;;  %v515_v19 = vld [vmem:[%s9754_s27 + $0x80] sm:$0xff] }
 0x237   : > { %v2896_v51 = vadd.f32 %v2871_v2, %v2827_v47  ;;  %v2964_v50 = vadd.f32 %v2941_v53, %v2895_v57  ;;  %v16613_v47 = vrot.slane %v12466_v22, 6  ;;  %v3277_v52 = vmul.f32 %v16383_v59, %v16608_v54  ;;  %546 = vst [vmem:[#allocation2 + $0x148] sm:$0xff] %v513_v26 }
 0x238   : > { %v3591_v13 = vadd.f32 %v15864_v49, %v3522_v42  ;;  %v3196_v3 = vsel %vm982_vm6, %v16611_v41, %v16610_v6  ;;  %v3346_v31 = vmul.f32 %v16525_v28, %v16608_v54  ;;  %v3536_v0 = vmul.f32 %v16528_v16, %v16608_v54  ;;  %v516_v49 = vld [vmem:[%s9754_s27 + $0x88] sm:$0xff]  ;;  %548 = vst [vmem:[#allocation2 + $0x168] sm:$0xff] %v515_v19 }
 0x239   : > { %v2965_v9 = vadd.f32 %v2940_v5, %v2896_v51  ;;  %v3222_v2 = vadd.f32 %v3196_v3, %v3153_v43  ;;  %v3017_v5 = vadd.f32 %v2994_v18, %v2964_v50  ;;  %v3412_v51 = vmul.f32 %v16526_v36, %v16608_v54  ;;  %549 = vst [vmem:[#allocation2 + $0x170] sm:$0xff] %v516_v49 }
 0x23a   : > { %v3660_v42 = vadd.f32 %v16613_v47, %v3591_v13  ;;  %v3467_v43 = vmul.f32 %v16527_v38, %v16608_v54  ;;  %v3306_v41 = vrot.slane %v3277_v52, 1  ;;  %v3375_v3 = vrot.slane %v3346_v31, 2  ;;  %v514_v47 = vld [vmem:[%s9754_s27 + $0x78] sm:$0xff] }
 0x23b   : > { %v3264_v13 = vadd.f32 %v3252_v39, %v3222_v2  ;;  %v3018_v18 = vadd.f32 %v2993_v48, %v2965_v9  ;;  %v3430_v50 = vrot.slane %v3412_v51, 3  ;;  %v16614_v55 = vrot.slane %v12433_v27, 1  ;;  %547 = vst [vmem:[#allocation2 + $0x150] sm:$0xff] %v514_v47  ;;  %v517_v9 = vld [vmem:[%s9754_s27 + $0x90] sm:$0xff] }
 0x23c   : > { %v12559_v53 = vadd.f32 %v11797_v40, %v3660_v42   ;;  %v3495_v57 = vrot.slane %v3467_v43, 4  ;;  %v16615_v39 = vrot.slane %v12437_v44, 2  ;;  %v3605_v48 = vmul.f32 %v16529_v46, %v16608_v54  ;;  %v518_v43 = vld [vmem:[%s9754_s27 + $0x98] sm:$0xff]  ;;  %550 = vst [vmem:[#allocation2 + $0x188] sm:$0xff] %v517_v9 }
 0x23d   : > { %v3307_v42 = vsel %vm648_vm0, %v16614_v55, %v3306_v41  ;;  %v3333_v2 = vadd.f32 %v3306_v41, %v3264_v13  ;;  %v3431_v51 = vsel %vm780_vm3, %v3429_v24, %v3430_v50  ;;  %v16616_v27 = vrot.slane %v12454_v4, 4  ;;  %551 = vst [vmem:[#allocation2 + $0x190] sm:$0xff] %v518_v43  ;;  %v524_v43 = vld [vmem:[%s9754_s27 + $0xc8] sm:$0xff] }
 0x23e   : > { %v3376_v52 = vsel %vm718_vm1, %v16615_v39, %v3375_v3  ;;  %v3332_v31 = vadd.f32 %v3307_v42, %v12448_v1  ;;  %v3498_v44 = vsel %vm842_vm4, %v3495_v57, %v16576_v25  ;;  %v3564_v46 = vrot.slane %v3536_v0, 5  ;;  %v522_v42 = vld [vmem:[%s9754_s27 + $0xb8] sm:$0xff]  ;;  %557 = vst [vmem:[#allocation2 + $0x1f0] sm:$0xff] %v524_v43 }
 0x23f   : > { %v3496_v55 = vsel %vm842_vm4, %v16616_v27, %v3495_v57  ;;  %v3402_v13 = vadd.f32 %v3375_v3, %v3333_v2  ;;  %v3633_v54 = vrot.slane %v3605_v48, 6  ;;  %v2894_v1 = vadd.f32 %v12482_v23, %v12457_v8  ;;  %v520_v57 = vld [vmem:[%s9754_s27 + $0xa8] sm:$0xff]  ;;  %555 = vst [vmem:[#allocation2 + $0x1d0] sm:$0xff] %v522_v42 }
 0x240   : > { %v3401_v24 = vadd.f32 %v3376_v52, %v3332_v31  ;;  %v16617_v4 = vrot.slane %v12442_v17, 4  ;;  %v3128_v26 = vrot.slane %v12519_v37, 5  ;;  %v3197_v19 = vrot.slane %v12523_v32, 6  ;;  %553 = vst [vmem:[#allocation2 + $0x1b0] sm:$0xff] %v520_v57  ;;  %v523_v31 = vld [vmem:[%s9754_s27 + $0xc0] sm:$0xff]  ;;  %v526_v57 = vld [vmem:[%s9754_s27 + $0xd8] sm:$0xff] }
 0x241   : > { %v3455_v0 = vadd.f32 %v3430_v50, %v3402_v13  ;;  %v16618_v3 = vrot.slane %v12462_v60, 5  ;;  %v3567_v8 = vsel %vm912_vm5, %v3564_v46, %v16578_v30  ;;  %v16619_v49 = vrot.slane %v12466_v22, 6  ;;  %556 = vst [vmem:[#allocation2 + $0x1e8] sm:$0xff] %v523_v31  ;;  %v528_v17 = vld [vmem:[%s9754_s27 + $0xe8] sm:$0xff] }
 0x242   : > { %v3061_v41 = vsel %vm842_vm4, %v16617_v4, %v3060_v45  ;;  %v521_v45 = vld [vmem:[%s9754_s27 + $0xb0] sm:$0xff]  ;;  %v3454_v37 = vadd.f32 %v3431_v51, %v3401_v24  ;;  %v3636_v32 = vsel %vm982_vm6, %v3633_v54, %v16583_v20  ;;  %v2963_v50 = vadd.f32 %v12487_v56, %v2894_v1  ;;  %559 = vst [vmem:[#allocation2 + $0x210] sm:$0xff] %v526_v57 }
 0x243   : > { %v3565_v47 = vsel %vm912_vm5, %v16618_v3, %v3564_v46  ;;  %v3634_v23 = vsel %vm982_vm6, %v16619_v49, %v3633_v54  ;;  %v3086_v60 = vadd.f32 %v3061_v41, %v3017_v5  ;;  %v3524_v2 = vadd.f32 %v3498_v44, %v3455_v0  ;;  %554 = vst [vmem:[#allocation2 + $0x1c8] sm:$0xff] %v521_v45 }
 0x244   : > { %v16620_v39 = vrot.slane %v12511_v34, 5  ;;  %v16621_v22 = vrot.slane %v12529_v11, 6  ;;  %v3254_v9 = vmul.f32 %v16380_v58, %v12418_v21  ;;  %v3523_v51 = vadd.f32 %v3496_v55, %v3454_v37  ;;  %v525_v55 = vld [vmem:[%s9754_s27 + $0xd0] sm:$0xff]  ;;  %v527_v37 = vld [vmem:[%s9754_s27 + $0xe0] sm:$0xff]  ;;  %561 = vst [vmem:[#allocation2 + $0x230] sm:$0xff] %v528_v17 }
 0x245   : > { %v16622_v56 = vrot.slane %v12427_v63, 3  ;;  %v3279_v44 = vmul.f32 %v16383_v59, %v12418_v21  ;;  %v3593_v13 = vadd.f32 %v3567_v8, %v3524_v2  ;;  %v12624_v46 = vmul.f32 %v16525_v28, %v12418_v21  ;;  %558 = vst [vmem:[#allocation2 + $0x208] sm:$0xff] %v525_v55 }
 0x246   : > { %v3130_v52 = vsel %vm912_vm5, %v3128_v26, %v16620_v39  ;;  %v3199_v48 = vsel %vm982_vm6, %v3197_v19, %v16621_v22  ;;  %v12628_v54 = vmul.f32 %v16526_v36, %v12418_v21  ;;  %v12632_v63 = vmul.f32 %v16527_v38, %v12418_v21  ;;  %560 = vst [vmem:[#allocation2 + $0x228] sm:$0xff] %v527_v37 }
 0x247   : > { %v3016_v5 = vadd.f32 %v16622_v56, %v2963_v50  ;;  %v3155_v27 = vadd.f32 %v3130_v52, %v3086_v60  ;;  %v3087_v1 = vadd.f32 %v12543_v7, %v3018_v18  ;;  %v3592_v14 = vadd.f32 %v3565_v47, %v3523_v51  ;;  %v530_v52 = vld [vmem:[%s9754_s27 + $0xf8] sm:$0xff] }
 0x248   : > { %v16623_v24 = vmov %v16617_v4  ;;  %v16624_v0 = vmov %v16620_v39  ;;  %v3662_v8 = vadd.f32 %v3636_v32, %v3593_v13  ;;  %v3309_v49 = vrot.slane %v3279_v44, 1  ;;  %v9178_v32 = vld [vmem:[%s15570_s2] ss:$0 sm:$0xff]  ;;  %563 = vst [vmem:[#allocation2 + $0x250] sm:$0xff] %v530_v52  ;;  %v16629_v52 = vld [vmem:[#allocation119_spill] sm:$0xff] }
 0x249   : > { %v3085_v4 = vadd.f32 %v16623_v24, %v3016_v5  ;;  %v3224_v41 = vadd.f32 %v3199_v48, %v3155_v27  ;;  %v3132_v3 = vsel %vm912_vm5, %v16624_v0, %v16599_v61  ;;  %v3378_v45 = vrot.slane %v12624_v46, 2  ;;  %v529_v61 = vld [vmem:[%s9754_s27 + $0xf0] sm:$0xff] }
 0x24a   : > { %v3661_v7 = vadd.f32 %v3634_v23, %v3592_v14  ;;  %v12647_v47 = vadd.f32 %v11797_v40, %v3662_v8   ;;  %v3432_v34 = vrot.slane %v12628_v54, 3  ;;  %v3499_v60 = vrot.slane %v12632_v63, 4  ;;  %562 = vst [vmem:[#allocation2 + $0x248] sm:$0xff] %v529_v61 }
 0x24b   : > { %v3154_v18 = vadd.f32 %v3128_v26, %v3085_v4  ;;  %v3266_v50 = vadd.f32 %v3254_v9, %v3224_v41  ;;  %v3156_v26 = vadd.f32 %v3132_v3, %v3087_v1  ;;  %v16625_v2 = vmov %v16621_v22 }
 0x24c   : > { %v12655_v42 = vadd.f32 %v9178_v32, %v3661_v7   ;;  %v3201_v39 = vsel %vm982_vm6, %v16625_v2, %v16610_v6  ;;  %v3310_v22 = vsel %vm648_vm0, %v16603_v62, %v3309_v49  ;;  %v3379_v48 = vsel %vm718_vm1, %v16604_v33, %v3378_v45 }
 0x24d   : > { %v3223_v23 = vadd.f32 %v3197_v19, %v3154_v18  ;;  %v3255_v9 = vmul.f32 %v16380_v58, %v12423_v12  ;;  %v3280_v19 = vmul.f32 %v16383_v59, %v12423_v12  ;;  %v3225_v11 = vadd.f32 %v3201_v39, %v3156_v26 }
 0x24e   : > { %v3349_v6 = vmul.f32 %v16525_v28, %v12423_v12  ;;  %v3414_v51 = vmul.f32 %v16526_v36, %v12423_v12  ;;  %v3538_v62 = vmul.f32 %v16528_v16, %v12418_v21  ;;  %v3470_v58 = vmul.f32 %v16527_v38, %v12423_v12  ;;  %v9179_v28 = vld [vmem:[#allocation6 + $0x30] ss:$0 sm:$0xff] }
 0x24f   : > { %v3265_v31 = vadd.f32 %v16602_v15, %v3223_v23  ;;  %v3311_v33 = vrot.slane %v3280_v19, 1  ;;  %v3539_v59 = vmul.f32 %v16528_v16, %v12423_v12  ;;  %v3267_v56 = vadd.f32 %v3255_v9, %v3225_v11 }
 0x250   : > { %v3380_v5 = vrot.slane %v3349_v6, 2  ;;  %v3433_v27 = vrot.slane %v3414_v51, 3  ;;  %v3607_v44 = vmul.f32 %v9179_v28, %v12418_v21  ;;  %v3500_v43 = vrot.slane %v3470_v58, 4 }
 0x251   : > { %v3334_v15 = vadd.f32 %v3310_v22, %v3265_v31  ;;  %v3312_v36 = vsel %vm648_vm0, %v3309_v49, %v3311_v33  ;;  %v3608_v13 = vmul.f32 %v9179_v28, %v12423_v12  ;;  %v3336_v63 = vadd.f32 %v3311_v33, %v3267_v56 }
 0x252   : > { %v3335_v54 = vadd.f32 %v3312_v36, %v3266_v50  ;;  %v3381_v38 = vsel %vm718_vm1, %v3378_v45, %v3380_v5  ;;  %v3568_v55 = vrot.slane %v3538_v62, 5  ;;  %v3434_v16 = vsel %vm780_vm3, %v3432_v34, %v3433_v27 }
 0x253   : > { %v3403_v46 = vadd.f32 %v3379_v48, %v3334_v15  ;;  %v3569_v1 = vrot.slane %v3539_v59, 5  ;;  %v3405_v4 = vadd.f32 %v3380_v5, %v3336_v63  ;;  %v3637_v41 = vrot.slane %v3607_v44, 6 }
 0x254   : > { %v3404_v24 = vadd.f32 %v3381_v38, %v3335_v54  ;;  %v3501_v21 = vsel %vm842_vm4, %v3499_v60, %v3500_v43  ;;  %v3503_v57 = vsel %vm842_vm4, %v3500_v43, %v16576_v25  ;;  %v3638_v0 = vrot.slane %v3608_v13, 6 }
 0x255   : > { %v3456_v14 = vadd.f32 %v3432_v34, %v3403_v46  ;;  %v3458_v8 = vadd.f32 %v3433_v27, %v3405_v4  ;;  %v3570_v49 = vsel %vm912_vm5, %v3568_v55, %v3569_v1  ;;  %v3572_v45 = vsel %vm912_vm5, %v3569_v1, %v16578_v30  ;;  %v16626_v30 = vld [vmem:[#allocation132_spill] sm:$0xff] }
 0x256   : > { %v3457_v3 = vadd.f32 %v3434_v16, %v3404_v24  ;;  %v3639_v17 = vsel %vm982_vm6, %v3637_v41, %v3638_v0  ;;  %v3641_v50 = vsel %vm982_vm6, %v3638_v0, %v16583_v20  ;;  %v16627_v20 = vld [vmem:[#allocation131_spill] sm:$0xff] }
 0x257   : > { %v3525_v12 = vadd.f32 %v3499_v60, %v3456_v14  ;;  %v3527_v18 = vadd.f32 %v3503_v57, %v3458_v8 }
 0x258   : > { %v3526_v7 = vadd.f32 %v3501_v21, %v3457_v3 }
 0x259   : > { %v3594_v37 = vadd.f32 %v3568_v55, %v3525_v12  ;;  %v3596_v61 = vadd.f32 %v3572_v45, %v3527_v18 }
 0x25a   : > { %v3595_v25 = vadd.f32 %v3570_v49, %v3526_v7 }
 0x25b   : > { %v3663_v34 = vadd.f32 %v3637_v41, %v3594_v37  ;;  %v3665_v26 = vadd.f32 %v3641_v50, %v3596_v61 }
 0x25c   : > { %v3664_v23 = vadd.f32 %v3639_v17, %v3595_v25 }
 0x25d   : > { %v3678_v60 = vadd.f32 %v9178_v32, %v3663_v34   ;;  %v3680_v39 = vadd.f32 %v9178_v32, %v3665_v26  }
 0x25e   : > { %v3679_v2 = vadd.f32 %v9178_v32, %v3664_v23   ;;  %v16628_v32 = vld [vmem:[#allocation34_spill] sm:$0xff] }
 0x25f LB: >> { %v6770_v22 = vrot.slane %v9562_v52, 5  ;;  %v6771_v48 = vrot.slane %v9558_v32, 5  ;;  %v6780_v9 = vrot.slane %v9538_v53, 5  ;;  %v6781_v19 = vrot.slane %v9534_v42, 5  ;;  %v16630_v6 = vld [vmem:[#allocation40_spill] sm:$0xff]  ;;  %s8619_s23 = sshll.u32 %s9566_s7, 7  ;;  %s9566_s7 = sphi %s12732_s7, %s3686_s7   ;;  %v9562_v52 = vphi %v16629_v52, %v16733_v52   ;;  %v9558_v32 = vphi %v16628_v32, %v16732_v32   ;;  %v9554_v20 = vphi %v16627_v20, %v16731_v20   ;;  %v9550_v30 = vphi %v16626_v30, %v16730_v30   ;;  %v9546_v10 = vphi %v12413_v10, %v16729_v10   ;;  %v9542_v35 = vphi %v12400_v35, %v16728_v35   ;;  %v9538_v53 = vphi %v12559_v53, %v16727_v53   ;;  %v9534_v42 = vphi %v12655_v42, %v16726_v42   ;;  %v9530_v47 = vphi %v12647_v47, %v16725_v47   ;;  %v9526_v60 = vphi %v3678_v60, %v16724_v60   ;;  %v9522_v2 = vphi %v3679_v2, %v16723_v2   ;;  %v9518_v39 = vphi %v3680_v39, %v16722_v39  }
 0x260   : >> { %v6785_v33 = vrot.slane %v9526_v60, 5  ;;  %v6786_v58 = vrot.slane %v9522_v2, 5  ;;  %v6773_v15 = vrot.slane %v9554_v20, 5  ;;  %v6783_v56 = vrot.slane %v9530_v47, 5  ;;  %s13202_s26 = scalar_lea.vmem [#allocation2], %s8619_s23  ;;  %s8934_s12 = sshll.u32 %s9566_s7, 6 }
 0x261   : >> { %v6772_v31 = vsel %vm912_vm5, %v6770_v22, %v6771_v48  ;;  %v6782_v11 = vsel %vm912_vm5, %v6780_v9, %v6781_v19  ;;  %v6788_v53 = vrot.slane %v9518_v39, 5  ;;  %v6775_v43 = vrot.slane %v9550_v30, 5  ;;  %s14957_s1 = scalar_lea.vmem %s9754_s27, %s8934_s12 [#allocation3]  ;;  %s7577_s22 = scalar_lea.vmem %s12697_s24, %s8934_s12 [#allocation11] }
 0x262   : >> { %v6798_v51 = vmul.f32 %v16630_v6, %v6772_v31  ;;  %v6802_v62 = vmul.f32 %v16630_v6, %v6782_v11  ;;  %v6787_v59 = vsel %vm912_vm5, %v6785_v33, %v6786_v58  ;;  %v6774_v42 = vsel %vm912_vm5, %v6771_v48, %v6773_v15  ;;  %v8924_v33 = vld [vmem:[#allocation8 + $0x30] sm:$0xff]  ;;  %v8921_v15 = vld [vmem:[#allocation8 + $0x18] sm:$0xff]  ;;  %s3686_s7 = sadd.s32 1, %s9566_s7  }
 0x263   : >> { %v6804_v5 = vmul.f32 %v16630_v6, %v6787_v59  ;;  %v6784_v27 = vsel %vm912_vm5, %v6781_v19, %v6783_v56  ;;  %v6799_v28 = vmul.f32 %v16630_v6, %v6774_v42  ;;  %v6789_v36 = vsel %vm912_vm5, %v6786_v58, %v6788_v53  ;;  %v8923_v58 = vld [vmem:[#allocation8 + $0x28] sm:$0xff]  ;;  %v8920_v56 = vld [vmem:[#allocation8 + $0x10] sm:$0xff]  ;;  %p14991_p1 = scmp.ge.s32.totalorder %s3686_s7, 3  }
 0x264   : >> { %6806 = vadd.xlane.f32.xlu1 %v6798_v51  ;;  %6814 = vadd.xlane.f32.xlu0 %v6802_v62  ;;  %v6803_v44 = vmul.f32 %v16630_v6, %v6784_v27  ;;  %v6776_v13 = vrot.slane %v9546_v10, 5  ;;  %v6778_v46 = vrot.slane %v9542_v35, 5  ;;  %v6805_v54 = vmul.f32 %v16630_v6, %v6789_v36  ;;  %v8925_v62 = vld [vmem:[#allocation8 + $0x38] sm:$0xff]  ;;  %s8951_s28 = sshll.u32 (%p14991_p1), %s9654_s17, 8  ;;  %s8426_s19 = sshll.u32 (%p14991_p1), %s12697_s24, 4  ;;  %s8427_s19 = int_to_ptr.vmem [resolvable:$true] %s8426_s19 }
 0x265   : >> { %6818 = vadd.xlane.f32.xlu2 %v6804_v5  ;;  %7067 = vmatpush.bf16.msra.mxu0 %v8925_v62  ;;  %s8425_s5 = scalar_lea.hbm (%p14991_p1), %s15578_s10, %s8951_s28  ;;  %s8414_s17 = scalar_lea.sflag (%p14991_p1), [#allocation5], %s9748_s29 }
 0x266   : >> { %v6777_v47 = vsel %vm912_vm5, %v6775_v43, %v6776_v13  ;;  %v6779_v63 = vsel %vm912_vm5, %v6776_v13, %v6778_v46  ;;  %8952 = vmatpush.bf16.msra.mxu2 %v8925_v62  ;;  %s8428_s7 = sshll.u32 (%p14991_p1), %s8425_s5, 4  ;;  %s8429_s7 = int_to_ptr.hbm [resolvable:$true] %s8428_s7 }
 0x267   : >> { %v6800_v38 = vmul.f32 %v16630_v6, %v6777_v47  ;;  %v6801_v55 = vmul.f32 %v16630_v6, %v6779_v63  ;;  %s9402_s23 = sshra.s32 (%p14991_p1), %s8429_s7, 4  ;;  %s9403_s23 = int_to_ptr.hbm [resolvable:$true] %s9402_s23 }
 0x268   : > { %p9409_p9 = scmp.lt.s32.totalorder (%p14991_p1), %s9403_s23, %s15578_s10 }
 0x269   : >> { %7068 = vmatpush.bf16.msra.mxu0 %v8924_v33 }
 0x26a   : >> { %8953 = vmatpush.bf16.msra.mxu2 %v8924_v33 }
 0x26c   : >> { %6808 = vadd.xlane.f32.xlu1 %v6799_v28  ;;  %6816 = vadd.xlane.f32.xlu0 %v6803_v44 }
 0x26d   : >> { %6820 = vadd.xlane.f32.xlu2 %v6805_v54  ;;  %7069 = vmatpush.bf16.msra.mxu0 %v8923_v58 }
 0x26e   : >> { %8954 = vmatpush.bf16.msra.mxu2 %v8923_v58 }
 0x274   : >> { %6810 = vadd.xlane.f32.xlu0 %v6800_v38  ;;  %6812 = vadd.xlane.f32.xlu1 %v6801_v55 }
 0x2d7   : >> { %v6807_v16 = vpop.xlane.xlu1 %6806  ;;  %v6815_v1 = vpop.xlane.xlu0 %6814 }
 0x2d8   : >> { %v6822_v14 = vmul.f32 0.03125, %v6807_v16  ;;  %v6826_v10 = vmul.f32 0.03125, %v6815_v1  ;;  %v6819_v4 = vpop.xlane.xlu2 %6818 }
 0x2d9   : >> { %v6828_v8 = vmul.f32 0.03125, %v6819_v4 }
 0x2da   : >> { %v12765_v35 = vsub.f32 %v6772_v31, %v6822_v14  ;;  %v12767_v24 = vsub.f32 %v6782_v11, %v6826_v10 }
 0x2db   : >> { %v12779_v50 = vsub.f32 %v6787_v59, %v6828_v8  ;;  %v8922_v59 = vld [vmem:[#allocation8 + $0x20] sm:$0xff] }
 0x2dc   : >> { %v6838_v41 = vmul.f32 %v12765_v35, %v12765_v35  ;;  %v6842_v21 = vmul.f32 %v12767_v24, %v12767_v24  ;;  %7070 = vmatpush.bf16.msra.mxu0 %v8922_v59  ;;  %8955 = vmatpush.bf16.msra.mxu2 %v8922_v59 }
 0x2dd   : >> { %v6844_v32 = vmul.f32 %v12779_v50, %v12779_v50 }
 0x2de   : >> { %v6846_v57 = vmul.f32 %v16630_v6, %v6838_v41  ;;  %v6850_v0 = vmul.f32 %v16630_v6, %v6842_v21 }
 0x2df   : >> { %v6809_v12 = vpop.xlane.xlu1 %6808  ;;  %v6817_v3 = vpop.xlane.xlu0 %6816  ;;  %v6852_v9 = vmul.f32 %v16630_v6, %v6844_v32 }
 0x2e0   : >> { %v6823_v49 = vmul.f32 0.03125, %v6809_v12  ;;  %v6827_v45 = vmul.f32 0.03125, %v6817_v3  ;;  %6854 = vadd.xlane.f32.xlu1 %v6846_v57  ;;  %6862 = vadd.xlane.f32.xlu2 %v6850_v0  ;;  %v6821_v18 = vpop.xlane.xlu2 %6820 }
 0x2e1   : >> { %v6829_v17 = vmul.f32 0.03125, %v6821_v18  ;;  %7071 = vmatpush.bf16.msra.mxu0 %v8921_v15  ;;  %8956 = vmatpush.bf16.msra.mxu2 %v8921_v15 }
 0x2e2   : >> { %v12775_v37 = vsub.f32 %v6774_v42, %v6823_v49  ;;  %v12777_v7 = vsub.f32 %v6784_v27, %v6827_v45  ;;  %v8919_v27 = vld [vmem:[#allocation8 + $0x8] sm:$0xff] }
 0x2e3   : >> { %v12785_v61 = vsub.f32 %v6789_v36, %v6829_v17  ;;  %v8918_v36 = vld [vmem:[#allocation8] sm:$0xff] }
 0x2e4   : >> { %v6843_v34 = vmul.f32 %v12777_v7, %v12777_v7  ;;  %v6839_v25 = vmul.f32 %v12775_v37, %v12775_v37 }
 0x2e5   : >> { %v6845_v2 = vmul.f32 %v12785_v61, %v12785_v61  ;;  %7072 = vmatpush.bf16.msra.mxu0 %v8920_v56  ;;  %8957 = vmatpush.bf16.msra.mxu2 %v8920_v56 }
 0x2e6   : >> { %v6851_v60 = vmul.f32 %v16630_v6, %v6843_v34  ;;  %v6847_v23 = vmul.f32 %v16630_v6, %v6839_v25 }
 0x2e7   : >> { %v6811_v26 = vpop.xlane.xlu0 %6810  ;;  %v6813_v39 = vpop.xlane.xlu1 %6812  ;;  %v6853_v52 = vmul.f32 %v16630_v6, %v6845_v2 }
 0x2e8   : >> { %v6824_v30 = vmul.f32 0.03125, %v6811_v26  ;;  %6864 = vadd.xlane.f32.xlu0 %v6851_v60  ;;  %6856 = vadd.xlane.f32.xlu2 %v6847_v23  ;;  %v6825_v20 = vmul.f32 0.03125, %v6813_v39 }
 0x2e9   : >> { %6868 = vadd.xlane.f32.xlu1 %v6853_v52  ;;  %7073 = vmatpush.bf16.msra.mxu0 %v8919_v27 }
 0x2ea   : >> { %v12794_v22 = vsub.f32 %v6777_v47, %v6824_v30  ;;  %v12796_v48 = vsub.f32 %v6779_v63, %v6825_v20  ;;  %8958 = vmatpush.bf16.msra.mxu2 %v8919_v27 }
 0x2ec   : >> { %v6840_v19 = vmul.f32 %v12794_v22, %v12794_v22  ;;  %v6841_v11 = vmul.f32 %v12796_v48, %v12796_v48 }
 0x2ed   : >> { %7074 = vmatpush.bf16.msra.mxu0 %v8918_v36 }
 0x2ee   : >> { %v6848_v31 = vmul.f32 %v16630_v6, %v6840_v19  ;;  %v6849_v51 = vmul.f32 %v16630_v6, %v6841_v11  ;;  %8959 = vmatpush.bf16.msra.mxu2 %v8918_v36 }
 0x2f0   : >> { %6866 = vadd.xlane.f32.xlu0 %v6852_v9  ;;  %6858 = vadd.xlane.f32.xlu2 %v6848_v31 }
 0x2f8   : >> { %6860 = vadd.xlane.f32.xlu0 %v6849_v51  ;;  %v16635_v51 = vld [vmem:[#allocation17_spill] sm:$0xff] }
 0x2f9   : >> { %v12842_v62 = vperm.slane %v16635_v51, 0 }
 0x353   : >> { %v6855_v6 = vpop.xlane.xlu1 %6854  ;;  %v6863_v5 = vpop.xlane.xlu2 %6862 }
 0x354   : >> { %v6870_v53 = vmul.f32 0.03125, %v6855_v6  ;;  %v6874_v42 = vmul.f32 0.03125, %v6863_v5 }
 0x356   : >> { %v6878_v28 = vadd.f32 1e-06, %v6870_v53  ;;  %v6882_v44 = vadd.f32 1e-06, %v6874_v42 }
 0x358   : >> { %9180 = vrsqrt.f32 %v6878_v28  ;;  %vm6892_vm7 = vweird.f32 %v6878_v28  ;;  %vm6932_vm10 = vweird.f32 %v6882_v44 }
 0x359   : >> { %9182 = vrsqrt.f32 %v6882_v44 }
 0x35b   : >> { %v6865_v43 = vpop.xlane.xlu0 %6864  ;;  %v6857_v13 = vpop.xlane.xlu2 %6856 }
 0x35c   : >> { %v6875_v46 = vmul.f32 0.03125, %v6865_v43  ;;  %v6871_v54 = vmul.f32 0.03125, %v6857_v13  ;;  %v6869_v38 = vpop.xlane.xlu1 %6868 }
 0x35d   : >> { %v6877_v14 = vmul.f32 0.03125, %v6869_v38 }
 0x35e   : >> { %v12805_v47 = vpop.eup %9180  ;;  %v12807_v63 = vadd.f32 1e-06, %v6875_v46  ;;  %v12809_v55 = vadd.f32 1e-06, %v6871_v54 }
 0x35f   : >> { %v9183_v16 = vpop.eup %9182  ;;  %v6887_v1 = vmul.f32 %v12805_v47, %v6878_v28  ;;  %v12814_v41 = vadd.f32 1e-06, %v6877_v14  ;;  %vm6893_vm8 = vweird.f32 %v12805_v47 }
 0x360   : >> { %v6927_v10 = vmul.f32 %v9183_v16, %v6882_v44  ;;  %9184 = vrsqrt.f32 %v12807_v63  ;;  %vm6933_vm9 = vweird.f32 %v9183_v16  ;;  %vm12837_vm12 = vmor %vm6892_vm7, %vm6893_vm8  ;;  %vm6942_vm13 = vweird.f32 %v12807_v63 }
 0x361   : >> { %v6888_v4 = vmul.f32 %v12805_v47, %v6887_v1  ;;  %9186 = vrsqrt.f32 %v12809_v55  ;;  %vm12830_vm11 = vmor %vm6932_vm10, %vm6933_vm9  ;;  %vm6902_vm15 = vweird.f32 %v12809_v55  ;;  %vm6962_vm8 = vweird.f32 %v12814_v41 }
 0x362   : >> { %v6928_v21 = vmul.f32 %v9183_v16, %v6927_v10  ;;  %9188 = vrsqrt.f32 %v12814_v41 }
 0x363   : >> { %v6889_v57 = vmul.f32 0.5, %v6888_v4  ;;  %v6867_v0 = vpop.xlane.xlu0 %6866  ;;  %v6859_v12 = vpop.xlane.xlu2 %6858 }
 0x364   : >> { %v6929_v3 = vmul.f32 0.5, %v6928_v21  ;;  %v6876_v8 = vmul.f32 0.03125, %v6867_v0  ;;  %v6872_v49 = vmul.f32 0.03125, %v6859_v12 }
 0x365   : >> { %v6890_v45 = vsub.f32 1.5, %v6889_v57 }
 0x366   : >> { %v9185_v18 = vpop.eup %9184  ;;  %v6930_v17 = vsub.f32 1.5, %v6929_v3  ;;  %v12818_v34 = vadd.f32 1e-06, %v6876_v8  ;;  %v12820_v25 = vadd.f32 1e-06, %v6872_v49 }
 0x367   : >> { %v9187_v60 = vpop.eup %9186  ;;  %v6937_v23 = vmul.f32 %v9185_v18, %v12807_v63  ;;  %v6891_v26 = vmul.f32 %v12805_v47, %v6890_v45  ;;  %vm6943_vm14 = vweird.f32 %v9185_v18 }
 0x368   : >> { %v6931_v2 = vmul.f32 %v9183_v16, %v6930_v17  ;;  %v6897_v39 = vmul.f32 %v9187_v60, %v12809_v55  ;;  %9190 = vrsqrt.f32 %v12818_v34  ;;  %v12827_v30 = vpop.eup %9188  ;;  %vm6903_vm2 = vweird.f32 %v9187_v60  ;;  %vm6944_vm7 = vmor %vm6942_vm13, %vm6943_vm14 }
 0x369   : >> { %v6938_v20 = vmul.f32 %v9185_v18, %v6937_v23  ;;  %9192 = vrsqrt.f32 %v12820_v25  ;;  %v6957_v52 = vmul.f32 %v12827_v30, %v12814_v41  ;;  %v6895_v56 = vsel %vm12837_vm12, %v12805_v47, %v6891_v26  ;;  %v16636_v47 = vld [vmem:[#allocation18_spill] sm:$0xff]  ;;  %vm6904_vm9 = vmor %vm6902_vm15, %vm6903_vm2 }
 0x36a   : >> { %v6898_v9 = vmul.f32 %v9187_v60, %v6897_v39  ;;  %v6935_v33 = vsel %vm12830_vm11, %v9183_v16, %v6931_v2  ;;  %v6966_v13 = vmul.f32 %v6895_v56, %v12765_v35  ;;  %v12859_v63 = vperm.slane %v16636_v47, 0  ;;  %v8932_v47 = vld [vmem:[#allocation9 + $0x30] sm:$0xff] }
 0x36b   : >> { %v6939_v31 = vmul.f32 0.5, %v6938_v20  ;;  %v6861_v11 = vpop.xlane.xlu0 %6860  ;;  %v6958_v58 = vmul.f32 %v12827_v30, %v6957_v52  ;;  %v6970_v27 = vmul.f32 %v6935_v33, %v12767_v24  ;;  %vm6963_vm10 = vweird.f32 %v12827_v30 }
 0x36c   : >> { %v6899_v59 = vmul.f32 0.5, %v6898_v9  ;;  %v6873_v15 = vmul.f32 0.03125, %v6861_v11  ;;  %16637 = vst [vmem:[#allocation99_spill] sm:$0xff] %v12859_v63  ;;  %v6977_v57 = vmul.f32 %v12842_v62, %v6966_v13  ;;  %vm6952_vm11 = vweird.f32 %v12818_v34  ;;  %vm12879_vm15 = vmor %vm6962_vm8, %vm6963_vm10 }
 0x36d   : >> { %v6940_v6 = vsub.f32 1.5, %v6939_v31  ;;  %v6959_v36 = vmul.f32 0.5, %v6958_v58  ;;  %v6981_v14 = vmul.f32 %v12842_v62, %v6970_v27  ;;  %vm6912_vm13 = vweird.f32 %v12820_v25 }
 0x36e   : >> { %v9191_v5 = vpop.eup %9190  ;;  %v6900_v53 = vsub.f32 1.5, %v6899_v59  ;;  %v12852_v42 = vadd.f32 1e-06, %v6873_v15 }
 0x36f   : >> { %v9193_v28 = vpop.eup %9192  ;;  %v6941_v44 = vmul.f32 %v9185_v18, %v6940_v6  ;;  %v6947_v43 = vmul.f32 %v9191_v5, %v12818_v34  ;;  %v6960_v10 = vsub.f32 1.5, %v6959_v36  ;;  %vm6953_vm12 = vweird.f32 %v9191_v5  ;;  %v8933_v36 = vld [vmem:[#allocation9 + $0x38] sm:$0xff] }
 0x370   : >> { %v6901_v46 = vmul.f32 %v9187_v60, %v6900_v53  ;;  %v6907_v54 = vmul.f32 %v9193_v28, %v12820_v25  ;;  %9194 = vrsqrt.f32 %v12852_v42  ;;  %vm6913_vm14 = vweird.f32 %v9193_v28  ;;  %vm6954_vm2 = vmor %vm6952_vm11, %vm6953_vm12  ;;  %7519 = vmatpush.bf16.msra.mxu1 %v8933_v36  ;;  %8960 = vmatpush.bf16.msra.mxu3 %v8933_v36 }
 0x371   : >> { %v6948_v24 = vmul.f32 %v9191_v5, %v6947_v43  ;;  %v6945_v38 = vsel %vm6944_vm7, %v9185_v18, %v6941_v44  ;;  %v6992_v8 = vadd.f32 %v12859_v63, %v6981_v14  ;;  %v6961_v45 = vmul.f32 %v12827_v30, %v6960_v10  ;;  %vm6914_vm7 = vmor %vm6912_vm13, %vm6913_vm14  ;;  %v8930_v18 = vld [vmem:[#allocation9 + $0x20] sm:$0xff] }
 0x372   : >> { %v6908_v16 = vmul.f32 %v9193_v28, %v6907_v54  ;;  %v6905_v1 = vsel %vm6904_vm9, %v9187_v60, %v6901_v46  ;;  %v6971_v35 = vmul.f32 %v6945_v38, %v12777_v7  ;;  %v6988_v60 = vadd.f32 %v12859_v63, %v6977_v57 }
 0x373   : >> { %v6949_v4 = vmul.f32 0.5, %v6948_v24  ;;  %v6967_v21 = vmul.f32 %v6905_v1, %v12775_v37  ;;  %v6965_v52 = vsel %vm12879_vm15, %v12827_v30, %v6961_v45  ;;  %vm6922_vm8 = vweird.f32 %v12852_v42 }
 0x374   : >> { %v6909_v55 = vmul.f32 0.5, %v6908_v16  ;;  %v6982_v0 = vmul.f32 %v12842_v62, %v6971_v35  ;;  %v6973_v25 = vmul.f32 %v6965_v52, %v12785_v61  ;;  %7520 = vmatpush.bf16.msra.mxu1 %v8932_v47  ;;  %8961 = vmatpush.bf16.msra.mxu3 %v8932_v47 }
 0x375   : >> { %v6950_v12 = vsub.f32 1.5, %v6949_v4  ;;  %v6978_v7 = vmul.f32 %v12842_v62, %v6967_v21  ;;  %v8931_v21 = vld [vmem:[#allocation9 + $0x28] sm:$0xff] }
 0x376   : >> { %v6910_v3 = vsub.f32 1.5, %v6909_v55  ;;  %v6993_v37 = vadd.f32 %v12859_v63, %v6982_v0  ;;  %v9195_v49 = vpop.eup %9194  ;;  %v6984_v30 = vmul.f32 %v12842_v62, %v6973_v25 }
 0x377   : >> { %v6951_v17 = vmul.f32 %v9191_v5, %v6950_v12  ;;  %v6989_v23 = vadd.f32 %v12859_v63, %v6978_v7  ;;  %v6917_v2 = vmul.f32 %v9195_v49, %v12852_v42  ;;  %vm6923_vm9 = vweird.f32 %v9195_v49  ;;  %v16640_v42 = vld [vmem:[#allocation19_spill] sm:$0xff] }
 0x378   : >> { %v6911_v26 = vmul.f32 %v9193_v28, %v6910_v3  ;;  %v6998_v39 = vpack.c.bf16 %v6993_v37, %v6992_v8  ;;  %vm6924_vm10 = vmor %vm6922_vm8, %vm6923_vm9  ;;  %v6995_v6 = vadd.f32 %v12859_v63, %v6984_v30  ;;  %v12907_v27 = vperm.slane %v16640_v42, 0  ;;  %7521 = vmatpush.bf16.msra.mxu1 %v8931_v21  ;;  %8962 = vmatpush.bf16.msra.mxu3 %v8931_v21  ;;  %v8927_v21 = vld [vmem:[#allocation9 + $0x8] sm:$0xff] }
 0x379   : >> { %v6996_v41 = vpack.c.bf16 %v6989_v23, %v6988_v60  ;;  %v6955_v20 = vsel %vm6954_vm2, %v9191_v5, %v6951_v17  ;;  %v6918_v32 = vmul.f32 %v9195_v49, %v6917_v2 }
 0x37a   : >> { %7085 = vmatmul.bf16.vlgmr.msra.gmra.mxu2 %v6998_v39  ;;  %v6915_v9 = vsel %vm6914_vm7, %v9193_v28, %v6911_v26  ;;  %v6972_v34 = vmul.f32 %v6955_v20, %v12779_v50  ;;  %16641 = vst [vmem:[#allocation125_spill] sm:$0xff] %v12907_v27 }
 0x37b   : >> { %7075 = vmatmul.bf16.vlgmr.msra.gmra.mxu0 %v6996_v41  ;;  %v6919_v19 = vmul.f32 0.5, %v6918_v32  ;;  %v6968_v11 = vmul.f32 %v6915_v9, %v12794_v22  ;;  %v8929_v9 = vld [vmem:[#allocation9 + $0x18] sm:$0xff] }
 0x37c   : >> { %v6983_v33 = vmul.f32 %v12842_v62, %v6972_v34  ;;  %7522 = vmatpush.bf16.msra.mxu1 %v8930_v18  ;;  %8963 = vmatpush.bf16.msra.mxu3 %v8930_v18 }
 0x37d   : >> { %v6920_v31 = vsub.f32 1.5, %v6919_v19  ;;  %v6979_v15 = vmul.f32 %v12842_v62, %v6968_v11 }
 0x37e   : >> { %v6994_v50 = vadd.f32 %v12859_v63, %v6983_v33 }
 0x37f   : >> { %v6921_v51 = vmul.f32 %v9195_v49, %v6920_v31  ;;  %v6990_v61 = vadd.f32 %v12859_v63, %v6979_v15 }
 0x380   : >> { %v6999_v5 = vpack.c.bf16 %v6995_v6, %v6994_v50  ;;  %7523 = vmatpush.bf16.msra.mxu1 %v8929_v9  ;;  %8964 = vmatpush.bf16.msra.mxu3 %v8929_v9  ;;  %v8928_v6 = vld [vmem:[#allocation9 + $0x10] sm:$0xff] }
 0x381   : >> { %v6925_v58 = vsel %vm6924_vm10, %v9195_v49, %v6921_v51 }
 0x382   : >> { %v6969_v59 = vmul.f32 %v6925_v58, %v12796_v48 }
 0x384   : >> { %v6980_v56 = vmul.f32 %v12842_v62, %v6969_v59  ;;  %7524 = vmatpush.bf16.msra.mxu1 %v8928_v6  ;;  %8965 = vmatpush.bf16.msra.mxu3 %v8928_v6 }
 0x386   : >> { %v6991_v22 = vadd.f32 %v12859_v63, %v6980_v56 }
 0x388   : >> { %v6997_v53 = vpack.c.bf16 %v6991_v22, %v6990_v61  ;;  %7525 = vmatpush.bf16.msra.mxu1 %v8927_v21  ;;  %8966 = vmatpush.bf16.msra.mxu3 %v8927_v21 }
 0x38a   : >> { %7090 = vmatmul.bf16.gmra.mxu2 %v6999_v5 }
 0x38b   : >> { %7080 = vmatmul.bf16.gmra.mxu0 %v6997_v53 }
 0x3f8   : >> { %v7076_v48 = vpop.f32.mrf.mxu0 }
 0x3f9   : >> { %v12910_v28 = vadd.f32 %v7076_v48, %v12907_v27 }
 0x3fb   : >> { %v12913_v44 = vmul.f32 0.70710677, %v12910_v28  ;;  %v12976_v48 = vmul.f32 0.5, %v12910_v28 }
 0x3fd   : >> { %v7112_v43 = vmul.f32 %v12913_v44, %v12913_v44  ;;  %v7086_v13 = vpop.f32.mrf.mxu2 }
 0x3fe   : >> { %v12918_v46 = vadd.f32 %v7086_v13, %v12907_v27 }
 0x3ff   : >> { %v12920_v54 = vmin.f32 %v7112_v43, 16.0 }
 0x400   : >> { %v12923_v24 = vmul.f32 0.70710677, %v12918_v46  ;;  %v7078_v38 = vpop.f32.mrf.mxu0 }
 0x401   : >> { %v7114_v16 = vmul.f32 2.1237322e-06, %v12920_v54  ;;  %v12927_v1 = vadd.f32 %v7078_v38, %v12907_v27  ;;  %v7125_v35 = vmul.f32 3.8918573e-05, %v12920_v54 }
 0x402   : >> { %v7272_v14 = vmul.f32 %v12923_v24, %v12923_v24 }
 0x403   : >> { %v7115_v10 = vadd.f32 0.00028619796, %v7114_v16  ;;  %v12933_v4 = vmul.f32 0.70710677, %v12927_v1  ;;  %v7126_v55 = vadd.f32 0.001143296, %v7125_v35 }
 0x404   : >> { %v12935_v57 = vmin.f32 %v7272_v14, 16.0  ;;  %v12990_v14 = vmul.f32 0.5, %v12918_v46 }
 0x405   : >> { %v7116_v0 = vmul.f32 %v7115_v10, %v12920_v54  ;;  %v7152_v12 = vmul.f32 %v12933_v4, %v12933_v4  ;;  %v7088_v7 = vpop.f32.mrf.mxu2  ;;  %v7127_v37 = vmul.f32 %v7126_v55, %v12920_v54 }
 0x406   : >> { %v7274_v3 = vmul.f32 2.1237322e-06, %v12935_v57  ;;  %v12942_v8 = vadd.f32 %v7088_v7, %v12907_v27  ;;  %v7285_v55 = vmul.f32 3.8918573e-05, %v12935_v57 }
 0x407   : >> { %v7117_v49 = vadd.f32 0.0036580483, %v7116_v0  ;;  %v12945_v45 = vmin.f32 %v7152_v12, 16.0  ;;  %v7128_v39 = vadd.f32 0.014752088, %v7127_v37 }
 0x408   : >> { %v7275_v17 = vadd.f32 0.00028619796, %v7274_v3  ;;  %v12948_v60 = vmul.f32 0.70710677, %v12942_v8  ;;  %v7081_v23 = vpop.f32.mrf.mxu0 }
 0x409   : >> { %v7154_v26 = vmul.f32 2.1237322e-06, %v12945_v45  ;;  %v12952_v2 = vadd.f32 %v7081_v23, %v12907_v27  ;;  %v7118_v32 = vmul.f32 %v7117_v49, %v12920_v54  ;;  %v7129_v19 = vmul.f32 %v7128_v39, %v12920_v54 }
 0x40a   : >> { %v7276_v41 = vmul.f32 %v7275_v17, %v12935_v57  ;;  %v7312_v20 = vmul.f32 %v12948_v60, %v12948_v60  ;;  %v7165_v35 = vmul.f32 3.8918573e-05, %v12945_v45  ;;  %v8926_v17 = vld [vmem:[#allocation9] sm:$0xff] }
 0x40b   : >> { %v7155_v52 = vadd.f32 0.00028619796, %v7154_v26  ;;  %v12962_v25 = vmul.f32 0.70710677, %v12952_v2  ;;  %v7130_v33 = vadd.f32 0.112945676, %v7129_v19  ;;  %7526 = vmatpush.bf16.msra.mxu1 %v8926_v17  ;;  %8967 = vmatpush.bf16.msra.mxu3 %v8926_v17 }
 0x40c   : >> { %v7277_v34 = vadd.f32 0.0036580483, %v7276_v41  ;;  %v12959_v31 = vmin.f32 %v7312_v20, 16.0  ;;  %v7119_v50 = vadd.f32 0.05243302, %v7118_v32 }
 0x40d   : >> { %v7156_v11 = vmul.f32 %v7155_v52, %v12945_v45  ;;  %v7091_v51 = vpop.f32.mrf.mxu2  ;;  %v7192_v59 = vmul.f32 %v12962_v25, %v12962_v25  ;;  %v7131_v61 = vmul.f32 %v7130_v33, %v12920_v54  ;;  %v7166_v41 = vadd.f32 0.001143296, %v7165_v35 }
 0x40e   : >> { %v7278_v58 = vmul.f32 %v7277_v34, %v12935_v57  ;;  %v7314_v30 = vmul.f32 2.1237322e-06, %v12959_v31  ;;  %v12970_v15 = vadd.f32 %v7091_v51, %v12907_v27  ;;  %v7120_v28 = vmul.f32 %v7119_v50, %v12920_v54 }
 0x40f   : >> { %v7157_v56 = vadd.f32 0.0036580483, %v7156_v11  ;;  %v12973_v53 = vmin.f32 %v7192_v59, 16.0  ;;  %v7132_v16 = vadd.f32 0.4994258, %v7131_v61  ;;  %v13013_v34 = vmul.f32 0.5, %v12927_v1 }
 0x410   : >> { %v7279_v22 = vadd.f32 0.05243302, %v7278_v58  ;;  %v7315_v5 = vadd.f32 0.00028619796, %v7314_v30  ;;  %v7083_v42 = vpop.f32.mrf.mxu0  ;;  %v12980_v43 = vmul.f32 0.70710677, %v12970_v15  ;;  %v7167_v1 = vmul.f32 %v7166_v41, %v12945_v45 }
 0x411   : >> { %v7158_v36 = vmul.f32 %v7157_v56, %v12945_v45  ;;  %v12983_v13 = vadd.f32 %v7083_v42, %v12907_v27  ;;  %v7194_v38 = vmul.f32 2.1237322e-06, %v12973_v53  ;;  %v7133_v3 = vmul.f32 %v7132_v16, %v12920_v54 }
 0x412   : >> { %v7316_v47 = vmul.f32 %v7315_v5, %v12959_v31  ;;  %v7352_v10 = vmul.f32 %v12980_v43, %v12980_v43  ;;  %v7280_v0 = vmul.f32 %v7279_v22, %v12935_v57  ;;  %v7121_v20 = vadd.f32 0.18741608, %v7120_v28 }
 0x413   : >> { %v7195_v7 = vadd.f32 0.00028619796, %v7194_v38  ;;  %v7159_v37 = vadd.f32 0.05243302, %v7158_v36  ;;  %v13000_v18 = vmul.f32 0.70710677, %v12983_v13 }
 0x414   : >> { %v7317_v12 = vadd.f32 0.0036580483, %v7316_v47  ;;  %v12997_v49 = vmin.f32 %v7352_v10, 16.0  ;;  %v13010_v9 = vadd.f32 1.0, %v7133_v3  ;;  %v7281_v19 = vadd.f32 0.18741608, %v7280_v0 }
 0x415   : >> { %v7093_v46 = vpop.f32.mrf.mxu2  ;;  %v7196_v26 = vmul.f32 %v7195_v7, %v12973_v53  ;;  %v7232_v52 = vmul.f32 %v13000_v18, %v13000_v18  ;;  %v13016_v11 = vmul.f32 0.5, %v12942_v8  ;;  %v7160_v33 = vmul.f32 %v7159_v37, %v12945_v45 }
 0x416   : >> { %v7318_v23 = vmul.f32 %v7317_v12, %v12959_v31  ;;  %v13005_v39 = vadd.f32 %v7093_v46, %v12907_v27  ;;  %v7354_v32 = vmul.f32 2.1237322e-06, %v12997_v49  ;;  %v7286_v59 = vadd.f32 0.001143296, %v7285_v55 }
 0x417   : >> { %v7197_v51 = vadd.f32 0.0036580483, %v7196_v26  ;;  %v13019_v30 = vmin.f32 %v7232_v52, 16.0  ;;  %v7122_v8 = vmul.f32 %v7121_v20, %v12920_v54  ;;  %9196 = vrcp.f32 %v13010_v9 }
 0x418   : >> { %v7355_v58 = vadd.f32 0.00028619796, %v7354_v32  ;;  %v7319_v50 = vadd.f32 0.05243302, %v7318_v23  ;;  %v13023_v6 = vmul.f32 0.70710677, %v13005_v39  ;;  %v7282_v5 = vmul.f32 %v7281_v19, %v12935_v57 }
 0x419   : >> { %v7198_v56 = vmul.f32 %v7197_v51, %v12973_v53  ;;  %v7234_v22 = vmul.f32 2.1237322e-06, %v13019_v30  ;;  %v13032_v42 = vmul.f32 0.5, %v12952_v2  ;;  %v7161_v38 = vadd.f32 0.18741608, %v7160_v33 }
 0x41a   : >> { %v7356_v61 = vmul.f32 %v7355_v58, %v12997_v49  ;;  %v7392_v47 = vmul.f32 %v13023_v6, %v13023_v6  ;;  %v7320_v54 = vmul.f32 %v7319_v50, %v12959_v31  ;;  %v13038_v28 = vmul.f32 0.5, %v12970_v15 }
 0x41b   : >> { %v7199_v36 = vadd.f32 0.05243302, %v7198_v56  ;;  %v7235_v35 = vadd.f32 0.00028619796, %v7234_v22  ;;  %v7287_v21 = vmul.f32 %v7286_v59, %v12935_v57  ;;  %v7123_v55 = vadd.f32 1.1283791, %v7122_v8 }
 0x41c   : >> { %v7357_v16 = vadd.f32 0.0036580483, %v7356_v61  ;;  %v13040_v10 = vmin.f32 %v7392_v47, 16.0  ;;  %v7168_v12 = vadd.f32 0.014752088, %v7167_v1  ;;  %v13047_v37 = vmul.f32 0.5, %v12983_v13 }
 0x41d   : >> { %v7236_v0 = vmul.f32 %v7235_v35, %v13019_v30  ;;  %v7283_v7 = vadd.f32 1.1283791, %v7282_v5  ;;  %v7200_v3 = vmul.f32 %v7199_v36, %v12973_v53  ;;  %v9197_v15 = vpop.eup %9196  ;;  %v7162_v17 = vmul.f32 %v7161_v38, %v12945_v45 }
 0x41e   : >> { %v7358_v2 = vmul.f32 %v7357_v16, %v12997_v49  ;;  %v7394_v46 = vmul.f32 2.1237322e-06, %v13040_v10  ;;  %v7169_v41 = vmul.f32 %v7168_v12, %v12945_v45  ;;  %v7321_v20 = vadd.f32 0.18741608, %v7320_v54 }
 0x41f   : >> { %v7237_v26 = vadd.f32 0.0036580483, %v7236_v0  ;;  %v7136_v52 = vmul.f32 %v9197_v15, %v13010_v9  ;;  %vm7140_vm11 = vweird.f32 %v13010_v9  ;;  %v7144_v51 = vand.u32 2147483647, %v13010_v9 }
 0x420   : >> { %v7359_v23 = vadd.f32 0.05243302, %v7358_v2  ;;  %v7395_v32 = vadd.f32 0.00028619796, %v7394_v46  ;;  %v7170_v33 = vadd.f32 0.112945676, %v7169_v41  ;;  %vm7141_vm12 = vweird.f32 %v9197_v15 }
 0x421   : >> { %v7238_v13 = vmul.f32 %v7237_v26, %v13019_v30  ;;  %v7201_v58 = vadd.f32 0.18741608, %v7200_v3  ;;  %v7137_v50 = vsub.f32 1.0, %v7136_v52  ;;  %v7288_v56 = vadd.f32 0.014752088, %v7287_v21  ;;  %vm13069_vm13 = vmor %vm7140_vm11, %vm7141_vm12 }
 0x422   : >> { %v7360_v19 = vmul.f32 %v7359_v23, %v12997_v49  ;;  %v7396_v59 = vmul.f32 %v7395_v32, %v13040_v10  ;;  %v7171_v8 = vmul.f32 %v7170_v33, %v12945_v45  ;;  %v7325_v61 = vmul.f32 3.8918573e-05, %v12959_v31 }
 0x423   : >> { %v7239_v1 = vadd.f32 0.05243302, %v7238_v13  ;;  %v7138_v36 = vmul.f32 %v9197_v15, %v7137_v50  ;;  %v7289_v47 = vmul.f32 %v7288_v56, %v12935_v57  ;;  %v7146_v16 = vand.u32 2147483648, %v13010_v9 }
 0x424   : >> { %v7361_v22 = vadd.f32 0.18741608, %v7360_v19  ;;  %v7397_v5 = vadd.f32 0.0036580483, %v7396_v59  ;;  %v7172_v35 = vadd.f32 0.4994258, %v7171_v8  ;;  %v7322_v3 = vmul.f32 %v7321_v20, %v12959_v31 }
 0x425   : >> { %v7240_v38 = vmul.f32 %v7239_v1, %v13019_v30  ;;  %v7326_v54 = vadd.f32 0.001143296, %v7325_v61  ;;  %v7139_v21 = vadd.f32 %v9197_v15, %v7138_v36  ;;  %v7290_v0 = vadd.f32 0.112945676, %v7289_v47 }
 0x426   : >> { %v7398_v2 = vmul.f32 %v7397_v5, %v13040_v10  ;;  %v7205_v12 = vmul.f32 3.8918573e-05, %v12973_v53  ;;  %v7173_v26 = vmul.f32 %v7172_v35, %v12945_v45  ;;  %v7202_v32 = vmul.f32 %v7201_v58, %v12973_v53 }
 0x427   : >> { %v7241_v46 = vadd.f32 0.18741608, %v7240_v38  ;;  %v7327_v41 = vmul.f32 %v7326_v54, %v12959_v31  ;;  %v7362_v52 = vmul.f32 %v7361_v22, %v12997_v49  ;;  %v7143_v19 = vsel %vm13069_vm13, %v9197_v15, %v7139_v21 }
 0x428   : >> { %v7291_v20 = vmul.f32 %v7290_v0, %v12935_v57  ;;  %vm7145_vm14 = vcmp.eq.f32.partialorder %v7144_v51, 8.507059e+37  ;;  %v7147_v13 = vor.u32 1.1754944e-38, %v7146_v16  ;;  %v13080_v9 = vadd.f32 1.0, %v7173_v26 }
 0x429   : >> { %v7206_v33 = vadd.f32 0.001143296, %v7205_v12  ;;  %v7242_v59 = vmul.f32 %v7241_v46, %v13019_v30  ;;  %v7399_v50 = vadd.f32 0.05243302, %v7398_v2  ;;  %v7328_v56 = vadd.f32 0.014752088, %v7327_v41 }
 0x42a   : >> { %v7292_v45 = vadd.f32 0.4994258, %v7291_v20  ;;  %v7124_v1 = vmul.f32 %v7123_v55, %v12913_v44  ;;  %v7163_v58 = vadd.f32 1.1283791, %v7162_v17  ;;  %v7148_v8 = vsel %vm7145_vm14, %v7147_v13, %v7143_v19 }
 0x42b   : >> { %9198 = vrcp.f32 %v13080_v9  ;;  %v7323_v61 = vadd.f32 1.1283791, %v7322_v3  ;;  %v7203_v15 = vadd.f32 1.1283791, %v7202_v32  ;;  %v7363_v22 = vadd.f32 1.1283791, %v7362_v52 }
 0x42c   : >> { %v7293_v51 = vmul.f32 %v7292_v45, %v12935_v57  ;;  %v13087_v5 = vmul.f32 %v7283_v7, %v12923_v24  ;;  %v13090_v36 = vmul.f32 0.5, %v13005_v39  ;;  %v7329_v47 = vmul.f32 %v7328_v56, %v12959_v31 }
 0x42d   : >> { %v7207_v38 = vmul.f32 %v7206_v33, %v12973_v53  ;;  %v7243_v44 = vadd.f32 1.1283791, %v7242_v59  ;;  %v7400_v55 = vmul.f32 %v7399_v50, %v13040_v10  ;;  %v7149_v17 = vmul.f32 %v7148_v8, %v7124_v1 }
 0x42e   : >> { %v13095_v16 = vadd.f32 1.0, %v7293_v51  ;;  %v7164_v35 = vmul.f32 %v7163_v58, %v12933_v4  ;;  %v7330_v54 = vadd.f32 0.112945676, %v7329_v47  ;;  %v7245_v24 = vmul.f32 3.8918573e-05, %v13019_v30 }
 0x42f   : >> { %v7208_v57 = vadd.f32 0.014752088, %v7207_v38  ;;  %v13100_v7 = vmul.f32 %v7323_v61, %v12948_v60  ;;  %v13103_v39 = vmul.f32 %v7203_v15, %v12962_v25  ;;  %v13106_v2 = vmul.f32 %v7363_v22, %v12980_v43 }
 0x430   : >> { %9200 = vrcp.f32 %v13095_v16  ;;  %vm7180_vm15 = vweird.f32 %v13080_v9  ;;  %v7184_v4 = vand.u32 2147483647, %v13080_v9  ;;  %v7331_v0 = vmul.f32 %v7330_v54, %v12959_v31 }
 0x431   : >> { %v9199_v21 = vpop.eup %9198  ;;  %v7209_v12 = vmul.f32 %v7208_v57, %v12973_v53  ;;  %v7401_v3 = vadd.f32 0.18741608, %v7400_v55  ;;  %v8777_v60 = vclamps-f32 %v7149_v17, 1.0  ;;  %v7246_v25 = vadd.f32 0.001143296, %v7245_v24 }
 0x432   : >> { %v7176_v46 = vmul.f32 %v9199_v21, %v13080_v9  ;;  %v13115_v23 = vmul.f32 %v7243_v44, %v13000_v18  ;;  %v7186_v43 = vand.u32 2147483648, %v13080_v9  ;;  %v7332_v26 = vadd.f32 0.4994258, %v7331_v0 }
 0x433   : >> { %v7210_v41 = vadd.f32 0.112945676, %v7209_v12  ;;  %v7247_v52 = vmul.f32 %v7246_v25, %v13019_v30  ;;  %v7365_v19 = vmul.f32 3.8918573e-05, %v12997_v49  ;;  %v7405_v20 = vmul.f32 3.8918573e-05, %v13040_v10 }
 0x434   : >> { %v7177_v32 = vsub.f32 1.0, %v7176_v46  ;;  %vm7181_vm2 = vweird.f32 %v9199_v21  ;;  %vm13121_vm7 = vcmp.eq.f32.partialorder %v7184_v4, 8.507059e+37  ;;  %v7333_v33 = vmul.f32 %v7332_v26, %v12959_v31 }
 0x435   : >> { %v7211_v18 = vmul.f32 %v7210_v41, %v12973_v53  ;;  %v7248_v45 = vadd.f32 0.014752088, %v7247_v52  ;;  %v7366_v56 = vadd.f32 0.001143296, %v7365_v19  ;;  %v7406_v1 = vadd.f32 0.001143296, %v7405_v20  ;;  %vm7182_vm8 = vmor %vm7180_vm15, %vm7181_vm2 }
 0x436   : >> { %v9201_v59 = vpop.eup %9200  ;;  %v7178_v50 = vmul.f32 %v9199_v21, %v7177_v32  ;;  %v7402_v58 = vmul.f32 %v7401_v3, %v13040_v10  ;;  %v13129_v61 = vadd.f32 1.0, %v7333_v33  ;;  %v7187_v51 = vor.u32 1.1754944e-38, %v7186_v43 }
 0x437   : >> { %v7296_v8 = vmul.f32 %v9201_v59, %v13095_v16  ;;  %v7212_v15 = vadd.f32 0.4994258, %v7211_v18  ;;  %v7249_v47 = vmul.f32 %v7248_v45, %v13019_v30  ;;  %v7367_v31 = vmul.f32 %v7366_v56, %v12997_v49 }
 0x438   : >> { %v7179_v22 = vadd.f32 %v9199_v21, %v7178_v50  ;;  %v7304_v44 = vand.u32 2147483647, %v13095_v16  ;;  %v7306_v55 = vand.u32 2147483648, %v13095_v16  ;;  %9202 = vrcp.f32 %v13129_v61 }
 0x439   : >> { %v7297_v38 = vsub.f32 1.0, %v7296_v8  ;;  %v7213_v54 = vmul.f32 %v7212_v15, %v12973_v53  ;;  %v7250_v57 = vadd.f32 0.112945676, %v7249_v47  ;;  %v7407_v24 = vmul.f32 %v7406_v1, %v13040_v10 }
 0x43a   : >> { %v7183_v17 = vsel %vm7182_vm8, %v9199_v21, %v7179_v22  ;;  %vm7301_vm9 = vweird.f32 %v9201_v59  ;;  %v7368_v9 = vadd.f32 0.014752088, %v7367_v31  ;;  %v7432_v3 = vadd.f32 1.0, %v8777_v60 }
 0x43b   : >> { %v7188_v4 = vsel %vm13121_vm7, %v7187_v51, %v7183_v17  ;;  %v7298_v0 = vmul.f32 %v9201_v59, %v7297_v38  ;;  %v13143_v46 = vadd.f32 1.0, %v7213_v54  ;;  %v7251_v25 = vmul.f32 %v7250_v57, %v13019_v30 }
 0x43c   : >> { %v7189_v12 = vmul.f32 %v7188_v4, %v7164_v35  ;;  %v7403_v43 = vadd.f32 1.1283791, %v7402_v58  ;;  %vm7300_vm10 = vweird.f32 %v13095_v16  ;;  %v7369_v53 = vmul.f32 %v7368_v9, %v12997_v49 }
 0x43d   : >> { %v7299_v26 = vadd.f32 %v9201_v59, %v7298_v0  ;;  %vm7302_vm11 = vmor %vm7300_vm10, %vm7301_vm9  ;;  %v7307_v41 = vor.u32 1.1754944e-38, %v7306_v55  ;;  %9204 = vrcp.f32 %v13143_v46  ;;  %v7408_v32 = vadd.f32 0.014752088, %v7407_v24 }
 0x43e   : >> { %v8778_v21 = vclamps-f32 %v7189_v12, 1.0  ;;  %v9203_v52 = vpop.eup %9202  ;;  %vm7305_vm12 = vcmp.eq.f32.partialorder %v7304_v44, 8.507059e+37  ;;  %v7252_v35 = vadd.f32 0.4994258, %v7251_v25  ;;  %v7370_v60 = vadd.f32 0.112945676, %v7369_v53 }
 0x43f   : >> { %v7303_v19 = vsel %vm7302_vm11, %v9201_v59, %v7299_v26  ;;  %v7440_v13 = vmul.f32 %v7432_v3, %v12976_v48  ;;  %v7336_v18 = vmul.f32 %v9203_v52, %v13129_v61  ;;  %v7344_v50 = vand.u32 2147483647, %v13129_v61 }
 0x440   : >> { %v7433_v20 = vadd.f32 1.0, %v8778_v21  ;;  %v7308_v33 = vsel %vm7305_vm12, %v7307_v41, %v7303_v19  ;;  %v7346_v45 = vand.u32 2147483648, %v13129_v61  ;;  %v7253_v56 = vmul.f32 %v7252_v35, %v13019_v30 }
 0x441   : >> { %v7309_v16 = vmul.f32 %v7308_v33, %v13087_v5  ;;  %v7337_v59 = vsub.f32 1.0, %v7336_v18  ;;  %v7371_v58 = vmul.f32 %v7370_v60, %v12997_v49  ;;  %v7409_v8 = vmul.f32 %v7408_v32, %v13040_v10 }
 0x442   : >> { %v7441_v1 = vmul.f32 %v7433_v20, %v13013_v34  ;;  %v13159_v48 = vmul.f32 %v7403_v43, %v13023_v6  ;;  %vm7341_vm13 = vweird.f32 %v9203_v52  ;;  %v13161_v22 = vadd.f32 1.0, %v7253_v56  ;;  %v13213_v56 = vld [vmem:[%s13202_s26 + $0x88] sm:$0xff] }
 0x443   : >> { %v8781_v15 = vclamps-f32 %v7309_v16, 1.0  ;;  %v9205_v5 = vpop.eup %9204  ;;  %v7338_v47 = vmul.f32 %v9203_v52, %v7337_v59  ;;  %v7372_v31 = vadd.f32 0.4994258, %v7371_v58  ;;  %v7410_v38 = vadd.f32 0.112945676, %v7409_v8  ;;  %v13205_v16 = vld [vmem:[%s13202_s26 + $0x80] sm:$0xff] }
 0x444   : >> { %v7448_v51 = vpack.c.bf16 %v7441_v1, %v7440_v13  ;;  %vm7340_vm14 = vweird.f32 %v13129_v61  ;;  %vm13164_vm15 = vcmp.eq.f32.partialorder %v7344_v50, 8.507059e+37  ;;  %v7216_v30 = vmul.f32 %v9205_v5, %v13143_v46  ;;  %v13216_v1 = vld [vmem:[%s13202_s26 + $0x90] sm:$0xff]  ;;  %v16652_v59 = vld [vmem:[#allocation22_spill] sm:$0xff] }
 0x445   : >> { %9206 = vrcp.f32 %v13161_v22  ;;  %v7339_v6 = vadd.f32 %v9203_v52, %v7338_v47  ;;  %v7347_v44 = vor.u32 1.1754944e-38, %v7346_v45  ;;  %v7224_v55 = vand.u32 2147483647, %v13143_v46  ;;  %vm7342_vm2 = vmor %vm7340_vm14, %vm7341_vm13 }
 0x446   : >> { %7527 = vmatmul.bf16.vlgmr.msra.gmra.mxu1 %v7448_v51  ;;  %v7226_v17 = vand.u32 2147483648, %v13143_v46  ;;  %v7436_v54 = vadd.f32 1.0, %v8781_v15  ;;  %v7217_v61 = vsub.f32 1.0, %v7216_v30  ;;  %v7373_v57 = vmul.f32 %v7372_v31, %v12997_v49 }
 0x447   : >> { %v7411_v24 = vmul.f32 %v7410_v38, %v13040_v10  ;;  %v7343_v4 = vsel %vm7342_vm2, %v9203_v52, %v7339_v6  ;;  %vm7221_vm7 = vweird.f32 %v9205_v5  ;;  %v7264_v0 = vand.u32 2147483647, %v13161_v22 }
 0x448   : >> { %v7266_v9 = vand.u32 2147483648, %v13161_v22  ;;  %v7348_v12 = vsel %vm13164_vm15, %v7347_v44, %v7343_v4  ;;  %v7218_v3 = vmul.f32 %v9205_v5, %v7217_v61  ;;  %v13180_v25 = vadd.f32 1.0, %v7373_v57  ;;  %v13264_v4 = vld [vmem:[%s13202_s26 + $0xc8] sm:$0xff] }
 0x449   : >> { %v7412_v43 = vadd.f32 0.4994258, %v7411_v24  ;;  %v7349_v26 = vmul.f32 %v7348_v12, %v13100_v7  ;;  %vm7220_vm8 = vweird.f32 %v13143_v46  ;;  %vm13184_vm9 = vcmp.eq.f32.partialorder %v7224_v55, 8.507059e+37  ;;  %v13261_v24 = vld [vmem:[%s13202_s26 + $0xc0] sm:$0xff] }
 0x44a   : >> { %v7227_v53 = vor.u32 1.1754944e-38, %v7226_v17  ;;  %v7444_v41 = vmul.f32 %v7436_v54, %v12990_v14  ;;  %v7219_v32 = vadd.f32 %v9205_v5, %v7218_v3  ;;  %vm7260_vm10 = vweird.f32 %v13161_v22  ;;  %vm7222_vm11 = vmor %vm7220_vm8, %vm7221_vm7  ;;  %v13254_v54 = vld [vmem:[%s13202_s26 + $0xb0] sm:$0xff] }
 0x44b   : >> { %v9207_v21 = vpop.eup %9206  ;;  %9208 = vrcp.f32 %v13180_v25  ;;  %v8782_v52 = vclamps-f32 %v7349_v26, 1.0  ;;  %vm13193_vm12 = vcmp.eq.f32.partialorder %v7264_v0, 8.507059e+37  ;;  %v7386_v19 = vand.u32 2147483648, %v13180_v25 }
 0x44c   : >> { %v7256_v7 = vmul.f32 %v9207_v21, %v13161_v22  ;;  %v7223_v35 = vsel %vm7222_vm11, %v9205_v5, %v7219_v32  ;;  %v7267_v60 = vor.u32 1.1754944e-38, %v7266_v9  ;;  %v7384_v14 = vand.u32 2147483647, %v13180_v25  ;;  %v13225_v5 = vld [vmem:[%s13202_s26 + $0xa0] sm:$0xff]  ;;  %v13271_v22 = vld [vmem:[%s13202_s26 + $0xd0] sm:$0xff] }
 0x44d   : >> { %v7413_v20 = vmul.f32 %v7412_v43, %v13040_v10  ;;  %v7437_v13 = vadd.f32 1.0, %v8782_v52  ;;  %v7228_v33 = vsel %vm13184_vm9, %v7227_v53, %v7223_v35  ;;  %vm7261_vm13 = vweird.f32 %v9207_v21 }
 0x44e   : >> { %v7257_v18 = vsub.f32 1.0, %v7256_v7  ;;  %v7229_v50 = vmul.f32 %v7228_v33, %v13103_v39  ;;  %v13208_v45 = vor.u32 1.1754944e-38, %v7386_v19  ;;  %v13220_v58 = vmul.f32 %v13205_v16, %v16652_v59  ;;  %v13228_v39 = vld [vmem:[%s13202_s26 + $0xa8] sm:$0xff]  ;;  %vm7262_vm2 = vmor %vm7260_vm10, %vm7261_vm13  ;;  %v13297_v19 = vld [vmem:[%s13202_s26 + $0xf0] sm:$0xff] }
 0x44f   : >> { %v13210_v10 = vadd.f32 1.0, %v7413_v20  ;;  %v7445_v8 = vmul.f32 %v7437_v13, %v13016_v11  ;;  %vm7380_vm14 = vweird.f32 %v13180_v25  ;;  %v13232_v51 = vmul.f32 %v13213_v56, %v16652_v59 }
 0x450   : >> { %v7258_v15 = vmul.f32 %v9207_v21, %v7257_v18  ;;  %v13236_v47 = vmul.f32 %v13216_v1, %v16652_v59  ;;  %v8779_v11 = vclamps-f32 %v7229_v50, 1.0  ;;  %v13241_v38 = vmul.f32 %v13225_v5, %v16652_v59 }
 0x451   : >> { %v9209_v31 = vpop.eup %9208  ;;  %9210 = vrcp.f32 %v13210_v10  ;;  %v13245_v34 = vmul.f32 %v13228_v39, %v16652_v59  ;;  %v7450_v30 = vpack.c.bf16 %v7445_v8, %v7444_v41  ;;  %vm13248_vm15 = vcmp.eq.f32.partialorder %v7384_v14, 8.507059e+37  ;;  %v13285_v41 = vld [vmem:[%s13202_s26 + $0xe0] sm:$0xff]  ;;  %v16655_v14 = vld [vmem:[#allocation23_spill] sm:$0xff] }
 0x452   : >> { %v7259_v6 = vadd.f32 %v9207_v21, %v7258_v15  ;;  %v7376_v44 = vmul.f32 %v9209_v31, %v13180_v25  ;;  %v7424_v17 = vand.u32 2147483647, %v13210_v10  ;;  %v7434_v61 = vadd.f32 1.0, %v8779_v11 }
 0x453   : >> { %vm7381_vm7 = vweird.f32 %v9209_v31  ;;  %v7426_v57 = vand.u32 2147483648, %v13210_v10  ;;  %v13268_v0 = vmul.f32 %v13254_v54, %v16652_v59  ;;  %7537 = vmatmul.bf16.vlgmr.msra.gmra.mxu3 %v7450_v30  ;;  %v13275_v3 = vmul.f32 %v13261_v24, %v16652_v59 }
 0x454   : >> { %v7263_v9 = vsel %vm7262_vm2, %v9207_v21, %v7259_v6  ;;  %v7377_v12 = vsub.f32 1.0, %v7376_v44  ;;  %v13279_v43 = vmul.f32 %v13264_v4, %v16652_v59  ;;  %v7442_v49 = vmul.f32 %v7434_v61, %v13032_v42  ;;  %v13288_v21 = vld [vmem:[%s13202_s26 + $0xe8] sm:$0xff]  ;;  %vm7382_vm11 = vmor %vm7380_vm14, %vm7381_vm7 }
 0x455   : >> { %v7268_v26 = vsel %vm13193_vm12, %v7267_v60, %v7263_v9  ;;  %v7427_v53 = vor.u32 1.1754944e-38, %v7426_v57  ;;  %v13292_v32 = vmul.f32 %v13271_v22, %v16652_v59  ;;  %vm7420_vm8 = vweird.f32 %v13210_v10 }
 0x456   : >> { %v7269_v52 = vmul.f32 %v7268_v26, %v13115_v23  ;;  %v7378_v7 = vmul.f32 %v9209_v31, %v7377_v12  ;;  %v13301_v46 = vmul.f32 %v13285_v41, %v16652_v59  ;;  %v13305_v42 = vmul.f32 %v13288_v21, %v16652_v59 }
 0x457   : >> { %v9211_v35 = vpop.eup %9210  ;;  %v13309_v60 = vmul.f32 %v13297_v19, %v16652_v59  ;;  %v3743_v23 = vmul.f32 %v13205_v16, %v16655_v14  ;;  %v3744_v20 = vmul.f32 %v13213_v56, %v16655_v14  ;;  %v3745_v13 = vmul.f32 %v13216_v1, %v16655_v14 }
 0x458   : >> { %v8780_v33 = vclamps-f32 %v7269_v52, 1.0  ;;  %v7379_v18 = vadd.f32 %v9209_v31, %v7378_v7  ;;  %v7416_v50 = vmul.f32 %v9211_v35, %v13210_v10  ;;  %vm7421_vm9 = vweird.f32 %v9211_v35 }
 0x459   : >> { %vm13318_vm10 = vcmp.eq.f32.partialorder %v7424_v17, 8.507059e+37  ;;  %v3746_v15 = vmul.f32 %v13225_v5, %v16655_v14  ;;  %v3747_v11 = vmul.f32 %v13228_v39, %v16655_v14  ;;  %v3748_v30 = vmul.f32 %v13254_v54, %v16655_v14  ;;  %vm7422_vm12 = vmor %vm7420_vm8, %vm7421_vm9 }
 0x45a   : >> { %v3749_v6 = vmul.f32 %v13261_v24, %v16655_v14  ;;  %v7435_v44 = vadd.f32 1.0, %v8780_v33  ;;  %v7383_v17 = vsel %vm7382_vm11, %v9209_v31, %v7379_v18  ;;  %v7417_v61 = vsub.f32 1.0, %v7416_v50 }
 0x45b   : >> { %v3750_v57 = vmul.f32 %v13264_v4, %v16655_v14  ;;  %v7388_v25 = vsel %vm13248_vm15, %v13208_v45, %v7383_v17  ;;  %v3751_v9 = vmul.f32 %v13271_v22, %v16655_v14  ;;  %v3752_v12 = vmul.f32 %v13285_v41, %v16655_v14 }
 0x45c   : >> { %v3753_v26 = vmul.f32 %v13288_v21, %v16655_v14  ;;  %v7443_v52 = vmul.f32 %v7435_v44, %v13047_v37  ;;  %v7389_v31 = vmul.f32 %v7388_v25, %v13106_v2  ;;  %v7418_v7 = vmul.f32 %v9211_v35, %v7417_v61 }
 0x45d   : >> { %v3754_v33 = vmul.f32 %v13297_v19, %v16655_v14  ;;  %v3767_v18 = vrot.slane %v3743_v23, 1  ;;  %v3768_v55 = vrot.slane %v3744_v20, 1  ;;  %v3770_v45 = vrot.slane %v3745_v13, 1 }
 0x45e   : >> { %v3772_v50 = vrot.slane %v3746_v15, 1  ;;  %v7449_v17 = vpack.c.bf16 %v7443_v52, %v7442_v49  ;;  %v8783_v59 = vclamps-f32 %v7389_v31, 1.0  ;;  %v7419_v27 = vadd.f32 %v9211_v35, %v7418_v7 }
 0x45f   : >> { %v3773_v63 = vrot.slane %v3747_v11, 1  ;;  %v3769_v37 = vsel %vm648_vm0, %v3767_v18, %v3768_v55  ;;  %v3771_v2 = vsel %vm648_vm0, %v3768_v55, %v3770_v45  ;;  %v3775_v44 = vrot.slane %v3748_v30, 1 }
 0x460   : >> { %v3777_v61 = vrot.slane %v3749_v6, 1  ;;  %7532 = vmatmul.bf16.gmra.mxu1 %v7449_v17  ;;  %v7423_v25 = vsel %vm7422_vm12, %v9211_v35, %v7419_v27  ;;  %v7438_v23 = vadd.f32 1.0, %v8783_v59  ;;  %v3778_v13 = vrot.slane %v3750_v57, 1 }
 0x461   : >> { %v3774_v20 = vsel %vm648_vm0, %v3772_v50, %v3773_v63  ;;  %v7428_v49 = vsel %vm13318_vm10, %v7427_v53, %v7423_v25  ;;  %v3776_v15 = vsel %vm648_vm0, %v3773_v63, %v3775_v44  ;;  %v3780_v11 = vrot.slane %v3751_v9, 1 }
 0x462   : >> { %v3782_v10 = vrot.slane %v3752_v12, 1  ;;  %v7429_v52 = vmul.f32 %v7428_v49, %v13159_v48  ;;  %v7446_v31 = vmul.f32 %v7438_v23, %v13038_v28  ;;  %v3779_v30 = vsel %vm648_vm0, %v3777_v61, %v3778_v13 }
 0x463   : >> { %v3783_v6 = vrot.slane %v3753_v26, 1  ;;  %v3781_v27 = vsel %vm648_vm0, %v3778_v13, %v3780_v11  ;;  %v3785_v59 = vrot.slane %v3754_v33, 1  ;;  %v3799_v35 = vadd.f32 %v3769_v37, %v13220_v58 }
 0x464   : >> { %v3800_v57 = vadd.f32 %v3771_v2, %v13232_v51  ;;  %v8784_v8 = vclamps-f32 %v7429_v52, 1.0  ;;  %v3801_v63 = vadd.f32 %v3770_v45, %v13236_v47  ;;  %v3802_v9 = vadd.f32 %v3774_v20, %v13241_v38  ;;  %v16658_v38 = vld [vmem:[#allocation24_spill] sm:$0xff] }
 0x465   : >> { %v3784_v53 = vsel %vm648_vm0, %v3782_v10, %v3783_v6  ;;  %v3786_v48 = vsel %vm648_vm0, %v3783_v6, %v3785_v59  ;;  %v3803_v28 = vadd.f32 %v3776_v15, %v13245_v34  ;;  %v3804_v12 = vadd.f32 %v3775_v44, %v13268_v0 }
 0x466   : >> { %v3805_v26 = vadd.f32 %v3779_v30, %v13275_v3  ;;  %v7439_v7 = vadd.f32 1.0, %v8784_v8  ;;  %v3806_v58 = vadd.f32 %v3781_v27, %v13279_v43  ;;  %v3807_v51 = vadd.f32 %v3780_v11, %v13292_v32 }
 0x467   : >> { %v3808_v33 = vadd.f32 %v3784_v53, %v13301_v46  ;;  %v3809_v18 = vadd.f32 %v3786_v48, %v13305_v42  ;;  %v3810_v47 = vadd.f32 %v3785_v59, %v13309_v60  ;;  %v3811_v55 = vmul.f32 %v13205_v16, %v16658_v38 }
 0x468   : >> { %v3812_v34 = vmul.f32 %v13213_v56, %v16658_v38  ;;  %v7447_v0 = vmul.f32 %v7439_v7, %v13090_v36  ;;  %v3813_v3 = vmul.f32 %v13216_v1, %v16658_v38  ;;  %v3814_v43 = vmul.f32 %v13225_v5, %v16658_v38 }
 0x469   : >> { %v3815_v32 = vmul.f32 %v13228_v39, %v16658_v38  ;;  %v3816_v46 = vmul.f32 %v13254_v54, %v16658_v38  ;;  %v3817_v16 = vmul.f32 %v13261_v24, %v16658_v38  ;;  %v3818_v42 = vmul.f32 %v13264_v4, %v16658_v38 }
 0x46a   : >> { %v3819_v36 = vmul.f32 %v13271_v22, %v16658_v38  ;;  %v7451_v60 = vpack.c.bf16 %v7447_v0, %v7446_v31  ;;  %v3820_v45 = vmul.f32 %v13285_v41, %v16658_v38  ;;  %v3821_v50 = vmul.f32 %v13288_v21, %v16658_v38 }
 0x46b   : >> { %v3822_v17 = vmul.f32 %v13297_v19, %v16658_v38  ;;  %v3835_v37 = vrot.slane %v3811_v55, 2  ;;  %v3836_v2 = vrot.slane %v3812_v34, 2  ;;  %v3838_v44 = vrot.slane %v3813_v3, 2 }
 0x46c   : >> { %v3840_v61 = vrot.slane %v3814_v43, 2  ;;  %7542 = vmatmul.bf16.gmra.mxu3 %v7451_v60  ;;  %v3841_v25 = vrot.slane %v3815_v32, 2  ;;  %v3843_v23 = vrot.slane %v3816_v46, 2  ;;  %v3845_v20 = vrot.slane %v3817_v16, 2  ;;  %v16659_v60 = vld [vmem:[#allocation25_spill] sm:$0xff] }
 0x46d   : >> { %v3846_v13 = vrot.slane %v3818_v42, 2  ;;  %v3837_v49 = vsel %vm718_vm1, %v3835_v37, %v3836_v2  ;;  %v3839_v15 = vsel %vm718_vm1, %v3836_v2, %v3838_v44  ;;  %v3848_v11 = vrot.slane %v3819_v36, 2 }
 0x46e   : >> { %v3850_v10 = vrot.slane %v3820_v45, 2  ;;  %v3842_v52 = vsel %vm718_vm1, %v3840_v61, %v3841_v25  ;;  %v3844_v31 = vsel %vm718_vm1, %v3841_v25, %v3843_v23  ;;  %v3851_v6 = vrot.slane %v3821_v50, 2 }
 0x46f   : >> { %v3847_v30 = vsel %vm718_vm1, %v3845_v20, %v3846_v13  ;;  %v3849_v27 = vsel %vm718_vm1, %v3846_v13, %v3848_v11  ;;  %v3853_v59 = vrot.slane %v3822_v17, 2  ;;  %v3867_v8 = vadd.f32 %v3837_v49, %v3799_v35  ;;  %v13427_v20 = vld [vmem:[%s13202_s26 + $0x98] sm:$0xff] }
 0x470   : >> { %v3868_v53 = vadd.f32 %v3839_v15, %v3800_v57  ;;  %v3852_v48 = vsel %vm718_vm1, %v3850_v10, %v3851_v6  ;;  %v3869_v7 = vadd.f32 %v3838_v44, %v3801_v63  ;;  %v3870_v55 = vadd.f32 %v3842_v52, %v3802_v9  ;;  %v13432_v10 = vld [vmem:[%s13202_s26 + $0xb8] sm:$0xff] }
 0x471   : >> { %v3871_v34 = vadd.f32 %v3844_v31, %v3803_v28  ;;  %v3854_v0 = vsel %vm718_vm1, %v3851_v6, %v3853_v59  ;;  %v3872_v3 = vadd.f32 %v3843_v23, %v3804_v12  ;;  %v3873_v43 = vadd.f32 %v3847_v30, %v3805_v26 }
 0x472   : >> { %v3874_v32 = vadd.f32 %v3849_v27, %v3806_v58  ;;  %v3875_v46 = vadd.f32 %v3848_v11, %v3807_v51  ;;  %v3876_v16 = vadd.f32 %v3852_v48, %v3808_v33  ;;  %v3877_v42 = vadd.f32 %v3854_v0, %v3809_v18  ;;  %v13435_v27 = vld [vmem:[%s13202_s26 + $0xd8] sm:$0xff] }
 0x473   : >> { %v3878_v36 = vadd.f32 %v3853_v59, %v3810_v47  ;;  %v16660_v45 = vmov %v16659_v60  ;;  %v3879_v50 = vmul.f32 %v13213_v56, %v16659_v60  ;;  %v13438_v59 = vld [vmem:[%s13202_s26 + $0xf8] sm:$0xff]  ;;  %v16661_v60 = vld [vmem:[#allocation26_spill] sm:$0xff] }
 0x474   : >> { %v3880_v35 = vmul.f32 %v13216_v1, %v16660_v45  ;;  %v3881_v57 = vmul.f32 %v13228_v39, %v16660_v45  ;;  %v3882_v63 = vmul.f32 %v13254_v54, %v16660_v45  ;;  %v3883_v9 = vmul.f32 %v13264_v4, %v16660_v45 }
 0x475   : >> { %v3884_v28 = vmul.f32 %v13271_v22, %v16660_v45  ;;  %v3885_v12 = vmul.f32 %v13288_v21, %v16660_v45  ;;  %v3886_v26 = vmul.f32 %v13297_v19, %v16660_v45  ;;  %v3895_v58 = vrot.slane %v3879_v50, 3 }
 0x476   : >> { %v3896_v51 = vrot.slane %v3880_v35, 3  ;;  %v3898_v33 = vrot.slane %v3881_v57, 3  ;;  %v3899_v18 = vrot.slane %v3882_v63, 3  ;;  %v3901_v47 = vrot.slane %v3883_v9, 3 }
 0x477   : >> { %v3902_v17 = vrot.slane %v3884_v28, 3  ;;  %v3904_v37 = vrot.slane %v3885_v12, 3  ;;  %v3905_v2 = vrot.slane %v3886_v26, 3  ;;  %v3919_v25 = vadd.f32 %v3895_v58, %v3867_v8 }
 0x478   : >> { %v3897_v44 = vsel %vm780_vm3, %v3895_v58, %v3896_v51  ;;  %v3900_v61 = vsel %vm780_vm3, %v3898_v33, %v3899_v18  ;;  %v3921_v23 = vadd.f32 %v3896_v51, %v3869_v7  ;;  %v3922_v11 = vadd.f32 %v3898_v33, %v3870_v55 }
 0x479   : >> { %v3903_v13 = vsel %vm780_vm3, %v3901_v47, %v3902_v17  ;;  %v3906_v49 = vsel %vm780_vm3, %v3904_v37, %v3905_v2  ;;  %v3920_v15 = vadd.f32 %v3897_v44, %v3868_v53  ;;  %v3923_v52 = vadd.f32 %v3900_v61, %v3871_v34 }
 0x47a   : >> { %v3924_v31 = vadd.f32 %v3899_v18, %v3872_v3  ;;  %v3925_v30 = vadd.f32 %v3901_v47, %v3873_v43  ;;  %v3926_v6 = vadd.f32 %v3903_v13, %v3874_v32  ;;  %v3927_v8 = vadd.f32 %v3902_v17, %v3875_v46 }
 0x47b   : >> { %v3928_v48 = vadd.f32 %v3904_v37, %v3876_v16  ;;  %v3929_v7 = vadd.f32 %v3906_v49, %v3877_v42  ;;  %v3930_v0 = vadd.f32 %v3905_v2, %v3878_v36  ;;  %v16662_v50 = vmov %v16661_v60 }
 0x47c   : >> { %v3931_v35 = vmul.f32 %v13213_v56, %v16661_v60  ;;  %v3932_v53 = vmul.f32 %v13216_v1, %v16662_v50  ;;  %v3933_v55 = vmul.f32 %v13427_v20, %v16662_v50  ;;  %v3934_v34 = vmul.f32 %v13228_v39, %v16662_v50 }
 0x47d   : >> { %v3935_v3 = vmul.f32 %v13254_v54, %v16662_v50  ;;  %v3936_v43 = vmul.f32 %v13432_v10, %v16662_v50  ;;  %v3937_v32 = vmul.f32 %v13264_v4, %v16662_v50  ;;  %v3938_v46 = vmul.f32 %v13271_v22, %v16662_v50 }
 0x47e   : >> { %v3939_v16 = vmul.f32 %v13435_v27, %v16662_v50  ;;  %v3940_v42 = vmul.f32 %v13288_v21, %v16662_v50  ;;  %v3941_v36 = vmul.f32 %v13297_v19, %v16662_v50  ;;  %v3942_v57 = vmul.f32 %v13438_v59, %v16662_v50 }
 0x47f   : >> { %v3955_v63 = vrot.slane %v3931_v35, 4  ;;  %v3956_v9 = vrot.slane %v3932_v53, 4  ;;  %v3958_v28 = vrot.slane %v3933_v55, 4  ;;  %v3960_v12 = vrot.slane %v3934_v34, 4 }
 0x480   : >> { %v3961_v26 = vrot.slane %v3935_v3, 4  ;;  %v3963_v58 = vrot.slane %v3936_v43, 4  ;;  %v3965_v51 = vrot.slane %v3937_v32, 4  ;;  %v3966_v33 = vrot.slane %v3938_v46, 4 }
 0x481   : >> { %v3957_v18 = vsel %vm842_vm4, %v3955_v63, %v3956_v9  ;;  %v3959_v47 = vsel %vm842_vm4, %v3956_v9, %v3958_v28  ;;  %v3968_v17 = vrot.slane %v3939_v16, 4  ;;  %v3970_v37 = vrot.slane %v3940_v42, 4 }
 0x482   : >> { %v3962_v2 = vsel %vm842_vm4, %v3960_v12, %v3961_v26  ;;  %v3964_v44 = vsel %vm842_vm4, %v3961_v26, %v3963_v58  ;;  %v3967_v61 = vsel %vm842_vm4, %v3965_v51, %v3966_v33  ;;  %v3971_v13 = vrot.slane %v3941_v36, 4  ;;  %v16663_v36 = vld [vmem:[#allocation96_spill] sm:$0xff] }
 0x483   : >> { %v3969_v49 = vsel %vm842_vm4, %v3966_v33, %v3968_v17  ;;  %v3973_v60 = vrot.slane %v3942_v57, 4  ;;  %v3987_v35 = vadd.f32 %v3955_v63, %v3919_v25  ;;  %v3988_v53 = vadd.f32 %v3957_v18, %v3920_v15 }
 0x484   : >> { %v3972_v55 = vsel %vm842_vm4, %v3970_v37, %v3971_v13  ;;  %v3989_v34 = vadd.f32 %v3959_v47, %v3921_v23  ;;  %v3990_v3 = vadd.f32 %v3960_v12, %v3922_v11  ;;  %v3991_v43 = vadd.f32 %v3962_v2, %v3923_v52 }
 0x485   : >> { %v3974_v32 = vsel %vm842_vm4, %v3971_v13, %v3973_v60  ;;  %v3992_v46 = vadd.f32 %v3964_v44, %v3924_v31  ;;  %v3993_v16 = vadd.f32 %v3965_v51, %v3925_v30  ;;  %v3994_v42 = vadd.f32 %v3967_v61, %v3926_v6 }
 0x486   : >> { %v3995_v9 = vadd.f32 %v3969_v49, %v3927_v8  ;;  %v3996_v28 = vadd.f32 %v3970_v37, %v3928_v48  ;;  %v3997_v26 = vadd.f32 %v3972_v55, %v3929_v7  ;;  %v3998_v58 = vadd.f32 %v3974_v32, %v3930_v0 }
 0x487   : >> { %v3999_v33 = vmul.f32 %v13213_v56, %v16663_v36  ;;  %v4000_v25 = vmul.f32 %v13216_v1, %v16663_v36  ;;  %v4001_v23 = vmul.f32 %v13427_v20, %v16663_v36  ;;  %v4002_v15 = vmul.f32 %v13228_v39, %v16663_v36 }
 0x488   : >> { %v4003_v11 = vmul.f32 %v13254_v54, %v16663_v36  ;;  %v4004_v52 = vmul.f32 %v13432_v10, %v16663_v36  ;;  %v4005_v31 = vmul.f32 %v13264_v4, %v16663_v36  ;;  %v4006_v30 = vmul.f32 %v13271_v22, %v16663_v36 }
 0x489   : >> { %v4007_v6 = vmul.f32 %v13435_v27, %v16663_v36  ;;  %v4008_v8 = vmul.f32 %v13288_v21, %v16663_v36  ;;  %v4009_v48 = vmul.f32 %v13297_v19, %v16663_v36  ;;  %v4010_v7 = vmul.f32 %v13438_v59, %v16663_v36 }
 0x48a   : >> { %v4023_v0 = vrot.slane %v3999_v33, 5  ;;  %v4024_v57 = vrot.slane %v4000_v25, 5  ;;  %v4026_v63 = vrot.slane %v4001_v23, 5  ;;  %v4028_v12 = vrot.slane %v4002_v15, 5 }
 0x48b   : >> { %v4029_v51 = vrot.slane %v4003_v11, 5  ;;  %v4031_v18 = vrot.slane %v4004_v52, 5  ;;  %v4033_v47 = vrot.slane %v4005_v31, 5  ;;  %v4034_v17 = vrot.slane %v4006_v30, 5 }
 0x48c   : >> { %v4025_v37 = vsel %vm912_vm5, %v4023_v0, %v4024_v57  ;;  %v4027_v2 = vsel %vm912_vm5, %v4024_v57, %v4026_v63  ;;  %v4036_v44 = vrot.slane %v4007_v6, 5  ;;  %v4038_v61 = vrot.slane %v4008_v8, 5 }
 0x48d   : >> { %v4030_v13 = vsel %vm912_vm5, %v4028_v12, %v4029_v51  ;;  %v4032_v49 = vsel %vm912_vm5, %v4029_v51, %v4031_v18  ;;  %v4035_v60 = vsel %vm912_vm5, %v4033_v47, %v4034_v17  ;;  %v4039_v55 = vrot.slane %v4009_v48, 5  ;;  %v16664_v48 = vld [vmem:[#allocation97_spill] sm:$0xff] }
 0x48e   : >> { %v4037_v32 = vsel %vm912_vm5, %v4034_v17, %v4036_v44  ;;  %v4041_v33 = vrot.slane %v4010_v7, 5  ;;  %v4055_v25 = vadd.f32 %v4023_v0, %v3987_v35  ;;  %v4056_v23 = vadd.f32 %v4025_v37, %v3988_v53 }
 0x48f   : >> { %v4040_v15 = vsel %vm912_vm5, %v4038_v61, %v4039_v55  ;;  %v4057_v11 = vadd.f32 %v4027_v2, %v3989_v34  ;;  %v4058_v52 = vadd.f32 %v4028_v12, %v3990_v3  ;;  %v4059_v31 = vadd.f32 %v4030_v13, %v3991_v43 }
 0x490   : >> { %v4042_v30 = vsel %vm912_vm5, %v4039_v55, %v4041_v33  ;;  %v4060_v6 = vadd.f32 %v4032_v49, %v3992_v46  ;;  %v4061_v8 = vadd.f32 %v4033_v47, %v3993_v16  ;;  %v4062_v57 = vadd.f32 %v4035_v60, %v3994_v42 }
 0x491   : >> { %v4063_v63 = vadd.f32 %v4037_v32, %v3995_v9  ;;  %v4064_v51 = vadd.f32 %v4038_v61, %v3996_v28  ;;  %v4065_v18 = vadd.f32 %v4040_v15, %v3997_v26  ;;  %v4066_v14 = vadd.f32 %v4042_v30, %v3998_v58 }
 0x492   : >> { %v4067_v17 = vmul.f32 %v13213_v56, %v16664_v48  ;;  %v4068_v35 = vmul.f32 %v13216_v1, %v16664_v48  ;;  %v4069_v53 = vmul.f32 %v13427_v20, %v16664_v48  ;;  %v4070_v34 = vmul.f32 %v13228_v39, %v16664_v48 }
 0x493   : >> { %v4071_v3 = vmul.f32 %v13254_v54, %v16664_v48  ;;  %v4072_v43 = vmul.f32 %v13432_v10, %v16664_v48  ;;  %v4073_v46 = vmul.f32 %v13264_v4, %v16664_v48  ;;  %v4074_v56 = vmul.f32 %v13271_v22, %v16664_v48 }
 0x494   : >> { %v4075_v1 = vmul.f32 %v13435_v27, %v16664_v48  ;;  %v4076_v20 = vmul.f32 %v13288_v21, %v16664_v48  ;;  %v4077_v16 = vmul.f32 %v13297_v19, %v16664_v48  ;;  %v4078_v42 = vmul.f32 %v13438_v59, %v16664_v48 }
 0x495   : >> { %v4091_v9 = vrot.slane %v4067_v17, 6  ;;  %v4092_v28 = vrot.slane %v4068_v35, 6  ;;  %v4094_v26 = vrot.slane %v4069_v53, 6  ;;  %v4096_v58 = vrot.slane %v4070_v34, 6 }
 0x496   : >> { %v4097_v7 = vrot.slane %v4071_v3, 6  ;;  %v4099_v0 = vrot.slane %v4072_v43, 6  ;;  %v4101_v12 = vrot.slane %v4073_v46, 6  ;;  %v4102_v47 = vrot.slane %v4074_v56, 6 }
 0x497   : >> { %v4093_v37 = vsel %vm982_vm6, %v4091_v9, %v4092_v28  ;;  %v4095_v2 = vsel %vm982_vm6, %v4092_v28, %v4094_v26  ;;  %v4104_v44 = vrot.slane %v4075_v1, 6  ;;  %v4106_v61 = vrot.slane %v4076_v20, 6  ;;  %v13537_v26 = vld [vmem:[%s13202_s26 + $0x100] sm:$0xff] }
 0x498   : >> { %v4098_v13 = vsel %vm982_vm6, %v4096_v58, %v4097_v7  ;;  %v4100_v49 = vsel %vm982_vm6, %v4097_v7, %v4099_v0  ;;  %v4103_v60 = vsel %vm982_vm6, %v4101_v12, %v4102_v47  ;;  %v4107_v55 = vrot.slane %v4077_v16, 6 }
 0x499   : >> { %v4105_v32 = vsel %vm982_vm6, %v4102_v47, %v4104_v44  ;;  %v4109_v33 = vrot.slane %v4078_v42, 6  ;;  %v4123_v15 = vadd.f32 %v4091_v9, %v4055_v25  ;;  %v4124_v30 = vadd.f32 %v4093_v37, %v4056_v23  ;;  %v13540_v42 = vld [vmem:[%s13202_s26 + $0x108] sm:$0xff]  ;;  %v13543_v25 = vld [vmem:[%s13202_s26 + $0x110] sm:$0xff] }
 0x49a   : >> { %v4108_v17 = vsel %vm982_vm6, %v4106_v61, %v4107_v55  ;;  %v4125_v35 = vadd.f32 %v4095_v2, %v4057_v11  ;;  %v4126_v53 = vadd.f32 %v4096_v58, %v4058_v52  ;;  %v4127_v34 = vadd.f32 %v4098_v13, %v4059_v31  ;;  %v16665_v23 = vld [vmem:[#allocation27_spill] sm:$0xff] }
 0x49b   : >> { %v4110_v3 = vsel %vm982_vm6, %v4107_v55, %v4109_v33  ;;  %v4128_v43 = vadd.f32 %v4100_v49, %v4060_v6  ;;  %v4129_v46 = vadd.f32 %v4101_v12, %v4061_v8  ;;  %v4130_v56 = vadd.f32 %v4103_v60, %v4062_v57 }
 0x49c   : >> { %v4131_v1 = vadd.f32 %v4105_v32, %v4063_v63  ;;  %v4132_v20 = vadd.f32 %v4106_v61, %v4064_v51  ;;  %v4133_v16 = vadd.f32 %v4108_v17, %v4065_v18  ;;  %v4134_v28 = vadd.f32 %v4110_v3, %v4066_v14  ;;  %v16666_v32 = vld [vmem:[#allocation28_spill] sm:$0xff] }
 0x49d   : >> { %v4154_v11 = vmul.f32 %v13225_v5, %v16665_v23  ;;  %v4155_v52 = vmul.f32 %v13228_v39, %v16665_v23  ;;  %v4156_v31 = vmul.f32 %v13254_v54, %v16665_v23  ;;  %v4157_v6 = vmul.f32 %v13261_v24, %v16665_v23 }
 0x49e   : >> { %v4158_v14 = vmul.f32 %v13264_v4, %v16665_v23  ;;  %v4159_v8 = vmul.f32 %v13271_v22, %v16665_v23  ;;  %v4160_v57 = vmul.f32 %v13285_v41, %v16665_v23  ;;  %v4161_v63 = vmul.f32 %v13288_v21, %v16665_v23 }
 0x49f   : >> { %v4162_v51 = vmul.f32 %v13297_v19, %v16665_v23  ;;  %v4163_v18 = vmul.f32 %v13537_v26, %v16665_v23  ;;  %v4164_v9 = vmul.f32 %v13540_v42, %v16665_v23  ;;  %v4165_v58 = vmul.f32 %v13543_v25, %v16665_v23 }
 0x4a0   : >> { %v4166_v7 = vadd.f32 %v4154_v11, %v4123_v15  ;;  %v4167_v0 = vadd.f32 %v4155_v52, %v4124_v30  ;;  %v4168_v12 = vadd.f32 %v4156_v31, %v4125_v35  ;;  %v4169_v47 = vadd.f32 %v4157_v6, %v4126_v53 }
 0x4a1   : >> { %v4170_v37 = vadd.f32 %v4158_v14, %v4127_v34  ;;  %v4171_v2 = vadd.f32 %v4159_v8, %v4128_v43  ;;  %v4172_v44 = vadd.f32 %v4160_v57, %v4129_v46  ;;  %v4173_v61 = vadd.f32 %v4161_v63, %v4130_v56 }
 0x4a2   : >> { %v4174_v13 = vadd.f32 %v4162_v51, %v4131_v1  ;;  %v4175_v49 = vadd.f32 %v4163_v18, %v4132_v20  ;;  %v4176_v60 = vadd.f32 %v4164_v9, %v4133_v16  ;;  %v4177_v55 = vadd.f32 %v4165_v58, %v4134_v28 }
 0x4a3   : >> { %v4178_v33 = vmul.f32 %v13225_v5, %v16666_v32  ;;  %v4179_v17 = vmul.f32 %v13228_v39, %v16666_v32  ;;  %v4180_v15 = vmul.f32 %v13254_v54, %v16666_v32  ;;  %v4181_v30 = vmul.f32 %v13261_v24, %v16666_v32 }
 0x4a4   : >> { %v4182_v35 = vmul.f32 %v13264_v4, %v16666_v32  ;;  %v4183_v53 = vmul.f32 %v13271_v22, %v16666_v32  ;;  %v4184_v34 = vmul.f32 %v13285_v41, %v16666_v32  ;;  %v4185_v3 = vmul.f32 %v13288_v21, %v16666_v32 }
 0x4a5   : >> { %v4186_v43 = vmul.f32 %v13297_v19, %v16666_v32  ;;  %v4187_v46 = vmul.f32 %v13537_v26, %v16666_v32  ;;  %v4188_v56 = vmul.f32 %v13540_v42, %v16666_v32  ;;  %v4189_v1 = vmul.f32 %v13543_v25, %v16666_v32 }
 0x4a6   : >> { %v4202_v20 = vrot.slane %v4178_v33, 1  ;;  %v4203_v16 = vrot.slane %v4179_v17, 1  ;;  %v4205_v28 = vrot.slane %v4180_v15, 1  ;;  %v4207_v23 = vrot.slane %v4181_v30, 1 }
 0x4a7   : >> { %v4208_v11 = vrot.slane %v4182_v35, 1  ;;  %v4210_v52 = vrot.slane %v4183_v53, 1  ;;  %v4212_v31 = vrot.slane %v4184_v34, 1  ;;  %v4213_v6 = vrot.slane %v4185_v3, 1 }
 0x4a8   : >> { %v4204_v14 = vsel %vm648_vm0, %v4202_v20, %v4203_v16  ;;  %v4206_v8 = vsel %vm648_vm0, %v4203_v16, %v4205_v28  ;;  %v4215_v57 = vrot.slane %v4186_v43, 1  ;;  %v4217_v63 = vrot.slane %v4187_v46, 1 }
 0x4a9   : >> { %v4209_v51 = vsel %vm648_vm0, %v4207_v23, %v4208_v11  ;;  %v4211_v18 = vsel %vm648_vm0, %v4208_v11, %v4210_v52  ;;  %v4214_v9 = vsel %vm648_vm0, %v4212_v31, %v4213_v6  ;;  %v4218_v58 = vrot.slane %v4188_v56, 1  ;;  %v16667_v56 = vld [vmem:[#allocation29_spill] sm:$0xff] }
 0x4aa   : >> { %v4216_v32 = vsel %vm648_vm0, %v4213_v6, %v4215_v57  ;;  %v4220_v33 = vrot.slane %v4189_v1, 1  ;;  %v4234_v17 = vadd.f32 %v4204_v14, %v4166_v7  ;;  %v4235_v15 = vadd.f32 %v4206_v8, %v4167_v0 }
 0x4ab   : >> { %v4219_v30 = vsel %vm648_vm0, %v4217_v63, %v4218_v58  ;;  %v4236_v35 = vadd.f32 %v4205_v28, %v4168_v12  ;;  %v4237_v53 = vadd.f32 %v4209_v51, %v4169_v47  ;;  %v4238_v34 = vadd.f32 %v4211_v18, %v4170_v37 }
 0x4ac   : >> { %v4221_v3 = vsel %vm648_vm0, %v4218_v58, %v4220_v33  ;;  %v4239_v43 = vadd.f32 %v4210_v52, %v4171_v2  ;;  %v4240_v46 = vadd.f32 %v4214_v9, %v4172_v44  ;;  %v4241_v20 = vadd.f32 %v4216_v32, %v4173_v61 }
 0x4ad   : >> { %v4242_v16 = vadd.f32 %v4215_v57, %v4174_v13  ;;  %v4243_v23 = vadd.f32 %v4219_v30, %v4175_v49  ;;  %v4244_v11 = vadd.f32 %v4221_v3, %v4176_v60  ;;  %v4245_v31 = vadd.f32 %v4220_v33, %v4177_v55 }
 0x4ae   : >> { %v4246_v6 = vmul.f32 %v13225_v5, %v16667_v56  ;;  %v4247_v7 = vmul.f32 %v13228_v39, %v16667_v56  ;;  %v4248_v0 = vmul.f32 %v13254_v54, %v16667_v56  ;;  %v4249_v12 = vmul.f32 %v13261_v24, %v16667_v56 }
 0x4af   : >> { %v4250_v47 = vmul.f32 %v13264_v4, %v16667_v56  ;;  %v4251_v37 = vmul.f32 %v13271_v22, %v16667_v56  ;;  %v4252_v2 = vmul.f32 %v13285_v41, %v16667_v56  ;;  %v4253_v5 = vmul.f32 %v13288_v21, %v16667_v56 }
 0x4b0   : >> { %v4254_v44 = vmul.f32 %v13297_v19, %v16667_v56  ;;  %v4255_v61 = vmul.f32 %v13537_v26, %v16667_v56  ;;  %v4256_v24 = vmul.f32 %v13540_v42, %v16667_v56  ;;  %v4257_v13 = vmul.f32 %v13543_v25, %v16667_v56 }
 0x4b1   : >> { %v4270_v49 = vrot.slane %v4246_v6, 2  ;;  %v4271_v60 = vrot.slane %v4247_v7, 2  ;;  %v4273_v55 = vrot.slane %v4248_v0, 2  ;;  %v4275_v1 = vrot.slane %v4249_v12, 2 }
 0x4b2   : >> { %v4276_v41 = vrot.slane %v4250_v47, 2  ;;  %v4278_v28 = vrot.slane %v4251_v37, 2  ;;  %v4280_v52 = vrot.slane %v4252_v2, 2  ;;  %v4281_v14 = vrot.slane %v4253_v5, 2 }
 0x4b3   : >> { %v4272_v8 = vsel %vm718_vm1, %v4270_v49, %v4271_v60  ;;  %v4274_v57 = vsel %vm718_vm1, %v4271_v60, %v4273_v55  ;;  %v4283_v63 = vrot.slane %v4254_v44, 2  ;;  %v4285_v51 = vrot.slane %v4255_v61, 2 }
 0x4b4   : >> { %v4277_v18 = vsel %vm718_vm1, %v4275_v1, %v4276_v41  ;;  %v4279_v9 = vsel %vm718_vm1, %v4276_v41, %v4278_v28  ;;  %v4282_v58 = vsel %vm718_vm1, %v4280_v52, %v4281_v14  ;;  %v4286_v32 = vrot.slane %v4256_v24, 2  ;;  %v16668_v24 = vld [vmem:[#allocation33_spill] sm:$0xff] }
 0x4b5   : >> { %v4284_v33 = vsel %vm718_vm1, %v4281_v14, %v4283_v63  ;;  %v4288_v30 = vrot.slane %v4257_v13, 2  ;;  %v4302_v3 = vadd.f32 %v4272_v8, %v4234_v17  ;;  %v4303_v6 = vadd.f32 %v4274_v57, %v4235_v15 }
 0x4b6   : >> { %v4287_v7 = vsel %vm718_vm1, %v4285_v51, %v4286_v32  ;;  %v4304_v0 = vadd.f32 %v4273_v55, %v4236_v35  ;;  %v4305_v12 = vadd.f32 %v4277_v18, %v4237_v53  ;;  %v4306_v47 = vadd.f32 %v4279_v9, %v4238_v34 }
 0x4b7   : >> { %v4289_v37 = vsel %vm718_vm1, %v4286_v32, %v4288_v30  ;;  %v4307_v2 = vadd.f32 %v4278_v28, %v4239_v43  ;;  %v4308_v5 = vadd.f32 %v4282_v58, %v4240_v46  ;;  %v4309_v44 = vadd.f32 %v4284_v33, %v4241_v20 }
 0x4b8   : >> { %v4310_v61 = vadd.f32 %v4283_v63, %v4242_v16  ;;  %v4311_v49 = vadd.f32 %v4287_v7, %v4243_v23  ;;  %v4312_v60 = vadd.f32 %v4289_v37, %v4244_v11  ;;  %v4313_v1 = vadd.f32 %v4288_v30, %v4245_v31  ;;  %v13654_v7 = vld [vmem:[%s13202_s26 + $0x118] sm:$0xff] }
 0x4b9   : >> { %v4314_v41 = vmul.f32 %v13228_v39, %v16668_v24  ;;  %v4315_v17 = vmul.f32 %v13254_v54, %v16668_v24  ;;  %v4316_v15 = vmul.f32 %v13264_v4, %v16668_v24  ;;  %v4317_v35 = vmul.f32 %v13271_v22, %v16668_v24 }
 0x4ba   : >> { %v4318_v53 = vmul.f32 %v13288_v21, %v16668_v24  ;;  %v4319_v34 = vmul.f32 %v13297_v19, %v16668_v24  ;;  %v4320_v43 = vmul.f32 %v13540_v42, %v16668_v24  ;;  %v4321_v46 = vmul.f32 %v13543_v25, %v16668_v24 }
 0x4bb   : >> { %v4330_v20 = vrot.slane %v4314_v41, 3  ;;  %v4331_v16 = vrot.slane %v4315_v17, 3  ;;  %v4333_v23 = vrot.slane %v4316_v15, 3  ;;  %v4334_v11 = vrot.slane %v4317_v35, 3  ;;  %v16669_v15 = vld [vmem:[#allocation35_spill] sm:$0xff] }
 0x4bc   : >> { %v4336_v31 = vrot.slane %v4318_v53, 3  ;;  %v4337_v13 = vrot.slane %v4319_v34, 3  ;;  %v4339_v55 = vrot.slane %v4320_v43, 3  ;;  %v4340_v28 = vrot.slane %v4321_v46, 3 }
 0x4bd   : >> { %v4332_v52 = vsel %vm780_vm3, %v4330_v20, %v4331_v16  ;;  %v4335_v14 = vsel %vm780_vm3, %v4333_v23, %v4334_v11  ;;  %v4354_v8 = vadd.f32 %v4330_v20, %v4302_v3  ;;  %v4356_v57 = vadd.f32 %v4331_v16, %v4304_v0 }
 0x4be   : >> { %v4338_v63 = vsel %vm780_vm3, %v4336_v31, %v4337_v13  ;;  %v4341_v51 = vsel %vm780_vm3, %v4339_v55, %v4340_v28  ;;  %v4355_v18 = vadd.f32 %v4332_v52, %v4303_v6  ;;  %v4357_v9 = vadd.f32 %v4333_v23, %v4305_v12 }
 0x4bf   : >> { %v4358_v58 = vadd.f32 %v4335_v14, %v4306_v47  ;;  %v4359_v32 = vadd.f32 %v4334_v11, %v4307_v2  ;;  %v4360_v33 = vadd.f32 %v4336_v31, %v4308_v5  ;;  %v4361_v30 = vadd.f32 %v4338_v63, %v4309_v44 }
 0x4c0   : >> { %v4362_v37 = vadd.f32 %v4337_v13, %v4310_v61  ;;  %v4363_v24 = vadd.f32 %v4339_v55, %v4311_v49  ;;  %v4364_v41 = vadd.f32 %v4341_v51, %v4312_v60  ;;  %v4365_v17 = vadd.f32 %v4340_v28, %v4313_v1 }
 0x4c1   : >> { %v4366_v3 = vmul.f32 %v13228_v39, %v16669_v15  ;;  %v4367_v0 = vmul.f32 %v13254_v54, %v16669_v15  ;;  %v4368_v6 = vmul.f32 %v13432_v10, %v16669_v15  ;;  %v4369_v12 = vmul.f32 %v13264_v4, %v16669_v15 }
 0x4c2   : >> { %v4370_v47 = vmul.f32 %v13271_v22, %v16669_v15  ;;  %v4371_v2 = vmul.f32 %v13435_v27, %v16669_v15  ;;  %v4372_v5 = vmul.f32 %v13288_v21, %v16669_v15  ;;  %v4373_v39 = vmul.f32 %v13297_v19, %v16669_v15 }
 0x4c3   : >> { %v4374_v44 = vmul.f32 %v13438_v59, %v16669_v15  ;;  %v4375_v61 = vmul.f32 %v13540_v42, %v16669_v15  ;;  %v4376_v49 = vmul.f32 %v13543_v25, %v16669_v15  ;;  %v4377_v60 = vmul.f32 %v13654_v7, %v16669_v15 }
 0x4c4   : >> { %v4390_v1 = vrot.slane %v4366_v3, 4  ;;  %v4391_v35 = vrot.slane %v4367_v0, 4  ;;  %v4393_v53 = vrot.slane %v4368_v6, 4  ;;  %v4395_v34 = vrot.slane %v4369_v12, 4 }
 0x4c5   : >> { %v4396_v43 = vrot.slane %v4370_v47, 4  ;;  %v4398_v46 = vrot.slane %v4371_v2, 4  ;;  %v4400_v20 = vrot.slane %v4372_v5, 4  ;;  %v4401_v16 = vrot.slane %v4373_v39, 4 }
 0x4c6   : >> { %v4392_v23 = vsel %vm842_vm4, %v4390_v1, %v4391_v35  ;;  %v4394_v11 = vsel %vm842_vm4, %v4391_v35, %v4393_v53  ;;  %v4403_v31 = vrot.slane %v4374_v44, 4  ;;  %v4405_v13 = vrot.slane %v4375_v61, 4 }
 0x4c7   : >> { %v4397_v55 = vsel %vm842_vm4, %v4395_v34, %v4396_v43  ;;  %v4399_v28 = vsel %vm842_vm4, %v4396_v43, %v4398_v46  ;;  %v4402_v52 = vsel %vm842_vm4, %v4400_v20, %v4401_v16  ;;  %v4406_v14 = vrot.slane %v4376_v49, 4  ;;  %v9212_v43 = vld [vmem:[%s13202_s26 + $0xa8] sm:$0xff]  ;;  %v16670_v46 = vld [vmem:[#allocation100_spill] sm:$0xff] }
 0x4c8   : >> { %v4404_v63 = vsel %vm842_vm4, %v4401_v16, %v4403_v31  ;;  %v4408_v51 = vrot.slane %v4377_v60, 4  ;;  %v4422_v15 = vadd.f32 %v4390_v1, %v4354_v8  ;;  %v4423_v3 = vadd.f32 %v4392_v23, %v4355_v18 }
 0x4c9   : >> { %v4407_v0 = vsel %vm842_vm4, %v4405_v13, %v4406_v14  ;;  %v4424_v6 = vadd.f32 %v4394_v11, %v4356_v57  ;;  %v4425_v12 = vadd.f32 %v4395_v34, %v4357_v9  ;;  %v4426_v47 = vadd.f32 %v4397_v55, %v4358_v58 }
 0x4ca   : >> { %v4409_v2 = vsel %vm842_vm4, %v4406_v14, %v4408_v51  ;;  %v4427_v5 = vadd.f32 %v4399_v28, %v4359_v32  ;;  %v4428_v39 = vadd.f32 %v4400_v20, %v4360_v33  ;;  %v4429_v44 = vadd.f32 %v4402_v52, %v4361_v30 }
 0x4cb   : >> { %v4430_v61 = vadd.f32 %v4404_v63, %v4362_v37  ;;  %v4431_v35 = vadd.f32 %v4405_v13, %v4363_v24  ;;  %v4432_v53 = vadd.f32 %v4407_v0, %v4364_v41  ;;  %v4433_v49 = vadd.f32 %v4409_v2, %v4365_v17 }
 0x4cc   : >> { %v4434_v16 = vmul.f32 %v9212_v43, %v16670_v46  ;;  %v4435_v8 = vmul.f32 %v13254_v54, %v16670_v46  ;;  %v4436_v57 = vmul.f32 %v13432_v10, %v16670_v46  ;;  %v4437_v18 = vmul.f32 %v13264_v4, %v16670_v46 }
 0x4cd   : >> { %v4438_v9 = vmul.f32 %v13271_v22, %v16670_v46  ;;  %v4439_v58 = vmul.f32 %v13435_v27, %v16670_v46  ;;  %v4440_v32 = vmul.f32 %v13288_v21, %v16670_v46  ;;  %v4441_v33 = vmul.f32 %v13297_v19, %v16670_v46 }
 0x4ce   : >> { %v4442_v54 = vmul.f32 %v13438_v59, %v16670_v46  ;;  %v4443_v30 = vmul.f32 %v13540_v42, %v16670_v46  ;;  %v4444_v4 = vmul.f32 %v13543_v25, %v16670_v46  ;;  %v4445_v22 = vmul.f32 %v13654_v7, %v16670_v46 }
 0x4cf   : >> { %v4458_v37 = vrot.slane %v4434_v16, 5  ;;  %v4459_v24 = vrot.slane %v4435_v8, 5  ;;  %v4461_v41 = vrot.slane %v4436_v57, 5  ;;  %v4463_v17 = vrot.slane %v4437_v18, 5 }
 0x4d0   : >> { %v4464_v21 = vrot.slane %v4438_v9, 5  ;;  %v4466_v60 = vrot.slane %v4439_v58, 5  ;;  %v4468_v1 = vrot.slane %v4440_v32, 5  ;;  %v4469_v19 = vrot.slane %v4441_v33, 5 }
 0x4d1   : >> { %v4460_v34 = vsel %vm912_vm5, %v4458_v37, %v4459_v24  ;;  %v4462_v20 = vsel %vm912_vm5, %v4459_v24, %v4461_v41  ;;  %v4471_v23 = vrot.slane %v4442_v54, 5  ;;  %v4473_v11 = vrot.slane %v4443_v30, 5  ;;  %v9213_v30 = vld [vmem:[%s13202_s26 + $0xb0] sm:$0xff] }
 0x4d2   : >> { %v4465_v31 = vsel %vm912_vm5, %v4463_v17, %v4464_v21  ;;  %v4467_v13 = vsel %vm912_vm5, %v4464_v21, %v4466_v60  ;;  %v4470_v55 = vsel %vm912_vm5, %v4468_v1, %v4469_v19  ;;  %v4474_v28 = vrot.slane %v4444_v4, 5 }
 0x4d3   : >> { %v4472_v52 = vsel %vm912_vm5, %v4469_v19, %v4471_v23  ;;  %v4476_v14 = vrot.slane %v4445_v22, 5  ;;  %v4490_v63 = vadd.f32 %v4458_v37, %v4422_v15  ;;  %v4491_v51 = vadd.f32 %v4460_v34, %v4423_v3  ;;  %v16671_v15 = vld [vmem:[#allocation102_spill] sm:$0xff] }
 0x4d4   : >> { %v4475_v0 = vsel %vm912_vm5, %v4473_v11, %v4474_v28  ;;  %v4492_v2 = vadd.f32 %v4462_v20, %v4424_v6  ;;  %v4493_v46 = vadd.f32 %v4463_v17, %v4425_v12  ;;  %v4494_v16 = vadd.f32 %v4465_v31, %v4426_v47  ;;  %v9214_v12 = vld [vmem:[%s13202_s26 + $0xc8] sm:$0xff] }
 0x4d5   : >> { %v4477_v8 = vsel %vm912_vm5, %v4474_v28, %v4476_v14  ;;  %v4495_v57 = vadd.f32 %v4467_v13, %v4427_v5  ;;  %v4496_v18 = vadd.f32 %v4468_v1, %v4428_v39  ;;  %v4497_v9 = vadd.f32 %v4470_v55, %v4429_v44  ;;  %v9215_v5 = vld [vmem:[%s13202_s26 + $0xd0] sm:$0xff] }
 0x4d6   : >> { %v4498_v58 = vadd.f32 %v4472_v52, %v4430_v61  ;;  %v4499_v32 = vadd.f32 %v4473_v11, %v4431_v35  ;;  %v4500_v33 = vadd.f32 %v4475_v0, %v4432_v53  ;;  %v4501_v54 = vadd.f32 %v4477_v8, %v4433_v49  ;;  %v9216_v61 = vld [vmem:[%s13202_s26 + $0xe8] sm:$0xff]  ;;  %v9217_v53 = vld [vmem:[%s13202_s26 + $0xf0] sm:$0xff]  ;;  %v13750_v8 = vld [vmem:[%s13202_s26 + $0xc0] sm:$0xff] }
 0x4d7   : >> { %v4502_v3 = vmul.f32 %v9212_v43, %v16671_v15  ;;  %v4503_v4 = vmul.f32 %v9213_v30, %v16671_v15  ;;  %v4504_v6 = vmul.f32 %v13432_v10, %v16671_v15  ;;  %v4505_v47 = vmul.f32 %v9214_v12, %v16671_v15  ;;  %v13757_v12 = vld [vmem:[%s13202_s26 + $0xd0] sm:$0xff] }
 0x4d8   : >> { %v4506_v39 = vmul.f32 %v9215_v5, %v16671_v15  ;;  %v4507_v44 = vmul.f32 %v13435_v27, %v16671_v15  ;;  %v4508_v35 = vmul.f32 %v9216_v61, %v16671_v15  ;;  %v4509_v49 = vmul.f32 %v9217_v53, %v16671_v15  ;;  %v13767_v61 = vld [vmem:[%s13202_s26 + $0xf0] sm:$0xff]  ;;  %v13770_v53 = vld [vmem:[%s13202_s26 + $0x120] sm:$0xff] }
 0x4d9   : >> { %v4510_v43 = vmul.f32 %v13438_v59, %v16671_v15  ;;  %v4511_v10 = vmul.f32 %v13540_v42, %v16671_v15  ;;  %v4512_v22 = vmul.f32 %v13543_v25, %v16671_v15  ;;  %v4513_v37 = vmul.f32 %v13654_v7, %v16671_v15 }
 0x4da   : >> { %v4526_v24 = vrot.slane %v4502_v3, 6  ;;  %v4527_v27 = vrot.slane %v4503_v4, 6  ;;  %v4529_v41 = vrot.slane %v4504_v6, 6  ;;  %v4531_v17 = vrot.slane %v4505_v47, 6  ;;  %v13754_v6 = vld [vmem:[%s13202_s26 + $0xc8] sm:$0xff]  ;;  %v13760_v47 = vld [vmem:[%s13202_s26 + $0xe0] sm:$0xff] }
 0x4db   : >> { %v4532_v21 = vrot.slane %v4506_v39, 6  ;;  %v4534_v60 = vrot.slane %v4507_v44, 6  ;;  %v4536_v1 = vrot.slane %v4508_v35, 6  ;;  %v4537_v19 = vrot.slane %v4509_v49, 6  ;;  %v13764_v44 = vld [vmem:[%s13202_s26 + $0xe8] sm:$0xff] }
 0x4dc   : >> { %v4528_v59 = vsel %vm982_vm6, %v4526_v24, %v4527_v27  ;;  %v4530_v34 = vsel %vm982_vm6, %v4527_v27, %v4529_v41  ;;  %v4539_v20 = vrot.slane %v4510_v43, 6  ;;  %v4541_v23 = vrot.slane %v4511_v10, 6  ;;  %v13773_v49 = vld [vmem:[%s13202_s26 + $0x128] sm:$0xff]  ;;  %v13776_v43 = vld [vmem:[%s13202_s26 + $0x130] sm:$0xff] }
 0x4dd   : >> { %v4533_v11 = vsel %vm982_vm6, %v4531_v17, %v4532_v21  ;;  %v4535_v31 = vsel %vm982_vm6, %v4532_v21, %v4534_v60  ;;  %v4538_v13 = vsel %vm982_vm6, %v4536_v1, %v4537_v19  ;;  %v4542_v55 = vrot.slane %v4512_v22, 6  ;;  %v16672_v10 = vld [vmem:[#allocation36_spill] sm:$0xff] }
 0x4de   : >> { %v4540_v28 = vsel %vm982_vm6, %v4537_v19, %v4539_v20  ;;  %v4544_v52 = vrot.slane %v4513_v37, 6  ;;  %v4558_v14 = vadd.f32 %v4526_v24, %v4490_v63  ;;  %v4559_v0 = vadd.f32 %v4528_v59, %v4491_v51 }
 0x4df   : >> { %v4543_v15 = vsel %vm982_vm6, %v4541_v23, %v4542_v55  ;;  %v4560_v3 = vadd.f32 %v4530_v34, %v4492_v2  ;;  %v4561_v30 = vadd.f32 %v4531_v17, %v4493_v46  ;;  %v4562_v4 = vadd.f32 %v4533_v11, %v4494_v16 }
 0x4e0   : >> { %v4545_v5 = vsel %vm982_vm6, %v4542_v55, %v4544_v52  ;;  %v4563_v63 = vadd.f32 %v4535_v31, %v4495_v57  ;;  %v4564_v51 = vadd.f32 %v4536_v1, %v4496_v18  ;;  %v4565_v39 = vadd.f32 %v4538_v13, %v4497_v9 }
 0x4e1   : >> { %v4566_v2 = vadd.f32 %v4540_v28, %v4498_v58  ;;  %v4567_v46 = vadd.f32 %v4541_v23, %v4499_v32  ;;  %v4568_v35 = vadd.f32 %v4543_v15, %v4500_v33  ;;  %v4569_v16 = vadd.f32 %v4545_v5, %v4501_v54  ;;  %v16674_v28 = vld [vmem:[#allocation37_spill] sm:$0xff] }
 0x4e2   : >> { %v16673_v22 = vmov %v16672_v10  ;;  %v4589_v37 = vmul.f32 %v13750_v8, %v16672_v10  ;;  %v4613_v52 = vmul.f32 %v13750_v8, %v16674_v28  ;;  %v4614_v15 = vmul.f32 %v13754_v6, %v16674_v28 }
 0x4e3   : >> { %v4590_v57 = vmul.f32 %v13754_v6, %v16673_v22  ;;  %v4591_v18 = vmul.f32 %v13757_v12, %v16673_v22  ;;  %v4592_v9 = vmul.f32 %v13760_v47, %v16673_v22  ;;  %v4593_v58 = vmul.f32 %v13764_v44, %v16673_v22 }
 0x4e4   : >> { %v4594_v32 = vmul.f32 %v13767_v61, %v16673_v22  ;;  %v4595_v33 = vmul.f32 %v13537_v26, %v16673_v22  ;;  %v4596_v54 = vmul.f32 %v13540_v42, %v16673_v22  ;;  %v4597_v24 = vmul.f32 %v13543_v25, %v16673_v22 }
 0x4e5   : >> { %v4598_v27 = vmul.f32 %v13770_v53, %v16673_v22  ;;  %v4599_v41 = vmul.f32 %v13773_v49, %v16673_v22  ;;  %v4600_v17 = vmul.f32 %v13776_v43, %v16673_v22  ;;  %v4601_v21 = vadd.f32 %v4589_v37, %v4558_v14 }
 0x4e6   : >> { %v4602_v60 = vadd.f32 %v4590_v57, %v4559_v0  ;;  %v4603_v1 = vadd.f32 %v4591_v18, %v4560_v3  ;;  %v4604_v19 = vadd.f32 %v4592_v9, %v4561_v30  ;;  %v4605_v59 = vadd.f32 %v4593_v58, %v4562_v4 }
 0x4e7   : >> { %v4606_v34 = vadd.f32 %v4594_v32, %v4563_v63  ;;  %v4607_v20 = vadd.f32 %v4595_v33, %v4564_v51  ;;  %v4608_v23 = vadd.f32 %v4596_v54, %v4565_v39  ;;  %v4609_v11 = vadd.f32 %v4597_v24, %v4566_v2 }
 0x4e8   : >> { %v4610_v31 = vadd.f32 %v4598_v27, %v4567_v46  ;;  %v4611_v13 = vadd.f32 %v4599_v41, %v4568_v35  ;;  %v4612_v55 = vadd.f32 %v4600_v17, %v4569_v16  ;;  %v4615_v14 = vmul.f32 %v13757_v12, %v16674_v28 }
 0x4e9   : >> { %v4616_v0 = vmul.f32 %v13760_v47, %v16674_v28  ;;  %v4617_v3 = vmul.f32 %v13764_v44, %v16674_v28  ;;  %v4618_v30 = vmul.f32 %v13767_v61, %v16674_v28  ;;  %v4619_v4 = vmul.f32 %v13537_v26, %v16674_v28 }
 0x4ea   : >> { %v4620_v5 = vmul.f32 %v13540_v42, %v16674_v28  ;;  %v4621_v63 = vmul.f32 %v13543_v25, %v16674_v28  ;;  %v4622_v51 = vmul.f32 %v13770_v53, %v16674_v28  ;;  %v4623_v39 = vmul.f32 %v13773_v49, %v16674_v28 }
 0x4eb   : >> { %v4624_v2 = vmul.f32 %v13776_v43, %v16674_v28  ;;  %v4637_v46 = vrot.slane %v4613_v52, 1  ;;  %v4638_v35 = vrot.slane %v4614_v15, 1  ;;  %v4640_v16 = vrot.slane %v4615_v14, 1 }
 0x4ec   : >> { %v4642_v10 = vrot.slane %v4616_v0, 1  ;;  %v4643_v37 = vrot.slane %v4617_v3, 1  ;;  %v4645_v57 = vrot.slane %v4618_v30, 1  ;;  %v4647_v18 = vrot.slane %v4619_v4, 1 }
 0x4ed   : >> { %v4648_v9 = vrot.slane %v4620_v5, 1  ;;  %v4639_v58 = vsel %vm648_vm0, %v4637_v46, %v4638_v35  ;;  %v4641_v32 = vsel %vm648_vm0, %v4638_v35, %v4640_v16  ;;  %v4650_v33 = vrot.slane %v4621_v63, 1 }
 0x4ee   : >> { %v4652_v54 = vrot.slane %v4622_v51, 1  ;;  %v4644_v24 = vsel %vm648_vm0, %v4642_v10, %v4643_v37  ;;  %v4646_v27 = vsel %vm648_vm0, %v4643_v37, %v4645_v57  ;;  %v4653_v17 = vrot.slane %v4623_v39, 1  ;;  %v16675_v39 = vld [vmem:[#allocation38_spill] sm:$0xff] }
 0x4ef   : >> { %v4649_v41 = vsel %vm648_vm0, %v4647_v18, %v4648_v9  ;;  %v4651_v52 = vsel %vm648_vm0, %v4648_v9, %v4650_v33  ;;  %v4655_v15 = vrot.slane %v4624_v2, 1  ;;  %v4669_v14 = vadd.f32 %v4639_v58, %v4601_v21 }
 0x4f0   : >> { %v4670_v0 = vadd.f32 %v4641_v32, %v4602_v60  ;;  %v4654_v3 = vsel %vm648_vm0, %v4652_v54, %v4653_v17  ;;  %v4671_v30 = vadd.f32 %v4640_v16, %v4603_v1  ;;  %v4672_v4 = vadd.f32 %v4644_v24, %v4604_v19 }
 0x4f1   : >> { %v4673_v5 = vadd.f32 %v4646_v27, %v4605_v59  ;;  %v4656_v63 = vsel %vm648_vm0, %v4653_v17, %v4655_v15  ;;  %v4674_v51 = vadd.f32 %v4645_v57, %v4606_v34  ;;  %v4675_v46 = vadd.f32 %v4649_v41, %v4607_v20 }
 0x4f2   : >> { %v4676_v35 = vadd.f32 %v4651_v52, %v4608_v23  ;;  %v4677_v10 = vadd.f32 %v4650_v33, %v4609_v11  ;;  %v4678_v37 = vadd.f32 %v4654_v3, %v4610_v31  ;;  %v4679_v22 = vadd.f32 %v4656_v63, %v4611_v13 }
 0x4f3   : >> { %v4680_v18 = vadd.f32 %v4655_v15, %v4612_v55  ;;  %v4681_v9 = vmul.f32 %v13750_v8, %v16675_v39  ;;  %v4682_v21 = vmul.f32 %v13754_v6, %v16675_v39  ;;  %v4683_v60 = vmul.f32 %v13757_v12, %v16675_v39 }
 0x4f4   : >> { %v4684_v1 = vmul.f32 %v13760_v47, %v16675_v39  ;;  %v4685_v19 = vmul.f32 %v13764_v44, %v16675_v39  ;;  %v4686_v59 = vmul.f32 %v13767_v61, %v16675_v39  ;;  %v4687_v34 = vmul.f32 %v13537_v26, %v16675_v39 }
 0x4f5   : >> { %v4688_v8 = vmul.f32 %v13540_v42, %v16675_v39  ;;  %v4689_v20 = vmul.f32 %v13543_v25, %v16675_v39  ;;  %v4690_v23 = vmul.f32 %v13770_v53, %v16675_v39  ;;  %v4691_v11 = vmul.f32 %v13773_v49, %v16675_v39 }
 0x4f6   : >> { %v4692_v31 = vmul.f32 %v13776_v43, %v16675_v39  ;;  %v4705_v13 = vrot.slane %v4681_v9, 2  ;;  %v4706_v55 = vrot.slane %v4682_v21, 2  ;;  %v4708_v2 = vrot.slane %v4683_v60, 2 }
 0x4f7   : >> { %v4710_v16 = vrot.slane %v4684_v1, 2  ;;  %v4711_v26 = vrot.slane %v4685_v19, 2  ;;  %v4713_v57 = vrot.slane %v4686_v59, 2  ;;  %v4715_v58 = vrot.slane %v4687_v34, 2 }
 0x4f8   : >> { %v4716_v32 = vrot.slane %v4688_v8, 2  ;;  %v4707_v33 = vsel %vm718_vm1, %v4705_v13, %v4706_v55  ;;  %v4709_v54 = vsel %vm718_vm1, %v4706_v55, %v4708_v2  ;;  %v4718_v24 = vrot.slane %v4689_v20, 2 }
 0x4f9   : >> { %v4720_v27 = vrot.slane %v4690_v23, 2  ;;  %v4712_v41 = vsel %vm718_vm1, %v4710_v16, %v4711_v26  ;;  %v4714_v17 = vsel %vm718_vm1, %v4711_v26, %v4713_v57  ;;  %v4721_v15 = vrot.slane %v4691_v11, 2  ;;  %v16676_v11 = vld [vmem:[#allocation39_spill] sm:$0xff] }
 0x4fa   : >> { %v4717_v52 = vsel %vm718_vm1, %v4715_v58, %v4716_v32  ;;  %v4719_v3 = vsel %vm718_vm1, %v4716_v32, %v4718_v24  ;;  %v4723_v63 = vrot.slane %v4692_v31, 2  ;;  %v4737_v39 = vadd.f32 %v4707_v33, %v4669_v14 }
 0x4fb   : >> { %v4738_v9 = vadd.f32 %v4709_v54, %v4670_v0  ;;  %v4722_v21 = vsel %vm718_vm1, %v4720_v27, %v4721_v15  ;;  %v4739_v60 = vadd.f32 %v4708_v2, %v4671_v30  ;;  %v4740_v1 = vadd.f32 %v4712_v41, %v4672_v4 }
 0x4fc   : >> { %v4741_v19 = vadd.f32 %v4714_v17, %v4673_v5  ;;  %v4724_v59 = vsel %vm718_vm1, %v4721_v15, %v4723_v63  ;;  %v4742_v34 = vadd.f32 %v4713_v57, %v4674_v51  ;;  %v4743_v8 = vadd.f32 %v4717_v52, %v4675_v46  ;;  %v13890_v15 = vld [vmem:[%s13202_s26 + $0xf8] sm:$0xff] }
 0x4fd   : >> { %v4744_v20 = vadd.f32 %v4719_v3, %v4676_v35  ;;  %v4745_v23 = vadd.f32 %v4718_v24, %v4677_v10  ;;  %v4746_v13 = vadd.f32 %v4722_v21, %v4678_v37  ;;  %v4747_v55 = vadd.f32 %v4724_v59, %v4679_v22  ;;  %v13885_v24 = vld [vmem:[%s13202_s26 + $0xd8] sm:$0xff] }
 0x4fe   : >> { %v4748_v16 = vadd.f32 %v4723_v63, %v4680_v18  ;;  %v4749_v26 = vmul.f32 %v13754_v6, %v16676_v11  ;;  %v4750_v14 = vmul.f32 %v13757_v12, %v16676_v11  ;;  %v4751_v0 = vmul.f32 %v13764_v44, %v16676_v11 }
 0x4ff   : >> { %v4752_v30 = vmul.f32 %v13767_v61, %v16676_v11  ;;  %v4753_v4 = vmul.f32 %v13540_v42, %v16676_v11  ;;  %v4754_v22 = vmul.f32 %v13543_v25, %v16676_v11  ;;  %v4755_v5 = vmul.f32 %v13773_v49, %v16676_v11 }
 0x500   : >> { %v4756_v51 = vmul.f32 %v13776_v43, %v16676_v11  ;;  %v4765_v46 = vrot.slane %v4749_v26, 3  ;;  %v4766_v35 = vrot.slane %v4750_v14, 3  ;;  %v4768_v10 = vrot.slane %v4751_v0, 3  ;;  %v13893_v11 = vld [vmem:[%s13202_s26 + $0x138] sm:$0xff]  ;;  %v16677_v0 = vld [vmem:[#allocation42_spill] sm:$0xff] }
 0x501   : >> { %v4769_v37 = vrot.slane %v4752_v30, 3  ;;  %v4771_v18 = vrot.slane %v4753_v4, 3  ;;  %v4772_v31 = vrot.slane %v4754_v22, 3  ;;  %v4774_v2 = vrot.slane %v4755_v5, 3 }
 0x502   : >> { %v4775_v57 = vrot.slane %v4756_v51, 3  ;;  %v4767_v58 = vsel %vm780_vm3, %v4765_v46, %v4766_v35  ;;  %v4789_v33 = vadd.f32 %v4765_v46, %v4737_v39  ;;  %v4791_v54 = vadd.f32 %v4766_v35, %v4739_v60 }
 0x503   : >> { %v4770_v32 = vsel %vm780_vm3, %v4768_v10, %v4769_v37  ;;  %v4773_v27 = vsel %vm780_vm3, %v4771_v18, %v4772_v31  ;;  %v4790_v17 = vadd.f32 %v4767_v58, %v4738_v9  ;;  %v4792_v52 = vadd.f32 %v4768_v10, %v4740_v1 }
 0x504   : >> { %v4776_v41 = vsel %vm780_vm3, %v4774_v2, %v4775_v57  ;;  %v4793_v3 = vadd.f32 %v4770_v32, %v4741_v19  ;;  %v4794_v63 = vadd.f32 %v4769_v37, %v4742_v34  ;;  %v4795_v21 = vadd.f32 %v4771_v18, %v4743_v8 }
 0x505   : >> { %v4796_v59 = vadd.f32 %v4773_v27, %v4744_v20  ;;  %v4797_v26 = vadd.f32 %v4772_v31, %v4745_v23  ;;  %v4798_v14 = vadd.f32 %v4774_v2, %v4746_v13  ;;  %v4799_v39 = vadd.f32 %v4776_v41, %v4747_v55 }
 0x506   : >> { %v4800_v60 = vadd.f32 %v4775_v57, %v4748_v16  ;;  %v4801_v30 = vmul.f32 %v13754_v6, %v16677_v0  ;;  %v4802_v4 = vmul.f32 %v13757_v12, %v16677_v0  ;;  %v4803_v9 = vmul.f32 %v13885_v24, %v16677_v0 }
 0x507   : >> { %v4804_v1 = vmul.f32 %v13764_v44, %v16677_v0  ;;  %v4805_v19 = vmul.f32 %v13767_v61, %v16677_v0  ;;  %v4806_v34 = vmul.f32 %v13890_v15, %v16677_v0  ;;  %v4807_v8 = vmul.f32 %v13540_v42, %v16677_v0 }
 0x508   : >> { %v4808_v20 = vmul.f32 %v13543_v25, %v16677_v0  ;;  %v4809_v23 = vmul.f32 %v13654_v7, %v16677_v0  ;;  %v4810_v13 = vmul.f32 %v13773_v49, %v16677_v0  ;;  %v4811_v55 = vmul.f32 %v13776_v43, %v16677_v0 }
 0x509   : >> { %v4812_v16 = vmul.f32 %v13893_v11, %v16677_v0  ;;  %v4825_v22 = vrot.slane %v4801_v30, 4  ;;  %v4826_v5 = vrot.slane %v4802_v4, 4  ;;  %v4828_v51 = vrot.slane %v4803_v9, 4 }
 0x50a   : >> { %v4830_v46 = vrot.slane %v4804_v1, 4  ;;  %v4831_v35 = vrot.slane %v4805_v19, 4  ;;  %v4833_v10 = vrot.slane %v4806_v34, 4  ;;  %v4835_v37 = vrot.slane %v4807_v8, 4 }
 0x50b   : >> { %v4836_v18 = vrot.slane %v4808_v20, 4  ;;  %v4827_v31 = vsel %vm842_vm4, %v4825_v22, %v4826_v5  ;;  %v4829_v2 = vsel %vm842_vm4, %v4826_v5, %v4828_v51  ;;  %v4838_v57 = vrot.slane %v4809_v23, 4 }
 0x50c   : >> { %v4840_v58 = vrot.slane %v4810_v13, 4  ;;  %v4832_v32 = vsel %vm842_vm4, %v4830_v46, %v4831_v35  ;;  %v4834_v27 = vsel %vm842_vm4, %v4831_v35, %v4833_v10  ;;  %v4841_v0 = vrot.slane %v4811_v55, 4  ;;  %v16678_v55 = vld [vmem:[#allocation106_spill] sm:$0xff] }
 0x50d   : >> { %v4837_v41 = vsel %vm842_vm4, %v4835_v37, %v4836_v18  ;;  %v4839_v30 = vsel %vm842_vm4, %v4836_v18, %v4838_v57  ;;  %v4843_v4 = vrot.slane %v4812_v16, 4  ;;  %v4857_v9 = vadd.f32 %v4825_v22, %v4789_v33 }
 0x50e   : >> { %v4858_v1 = vadd.f32 %v4827_v31, %v4790_v17  ;;  %v4842_v19 = vsel %vm842_vm4, %v4840_v58, %v4841_v0  ;;  %v4859_v34 = vadd.f32 %v4829_v2, %v4791_v54  ;;  %v4860_v8 = vadd.f32 %v4830_v46, %v4792_v52 }
 0x50f   : >> { %v4861_v20 = vadd.f32 %v4832_v32, %v4793_v3  ;;  %v4844_v23 = vsel %vm842_vm4, %v4841_v0, %v4843_v4  ;;  %v4862_v13 = vadd.f32 %v4834_v27, %v4794_v63  ;;  %v4863_v5 = vadd.f32 %v4835_v37, %v4795_v21 }
 0x510   : >> { %v4864_v51 = vadd.f32 %v4837_v41, %v4796_v59  ;;  %v4865_v28 = vadd.f32 %v4839_v30, %v4797_v26  ;;  %v4866_v35 = vadd.f32 %v4840_v58, %v4798_v14  ;;  %v4867_v10 = vadd.f32 %v4842_v19, %v4799_v39 }
 0x511   : >> { %v4868_v36 = vadd.f32 %v4844_v23, %v4800_v60  ;;  %v4869_v18 = vmul.f32 %v13754_v6, %v16678_v55  ;;  %v4870_v33 = vmul.f32 %v13757_v12, %v16678_v55  ;;  %v4871_v54 = vmul.f32 %v13885_v24, %v16678_v55 }
 0x512   : >> { %v4872_v17 = vmul.f32 %v13764_v44, %v16678_v55  ;;  %v4873_v52 = vmul.f32 %v13767_v61, %v16678_v55  ;;  %v4874_v3 = vmul.f32 %v13890_v15, %v16678_v55  ;;  %v4875_v63 = vmul.f32 %v13540_v42, %v16678_v55 }
 0x513   : >> { %v4876_v21 = vmul.f32 %v13543_v25, %v16678_v55  ;;  %v4877_v59 = vmul.f32 %v13654_v7, %v16678_v55  ;;  %v4878_v26 = vmul.f32 %v13773_v49, %v16678_v55  ;;  %v4879_v14 = vmul.f32 %v13776_v43, %v16678_v55 }
 0x514   : >> { %v4880_v39 = vmul.f32 %v13893_v11, %v16678_v55  ;;  %v4893_v60 = vrot.slane %v4869_v18, 5  ;;  %v4894_v16 = vrot.slane %v4870_v33, 5  ;;  %v4896_v22 = vrot.slane %v4871_v54, 5 }
 0x515   : >> { %v4898_v46 = vrot.slane %v4872_v17, 5  ;;  %v4899_v42 = vrot.slane %v4873_v52, 5  ;;  %v4901_v37 = vrot.slane %v4874_v3, 5  ;;  %v4903_v31 = vrot.slane %v4875_v63, 5 }
 0x516   : >> { %v4904_v25 = vrot.slane %v4876_v21, 5  ;;  %v4895_v2 = vsel %vm912_vm5, %v4893_v60, %v4894_v16  ;;  %v4897_v57 = vsel %vm912_vm5, %v4894_v16, %v4896_v22  ;;  %v4906_v58 = vrot.slane %v4877_v59, 5  ;;  %v16679_v22 = vld [vmem:[#allocation107_spill] sm:$0xff] }
 0x517   : >> { %v4908_v32 = vrot.slane %v4878_v26, 5  ;;  %v4900_v27 = vsel %vm912_vm5, %v4898_v46, %v4899_v42  ;;  %v4902_v41 = vsel %vm912_vm5, %v4899_v42, %v4901_v37  ;;  %v4909_v30 = vrot.slane %v4879_v14, 5 }
 0x518   : >> { %v4905_v0 = vsel %vm912_vm5, %v4903_v31, %v4904_v25  ;;  %v4907_v4 = vsel %vm912_vm5, %v4904_v25, %v4906_v58  ;;  %v4911_v19 = vrot.slane %v4880_v39, 5  ;;  %v4925_v23 = vadd.f32 %v4893_v60, %v4857_v9 }
 0x519   : >> { %v4926_v55 = vadd.f32 %v4895_v2, %v4858_v1  ;;  %v4910_v18 = vsel %vm912_vm5, %v4908_v32, %v4909_v30  ;;  %v4927_v33 = vadd.f32 %v4897_v57, %v4859_v34  ;;  %v4928_v54 = vadd.f32 %v4898_v46, %v4860_v8 }
 0x51a   : >> { %v4929_v17 = vadd.f32 %v4900_v27, %v4861_v20  ;;  %v4912_v52 = vsel %vm912_vm5, %v4909_v30, %v4911_v19  ;;  %v4930_v3 = vadd.f32 %v4902_v41, %v4862_v13  ;;  %v4931_v63 = vadd.f32 %v4903_v31, %v4863_v5  ;;  %v9218_v13 = vld [vmem:[%s13202_s26 + $0x108] sm:$0xff]  ;;  %v9219_v5 = vld [vmem:[%s13202_s26 + $0x110] sm:$0xff] }
 0x51b   : >> { %v4932_v21 = vadd.f32 %v4905_v0, %v4864_v51  ;;  %v4933_v59 = vadd.f32 %v4907_v4, %v4865_v28  ;;  %v4934_v26 = vadd.f32 %v4908_v32, %v4866_v35  ;;  %v4935_v14 = vadd.f32 %v4910_v18, %v4867_v10 }
 0x51c   : >> { %v4936_v16 = vadd.f32 %v4912_v52, %v4868_v36  ;;  %v4937_v9 = vmul.f32 %v13754_v6, %v16679_v22  ;;  %v4938_v1 = vmul.f32 %v13757_v12, %v16679_v22  ;;  %v4939_v34 = vmul.f32 %v13885_v24, %v16679_v22 }
 0x51d   : >> { %v4940_v8 = vmul.f32 %v13764_v44, %v16679_v22  ;;  %v4941_v20 = vmul.f32 %v13767_v61, %v16679_v22  ;;  %v4942_v28 = vmul.f32 %v13890_v15, %v16679_v22  ;;  %v4943_v36 = vmul.f32 %v9218_v13, %v16679_v22 }
 0x51e   : >> { %v4944_v6 = vmul.f32 %v9219_v5, %v16679_v22  ;;  %v4945_v12 = vmul.f32 %v13654_v7, %v16679_v22  ;;  %v4946_v24 = vmul.f32 %v13773_v49, %v16679_v22  ;;  %v4947_v51 = vmul.f32 %v13776_v43, %v16679_v22  ;;  %v13998_v5 = vld [vmem:[%s13202_s26 + $0x110] sm:$0xff] }
 0x51f   : >> { %v4948_v35 = vmul.f32 %v13893_v11, %v16679_v22  ;;  %v4961_v10 = vrot.slane %v4937_v9, 6  ;;  %v4962_v39 = vrot.slane %v4938_v1, 6  ;;  %v4964_v60 = vrot.slane %v4939_v34, 6  ;;  %v13991_v34 = vld [vmem:[%s13202_s26 + $0x100] sm:$0xff] }
 0x520   : >> { %v4966_v46 = vrot.slane %v4940_v8, 6  ;;  %v4967_v42 = vrot.slane %v4941_v20, 6  ;;  %v4969_v37 = vrot.slane %v4942_v28, 6  ;;  %v4971_v31 = vrot.slane %v4943_v36, 6  ;;  %v13995_v36 = vld [vmem:[%s13202_s26 + $0x108] sm:$0xff] }
 0x521   : >> { %v4972_v25 = vrot.slane %v4944_v6, 6  ;;  %v4963_v2 = vsel %vm982_vm6, %v4961_v10, %v4962_v39  ;;  %v4965_v7 = vsel %vm982_vm6, %v4962_v39, %v4964_v60  ;;  %v4974_v57 = vrot.slane %v4945_v12, 6 }
 0x522   : >> { %v4976_v58 = vrot.slane %v4946_v24, 6  ;;  %v4968_v32 = vsel %vm982_vm6, %v4966_v46, %v4967_v42  ;;  %v4970_v27 = vsel %vm982_vm6, %v4967_v42, %v4969_v37  ;;  %v4977_v0 = vrot.slane %v4947_v51, 6  ;;  %v14001_v24 = vld [vmem:[%s13202_s26 + $0x140] sm:$0xff] }
 0x523   : >> { %v4973_v41 = vsel %vm982_vm6, %v4971_v31, %v4972_v25  ;;  %v4975_v30 = vsel %vm982_vm6, %v4972_v25, %v4974_v57  ;;  %v4979_v4 = vrot.slane %v4948_v35, 6  ;;  %v4993_v19 = vadd.f32 %v4961_v10, %v4925_v23 }
 0x524   : >> { %v4994_v18 = vadd.f32 %v4963_v2, %v4926_v55  ;;  %v4978_v52 = vsel %vm982_vm6, %v4976_v58, %v4977_v0  ;;  %v4995_v22 = vadd.f32 %v4965_v7, %v4927_v33  ;;  %v4996_v9 = vadd.f32 %v4966_v46, %v4928_v54  ;;  %v14004_v33 = vld [vmem:[%s13202_s26 + $0x148] sm:$0xff]  ;;  %v14007_v54 = vld [vmem:[%s13202_s26 + $0x150] sm:$0xff] }
 0x525   : >> { %v4997_v1 = vadd.f32 %v4968_v32, %v4929_v17  ;;  %v4980_v8 = vsel %vm982_vm6, %v4977_v0, %v4979_v4  ;;  %v4998_v20 = vadd.f32 %v4970_v27, %v4930_v3  ;;  %v4999_v28 = vadd.f32 %v4971_v31, %v4931_v63  ;;  %v16680_v17 = vld [vmem:[#allocation45_spill] sm:$0xff]  ;;  %v16681_v0 = vld [vmem:[#allocation46_spill] sm:$0xff] }
 0x526   : >> { %v5000_v13 = vadd.f32 %v4973_v41, %v4932_v21  ;;  %v5001_v23 = vadd.f32 %v4975_v30, %v4933_v59  ;;  %v5002_v55 = vadd.f32 %v4976_v58, %v4934_v26  ;;  %v5003_v6 = vadd.f32 %v4978_v52, %v4935_v14 }
 0x527   : >> { %v5004_v12 = vadd.f32 %v4980_v8, %v4936_v16  ;;  %v5024_v51 = vmul.f32 %v13760_v47, %v16680_v17  ;;  %v5025_v3 = vmul.f32 %v13764_v44, %v16680_v17  ;;  %v5026_v63 = vmul.f32 %v13767_v61, %v16680_v17 }
 0x528   : >> { %v5027_v21 = vmul.f32 %v13991_v34, %v16680_v17  ;;  %v5028_v59 = vmul.f32 %v13995_v36, %v16680_v17  ;;  %v5029_v26 = vmul.f32 %v13998_v5, %v16680_v17  ;;  %v5030_v14 = vmul.f32 %v13770_v53, %v16680_v17 }
 0x529   : >> { %v5031_v16 = vmul.f32 %v13773_v49, %v16680_v17  ;;  %v5032_v35 = vmul.f32 %v13776_v43, %v16680_v17  ;;  %v5033_v10 = vmul.f32 %v14001_v24, %v16680_v17  ;;  %v5034_v39 = vmul.f32 %v14004_v33, %v16680_v17 }
 0x52a   : >> { %v5035_v60 = vmul.f32 %v14007_v54, %v16680_v17  ;;  %v5036_v46 = vadd.f32 %v5024_v51, %v4993_v19  ;;  %v5037_v42 = vadd.f32 %v5025_v3, %v4994_v18  ;;  %v5038_v37 = vadd.f32 %v5026_v63, %v4995_v22 }
 0x52b   : >> { %v5039_v31 = vadd.f32 %v5027_v21, %v4996_v9  ;;  %v5040_v25 = vadd.f32 %v5028_v59, %v4997_v1  ;;  %v5041_v2 = vadd.f32 %v5029_v26, %v4998_v20  ;;  %v5042_v7 = vadd.f32 %v5030_v14, %v4999_v28 }
 0x52c   : >> { %v5043_v57 = vadd.f32 %v5031_v16, %v5000_v13  ;;  %v5044_v58 = vadd.f32 %v5032_v35, %v5001_v23  ;;  %v5045_v32 = vadd.f32 %v5033_v10, %v5002_v55  ;;  %v5046_v27 = vadd.f32 %v5034_v39, %v5003_v6 }
 0x52d   : >> { %v5047_v41 = vadd.f32 %v5035_v60, %v5004_v12  ;;  %v5048_v30 = vmul.f32 %v13760_v47, %v16681_v0  ;;  %v5049_v4 = vmul.f32 %v13764_v44, %v16681_v0  ;;  %v5050_v19 = vmul.f32 %v13767_v61, %v16681_v0 }
 0x52e   : >> { %v5051_v18 = vmul.f32 %v13991_v34, %v16681_v0  ;;  %v5052_v52 = vmul.f32 %v13995_v36, %v16681_v0  ;;  %v5053_v22 = vmul.f32 %v13998_v5, %v16681_v0  ;;  %v5054_v9 = vmul.f32 %v13770_v53, %v16681_v0 }
 0x52f   : >> { %v5055_v1 = vmul.f32 %v13773_v49, %v16681_v0  ;;  %v5056_v8 = vmul.f32 %v13776_v43, %v16681_v0  ;;  %v5057_v20 = vmul.f32 %v14001_v24, %v16681_v0  ;;  %v5058_v28 = vmul.f32 %v14004_v33, %v16681_v0 }
 0x530   : >> { %v5059_v13 = vmul.f32 %v14007_v54, %v16681_v0  ;;  %v5072_v23 = vrot.slane %v5048_v30, 1  ;;  %v5073_v55 = vrot.slane %v5049_v4, 1  ;;  %v5075_v6 = vrot.slane %v5050_v19, 1 }
 0x531   : >> { %v5077_v12 = vrot.slane %v5051_v18, 1  ;;  %v5078_v17 = vrot.slane %v5052_v52, 1  ;;  %v5080_v51 = vrot.slane %v5053_v22, 1  ;;  %v5082_v3 = vrot.slane %v5054_v9, 1 }
 0x532   : >> { %v5083_v63 = vrot.slane %v5055_v1, 1  ;;  %v5074_v21 = vsel %vm648_vm0, %v5072_v23, %v5073_v55  ;;  %v5076_v59 = vsel %vm648_vm0, %v5073_v55, %v5075_v6  ;;  %v5085_v26 = vrot.slane %v5056_v8, 1 }
 0x533   : >> { %v5087_v14 = vrot.slane %v5057_v20, 1  ;;  %v5079_v16 = vsel %vm648_vm0, %v5077_v12, %v5078_v17  ;;  %v5081_v35 = vsel %vm648_vm0, %v5078_v17, %v5080_v51  ;;  %v5088_v39 = vrot.slane %v5058_v28, 1  ;;  %v16682_v28 = vld [vmem:[#allocation47_spill] sm:$0xff] }
 0x534   : >> { %v5084_v10 = vsel %vm648_vm0, %v5082_v3, %v5083_v63  ;;  %v5086_v60 = vsel %vm648_vm0, %v5083_v63, %v5085_v26  ;;  %v5090_v0 = vrot.slane %v5059_v13, 1  ;;  %v5104_v30 = vadd.f32 %v5074_v21, %v5036_v46 }
 0x535   : >> { %v5105_v4 = vadd.f32 %v5076_v59, %v5037_v42  ;;  %v5089_v19 = vsel %vm648_vm0, %v5087_v14, %v5088_v39  ;;  %v5106_v18 = vadd.f32 %v5075_v6, %v5038_v37  ;;  %v5107_v52 = vadd.f32 %v5079_v16, %v5039_v31 }
 0x536   : >> { %v5108_v22 = vadd.f32 %v5081_v35, %v5040_v25  ;;  %v5091_v9 = vsel %vm648_vm0, %v5088_v39, %v5090_v0  ;;  %v5109_v1 = vadd.f32 %v5080_v51, %v5041_v2  ;;  %v5110_v8 = vadd.f32 %v5084_v10, %v5042_v7 }
 0x537   : >> { %v5111_v20 = vadd.f32 %v5086_v60, %v5043_v57  ;;  %v5112_v23 = vadd.f32 %v5085_v26, %v5044_v58  ;;  %v5113_v55 = vadd.f32 %v5089_v19, %v5045_v32  ;;  %v5114_v12 = vadd.f32 %v5091_v9, %v5046_v27 }
 0x538   : >> { %v5115_v17 = vadd.f32 %v5090_v0, %v5047_v41  ;;  %v5116_v3 = vmul.f32 %v13760_v47, %v16682_v28  ;;  %v5117_v46 = vmul.f32 %v13764_v44, %v16682_v28  ;;  %v5118_v42 = vmul.f32 %v13767_v61, %v16682_v28 }
 0x539   : >> { %v5119_v37 = vmul.f32 %v13991_v34, %v16682_v28  ;;  %v5120_v31 = vmul.f32 %v13995_v36, %v16682_v28  ;;  %v5121_v25 = vmul.f32 %v13998_v5, %v16682_v28  ;;  %v5122_v2 = vmul.f32 %v13770_v53, %v16682_v28 }
 0x53a   : >> { %v5123_v47 = vmul.f32 %v13773_v49, %v16682_v28  ;;  %v5124_v7 = vmul.f32 %v13776_v43, %v16682_v28  ;;  %v5125_v57 = vmul.f32 %v14001_v24, %v16682_v28  ;;  %v5126_v58 = vmul.f32 %v14004_v33, %v16682_v28 }
 0x53b   : >> { %v5127_v32 = vmul.f32 %v14007_v54, %v16682_v28  ;;  %v5140_v27 = vrot.slane %v5116_v3, 2  ;;  %v5141_v41 = vrot.slane %v5117_v46, 2  ;;  %v5143_v13 = vrot.slane %v5118_v42, 2 }
 0x53c   : >> { %v5145_v6 = vrot.slane %v5119_v37, 2  ;;  %v5146_v53 = vrot.slane %v5120_v31, 2  ;;  %v5148_v51 = vrot.slane %v5121_v25, 2  ;;  %v5150_v63 = vrot.slane %v5122_v2, 2 }
 0x53d   : >> { %v5151_v21 = vrot.slane %v5123_v47, 2  ;;  %v5142_v59 = vsel %vm718_vm1, %v5140_v27, %v5141_v41  ;;  %v5144_v26 = vsel %vm718_vm1, %v5141_v41, %v5143_v13  ;;  %v5153_v14 = vrot.slane %v5124_v7, 2 }
 0x53e   : >> { %v5155_v16 = vrot.slane %v5125_v57, 2  ;;  %v5147_v35 = vsel %vm718_vm1, %v5145_v6, %v5146_v53  ;;  %v5149_v10 = vsel %vm718_vm1, %v5146_v53, %v5148_v51  ;;  %v5156_v60 = vrot.slane %v5126_v58, 2  ;;  %v16683_v58 = vld [vmem:[#allocation113_spill] sm:$0xff] }
 0x53f   : >> { %v5152_v39 = vsel %vm718_vm1, %v5150_v63, %v5151_v21  ;;  %v5154_v0 = vsel %vm718_vm1, %v5151_v21, %v5153_v14  ;;  %v5158_v19 = vrot.slane %v5127_v32, 2  ;;  %v5172_v9 = vadd.f32 %v5142_v59, %v5104_v30 }
 0x540   : >> { %v5173_v3 = vadd.f32 %v5144_v26, %v5105_v4  ;;  %v5157_v46 = vsel %vm718_vm1, %v5155_v16, %v5156_v60  ;;  %v5174_v42 = vadd.f32 %v5143_v13, %v5106_v18  ;;  %v5175_v37 = vadd.f32 %v5147_v35, %v5107_v52 }
 0x541   : >> { %v5176_v31 = vadd.f32 %v5149_v10, %v5108_v22  ;;  %v5159_v25 = vsel %vm718_vm1, %v5156_v60, %v5158_v19  ;;  %v5177_v2 = vadd.f32 %v5148_v51, %v5109_v1  ;;  %v5178_v47 = vadd.f32 %v5152_v39, %v5110_v8  ;;  %v14118_v39 = vld [vmem:[%s13202_s26 + $0x118] sm:$0xff] }
 0x542   : >> { %v5179_v7 = vadd.f32 %v5154_v0, %v5111_v20  ;;  %v5180_v57 = vadd.f32 %v5153_v14, %v5112_v23  ;;  %v5181_v27 = vadd.f32 %v5157_v46, %v5113_v55  ;;  %v5182_v41 = vadd.f32 %v5159_v25, %v5114_v12  ;;  %v14121_v25 = vld [vmem:[%s13202_s26 + $0x158] sm:$0xff] }
 0x543   : >> { %v5183_v6 = vadd.f32 %v5158_v19, %v5115_v17  ;;  %v5184_v53 = vmul.f32 %v13764_v44, %v16683_v58  ;;  %v5185_v30 = vmul.f32 %v13767_v61, %v16683_v58  ;;  %v5186_v4 = vmul.f32 %v13995_v36, %v16683_v58 }
 0x544   : >> { %v5187_v18 = vmul.f32 %v13998_v5, %v16683_v58  ;;  %v5188_v52 = vmul.f32 %v13773_v49, %v16683_v58  ;;  %v5189_v22 = vmul.f32 %v13776_v43, %v16683_v58  ;;  %v5190_v1 = vmul.f32 %v14004_v33, %v16683_v58 }
 0x545   : >> { %v5191_v8 = vmul.f32 %v14007_v54, %v16683_v58  ;;  %v5200_v20 = vrot.slane %v5184_v53, 3  ;;  %v5201_v23 = vrot.slane %v5185_v30, 3  ;;  %v5203_v55 = vrot.slane %v5186_v4, 3 }
 0x546   : >> { %v5204_v12 = vrot.slane %v5187_v18, 3  ;;  %v5206_v17 = vrot.slane %v5188_v52, 3  ;;  %v5207_v32 = vrot.slane %v5189_v22, 3  ;;  %v5209_v13 = vrot.slane %v5190_v1, 3 }
 0x547   : >> { %v5210_v51 = vrot.slane %v5191_v8, 3  ;;  %v5202_v63 = vsel %vm780_vm3, %v5200_v20, %v5201_v23  ;;  %v5224_v59 = vadd.f32 %v5200_v20, %v5172_v9  ;;  %v5226_v26 = vadd.f32 %v5201_v23, %v5174_v42  ;;  %v16684_v9 = vld [vmem:[#allocation48_spill] sm:$0xff] }
 0x548   : >> { %v5205_v21 = vsel %vm780_vm3, %v5203_v55, %v5204_v12  ;;  %v5208_v14 = vsel %vm780_vm3, %v5206_v17, %v5207_v32  ;;  %v5225_v35 = vadd.f32 %v5202_v63, %v5173_v3  ;;  %v5227_v10 = vadd.f32 %v5203_v55, %v5175_v37 }
 0x549   : >> { %v5211_v16 = vsel %vm780_vm3, %v5209_v13, %v5210_v51  ;;  %v5228_v60 = vadd.f32 %v5205_v21, %v5176_v31  ;;  %v5229_v0 = vadd.f32 %v5204_v12, %v5177_v2  ;;  %v5230_v19 = vadd.f32 %v5206_v17, %v5178_v47 }
 0x54a   : >> { %v5231_v46 = vadd.f32 %v5208_v14, %v5179_v7  ;;  %v5232_v58 = vadd.f32 %v5207_v32, %v5180_v57  ;;  %v5233_v53 = vadd.f32 %v5209_v13, %v5181_v27  ;;  %v5234_v30 = vadd.f32 %v5211_v16, %v5182_v41 }
 0x54b   : >> { %v5235_v4 = vadd.f32 %v5210_v51, %v5183_v6  ;;  %v5236_v42 = vmul.f32 %v13764_v44, %v16684_v9  ;;  %v5237_v18 = vmul.f32 %v13767_v61, %v16684_v9  ;;  %v5238_v3 = vmul.f32 %v13890_v15, %v16684_v9 }
 0x54c   : >> { %v5239_v37 = vmul.f32 %v13995_v36, %v16684_v9  ;;  %v5240_v31 = vmul.f32 %v13998_v5, %v16684_v9  ;;  %v5241_v2 = vmul.f32 %v14118_v39, %v16684_v9  ;;  %v5242_v47 = vmul.f32 %v13773_v49, %v16684_v9 }
 0x54d   : >> { %v5243_v7 = vmul.f32 %v13776_v43, %v16684_v9  ;;  %v5244_v57 = vmul.f32 %v13893_v11, %v16684_v9  ;;  %v5245_v27 = vmul.f32 %v14004_v33, %v16684_v9  ;;  %v5246_v41 = vmul.f32 %v14007_v54, %v16684_v9 }
 0x54e   : >> { %v5247_v6 = vmul.f32 %v14121_v25, %v16684_v9  ;;  %v5260_v52 = vrot.slane %v5236_v42, 4  ;;  %v5261_v22 = vrot.slane %v5237_v18, 4  ;;  %v5263_v1 = vrot.slane %v5238_v3, 4 }
 0x54f   : >> { %v5265_v8 = vrot.slane %v5239_v37, 4  ;;  %v5266_v20 = vrot.slane %v5240_v31, 4  ;;  %v5268_v23 = vrot.slane %v5241_v2, 4  ;;  %v5270_v55 = vrot.slane %v5242_v47, 4 }
 0x550   : >> { %v5271_v12 = vrot.slane %v5243_v7, 4  ;;  %v5262_v17 = vsel %vm842_vm4, %v5260_v52, %v5261_v22  ;;  %v5264_v32 = vsel %vm842_vm4, %v5261_v22, %v5263_v1  ;;  %v5273_v13 = vrot.slane %v5244_v57, 4 }
 0x551   : >> { %v5275_v51 = vrot.slane %v5245_v27, 4  ;;  %v5267_v63 = vsel %vm842_vm4, %v5265_v8, %v5266_v20  ;;  %v5269_v21 = vsel %vm842_vm4, %v5266_v20, %v5268_v23  ;;  %v5276_v16 = vrot.slane %v5246_v41, 4  ;;  %v16685_v41 = vld [vmem:[#allocation49_spill] sm:$0xff] }
 0x552   : >> { %v5272_v14 = vsel %vm842_vm4, %v5270_v55, %v5271_v12  ;;  %v5274_v9 = vsel %vm842_vm4, %v5271_v12, %v5273_v13  ;;  %v5278_v42 = vrot.slane %v5247_v6, 4  ;;  %v5292_v18 = vadd.f32 %v5260_v52, %v5224_v59 }
 0x553   : >> { %v5293_v3 = vadd.f32 %v5262_v17, %v5225_v35  ;;  %v5277_v37 = vsel %vm842_vm4, %v5275_v51, %v5276_v16  ;;  %v5294_v31 = vadd.f32 %v5264_v32, %v5226_v26  ;;  %v5295_v2 = vadd.f32 %v5265_v8, %v5227_v10 }
 0x554   : >> { %v5296_v47 = vadd.f32 %v5267_v63, %v5228_v60  ;;  %v5279_v7 = vsel %vm842_vm4, %v5276_v16, %v5278_v42  ;;  %v5297_v57 = vadd.f32 %v5269_v21, %v5229_v0  ;;  %v5298_v27 = vadd.f32 %v5270_v55, %v5230_v19 }
 0x555   : >> { %v5299_v22 = vadd.f32 %v5272_v14, %v5231_v46  ;;  %v5300_v1 = vadd.f32 %v5274_v9, %v5232_v58  ;;  %v5301_v20 = vadd.f32 %v5275_v51, %v5233_v53  ;;  %v5302_v23 = vadd.f32 %v5277_v37, %v5234_v30 }
 0x556   : >> { %v5303_v28 = vadd.f32 %v5279_v7, %v5235_v4  ;;  %v5304_v12 = vmul.f32 %v13764_v44, %v16685_v41  ;;  %v5305_v59 = vmul.f32 %v13767_v61, %v16685_v41  ;;  %v5306_v26 = vmul.f32 %v13890_v15, %v16685_v41 }
 0x557   : >> { %v5307_v35 = vmul.f32 %v13995_v36, %v16685_v41  ;;  %v5308_v10 = vmul.f32 %v13998_v5, %v16685_v41  ;;  %v5309_v60 = vmul.f32 %v14118_v39, %v16685_v41  ;;  %v5310_v0 = vmul.f32 %v13773_v49, %v16685_v41 }
 0x558   : >> { %v5311_v44 = vmul.f32 %v13776_v43, %v16685_v41  ;;  %v5312_v61 = vmul.f32 %v13893_v11, %v16685_v41  ;;  %v5313_v19 = vmul.f32 %v14004_v33, %v16685_v41  ;;  %v5314_v46 = vmul.f32 %v14007_v54, %v16685_v41 }
 0x559   : >> { %v5315_v58 = vmul.f32 %v14121_v25, %v16685_v41  ;;  %v5328_v53 = vrot.slane %v5304_v12, 5  ;;  %v5329_v30 = vrot.slane %v5305_v59, 5  ;;  %v5331_v4 = vrot.slane %v5306_v26, 5 }
 0x55a   : >> { %v5333_v6 = vrot.slane %v5307_v35, 5  ;;  %v5334_v49 = vrot.slane %v5308_v10, 5  ;;  %v5336_v52 = vrot.slane %v5309_v60, 5  ;;  %v5338_v8 = vrot.slane %v5310_v0, 5 }
 0x55b   : >> { %v5339_v43 = vrot.slane %v5311_v44, 5  ;;  %v5330_v55 = vsel %vm912_vm5, %v5328_v53, %v5329_v30  ;;  %v5332_v17 = vsel %vm912_vm5, %v5329_v30, %v5331_v4  ;;  %v5341_v32 = vrot.slane %v5312_v61, 5 }
 0x55c   : >> { %v5343_v13 = vrot.slane %v5313_v19, 5  ;;  %v5335_v51 = vsel %vm912_vm5, %v5333_v6, %v5334_v49  ;;  %v5337_v63 = vsel %vm912_vm5, %v5334_v49, %v5336_v52  ;;  %v5344_v14 = vrot.slane %v5314_v46, 5  ;;  %v9220_v46 = vld [vmem:[%s13202_s26 + $0xe8] sm:$0xff] }
 0x55d   : >> { %v5340_v21 = vsel %vm912_vm5, %v5338_v8, %v5339_v43  ;;  %v5342_v16 = vsel %vm912_vm5, %v5339_v43, %v5341_v32  ;;  %v5346_v9 = vrot.slane %v5315_v58, 5  ;;  %v5360_v42 = vadd.f32 %v5328_v53, %v5292_v18  ;;  %v16686_v18 = vld [vmem:[#allocation52_spill] sm:$0xff] }
 0x55e   : >> { %v5361_v37 = vadd.f32 %v5330_v55, %v5293_v3  ;;  %v5345_v7 = vsel %vm912_vm5, %v5343_v13, %v5344_v14  ;;  %v5362_v41 = vadd.f32 %v5332_v17, %v5294_v31  ;;  %v5363_v12 = vadd.f32 %v5333_v6, %v5295_v2  ;;  %v9221_v3 = vld [vmem:[%s13202_s26 + $0xf0] sm:$0xff] }
 0x55f   : >> { %v5364_v59 = vadd.f32 %v5335_v51, %v5296_v47  ;;  %v5347_v26 = vsel %vm912_vm5, %v5344_v14, %v5346_v9  ;;  %v5365_v35 = vadd.f32 %v5337_v63, %v5297_v57  ;;  %v5366_v10 = vadd.f32 %v5338_v8, %v5298_v27  ;;  %v9222_v27 = vld [vmem:[%s13202_s26 + $0x128] sm:$0xff] }
 0x560   : >> { %v5367_v60 = vadd.f32 %v5340_v21, %v5299_v22  ;;  %v5368_v0 = vadd.f32 %v5342_v16, %v5300_v1  ;;  %v5369_v44 = vadd.f32 %v5343_v13, %v5301_v20  ;;  %v5370_v61 = vadd.f32 %v5345_v7, %v5302_v23  ;;  %v9223_v22 = vld [vmem:[%s13202_s26 + $0x130] sm:$0xff] }
 0x561   : >> { %v5371_v19 = vadd.f32 %v5347_v26, %v5303_v28  ;;  %v5372_v58 = vmul.f32 %v9220_v46, %v16686_v18  ;;  %v5373_v53 = vmul.f32 %v9221_v3, %v16686_v18  ;;  %v5374_v31 = vmul.f32 %v13890_v15, %v16686_v18 }
 0x562   : >> { %v5375_v2 = vmul.f32 %v13995_v36, %v16686_v18  ;;  %v5376_v47 = vmul.f32 %v13998_v5, %v16686_v18  ;;  %v5377_v57 = vmul.f32 %v14118_v39, %v16686_v18  ;;  %v5378_v28 = vmul.f32 %v9222_v27, %v16686_v18 }
 0x563   : >> { %v5379_v1 = vmul.f32 %v9223_v22, %v16686_v18  ;;  %v5380_v20 = vmul.f32 %v13893_v11, %v16686_v18  ;;  %v5381_v15 = vmul.f32 %v14004_v33, %v16686_v18  ;;  %v5382_v23 = vmul.f32 %v14007_v54, %v16686_v18  ;;  %v14226_v22 = vld [vmem:[%s13202_s26 + $0x130] sm:$0xff] }
 0x564   : >> { %v5383_v30 = vmul.f32 %v14121_v25, %v16686_v18  ;;  %v5396_v4 = vrot.slane %v5372_v58, 6  ;;  %v5397_v6 = vrot.slane %v5373_v53, 6  ;;  %v5399_v49 = vrot.slane %v5374_v31, 6  ;;  %v14219_v31 = vld [vmem:[%s13202_s26 + $0x120] sm:$0xff] }
 0x565   : >> { %v5401_v52 = vrot.slane %v5375_v2, 6  ;;  %v5402_v8 = vrot.slane %v5376_v47, 6  ;;  %v5404_v43 = vrot.slane %v5377_v57, 6  ;;  %v5406_v55 = vrot.slane %v5378_v28, 6  ;;  %v14223_v28 = vld [vmem:[%s13202_s26 + $0x128] sm:$0xff] }
 0x566   : >> { %v5407_v17 = vrot.slane %v5379_v1, 6  ;;  %v5398_v32 = vsel %vm982_vm6, %v5396_v4, %v5397_v6  ;;  %v5400_v11 = vsel %vm982_vm6, %v5397_v6, %v5399_v49  ;;  %v5409_v13 = vrot.slane %v5380_v20, 6 }
 0x567   : >> { %v5411_v51 = vrot.slane %v5381_v15, 6  ;;  %v5403_v63 = vsel %vm982_vm6, %v5401_v52, %v5402_v8  ;;  %v5405_v21 = vsel %vm982_vm6, %v5402_v8, %v5404_v43  ;;  %v5412_v16 = vrot.slane %v5382_v23, 6  ;;  %v14229_v15 = vld [vmem:[%s13202_s26 + $0x160] sm:$0xff] }
 0x568   : >> { %v5408_v14 = vsel %vm982_vm6, %v5406_v55, %v5407_v17  ;;  %v5410_v9 = vsel %vm982_vm6, %v5407_v17, %v5409_v13  ;;  %v5414_v7 = vrot.slane %v5383_v30, 6  ;;  %v5428_v26 = vadd.f32 %v5396_v4, %v5360_v42 }
 0x569   : >> { %v5429_v46 = vadd.f32 %v5398_v32, %v5361_v37  ;;  %v5413_v18 = vsel %vm982_vm6, %v5411_v51, %v5412_v16  ;;  %v5430_v58 = vadd.f32 %v5400_v11, %v5362_v41  ;;  %v5431_v3 = vadd.f32 %v5401_v52, %v5363_v12  ;;  %v14232_v41 = vld [vmem:[%s13202_s26 + $0x168] sm:$0xff]  ;;  %v14235_v12 = vld [vmem:[%s13202_s26 + $0x170] sm:$0xff] }
 0x56a   : >> { %v5432_v53 = vadd.f32 %v5403_v63, %v5364_v59  ;;  %v5415_v2 = vsel %vm982_vm6, %v5412_v16, %v5414_v7  ;;  %v5433_v47 = vadd.f32 %v5405_v21, %v5365_v35  ;;  %v5434_v57 = vadd.f32 %v5406_v55, %v5366_v10  ;;  %v16687_v59 = vld [vmem:[#allocation53_spill] sm:$0xff]  ;;  %v16688_v16 = vld [vmem:[#allocation55_spill] sm:$0xff] }
 0x56b   : >> { %v5435_v27 = vadd.f32 %v5408_v14, %v5367_v60  ;;  %v5436_v42 = vadd.f32 %v5410_v9, %v5368_v0  ;;  %v5437_v37 = vadd.f32 %v5411_v51, %v5369_v44  ;;  %v5438_v1 = vadd.f32 %v5413_v18, %v5370_v61 }
 0x56c   : >> { %v5439_v20 = vadd.f32 %v5415_v2, %v5371_v19  ;;  %v5459_v23 = vmul.f32 %v13991_v34, %v16687_v59  ;;  %v5460_v35 = vmul.f32 %v13995_v36, %v16687_v59  ;;  %v5461_v10 = vmul.f32 %v13998_v5, %v16687_v59 }
 0x56d   : >> { %v5462_v60 = vmul.f32 %v14219_v31, %v16687_v59  ;;  %v5463_v0 = vmul.f32 %v14223_v28, %v16687_v59  ;;  %v5464_v44 = vmul.f32 %v14226_v22, %v16687_v59  ;;  %v5465_v61 = vmul.f32 %v14001_v24, %v16687_v59 }
 0x56e   : >> { %v5466_v19 = vmul.f32 %v14004_v33, %v16687_v59  ;;  %v5467_v30 = vmul.f32 %v14007_v54, %v16687_v59  ;;  %v5468_v4 = vmul.f32 %v14229_v15, %v16687_v59  ;;  %v5469_v6 = vmul.f32 %v14232_v41, %v16687_v59 }
 0x56f   : >> { %v5470_v49 = vmul.f32 %v14235_v12, %v16687_v59  ;;  %v5471_v52 = vadd.f32 %v5459_v23, %v5428_v26  ;;  %v5472_v8 = vadd.f32 %v5460_v35, %v5429_v46  ;;  %v5473_v43 = vadd.f32 %v5461_v10, %v5430_v58 }
 0x570   : >> { %v5474_v55 = vadd.f32 %v5462_v60, %v5431_v3  ;;  %v5475_v17 = vadd.f32 %v5463_v0, %v5432_v53  ;;  %v5476_v32 = vadd.f32 %v5464_v44, %v5433_v47  ;;  %v5477_v11 = vadd.f32 %v5465_v61, %v5434_v57 }
 0x571   : >> { %v5478_v13 = vadd.f32 %v5466_v19, %v5435_v27  ;;  %v5479_v51 = vadd.f32 %v5467_v30, %v5436_v42  ;;  %v5480_v63 = vadd.f32 %v5468_v4, %v5437_v37  ;;  %v5481_v21 = vadd.f32 %v5469_v6, %v5438_v1 }
 0x572   : >> { %v5482_v14 = vadd.f32 %v5470_v49, %v5439_v20  ;;  %v5483_v9 = vmul.f32 %v13991_v34, %v16688_v16  ;;  %v5484_v7 = vmul.f32 %v13995_v36, %v16688_v16  ;;  %v5485_v26 = vmul.f32 %v13998_v5, %v16688_v16 }
 0x573   : >> { %v5486_v46 = vmul.f32 %v14219_v31, %v16688_v16  ;;  %v5487_v18 = vmul.f32 %v14223_v28, %v16688_v16  ;;  %v5488_v58 = vmul.f32 %v14226_v22, %v16688_v16  ;;  %v5489_v3 = vmul.f32 %v14001_v24, %v16688_v16 }
 0x574   : >> { %v5490_v53 = vmul.f32 %v14004_v33, %v16688_v16  ;;  %v5491_v2 = vmul.f32 %v14007_v54, %v16688_v16  ;;  %v5492_v47 = vmul.f32 %v14229_v15, %v16688_v16  ;;  %v5493_v57 = vmul.f32 %v14232_v41, %v16688_v16 }
 0x575   : >> { %v5494_v27 = vmul.f32 %v14235_v12, %v16688_v16  ;;  %v5507_v42 = vrot.slane %v5483_v9, 1  ;;  %v5508_v37 = vrot.slane %v5484_v7, 1  ;;  %v5510_v1 = vrot.slane %v5485_v26, 1 }
 0x576   : >> { %v5512_v20 = vrot.slane %v5486_v46, 1  ;;  %v5513_v59 = vrot.slane %v5487_v18, 1  ;;  %v5515_v23 = vrot.slane %v5488_v58, 1  ;;  %v5517_v35 = vrot.slane %v5489_v3, 1 }
 0x577   : >> { %v5518_v10 = vrot.slane %v5490_v53, 1  ;;  %v5509_v60 = vsel %vm648_vm0, %v5507_v42, %v5508_v37  ;;  %v5511_v0 = vsel %vm648_vm0, %v5508_v37, %v5510_v1  ;;  %v5520_v44 = vrot.slane %v5491_v2, 1 }
 0x578   : >> { %v5522_v61 = vrot.slane %v5492_v47, 1  ;;  %v5514_v19 = vsel %vm648_vm0, %v5512_v20, %v5513_v59  ;;  %v5516_v30 = vsel %vm648_vm0, %v5513_v59, %v5515_v23  ;;  %v5523_v6 = vrot.slane %v5493_v57, 1  ;;  %v16689_v57 = vld [vmem:[#allocation56_spill] sm:$0xff] }
 0x579   : >> { %v5519_v4 = vsel %vm648_vm0, %v5517_v35, %v5518_v10  ;;  %v5521_v49 = vsel %vm648_vm0, %v5518_v10, %v5520_v44  ;;  %v5525_v16 = vrot.slane %v5494_v27, 1  ;;  %v5539_v9 = vadd.f32 %v5509_v60, %v5471_v52 }
 0x57a   : >> { %v5540_v7 = vadd.f32 %v5511_v0, %v5472_v8  ;;  %v5524_v26 = vsel %vm648_vm0, %v5522_v61, %v5523_v6  ;;  %v5541_v46 = vadd.f32 %v5510_v1, %v5473_v43  ;;  %v5542_v18 = vadd.f32 %v5514_v19, %v5474_v55 }
 0x57b   : >> { %v5543_v58 = vadd.f32 %v5516_v30, %v5475_v17  ;;  %v5526_v3 = vsel %vm648_vm0, %v5523_v6, %v5525_v16  ;;  %v5544_v53 = vadd.f32 %v5515_v23, %v5476_v32  ;;  %v5545_v2 = vadd.f32 %v5519_v4, %v5477_v11 }
 0x57c   : >> { %v5546_v47 = vadd.f32 %v5521_v49, %v5478_v13  ;;  %v5547_v42 = vadd.f32 %v5520_v44, %v5479_v51  ;;  %v5548_v37 = vadd.f32 %v5524_v26, %v5480_v63  ;;  %v5549_v20 = vadd.f32 %v5526_v3, %v5481_v21 }
 0x57d   : >> { %v5550_v59 = vadd.f32 %v5525_v16, %v5482_v14  ;;  %v5551_v35 = vmul.f32 %v13991_v34, %v16689_v57  ;;  %v5552_v52 = vmul.f32 %v13995_v36, %v16689_v57  ;;  %v5553_v8 = vmul.f32 %v13998_v5, %v16689_v57 }
 0x57e   : >> { %v5554_v43 = vmul.f32 %v14219_v31, %v16689_v57  ;;  %v5555_v55 = vmul.f32 %v14223_v28, %v16689_v57  ;;  %v5556_v17 = vmul.f32 %v14226_v22, %v16689_v57  ;;  %v5557_v32 = vmul.f32 %v14001_v24, %v16689_v57 }
 0x57f   : >> { %v5558_v34 = vmul.f32 %v14004_v33, %v16689_v57  ;;  %v5559_v11 = vmul.f32 %v14007_v54, %v16689_v57  ;;  %v5560_v13 = vmul.f32 %v14229_v15, %v16689_v57  ;;  %v5561_v51 = vmul.f32 %v14232_v41, %v16689_v57 }
 0x580   : >> { %v5562_v63 = vmul.f32 %v14235_v12, %v16689_v57  ;;  %v5575_v21 = vrot.slane %v5551_v35, 2  ;;  %v5576_v14 = vrot.slane %v5552_v52, 2  ;;  %v5578_v27 = vrot.slane %v5553_v8, 2 }
 0x581   : >> { %v5580_v1 = vrot.slane %v5554_v43, 2  ;;  %v5581_v24 = vrot.slane %v5555_v55, 2  ;;  %v5583_v23 = vrot.slane %v5556_v17, 2  ;;  %v5585_v10 = vrot.slane %v5557_v32, 2 }
 0x582   : >> { %v5586_v60 = vrot.slane %v5558_v34, 2  ;;  %v5577_v0 = vsel %vm718_vm1, %v5575_v21, %v5576_v14  ;;  %v5579_v44 = vsel %vm718_vm1, %v5576_v14, %v5578_v27  ;;  %v5588_v61 = vrot.slane %v5559_v11, 2 }
 0x583   : >> { %v5590_v19 = vrot.slane %v5560_v13, 2  ;;  %v5582_v30 = vsel %vm718_vm1, %v5580_v1, %v5581_v24  ;;  %v5584_v4 = vsel %vm718_vm1, %v5581_v24, %v5583_v23  ;;  %v5591_v49 = vrot.slane %v5561_v51, 2  ;;  %v16690_v51 = vld [vmem:[#allocation112_spill] sm:$0xff] }
 0x584   : >> { %v5587_v6 = vsel %vm718_vm1, %v5585_v10, %v5586_v60  ;;  %v5589_v16 = vsel %vm718_vm1, %v5586_v60, %v5588_v61  ;;  %v5593_v26 = vrot.slane %v5562_v63, 2  ;;  %v5607_v3 = vadd.f32 %v5577_v0, %v5539_v9 }
 0x585   : >> { %v5608_v57 = vadd.f32 %v5579_v44, %v5540_v7  ;;  %v5592_v35 = vsel %vm718_vm1, %v5590_v19, %v5591_v49  ;;  %v5609_v52 = vadd.f32 %v5578_v27, %v5541_v46  ;;  %v5610_v8 = vadd.f32 %v5582_v30, %v5542_v18 }
 0x586   : >> { %v5611_v43 = vadd.f32 %v5584_v4, %v5543_v58  ;;  %v5594_v55 = vsel %vm718_vm1, %v5591_v49, %v5593_v26  ;;  %v5612_v17 = vadd.f32 %v5583_v23, %v5544_v53  ;;  %v5613_v32 = vadd.f32 %v5587_v6, %v5545_v2  ;;  %v14346_v4 = vld [vmem:[%s13202_s26 + $0x138] sm:$0xff] }
 0x587   : >> { %v5614_v34 = vadd.f32 %v5589_v16, %v5546_v47  ;;  %v5615_v11 = vadd.f32 %v5588_v61, %v5547_v42  ;;  %v5616_v13 = vadd.f32 %v5592_v35, %v5548_v37  ;;  %v5617_v21 = vadd.f32 %v5594_v55, %v5549_v20  ;;  %v14349_v35 = vld [vmem:[%s13202_s26 + $0x178] sm:$0xff] }
 0x588   : >> { %v5618_v14 = vadd.f32 %v5593_v26, %v5550_v59  ;;  %v5619_v1 = vmul.f32 %v13995_v36, %v16690_v51  ;;  %v5620_v9 = vmul.f32 %v13998_v5, %v16690_v51  ;;  %v5621_v7 = vmul.f32 %v14223_v28, %v16690_v51 }
 0x589   : >> { %v5622_v46 = vmul.f32 %v14226_v22, %v16690_v51  ;;  %v5623_v18 = vmul.f32 %v14004_v33, %v16690_v51  ;;  %v5624_v58 = vmul.f32 %v14007_v54, %v16690_v51  ;;  %v5625_v53 = vmul.f32 %v14232_v41, %v16690_v51 }
 0x58a   : >> { %v5626_v2 = vmul.f32 %v14235_v12, %v16690_v51  ;;  %v5635_v47 = vrot.slane %v5619_v1, 3  ;;  %v5636_v42 = vrot.slane %v5620_v9, 3  ;;  %v5638_v37 = vrot.slane %v5621_v7, 3 }
 0x58b   : >> { %v5639_v20 = vrot.slane %v5622_v46, 3  ;;  %v5641_v59 = vrot.slane %v5623_v18, 3  ;;  %v5642_v63 = vrot.slane %v5624_v58, 3  ;;  %v5644_v27 = vrot.slane %v5625_v53, 3 }
 0x58c   : >> { %v5645_v24 = vrot.slane %v5626_v2, 3  ;;  %v5637_v23 = vsel %vm780_vm3, %v5635_v47, %v5636_v42  ;;  %v5659_v60 = vadd.f32 %v5635_v47, %v5607_v3  ;;  %v5661_v0 = vadd.f32 %v5636_v42, %v5609_v52  ;;  %v16691_v3 = vld [vmem:[#allocation62_spill] sm:$0xff] }
 0x58d   : >> { %v5640_v10 = vsel %vm780_vm3, %v5638_v37, %v5639_v20  ;;  %v5643_v44 = vsel %vm780_vm3, %v5641_v59, %v5642_v63  ;;  %v5660_v19 = vadd.f32 %v5637_v23, %v5608_v57  ;;  %v5662_v30 = vadd.f32 %v5638_v37, %v5610_v8 }
 0x58e   : >> { %v5646_v61 = vsel %vm780_vm3, %v5644_v27, %v5645_v24  ;;  %v5663_v6 = vadd.f32 %v5640_v10, %v5611_v43  ;;  %v5664_v49 = vadd.f32 %v5639_v20, %v5612_v17  ;;  %v5665_v16 = vadd.f32 %v5641_v59, %v5613_v32 }
 0x58f   : >> { %v5666_v26 = vadd.f32 %v5643_v44, %v5614_v34  ;;  %v5667_v55 = vadd.f32 %v5642_v63, %v5615_v11  ;;  %v5668_v1 = vadd.f32 %v5644_v27, %v5616_v13  ;;  %v5669_v9 = vadd.f32 %v5646_v61, %v5617_v21 }
 0x590   : >> { %v5670_v7 = vadd.f32 %v5645_v24, %v5618_v14  ;;  %v5671_v52 = vmul.f32 %v13995_v36, %v16691_v3  ;;  %v5672_v46 = vmul.f32 %v13998_v5, %v16691_v3  ;;  %v5673_v57 = vmul.f32 %v14118_v39, %v16691_v3 }
 0x591   : >> { %v5674_v8 = vmul.f32 %v14223_v28, %v16691_v3  ;;  %v5675_v43 = vmul.f32 %v14226_v22, %v16691_v3  ;;  %v5676_v17 = vmul.f32 %v14346_v4, %v16691_v3  ;;  %v5677_v32 = vmul.f32 %v14004_v33, %v16691_v3 }
 0x592   : >> { %v5678_v34 = vmul.f32 %v14007_v54, %v16691_v3  ;;  %v5679_v11 = vmul.f32 %v14121_v25, %v16691_v3  ;;  %v5680_v13 = vmul.f32 %v14232_v41, %v16691_v3  ;;  %v5681_v21 = vmul.f32 %v14235_v12, %v16691_v3 }
 0x593   : >> { %v5682_v14 = vmul.f32 %v14349_v35, %v16691_v3  ;;  %v5695_v18 = vrot.slane %v5671_v52, 4  ;;  %v5696_v58 = vrot.slane %v5672_v46, 4  ;;  %v5698_v53 = vrot.slane %v5673_v57, 4 }
 0x594   : >> { %v5700_v2 = vrot.slane %v5674_v8, 4  ;;  %v5701_v47 = vrot.slane %v5675_v43, 4  ;;  %v5703_v42 = vrot.slane %v5676_v17, 4  ;;  %v5705_v37 = vrot.slane %v5677_v32, 4 }
 0x595   : >> { %v5706_v20 = vrot.slane %v5678_v34, 4  ;;  %v5697_v59 = vsel %vm842_vm4, %v5695_v18, %v5696_v58  ;;  %v5699_v63 = vsel %vm842_vm4, %v5696_v58, %v5698_v53  ;;  %v5708_v27 = vrot.slane %v5679_v11, 4 }
 0x596   : >> { %v5710_v24 = vrot.slane %v5680_v13, 4  ;;  %v5702_v23 = vsel %vm842_vm4, %v5700_v2, %v5701_v47  ;;  %v5704_v10 = vsel %vm842_vm4, %v5701_v47, %v5703_v42  ;;  %v5711_v61 = vrot.slane %v5681_v21, 4  ;;  %v16692_v21 = vld [vmem:[#allocation63_spill] sm:$0xff] }
 0x597   : >> { %v5707_v44 = vsel %vm842_vm4, %v5705_v37, %v5706_v20  ;;  %v5709_v3 = vsel %vm842_vm4, %v5706_v20, %v5708_v27  ;;  %v5713_v52 = vrot.slane %v5682_v14, 4  ;;  %v5727_v46 = vadd.f32 %v5695_v18, %v5659_v60 }
 0x598   : >> { %v5728_v57 = vadd.f32 %v5697_v59, %v5660_v19  ;;  %v5712_v8 = vsel %vm842_vm4, %v5710_v24, %v5711_v61  ;;  %v5729_v43 = vadd.f32 %v5699_v63, %v5661_v0  ;;  %v5730_v17 = vadd.f32 %v5700_v2, %v5662_v30 }
 0x599   : >> { %v5731_v32 = vadd.f32 %v5702_v23, %v5663_v6  ;;  %v5714_v34 = vsel %vm842_vm4, %v5711_v61, %v5713_v52  ;;  %v5732_v11 = vadd.f32 %v5704_v10, %v5664_v49  ;;  %v5733_v13 = vadd.f32 %v5705_v37, %v5665_v16 }
 0x59a   : >> { %v5734_v58 = vadd.f32 %v5707_v44, %v5666_v26  ;;  %v5735_v53 = vadd.f32 %v5709_v3, %v5667_v55  ;;  %v5736_v47 = vadd.f32 %v5710_v24, %v5668_v1  ;;  %v5737_v42 = vadd.f32 %v5712_v8, %v5669_v9 }
 0x59b   : >> { %v5738_v38 = vadd.f32 %v5714_v34, %v5670_v7  ;;  %v5739_v20 = vmul.f32 %v13995_v36, %v16692_v21  ;;  %v5740_v60 = vmul.f32 %v13998_v5, %v16692_v21  ;;  %v5741_v0 = vmul.f32 %v14118_v39, %v16692_v21 }
 0x59c   : >> { %v5742_v19 = vmul.f32 %v14223_v28, %v16692_v21  ;;  %v5743_v30 = vmul.f32 %v14226_v22, %v16692_v21  ;;  %v5744_v6 = vmul.f32 %v14346_v4, %v16692_v21  ;;  %v5745_v49 = vmul.f32 %v14004_v33, %v16692_v21 }
 0x59d   : >> { %v5746_v36 = vmul.f32 %v14007_v54, %v16692_v21  ;;  %v5747_v5 = vmul.f32 %v14121_v25, %v16692_v21  ;;  %v5748_v16 = vmul.f32 %v14232_v41, %v16692_v21  ;;  %v5749_v26 = vmul.f32 %v14235_v12, %v16692_v21 }
 0x59e   : >> { %v5750_v55 = vmul.f32 %v14349_v35, %v16692_v21  ;;  %v5763_v1 = vrot.slane %v5739_v20, 5  ;;  %v5764_v9 = vrot.slane %v5740_v60, 5  ;;  %v5766_v7 = vrot.slane %v5741_v0, 5 }
 0x59f   : >> { %v5768_v14 = vrot.slane %v5742_v19, 5  ;;  %v5769_v33 = vrot.slane %v5743_v30, 5  ;;  %v5771_v18 = vrot.slane %v5744_v6, 5  ;;  %v5773_v2 = vrot.slane %v5745_v49, 5 }
 0x5a0   : >> { %v5774_v54 = vrot.slane %v5746_v36, 5  ;;  %v5765_v37 = vsel %vm912_vm5, %v5763_v1, %v5764_v9  ;;  %v5767_v59 = vsel %vm912_vm5, %v5764_v9, %v5766_v7  ;;  %v5776_v63 = vrot.slane %v5747_v5, 5 }
 0x5a1   : >> { %v5778_v27 = vrot.slane %v5748_v16, 5  ;;  %v5770_v24 = vsel %vm912_vm5, %v5768_v14, %v5769_v33  ;;  %v5772_v23 = vsel %vm912_vm5, %v5769_v33, %v5771_v18  ;;  %v5779_v44 = vrot.slane %v5749_v26, 5  ;;  %v9224_v26 = vld [vmem:[%s13202_s26 + $0x108] sm:$0xff] }
 0x5a2   : >> { %v5775_v10 = vsel %vm912_vm5, %v5773_v2, %v5774_v54  ;;  %v5777_v61 = vsel %vm912_vm5, %v5774_v54, %v5776_v63  ;;  %v5781_v3 = vrot.slane %v5750_v55, 5  ;;  %v5795_v52 = vadd.f32 %v5763_v1, %v5727_v46  ;;  %v16693_v46 = vld [vmem:[#allocation64_spill] sm:$0xff] }
 0x5a3   : >> { %v5796_v8 = vadd.f32 %v5765_v37, %v5728_v57  ;;  %v5780_v34 = vsel %vm912_vm5, %v5778_v27, %v5779_v44  ;;  %v5797_v21 = vadd.f32 %v5767_v59, %v5729_v43  ;;  %v5798_v20 = vadd.f32 %v5768_v14, %v5730_v17  ;;  %v9225_v57 = vld [vmem:[%s13202_s26 + $0x110] sm:$0xff] }
 0x5a4   : >> { %v5799_v60 = vadd.f32 %v5770_v24, %v5731_v32  ;;  %v5782_v0 = vsel %vm912_vm5, %v5779_v44, %v5781_v3  ;;  %v5800_v19 = vadd.f32 %v5772_v23, %v5732_v11  ;;  %v5801_v30 = vadd.f32 %v5773_v2, %v5733_v13  ;;  %v9226_v13 = vld [vmem:[%s13202_s26 + $0x148] sm:$0xff] }
 0x5a5   : >> { %v5802_v6 = vadd.f32 %v5775_v10, %v5734_v58  ;;  %v5803_v49 = vadd.f32 %v5777_v61, %v5735_v53  ;;  %v5804_v36 = vadd.f32 %v5778_v27, %v5736_v47  ;;  %v5805_v5 = vadd.f32 %v5780_v34, %v5737_v42  ;;  %v9227_v58 = vld [vmem:[%s13202_s26 + $0x150] sm:$0xff] }
 0x5a6   : >> { %v5806_v16 = vadd.f32 %v5782_v0, %v5738_v38  ;;  %v5807_v55 = vmul.f32 %v9224_v26, %v16693_v46  ;;  %v5808_v1 = vmul.f32 %v9225_v57, %v16693_v46  ;;  %v5809_v43 = vmul.f32 %v14118_v39, %v16693_v46 }
 0x5a7   : >> { %v5810_v17 = vmul.f32 %v14223_v28, %v16693_v46  ;;  %v5811_v32 = vmul.f32 %v14226_v22, %v16693_v46  ;;  %v5812_v11 = vmul.f32 %v14346_v4, %v16693_v46  ;;  %v5813_v38 = vmul.f32 %v9226_v13, %v16693_v46 }
 0x5a8   : >> { %v5814_v53 = vmul.f32 %v9227_v58, %v16693_v46  ;;  %v5815_v47 = vmul.f32 %v14121_v25, %v16693_v46  ;;  %v5816_v39 = vmul.f32 %v14232_v41, %v16693_v46  ;;  %v5817_v42 = vmul.f32 %v14235_v12, %v16693_v46  ;;  %v14454_v58 = vld [vmem:[%s13202_s26 + $0x150] sm:$0xff] }
 0x5a9   : >> { %v5818_v9 = vmul.f32 %v14349_v35, %v16693_v46  ;;  %v5831_v7 = vrot.slane %v5807_v55, 6  ;;  %v5832_v14 = vrot.slane %v5808_v1, 6  ;;  %v5834_v33 = vrot.slane %v5809_v43, 6  ;;  %v14447_v43 = vld [vmem:[%s13202_s26 + $0x140] sm:$0xff] }
 0x5aa   : >> { %v5836_v18 = vrot.slane %v5810_v17, 6  ;;  %v5837_v2 = vrot.slane %v5811_v32, 6  ;;  %v5839_v54 = vrot.slane %v5812_v11, 6  ;;  %v5841_v37 = vrot.slane %v5813_v38, 6  ;;  %v14451_v38 = vld [vmem:[%s13202_s26 + $0x148] sm:$0xff] }
 0x5ab   : >> { %v5842_v59 = vrot.slane %v5814_v53, 6  ;;  %v5833_v63 = vsel %vm982_vm6, %v5831_v7, %v5832_v14  ;;  %v5835_v25 = vsel %vm982_vm6, %v5832_v14, %v5834_v33  ;;  %v5844_v27 = vrot.slane %v5815_v47, 6 }
 0x5ac   : >> { %v5846_v24 = vrot.slane %v5816_v39, 6  ;;  %v5838_v23 = vsel %vm982_vm6, %v5836_v18, %v5837_v2  ;;  %v5840_v10 = vsel %vm982_vm6, %v5837_v2, %v5839_v54  ;;  %v5847_v61 = vrot.slane %v5817_v42, 6  ;;  %v14457_v39 = vld [vmem:[%s13202_s26 + $0x180] sm:$0xff] }
 0x5ad   : >> { %v5843_v44 = vsel %vm982_vm6, %v5841_v37, %v5842_v59  ;;  %v5845_v3 = vsel %vm982_vm6, %v5842_v59, %v5844_v27  ;;  %v5849_v34 = vrot.slane %v5818_v9, 6  ;;  %v5863_v0 = vadd.f32 %v5831_v7, %v5795_v52 }
 0x5ae   : >> { %v5864_v26 = vadd.f32 %v5833_v63, %v5796_v8  ;;  %v5848_v46 = vsel %vm982_vm6, %v5846_v24, %v5847_v61  ;;  %v5865_v55 = vadd.f32 %v5835_v25, %v5797_v21  ;;  %v5866_v57 = vadd.f32 %v5836_v18, %v5798_v20  ;;  %v14460_v21 = vld [vmem:[%s13202_s26 + $0x188] sm:$0xff]  ;;  %v14463_v20 = vld [vmem:[%s13202_s26 + $0x190] sm:$0xff] }
 0x5af   : >> { %v5867_v1 = vadd.f32 %v5838_v23, %v5799_v60  ;;  %v5850_v17 = vsel %vm982_vm6, %v5847_v61, %v5849_v34  ;;  %v5868_v32 = vadd.f32 %v5840_v10, %v5800_v19  ;;  %v5869_v11 = vadd.f32 %v5841_v37, %v5801_v30  ;;  %v16694_v60 = vld [vmem:[#allocation65_spill] sm:$0xff]  ;;  %v16695_v61 = vld [vmem:[#allocation66_spill] sm:$0xff] }
 0x5b0   : >> { %v5870_v13 = vadd.f32 %v5843_v44, %v5802_v6  ;;  %v5871_v52 = vadd.f32 %v5845_v3, %v5803_v49  ;;  %v5872_v8 = vadd.f32 %v5846_v24, %v5804_v36  ;;  %v5873_v53 = vadd.f32 %v5848_v46, %v5805_v5 }
 0x5b1   : >> { %v5874_v47 = vadd.f32 %v5850_v17, %v5806_v16  ;;  %v5894_v42 = vmul.f32 %v14219_v31, %v16694_v60  ;;  %v5895_v19 = vmul.f32 %v14223_v28, %v16694_v60  ;;  %v5896_v30 = vmul.f32 %v14226_v22, %v16694_v60 }
 0x5b2   : >> { %v5897_v6 = vmul.f32 %v14447_v43, %v16694_v60  ;;  %v5898_v49 = vmul.f32 %v14451_v38, %v16694_v60  ;;  %v5899_v36 = vmul.f32 %v14454_v58, %v16694_v60  ;;  %v5900_v5 = vmul.f32 %v14229_v15, %v16694_v60 }
 0x5b3   : >> { %v5901_v16 = vmul.f32 %v14232_v41, %v16694_v60  ;;  %v5902_v9 = vmul.f32 %v14235_v12, %v16694_v60  ;;  %v5903_v7 = vmul.f32 %v14457_v39, %v16694_v60  ;;  %v5904_v14 = vmul.f32 %v14460_v21, %v16694_v60 }
 0x5b4   : >> { %v5905_v33 = vmul.f32 %v14463_v20, %v16694_v60  ;;  %v5906_v18 = vadd.f32 %v5894_v42, %v5863_v0  ;;  %v5907_v2 = vadd.f32 %v5895_v19, %v5864_v26  ;;  %v5908_v54 = vadd.f32 %v5896_v30, %v5865_v55 }
 0x5b5   : >> { %v5909_v37 = vadd.f32 %v5897_v6, %v5866_v57  ;;  %v5910_v59 = vadd.f32 %v5898_v49, %v5867_v1  ;;  %v5911_v63 = vadd.f32 %v5899_v36, %v5868_v32  ;;  %v5912_v25 = vadd.f32 %v5900_v5, %v5869_v11 }
 0x5b6   : >> { %v5913_v27 = vadd.f32 %v5901_v16, %v5870_v13  ;;  %v5914_v24 = vadd.f32 %v5902_v9, %v5871_v52  ;;  %v5915_v23 = vadd.f32 %v5903_v7, %v5872_v8  ;;  %v5916_v10 = vadd.f32 %v5904_v14, %v5873_v53 }
 0x5b7   : >> { %v5917_v44 = vadd.f32 %v5905_v33, %v5874_v47  ;;  %v5918_v3 = vmul.f32 %v14219_v31, %v16695_v61  ;;  %v5919_v34 = vmul.f32 %v14223_v28, %v16695_v61  ;;  %v5920_v0 = vmul.f32 %v14226_v22, %v16695_v61 }
 0x5b8   : >> { %v5921_v26 = vmul.f32 %v14447_v43, %v16695_v61  ;;  %v5922_v46 = vmul.f32 %v14451_v38, %v16695_v61  ;;  %v5923_v55 = vmul.f32 %v14454_v58, %v16695_v61  ;;  %v5924_v57 = vmul.f32 %v14229_v15, %v16695_v61 }
 0x5b9   : >> { %v5925_v1 = vmul.f32 %v14232_v41, %v16695_v61  ;;  %v5926_v17 = vmul.f32 %v14235_v12, %v16695_v61  ;;  %v5927_v32 = vmul.f32 %v14457_v39, %v16695_v61  ;;  %v5928_v11 = vmul.f32 %v14460_v21, %v16695_v61 }
 0x5ba   : >> { %v5929_v13 = vmul.f32 %v14463_v20, %v16695_v61  ;;  %v5942_v52 = vrot.slane %v5918_v3, 1  ;;  %v5943_v8 = vrot.slane %v5919_v34, 1  ;;  %v5945_v53 = vrot.slane %v5920_v0, 1 }
 0x5bb   : >> { %v5947_v47 = vrot.slane %v5921_v26, 1  ;;  %v5948_v60 = vrot.slane %v5922_v46, 1  ;;  %v5950_v42 = vrot.slane %v5923_v55, 1  ;;  %v5952_v19 = vrot.slane %v5924_v57, 1 }
 0x5bc   : >> { %v5953_v30 = vrot.slane %v5925_v1, 1  ;;  %v5944_v6 = vsel %vm648_vm0, %v5942_v52, %v5943_v8  ;;  %v5946_v49 = vsel %vm648_vm0, %v5943_v8, %v5945_v53  ;;  %v5955_v36 = vrot.slane %v5926_v17, 1 }
 0x5bd   : >> { %v5957_v5 = vrot.slane %v5927_v32, 1  ;;  %v5949_v16 = vsel %vm648_vm0, %v5947_v47, %v5948_v60  ;;  %v5951_v9 = vsel %vm648_vm0, %v5948_v60, %v5950_v42  ;;  %v5958_v14 = vrot.slane %v5928_v11, 1  ;;  %v16696_v11 = vld [vmem:[#allocation69_spill] sm:$0xff] }
 0x5be   : >> { %v5954_v7 = vsel %vm648_vm0, %v5952_v19, %v5953_v30  ;;  %v5956_v33 = vsel %vm648_vm0, %v5953_v30, %v5955_v36  ;;  %v5960_v61 = vrot.slane %v5929_v13, 1  ;;  %v5974_v3 = vadd.f32 %v5944_v6, %v5906_v18 }
 0x5bf   : >> { %v5975_v34 = vadd.f32 %v5946_v49, %v5907_v2  ;;  %v5959_v0 = vsel %vm648_vm0, %v5957_v5, %v5958_v14  ;;  %v5976_v26 = vadd.f32 %v5945_v53, %v5908_v54  ;;  %v5977_v46 = vadd.f32 %v5949_v16, %v5909_v37 }
 0x5c0   : >> { %v5978_v55 = vadd.f32 %v5951_v9, %v5910_v59  ;;  %v5961_v57 = vsel %vm648_vm0, %v5958_v14, %v5960_v61  ;;  %v5979_v1 = vadd.f32 %v5950_v42, %v5911_v63  ;;  %v5980_v17 = vadd.f32 %v5954_v7, %v5912_v25 }
 0x5c1   : >> { %v5981_v32 = vadd.f32 %v5956_v33, %v5913_v27  ;;  %v5982_v52 = vadd.f32 %v5955_v36, %v5914_v24  ;;  %v5983_v8 = vadd.f32 %v5959_v0, %v5915_v23  ;;  %v5984_v47 = vadd.f32 %v5961_v57, %v5916_v10 }
 0x5c2   : >> { %v5985_v60 = vadd.f32 %v5960_v61, %v5917_v44  ;;  %v5986_v19 = vmul.f32 %v14219_v31, %v16696_v11  ;;  %v5987_v18 = vmul.f32 %v14223_v28, %v16696_v11  ;;  %v5988_v2 = vmul.f32 %v14226_v22, %v16696_v11 }
 0x5c3   : >> { %v5989_v54 = vmul.f32 %v14447_v43, %v16696_v11  ;;  %v5990_v37 = vmul.f32 %v14451_v38, %v16696_v11  ;;  %v5991_v59 = vmul.f32 %v14454_v58, %v16696_v11  ;;  %v5992_v63 = vmul.f32 %v14229_v15, %v16696_v11 }
 0x5c4   : >> { %v5993_v31 = vmul.f32 %v14232_v41, %v16696_v11  ;;  %v5994_v25 = vmul.f32 %v14235_v12, %v16696_v11  ;;  %v5995_v27 = vmul.f32 %v14457_v39, %v16696_v11  ;;  %v5996_v24 = vmul.f32 %v14460_v21, %v16696_v11 }
 0x5c5   : >> { %v5997_v23 = vmul.f32 %v14463_v20, %v16696_v11  ;;  %v6010_v10 = vrot.slane %v5986_v19, 2  ;;  %v6011_v44 = vrot.slane %v5987_v18, 2  ;;  %v6013_v13 = vrot.slane %v5988_v2, 2 }
 0x5c6   : >> { %v6015_v53 = vrot.slane %v5989_v54, 2  ;;  %v6016_v15 = vrot.slane %v5990_v37, 2  ;;  %v6018_v42 = vrot.slane %v5991_v59, 2  ;;  %v6020_v30 = vrot.slane %v5992_v63, 2 }
 0x5c7   : >> { %v6021_v6 = vrot.slane %v5993_v31, 2  ;;  %v6012_v49 = vsel %vm718_vm1, %v6010_v10, %v6011_v44  ;;  %v6014_v36 = vsel %vm718_vm1, %v6011_v44, %v6013_v13  ;;  %v6023_v5 = vrot.slane %v5994_v25, 2 }
 0x5c8   : >> { %v6025_v16 = vrot.slane %v5995_v27, 2  ;;  %v6017_v9 = vsel %vm718_vm1, %v6015_v53, %v6016_v15  ;;  %v6019_v7 = vsel %vm718_vm1, %v6016_v15, %v6018_v42  ;;  %v6026_v33 = vrot.slane %v5996_v24, 2 }
 0x5c9   : >> { %v6022_v14 = vsel %vm718_vm1, %v6020_v30, %v6021_v6  ;;  %v6024_v61 = vsel %vm718_vm1, %v6021_v6, %v6023_v5  ;;  %v6028_v0 = vrot.slane %v5997_v23, 2  ;;  %v6042_v57 = vadd.f32 %v6012_v49, %v5974_v3 }
 0x5ca   : >> { %v6043_v11 = vadd.f32 %v6014_v36, %v5975_v34  ;;  %v6027_v19 = vsel %vm718_vm1, %v6025_v16, %v6026_v33  ;;  %v6044_v18 = vadd.f32 %v6013_v13, %v5976_v26  ;;  %v6045_v2 = vadd.f32 %v6017_v9, %v5977_v46  ;;  %v14574_v9 = vld [vmem:[%s13202_s26 + $0x158] sm:$0xff] }
 0x5cb   : >> { %v6046_v54 = vadd.f32 %v6019_v7, %v5978_v55  ;;  %v6029_v37 = vsel %vm718_vm1, %v6026_v33, %v6028_v0  ;;  %v6047_v59 = vadd.f32 %v6018_v42, %v5979_v1  ;;  %v6048_v63 = vadd.f32 %v6022_v14, %v5980_v17 }
 0x5cc   : >> { %v6049_v31 = vadd.f32 %v6024_v61, %v5981_v32  ;;  %v6050_v25 = vadd.f32 %v6023_v5, %v5982_v52  ;;  %v6051_v27 = vadd.f32 %v6027_v19, %v5983_v8  ;;  %v6052_v10 = vadd.f32 %v6029_v37, %v5984_v47 }
 0x5cd   : >> { %v6053_v44 = vadd.f32 %v6028_v0, %v5985_v60  ;;  %v6054_v24 = vmul.f32 %v14223_v28, %v11205_v29  ;;  %v6055_v3 = vmul.f32 %v14226_v22, %v11205_v29  ;;  %v6056_v34 = vmul.f32 %v14451_v38, %v11205_v29  ;;  %v14577_v0 = vld [vmem:[%s13202_s26 + $0x198] sm:$0xff] }
 0x5ce   : >> { %v6057_v26 = vmul.f32 %v14454_v58, %v11205_v29  ;;  %v6058_v46 = vmul.f32 %v14232_v41, %v11205_v29  ;;  %v6059_v55 = vmul.f32 %v14235_v12, %v11205_v29  ;;  %v6060_v1 = vmul.f32 %v14460_v21, %v11205_v29 }
 0x5cf   : >> { %v6061_v17 = vmul.f32 %v14463_v20, %v11205_v29  ;;  %v6070_v32 = vrot.slane %v6054_v24, 3  ;;  %v6071_v52 = vrot.slane %v6055_v3, 3  ;;  %v6073_v8 = vrot.slane %v6056_v34, 3  ;;  %v16734_v29 = vld [vmem:[#allocation40_spill] sm:$0xff] (%p14991_p1) }
 0x5d0   : >> { %v6074_v47 = vrot.slane %v6057_v26, 3  ;;  %v6076_v60 = vrot.slane %v6058_v46, 3  ;;  %v6077_v23 = vrot.slane %v6059_v55, 3  ;;  %v6079_v13 = vrot.slane %v6060_v1, 3 }
 0x5d1   : >> { %v6080_v53 = vrot.slane %v6061_v17, 3  ;;  %v6072_v15 = vsel %vm780_vm3, %v6070_v32, %v6071_v52  ;;  %v6094_v30 = vadd.f32 %v6070_v32, %v6042_v57  ;;  %v6096_v6 = vadd.f32 %v6071_v52, %v6044_v18  ;;  %v16697_v57 = vld [vmem:[#allocation72_spill] sm:$0xff] }
 0x5d2   : >> { %v6075_v42 = vsel %vm780_vm3, %v6073_v8, %v6074_v47  ;;  %v6078_v49 = vsel %vm780_vm3, %v6076_v60, %v6077_v23  ;;  %v6095_v5 = vadd.f32 %v6072_v15, %v6043_v11  ;;  %v6097_v16 = vadd.f32 %v6073_v8, %v6045_v2 }
 0x5d3   : >> { %v6081_v36 = vsel %vm780_vm3, %v6079_v13, %v6080_v53  ;;  %v6098_v7 = vadd.f32 %v6075_v42, %v6046_v54  ;;  %v6099_v14 = vadd.f32 %v6074_v47, %v6047_v59  ;;  %v6100_v33 = vadd.f32 %v6076_v60, %v6048_v63 }
 0x5d4   : >> { %v6101_v61 = vadd.f32 %v6078_v49, %v6049_v31  ;;  %v6102_v19 = vadd.f32 %v6077_v23, %v6050_v25  ;;  %v6103_v37 = vadd.f32 %v6079_v13, %v6051_v27  ;;  %v6104_v24 = vadd.f32 %v6081_v36, %v6052_v10 }
 0x5d5   : >> { %v6105_v3 = vadd.f32 %v6080_v53, %v6053_v44  ;;  %v6106_v18 = vmul.f32 %v14223_v28, %v16697_v57  ;;  %v6107_v34 = vmul.f32 %v14226_v22, %v16697_v57  ;;  %v6108_v11 = vmul.f32 %v14346_v4, %v16697_v57 }
 0x5d6   : >> { %v6109_v2 = vmul.f32 %v14451_v38, %v16697_v57  ;;  %v6110_v54 = vmul.f32 %v14454_v58, %v16697_v57  ;;  %v6111_v59 = vmul.f32 %v14574_v9, %v16697_v57  ;;  %v6112_v63 = vmul.f32 %v14232_v41, %v16697_v57 }
 0x5d7   : >> { %v6113_v31 = vmul.f32 %v14235_v12, %v16697_v57  ;;  %v6114_v25 = vmul.f32 %v14349_v35, %v16697_v57  ;;  %v6115_v27 = vmul.f32 %v14460_v21, %v16697_v57  ;;  %v6116_v10 = vmul.f32 %v14463_v20, %v16697_v57 }
 0x5d8   : >> { %v6117_v44 = vmul.f32 %v14577_v0, %v16697_v57  ;;  %v6130_v26 = vrot.slane %v6106_v18, 4  ;;  %v6131_v46 = vrot.slane %v6107_v34, 4  ;;  %v6133_v55 = vrot.slane %v6108_v11, 4 }
 0x5d9   : >> { %v6135_v1 = vrot.slane %v6109_v2, 4  ;;  %v6136_v17 = vrot.slane %v6110_v54, 4  ;;  %v6138_v32 = vrot.slane %v6111_v59, 4  ;;  %v6140_v52 = vrot.slane %v6112_v63, 4 }
 0x5da   : >> { %v6141_v8 = vrot.slane %v6113_v31, 4  ;;  %v6132_v47 = vsel %vm842_vm4, %v6130_v26, %v6131_v46  ;;  %v6134_v60 = vsel %vm842_vm4, %v6131_v46, %v6133_v55  ;;  %v6143_v23 = vrot.slane %v6114_v25, 4 }
 0x5db   : >> { %v6145_v13 = vrot.slane %v6115_v27, 4  ;;  %v6137_v53 = vsel %vm842_vm4, %v6135_v1, %v6136_v17  ;;  %v6139_v15 = vsel %vm842_vm4, %v6136_v17, %v6138_v32  ;;  %v6146_v49 = vrot.slane %v6116_v10, 4  ;;  %v16698_v10 = vld [vmem:[#allocation73_spill] sm:$0xff] }
 0x5dc   : >> { %v6142_v42 = vsel %vm842_vm4, %v6140_v52, %v6141_v8  ;;  %v6144_v36 = vsel %vm842_vm4, %v6141_v8, %v6143_v23  ;;  %v6148_v57 = vrot.slane %v6117_v44, 4  ;;  %v6162_v18 = vadd.f32 %v6130_v26, %v6094_v30 }
 0x5dd   : >> { %v6163_v34 = vadd.f32 %v6132_v47, %v6095_v5  ;;  %v6147_v11 = vsel %vm842_vm4, %v6145_v13, %v6146_v49  ;;  %v6164_v2 = vadd.f32 %v6134_v60, %v6096_v6  ;;  %v6165_v54 = vadd.f32 %v6135_v1, %v6097_v16 }
 0x5de   : >> { %v6166_v59 = vadd.f32 %v6137_v53, %v6098_v7  ;;  %v6149_v63 = vsel %vm842_vm4, %v6146_v49, %v6148_v57  ;;  %v6167_v31 = vadd.f32 %v6139_v15, %v6099_v14  ;;  %v6168_v25 = vadd.f32 %v6140_v52, %v6100_v33 }
 0x5df   : >> { %v6169_v27 = vadd.f32 %v6142_v42, %v6101_v61  ;;  %v6170_v46 = vadd.f32 %v6144_v36, %v6102_v19  ;;  %v6171_v55 = vadd.f32 %v6145_v13, %v6103_v37  ;;  %v6172_v17 = vadd.f32 %v6147_v11, %v6104_v24 }
 0x5e0   : >> { %v6173_v32 = vadd.f32 %v6149_v63, %v6105_v3  ;;  %v6174_v8 = vmul.f32 %v14223_v28, %v16698_v10  ;;  %v6175_v30 = vmul.f32 %v14226_v22, %v16698_v10  ;;  %v6176_v6 = vmul.f32 %v14346_v4, %v16698_v10 }
 0x5e1   : >> { %v6177_v5 = vmul.f32 %v14451_v38, %v16698_v10  ;;  %v6178_v16 = vmul.f32 %v14454_v58, %v16698_v10  ;;  %v6179_v7 = vmul.f32 %v14574_v9, %v16698_v10  ;;  %v6180_v14 = vmul.f32 %v14232_v41, %v16698_v10 }
 0x5e2   : >> { %v6181_v28 = vmul.f32 %v14235_v12, %v16698_v10  ;;  %v6182_v22 = vmul.f32 %v14349_v35, %v16698_v10  ;;  %v6183_v33 = vmul.f32 %v14460_v21, %v16698_v10  ;;  %v6184_v61 = vmul.f32 %v14463_v20, %v16698_v10 }
 0x5e3   : >> { %v6185_v19 = vmul.f32 %v14577_v0, %v16698_v10  ;;  %v6198_v37 = vrot.slane %v6174_v8, 5  ;;  %v6199_v24 = vrot.slane %v6175_v30, 5  ;;  %v6201_v3 = vrot.slane %v6176_v6, 5 }
 0x5e4   : >> { %v6203_v44 = vrot.slane %v6177_v5, 5  ;;  %v6204_v41 = vrot.slane %v6178_v16, 5  ;;  %v6206_v26 = vrot.slane %v6179_v7, 5  ;;  %v6208_v1 = vrot.slane %v6180_v14, 5 }
 0x5e5   : >> { %v6209_v12 = vrot.slane %v6181_v28, 5  ;;  %v6200_v52 = vsel %vm912_vm5, %v6198_v37, %v6199_v24  ;;  %v6202_v47 = vsel %vm912_vm5, %v6199_v24, %v6201_v3  ;;  %v6211_v60 = vrot.slane %v6182_v22, 5 }
 0x5e6   : >> { %v6213_v23 = vrot.slane %v6183_v33, 5  ;;  %v6205_v13 = vsel %vm912_vm5, %v6203_v44, %v6204_v41  ;;  %v6207_v53 = vsel %vm912_vm5, %v6204_v41, %v6206_v26  ;;  %v6214_v42 = vrot.slane %v6184_v61, 5  ;;  %v9228_v61 = vld [vmem:[%s13202_s26 + $0x128] sm:$0xff] }
 0x5e7   : >> { %v6210_v15 = vsel %vm912_vm5, %v6208_v1, %v6209_v12  ;;  %v6212_v49 = vsel %vm912_vm5, %v6209_v12, %v6211_v60  ;;  %v6216_v36 = vrot.slane %v6185_v19, 5  ;;  %v6230_v57 = vadd.f32 %v6198_v37, %v6162_v18  ;;  %v16699_v18 = vld [vmem:[#allocation77_spill] sm:$0xff] }
 0x5e8   : >> { %v6231_v11 = vadd.f32 %v6200_v52, %v6163_v34  ;;  %v6215_v63 = vsel %vm912_vm5, %v6213_v23, %v6214_v42  ;;  %v6232_v10 = vadd.f32 %v6202_v47, %v6164_v2  ;;  %v6233_v8 = vadd.f32 %v6203_v44, %v6165_v54  ;;  %v9229_v34 = vld [vmem:[%s13202_s26 + $0x130] sm:$0xff] }
 0x5e9   : >> { %v6234_v30 = vadd.f32 %v6205_v13, %v6166_v59  ;;  %v6217_v6 = vsel %vm912_vm5, %v6214_v42, %v6216_v36  ;;  %v6235_v5 = vadd.f32 %v6207_v53, %v6167_v31  ;;  %v6236_v16 = vadd.f32 %v6208_v1, %v6168_v25  ;;  %v9230_v25 = vld [vmem:[%s13202_s26 + $0x168] sm:$0xff] }
 0x5ea   : >> { %v6237_v7 = vadd.f32 %v6210_v15, %v6169_v27  ;;  %v6238_v14 = vadd.f32 %v6212_v49, %v6170_v46  ;;  %v6239_v28 = vadd.f32 %v6213_v23, %v6171_v55  ;;  %v6240_v22 = vadd.f32 %v6215_v63, %v6172_v17  ;;  %v9231_v46 = vld [vmem:[%s13202_s26 + $0x170] sm:$0xff] }
 0x5eb   : >> { %v6241_v33 = vadd.f32 %v6217_v6, %v6173_v32  ;;  %v6242_v19 = vmul.f32 %v9228_v61, %v16699_v18  ;;  %v6243_v37 = vmul.f32 %v9229_v34, %v16699_v18  ;;  %v6244_v2 = vmul.f32 %v14346_v4, %v16699_v18 }
 0x5ec   : >> { %v6245_v54 = vmul.f32 %v14451_v38, %v16699_v18  ;;  %v6246_v59 = vmul.f32 %v14454_v58, %v16699_v18  ;;  %v6247_v31 = vmul.f32 %v14574_v9, %v16699_v18  ;;  %v6248_v27 = vmul.f32 %v9230_v25, %v16699_v18 }
 0x5ed   : >> { %v6249_v55 = vmul.f32 %v9231_v46, %v16699_v18  ;;  %v6250_v17 = vmul.f32 %v14349_v35, %v16699_v18  ;;  %v6251_v4 = vmul.f32 %v14460_v21, %v16699_v18  ;;  %v6252_v32 = vmul.f32 %v14463_v20, %v16699_v18  ;;  %v14682_v46 = vld [vmem:[%s13202_s26 + $0x170] sm:$0xff] }
 0x5ee   : >> { %v6253_v24 = vmul.f32 %v14577_v0, %v16699_v18  ;;  %v6266_v3 = vrot.slane %v6242_v19, 6  ;;  %v6267_v44 = vrot.slane %v6243_v37, 6  ;;  %v6269_v41 = vrot.slane %v6244_v2, 6  ;;  %v14675_v2 = vld [vmem:[%s13202_s26 + $0x160] sm:$0xff] }
 0x5ef   : >> { %v6271_v26 = vrot.slane %v6245_v54, 6  ;;  %v6272_v1 = vrot.slane %v6246_v59, 6  ;;  %v6274_v12 = vrot.slane %v6247_v31, 6  ;;  %v6276_v52 = vrot.slane %v6248_v27, 6  ;;  %v14679_v27 = vld [vmem:[%s13202_s26 + $0x168] sm:$0xff] }
 0x5f0   : >> { %v6277_v47 = vrot.slane %v6249_v55, 6  ;;  %v6268_v60 = vsel %vm982_vm6, %v6266_v3, %v6267_v44  ;;  %v6270_v35 = vsel %vm982_vm6, %v6267_v44, %v6269_v41  ;;  %v6279_v23 = vrot.slane %v6250_v17, 6 }
 0x5f1   : >> { %v6281_v13 = vrot.slane %v6251_v4, 6  ;;  %v6273_v53 = vsel %vm982_vm6, %v6271_v26, %v6272_v1  ;;  %v6275_v15 = vsel %vm982_vm6, %v6272_v1, %v6274_v12  ;;  %v6282_v49 = vrot.slane %v6252_v32, 6  ;;  %v14685_v4 = vld [vmem:[%s13202_s26 + $0x1a0] sm:$0xff] }
 0x5f2   : >> { %v6278_v42 = vsel %vm982_vm6, %v6276_v52, %v6277_v47  ;;  %v6280_v36 = vsel %vm982_vm6, %v6277_v47, %v6279_v23  ;;  %v6284_v63 = vrot.slane %v6253_v24, 6  ;;  %v6298_v6 = vadd.f32 %v6266_v3, %v6230_v57 }
 0x5f3   : >> { %v6299_v61 = vadd.f32 %v6268_v60, %v6231_v11  ;;  %v6283_v18 = vsel %vm982_vm6, %v6281_v13, %v6282_v49  ;;  %v6300_v19 = vadd.f32 %v6270_v35, %v6232_v10  ;;  %v6301_v34 = vadd.f32 %v6271_v26, %v6233_v8  ;;  %v14688_v10 = vld [vmem:[%s13202_s26 + $0x1a8] sm:$0xff]  ;;  %v14691_v8 = vld [vmem:[%s13202_s26 + $0x1b0] sm:$0xff] }
 0x5f4   : >> { %v6302_v37 = vadd.f32 %v6273_v53, %v6234_v30  ;;  %v6285_v54 = vsel %vm982_vm6, %v6282_v49, %v6284_v63  ;;  %v6303_v59 = vadd.f32 %v6275_v15, %v6235_v5  ;;  %v6304_v31 = vadd.f32 %v6276_v52, %v6236_v16  ;;  %v16700_v30 = vld [vmem:[#allocation79_spill] sm:$0xff]  ;;  %v16701_v49 = vld [vmem:[#allocation80_spill] sm:$0xff] }
 0x5f5   : >> { %v6305_v25 = vadd.f32 %v6278_v42, %v6237_v7  ;;  %v6306_v57 = vadd.f32 %v6280_v36, %v6238_v14  ;;  %v6307_v11 = vadd.f32 %v6281_v13, %v6239_v28  ;;  %v6308_v55 = vadd.f32 %v6283_v18, %v6240_v22 }
 0x5f6   : >> { %v6309_v17 = vadd.f32 %v6285_v54, %v6241_v33  ;;  %v6329_v32 = vmul.f32 %v14447_v43, %v16700_v30  ;;  %v6330_v5 = vmul.f32 %v14451_v38, %v16700_v30  ;;  %v6331_v16 = vmul.f32 %v14454_v58, %v16700_v30 }
 0x5f7   : >> { %v6332_v7 = vmul.f32 %v14675_v2, %v16700_v30  ;;  %v6333_v14 = vmul.f32 %v14679_v27, %v16700_v30  ;;  %v6334_v28 = vmul.f32 %v14682_v46, %v16700_v30  ;;  %v6335_v22 = vmul.f32 %v14457_v39, %v16700_v30 }
 0x5f8   : >> { %v6336_v33 = vmul.f32 %v14460_v21, %v16700_v30  ;;  %v6337_v24 = vmul.f32 %v14463_v20, %v16700_v30  ;;  %v6338_v3 = vmul.f32 %v14685_v4, %v16700_v30  ;;  %v6339_v44 = vmul.f32 %v14688_v10, %v16700_v30 }
 0x5f9   : >> { %v6340_v41 = vmul.f32 %v14691_v8, %v16700_v30  ;;  %v6341_v26 = vadd.f32 %v6329_v32, %v6298_v6  ;;  %v6342_v1 = vadd.f32 %v6330_v5, %v6299_v61  ;;  %v6343_v12 = vadd.f32 %v6331_v16, %v6300_v19 }
 0x5fa   : >> { %v6344_v52 = vadd.f32 %v6332_v7, %v6301_v34  ;;  %v6345_v47 = vadd.f32 %v6333_v14, %v6302_v37  ;;  %v6346_v60 = vadd.f32 %v6334_v28, %v6303_v59  ;;  %v6347_v35 = vadd.f32 %v6335_v22, %v6304_v31 }
 0x5fb   : >> { %v6348_v23 = vadd.f32 %v6336_v33, %v6305_v25  ;;  %v6349_v13 = vadd.f32 %v6337_v24, %v6306_v57  ;;  %v6350_v53 = vadd.f32 %v6338_v3, %v6307_v11  ;;  %v6351_v15 = vadd.f32 %v6339_v44, %v6308_v55 }
 0x5fc   : >> { %v6352_v42 = vadd.f32 %v6340_v41, %v6309_v17  ;;  %v6353_v36 = vmul.f32 %v14447_v43, %v16701_v49  ;;  %v6354_v63 = vmul.f32 %v14451_v38, %v16701_v49  ;;  %v6355_v6 = vmul.f32 %v14454_v58, %v16701_v49 }
 0x5fd   : >> { %v6356_v61 = vmul.f32 %v14675_v2, %v16701_v49  ;;  %v6357_v18 = vmul.f32 %v14679_v27, %v16701_v49  ;;  %v6358_v19 = vmul.f32 %v14682_v46, %v16701_v49  ;;  %v6359_v34 = vmul.f32 %v14457_v39, %v16701_v49 }
 0x5fe   : >> { %v6360_v37 = vmul.f32 %v14460_v21, %v16701_v49  ;;  %v6361_v54 = vmul.f32 %v14463_v20, %v16701_v49  ;;  %v6362_v59 = vmul.f32 %v14685_v4, %v16701_v49  ;;  %v6363_v31 = vmul.f32 %v14688_v10, %v16701_v49 }
 0x5ff   : >> { %v6364_v25 = vmul.f32 %v14691_v8, %v16701_v49  ;;  %v6377_v57 = vrot.slane %v6353_v36, 1  ;;  %v6378_v11 = vrot.slane %v6354_v63, 1  ;;  %v6380_v55 = vrot.slane %v6355_v6, 1 }
 0x600   : >> { %v6382_v17 = vrot.slane %v6356_v61, 1  ;;  %v6383_v30 = vrot.slane %v6357_v18, 1  ;;  %v6385_v32 = vrot.slane %v6358_v19, 1  ;;  %v6387_v5 = vrot.slane %v6359_v34, 1 }
 0x601   : >> { %v6388_v16 = vrot.slane %v6360_v37, 1  ;;  %v6379_v7 = vsel %vm648_vm0, %v6377_v57, %v6378_v11  ;;  %v6381_v14 = vsel %vm648_vm0, %v6378_v11, %v6380_v55  ;;  %v6390_v28 = vrot.slane %v6361_v54, 1 }
 0x602   : >> { %v6392_v22 = vrot.slane %v6362_v59, 1  ;;  %v6384_v33 = vsel %vm648_vm0, %v6382_v17, %v6383_v30  ;;  %v6386_v24 = vsel %vm648_vm0, %v6383_v30, %v6385_v32  ;;  %v6393_v44 = vrot.slane %v6363_v31, 1  ;;  %v16702_v31 = vld [vmem:[#allocation81_spill] sm:$0xff] }
 0x603   : >> { %v6389_v3 = vsel %vm648_vm0, %v6387_v5, %v6388_v16  ;;  %v6391_v41 = vsel %vm648_vm0, %v6388_v16, %v6390_v28  ;;  %v6395_v49 = vrot.slane %v6364_v25, 1  ;;  %v6409_v36 = vadd.f32 %v6379_v7, %v6341_v26 }
 0x604   : >> { %v6410_v63 = vadd.f32 %v6381_v14, %v6342_v1  ;;  %v6394_v6 = vsel %vm648_vm0, %v6392_v22, %v6393_v44  ;;  %v6411_v61 = vadd.f32 %v6380_v55, %v6343_v12  ;;  %v6412_v18 = vadd.f32 %v6384_v33, %v6344_v52 }
 0x605   : >> { %v6413_v19 = vadd.f32 %v6386_v24, %v6345_v47  ;;  %v6396_v34 = vsel %vm648_vm0, %v6393_v44, %v6395_v49  ;;  %v6414_v37 = vadd.f32 %v6385_v32, %v6346_v60  ;;  %v6415_v54 = vadd.f32 %v6389_v3, %v6347_v35 }
 0x606   : >> { %v6416_v59 = vadd.f32 %v6391_v41, %v6348_v23  ;;  %v6417_v57 = vadd.f32 %v6390_v28, %v6349_v13  ;;  %v6418_v11 = vadd.f32 %v6394_v6, %v6350_v53  ;;  %v6419_v17 = vadd.f32 %v6396_v34, %v6351_v15 }
 0x607   : >> { %v6420_v30 = vadd.f32 %v6395_v49, %v6352_v42  ;;  %v6421_v5 = vmul.f32 %v14447_v43, %v16702_v31  ;;  %v6422_v26 = vmul.f32 %v14451_v38, %v16702_v31  ;;  %v6423_v1 = vmul.f32 %v14454_v58, %v16702_v31 }
 0x608   : >> { %v6424_v12 = vmul.f32 %v14675_v2, %v16702_v31  ;;  %v6425_v52 = vmul.f32 %v14679_v27, %v16702_v31  ;;  %v6426_v47 = vmul.f32 %v14682_v46, %v16702_v31  ;;  %v6427_v60 = vmul.f32 %v14457_v39, %v16702_v31 }
 0x609   : >> { %v6428_v43 = vmul.f32 %v14460_v21, %v16702_v31  ;;  %v6429_v35 = vmul.f32 %v14463_v20, %v16702_v31  ;;  %v6430_v23 = vmul.f32 %v14685_v4, %v16702_v31  ;;  %v6431_v2 = vmul.f32 %v14688_v10, %v16702_v31 }
 0x60a   : >> { %v6432_v13 = vmul.f32 %v14691_v8, %v16702_v31  ;;  %v6445_v53 = vrot.slane %v6421_v5, 2  ;;  %v6446_v15 = vrot.slane %v6422_v26, 2  ;;  %v6448_v42 = vrot.slane %v6423_v1, 2 }
 0x60b   : >> { %v6450_v25 = vrot.slane %v6424_v12, 2  ;;  %v6451_v39 = vrot.slane %v6425_v52, 2  ;;  %v6453_v55 = vrot.slane %v6426_v47, 2  ;;  %v6455_v32 = vrot.slane %v6427_v60, 2 }
 0x60c   : >> { %v6456_v16 = vrot.slane %v6428_v43, 2  ;;  %v6447_v7 = vsel %vm718_vm1, %v6445_v53, %v6446_v15  ;;  %v6449_v14 = vsel %vm718_vm1, %v6446_v15, %v6448_v42  ;;  %v6458_v28 = vrot.slane %v6429_v35, 2 }
 0x60d   : >> { %v6460_v4 = vrot.slane %v6430_v23, 2  ;;  %v6452_v22 = vsel %vm718_vm1, %v6450_v25, %v6451_v39  ;;  %v6454_v33 = vsel %vm718_vm1, %v6451_v39, %v6453_v55  ;;  %v6461_v3 = vrot.slane %v6431_v2, 2  ;;  %v16703_v2 = vld [vmem:[#allocation31_spill] sm:$0xff] }
 0x60e   : >> { %v6457_v24 = vsel %vm718_vm1, %v6455_v32, %v6456_v16  ;;  %v6459_v44 = vsel %vm718_vm1, %v6456_v16, %v6458_v28  ;;  %v6463_v41 = vrot.slane %v6432_v13, 2  ;;  %v6477_v49 = vadd.f32 %v6447_v7, %v6409_v36 }
 0x60f   : >> { %v6478_v6 = vadd.f32 %v6449_v14, %v6410_v63  ;;  %v6462_v34 = vsel %vm718_vm1, %v6460_v4, %v6461_v3  ;;  %v6479_v31 = vadd.f32 %v6448_v42, %v6411_v61  ;;  %v6480_v5 = vadd.f32 %v6452_v22, %v6412_v18  ;;  %v14802_v4 = vld [vmem:[%s13202_s26 + $0x178] sm:$0xff] }
 0x610   : >> { %v6481_v26 = vadd.f32 %v6454_v33, %v6413_v19  ;;  %v6464_v1 = vsel %vm718_vm1, %v6461_v3, %v6463_v41  ;;  %v6482_v12 = vadd.f32 %v6453_v55, %v6414_v37  ;;  %v6483_v52 = vadd.f32 %v6457_v24, %v6415_v54 }
 0x611   : >> { %v6484_v47 = vadd.f32 %v6459_v44, %v6416_v59  ;;  %v6485_v60 = vadd.f32 %v6458_v28, %v6417_v57  ;;  %v6486_v43 = vadd.f32 %v6462_v34, %v6418_v11  ;;  %v6487_v35 = vadd.f32 %v6464_v1, %v6419_v17  ;;  %v14805_v44 = vld [vmem:[%s13202_s26 + $0x1b8] sm:$0xff] }
 0x612   : >> { %v6488_v23 = vadd.f32 %v6463_v41, %v6420_v30  ;;  %v6489_v53 = vmul.f32 %v14451_v38, %v16703_v2  ;;  %v6490_v36 = vmul.f32 %v14454_v58, %v16703_v2  ;;  %v6491_v63 = vmul.f32 %v14679_v27, %v16703_v2 }
 0x613   : >> { %v6492_v61 = vmul.f32 %v14682_v46, %v16703_v2  ;;  %v6493_v18 = vmul.f32 %v14460_v21, %v16703_v2  ;;  %v6494_v19 = vmul.f32 %v14463_v20, %v16703_v2  ;;  %v6495_v37 = vmul.f32 %v14688_v10, %v16703_v2 }
 0x614   : >> { %v6496_v54 = vmul.f32 %v14691_v8, %v16703_v2  ;;  %v6505_v59 = vrot.slane %v6489_v53, 3  ;;  %v6506_v57 = vrot.slane %v6490_v36, 3  ;;  %v6508_v11 = vrot.slane %v6491_v63, 3 }
 0x615   : >> { %v6509_v17 = vrot.slane %v6492_v61, 3  ;;  %v6511_v30 = vrot.slane %v6493_v18, 3  ;;  %v6512_v13 = vrot.slane %v6494_v19, 3  ;;  %v6514_v15 = vrot.slane %v6495_v37, 3 }
 0x616   : >> { %v6515_v42 = vrot.slane %v6496_v54, 3  ;;  %v6507_v25 = vsel %vm780_vm3, %v6505_v59, %v6506_v57  ;;  %v6529_v55 = vadd.f32 %v6505_v59, %v6477_v49  ;;  %v6531_v32 = vadd.f32 %v6506_v57, %v6479_v31  ;;  %v16704_v49 = vld [vmem:[#allocation82_spill] sm:$0xff] }
 0x617   : >> { %v6510_v39 = vsel %vm780_vm3, %v6508_v11, %v6509_v17  ;;  %v6513_v16 = vsel %vm780_vm3, %v6511_v30, %v6512_v13  ;;  %v6530_v14 = vadd.f32 %v6507_v25, %v6478_v6  ;;  %v6532_v28 = vadd.f32 %v6508_v11, %v6480_v5 }
 0x618   : >> { %v6516_v7 = vsel %vm780_vm3, %v6514_v15, %v6515_v42  ;;  %v6533_v22 = vadd.f32 %v6510_v39, %v6481_v26  ;;  %v6534_v33 = vadd.f32 %v6509_v17, %v6482_v12  ;;  %v6535_v24 = vadd.f32 %v6511_v30, %v6483_v52  ;;  %v14836_v39 = vpop.f32.mrf.mxu1 }
 0x619   : >> { %v6536_v3 = vadd.f32 %v6513_v16, %v6484_v47  ;;  %v6537_v41 = vadd.f32 %v6512_v13, %v6485_v60  ;;  %v6538_v34 = vadd.f32 %v6514_v15, %v6486_v43  ;;  %v6539_v1 = vadd.f32 %v6516_v7, %v6487_v35 }
 0x61a   : >> { %v6540_v2 = vadd.f32 %v6515_v42, %v6488_v23  ;;  %v6541_v31 = vmul.f32 %v14451_v38, %v16704_v49  ;;  %v6542_v53 = vmul.f32 %v14454_v58, %v16704_v49  ;;  %v6543_v6 = vmul.f32 %v14574_v9, %v16704_v49 }
 0x61b   : >> { %v6544_v5 = vmul.f32 %v14679_v27, %v16704_v49  ;;  %v6545_v26 = vmul.f32 %v14682_v46, %v16704_v49  ;;  %v6546_v12 = vmul.f32 %v14802_v4, %v16704_v49  ;;  %v6547_v52 = vmul.f32 %v14460_v21, %v16704_v49 }
 0x61c   : >> { %v6548_v47 = vmul.f32 %v14463_v20, %v16704_v49  ;;  %v6549_v60 = vmul.f32 %v14577_v0, %v16704_v49  ;;  %v6550_v43 = vmul.f32 %v14688_v10, %v16704_v49  ;;  %v6551_v35 = vmul.f32 %v14691_v8, %v16704_v49 }
 0x61d   : >> { %v6552_v23 = vmul.f32 %v14805_v44, %v16704_v49  ;;  %v6565_v36 = vrot.slane %v6541_v31, 4  ;;  %v6566_v63 = vrot.slane %v6542_v53, 4  ;;  %v6568_v61 = vrot.slane %v6543_v6, 4 }
 0x61e   : >> { %v6570_v18 = vrot.slane %v6544_v5, 4  ;;  %v6571_v19 = vrot.slane %v6545_v26, 4  ;;  %v6573_v37 = vrot.slane %v6546_v12, 4  ;;  %v6575_v54 = vrot.slane %v6547_v52, 4 }
 0x61f   : >> { %v6576_v59 = vrot.slane %v6548_v47, 4  ;;  %v6567_v57 = vsel %vm842_vm4, %v6565_v36, %v6566_v63  ;;  %v6569_v11 = vsel %vm842_vm4, %v6566_v63, %v6568_v61  ;;  %v6578_v17 = vrot.slane %v6549_v60, 4 }
 0x620   : >> { %v6580_v30 = vrot.slane %v6550_v43, 4  ;;  %v6572_v13 = vsel %vm842_vm4, %v6570_v18, %v6571_v19  ;;  %v6574_v15 = vsel %vm842_vm4, %v6571_v19, %v6573_v37  ;;  %v6581_v25 = vrot.slane %v6551_v35, 4  ;;  %v16705_v19 = vld [vmem:[#allocation87_spill] sm:$0xff] }
 0x621   : >> { %v6577_v42 = vsel %vm842_vm4, %v6575_v54, %v6576_v59  ;;  %v6579_v16 = vsel %vm842_vm4, %v6576_v59, %v6578_v17  ;;  %v6583_v7 = vrot.slane %v6552_v23, 4  ;;  %v6597_v49 = vadd.f32 %v6565_v36, %v6529_v55 }
 0x622   : >> { %v6598_v31 = vadd.f32 %v6567_v57, %v6530_v14  ;;  %v6582_v53 = vsel %vm842_vm4, %v6580_v30, %v6581_v25  ;;  %v6599_v6 = vadd.f32 %v6569_v11, %v6531_v32  ;;  %v6600_v5 = vadd.f32 %v6570_v18, %v6532_v28 }
 0x623   : >> { %v6601_v26 = vadd.f32 %v6572_v13, %v6533_v22  ;;  %v6584_v12 = vsel %vm842_vm4, %v6581_v25, %v6583_v7  ;;  %v6602_v52 = vadd.f32 %v6574_v15, %v6534_v33  ;;  %v6603_v47 = vadd.f32 %v6575_v54, %v6535_v24 }
 0x624   : >> { %v6604_v60 = vadd.f32 %v6577_v42, %v6536_v3  ;;  %v6605_v43 = vadd.f32 %v6579_v16, %v6537_v41  ;;  %v6606_v63 = vadd.f32 %v6580_v30, %v6538_v34  ;;  %v6607_v35 = vadd.f32 %v6582_v53, %v6539_v1  ;;  %v14865_v34 = vpop.f32.mrf.mxu3  ;;  %v14869_v30 = vpop.f32.mrf.mxu1 }
 0x625   : >> { %v6608_v61 = vadd.f32 %v6584_v12, %v6540_v2  ;;  %v6609_v37 = vmul.f32 %v14451_v38, %v16705_v19  ;;  %v6610_v55 = vmul.f32 %v14454_v58, %v16705_v19  ;;  %v6611_v32 = vmul.f32 %v14574_v9, %v16705_v19 }
 0x626   : >> { %v6612_v14 = vmul.f32 %v14679_v27, %v16705_v19  ;;  %v6613_v28 = vmul.f32 %v14682_v46, %v16705_v19  ;;  %v6614_v22 = vmul.f32 %v14802_v4, %v16705_v19  ;;  %v6615_v33 = vmul.f32 %v14460_v21, %v16705_v19 }
 0x627   : >> { %v6616_v38 = vmul.f32 %v14463_v20, %v16705_v19  ;;  %v6617_v58 = vmul.f32 %v14577_v0, %v16705_v19  ;;  %v6618_v24 = vmul.f32 %v14688_v10, %v16705_v19  ;;  %v6619_v3 = vmul.f32 %v14691_v8, %v16705_v19 }
 0x628   : >> { %v6620_v41 = vmul.f32 %v14805_v44, %v16705_v19  ;;  %v6633_v1 = vrot.slane %v6609_v37, 5  ;;  %v6634_v2 = vrot.slane %v6610_v55, 5  ;;  %v6636_v21 = vrot.slane %v6611_v32, 5 }
 0x629   : >> { %v6638_v23 = vrot.slane %v6612_v14, 5  ;;  %v6639_v36 = vrot.slane %v6613_v28, 5  ;;  %v6641_v20 = vrot.slane %v6614_v22, 5  ;;  %v6643_v18 = vrot.slane %v6615_v33, 5 }
 0x62a   : >> { %v6644_v54 = vrot.slane %v6616_v38, 5  ;;  %v6635_v59 = vsel %vm912_vm5, %v6633_v1, %v6634_v2  ;;  %v6637_v57 = vsel %vm912_vm5, %v6634_v2, %v6636_v21  ;;  %v6646_v11 = vrot.slane %v6617_v58, 5  ;;  %v9233_v2 = vld [vmem:[%s13202_s26 + $0x150] sm:$0xff] }
 0x62b   : >> { %v6648_v17 = vrot.slane %v6618_v24, 5  ;;  %v6640_v13 = vsel %vm912_vm5, %v6638_v23, %v6639_v36  ;;  %v6642_v15 = vsel %vm912_vm5, %v6639_v36, %v6641_v20  ;;  %v6649_v25 = vrot.slane %v6619_v3, 5 }
 0x62c   : >> { %v6645_v42 = vsel %vm912_vm5, %v6643_v18, %v6644_v54  ;;  %v6647_v16 = vsel %vm912_vm5, %v6644_v54, %v6646_v11  ;;  %v6651_v7 = vrot.slane %v6620_v41, 5  ;;  %v6665_v53 = vadd.f32 %v6633_v1, %v6597_v49  ;;  %v14877_v41 = vpop.f32.mrf.mxu3  ;;  %v9232_v49 = vld [vmem:[%s13202_s26 + $0x148] sm:$0xff] }
 0x62d   : >> { %v6666_v12 = vadd.f32 %v6635_v59, %v6598_v31  ;;  %v6650_v19 = vsel %vm912_vm5, %v6648_v17, %v6649_v25  ;;  %v6667_v37 = vadd.f32 %v6637_v57, %v6599_v6  ;;  %v6668_v55 = vadd.f32 %v6638_v23, %v6600_v5  ;;  %v16706_v31 = vld [vmem:[#allocation83_spill] sm:$0xff]  ;;  %v7533_v57 = vpop.f32.mrf.mxu1 }
 0x62e   : >> { %v6669_v32 = vadd.f32 %v6640_v13, %v6601_v26  ;;  %v6652_v14 = vsel %vm912_vm5, %v6649_v25, %v6651_v7  ;;  %v6670_v28 = vadd.f32 %v6642_v15, %v6602_v52  ;;  %v6671_v22 = vadd.f32 %v6643_v18, %v6603_v47 }
 0x62f   : >> { %v6672_v33 = vadd.f32 %v6645_v42, %v6604_v60  ;;  %v6673_v38 = vadd.f32 %v6647_v16, %v6605_v43  ;;  %v6674_v58 = vadd.f32 %v6648_v17, %v6606_v63  ;;  %v6675_v24 = vadd.f32 %v6650_v19, %v6607_v35  ;;  %v9234_v60 = vld [vmem:[%s13202_s26 + $0x188] sm:$0xff]  ;;  %v9235_v63 = vld [vmem:[%s13202_s26 + $0x190] sm:$0xff]  ;;  %s9404_s26 = scalar_lea.hbm (%p14991_p1), %s9403_s23, 256 }
 0x630   : >> { %v6676_v3 = vadd.f32 %v6652_v14, %v6608_v61  ;;  %v6677_v1 = vmul.f32 %v9232_v49, %v16706_v31  ;;  %v6678_v6 = vmul.f32 %v9233_v2, %v16706_v31  ;;  %v6679_v5 = vmul.f32 %v16706_v31, %v14574_v9  ;;  %p9405_p4 = scmp.ne.s32.totalorder (%p14991_p1), %s9403_s23, %s9404_s26 }
 0x631   : >> { %v6680_v26 = vmul.f32 %v16706_v31, %v14679_v27  ;;  %v6681_v52 = vmul.f32 %v16706_v31, %v14682_v46  ;;  %v6682_v47 = vmul.f32 %v16706_v31, %v14802_v4  ;;  %v6683_v43 = vmul.f32 %v9234_v60, %v16706_v31 }
 0x632   : >> { %v6684_v35 = vmul.f32 %v9235_v63, %v16706_v31  ;;  %v6685_v61 = vmul.f32 %v16706_v31, %v14577_v0  ;;  %v6686_v9 = vmul.f32 %v16706_v31, %v14688_v10  ;;  %v6687_v27 = vmul.f32 %v16706_v31, %v14691_v8  ;;  %p9406_p8 = pnand (%p14991_p1), %p9405_p4, %p9718_p3 }
 0x633   : >> { %v6688_v46 = vmul.f32 %v16706_v31, %v14805_v44  ;;  %v6701_v21 = vrot.slane %v6677_v1, 6  ;;  %v6702_v4 = vrot.slane %v6678_v6, 6  ;;  %v6704_v23 = vrot.slane %v6679_v5, 6 }
 0x634   : >> { %v6706_v36 = vrot.slane %v6680_v26, 6  ;;  %v6707_v20 = vrot.slane %v6681_v52, 6  ;;  %v6709_v18 = vrot.slane %v6682_v47, 6  ;;  %v6711_v54 = vrot.slane %v6683_v43, 6  ;;  %v7543_v19 = vpop.f32.mrf.mxu3  ;;  %p9407_p11 = pneg (%p14991_p1), %p9406_p8 }
 0x635   : >> { %v6712_v59 = vrot.slane %v6684_v35, 6  ;;  %v6703_v0 = vsel %vm982_vm6, %v6701_v21, %v6702_v4  ;;  %v6705_v11 = vsel %vm982_vm6, %v6702_v4, %v6704_v23  ;;  %v6714_v10 = vrot.slane %v6685_v61, 6  ;;  %v7535_v23 = vpop.f32.mrf.mxu1 }
 0x636   : >> { %v6716_v17 = vrot.slane %v6686_v9, 6  ;;  %v6708_v8 = vsel %vm982_vm6, %v6706_v36, %v6707_v20  ;;  %v6710_v13 = vsel %vm982_vm6, %v6707_v20, %v6709_v18  ;;  %v6717_v15 = vrot.slane %v6687_v27, 6  ;;  %v16718_v27 = vld [vmem:[#allocation20_spill] sm:$0xff] }
 0x637   : >> { %v6713_v44 = vsel %vm982_vm6, %v6711_v54, %v6712_v59  ;;  %v6715_v42 = vsel %vm982_vm6, %v6712_v59, %v6714_v10  ;;  %v6719_v25 = vrot.slane %v6688_v46, 6  ;;  %v6733_v16 = vadd.f32 %v6701_v21, %v6665_v53  ;;  %v16720_v21 = vld [vmem:[#allocation21_spill] sm:$0xff] }
 0x638   : >> { %v6734_v7 = vadd.f32 %v6703_v0, %v6666_v12  ;;  %v6718_v14 = vsel %vm982_vm6, %v6716_v17, %v6717_v15  ;;  %v6735_v49 = vadd.f32 %v6705_v11, %v6667_v37  ;;  %v6736_v1 = vadd.f32 %v6706_v36, %v6668_v55  ;;  %v7561_v0 = vld [vmem:[%s14957_s1] sm:$0xff]  ;;  %v7562_v11 = vld [vmem:[%s14957_s1 + $0x8] sm:$0xff] }
 0x639   : >> { %v6737_v2 = vadd.f32 %v6708_v8, %v6669_v32  ;;  %v6720_v6 = vsel %vm982_vm6, %v6717_v15, %v6719_v25  ;;  %v6738_v5 = vadd.f32 %v6710_v13, %v6670_v28  ;;  %v6739_v26 = vadd.f32 %v6711_v54, %v6671_v22  ;;  %v7563_v15 = vld [vmem:[%s14957_s1 + $0x10] sm:$0xff] }
 0x63a   : >> { %v6740_v52 = vadd.f32 %v6713_v44, %v6672_v33  ;;  %v6741_v47 = vadd.f32 %v6715_v42, %v6673_v38  ;;  %v6742_v60 = vadd.f32 %v6716_v17, %v6674_v58  ;;  %v6743_v43 = vadd.f32 %v6718_v14, %v6675_v24  ;;  %v7564_v14 = vld [vmem:[%s14957_s1 + $0x18] sm:$0xff] }
 0x63b   : >> { %v6744_v63 = vadd.f32 %v6720_v6, %v6676_v3  ;;  %v14912_v53 = vadd.f32 %v11797_v40, %v6733_v16   ;;  %v14915_v32 = vadd.f32 %v11797_v40, %v6734_v7   ;;  %v14918_v20 = vadd.f32 %v11797_v40, %v6735_v49  }
 0x63c   : >> { %v14921_v55 = vadd.f32 %v11797_v40, %v6736_v1   ;;  %v14925_v10 = vadd.f32 %v11797_v40, %v6737_v2   ;;  %v14928_v35 = vadd.f32 %v11797_v40, %v6738_v5   ;;  %v14934_v42 = vadd.f32 %v11797_v40, %v6740_v52   ;;  %v7545_v36 = vpop.f32.mrf.mxu3 }
 0x63d   : >> { %v16707_v12 = vmov %v14912_v53  ;;  %v16708_v61 = vmov %v14915_v32  ;;  %v16709_v37 = vmov %v14918_v20  ;;  %v14931_v53 = vadd.f32 %v11797_v40, %v6739_v26   ;;  %v7568_v26 = vld [vmem:[%s14957_s1 + $0x38] sm:$0xff] }
 0x63e   : >> { %v16710_v28 = vmov %v14925_v10  ;;  %v16711_v22 = vmov %v14928_v35  ;;  %v16713_v38 = vmov %v14934_v42  ;;  %v14937_v47 = vadd.f32 %v11797_v40, %v6741_v47   ;;  %v7565_v10 = vld [vmem:[%s14957_s1 + $0x20] sm:$0xff]  ;;  %v7566_v42 = vld [vmem:[%s14957_s1 + $0x28] sm:$0xff] }
 0x63f   : >> { %v16712_v33 = vmov %v14931_v53  ;;  %v14940_v60 = vadd.f32 %v11797_v40, %v6742_v60   ;;  %v14943_v2 = vadd.f32 %v11797_v40, %v6743_v43   ;;  %v14946_v32 = vadd.f32 %v11797_v40, %v6744_v63  }
 0x640   : >> { %v16714_v58 = vmov %v14937_v47  ;;  %v14949_v35 = vperm.slane %v16718_v27, 0  ;;  %v14952_v4 = vperm.slane %v16720_v21, 0  ;;  %v16727_v53 = vmov %v16712_v33 }
 0x641   : >> { %v16715_v24 = vmov %v14940_v60  ;;  %v16716_v3 = vmov %v14943_v2  ;;  %v16717_v9 = vmov %v14946_v32  ;;  %v7567_v2 = vld [vmem:[%s14957_s1 + $0x30] sm:$0xff]  ;;  %v16732_v32 = vmov %v16708_v61 }
 0x642   : >> { %v16719_v46 = vmov %v14949_v35  ;;  %v16728_v35 = vmov %v16711_v22  ;;  %v7613_v43 = vrot.slane (%p14991_p1), %v16715_v24, 5  ;;  %v7614_v63 = vrot.slane (%p14991_p1), %v16716_v3, 5 }
 0x643   : >> { %v7529_v20 = vadd.f32 %v14836_v39, %v16719_v46  ;;  %v7531_v18 = vadd.f32 %v14869_v30, %v16719_v46  ;;  %v7539_v54 = vadd.f32 %v14865_v34, %v16719_v46  ;;  %v7534_v59 = vadd.f32 %v7533_v57, %v16719_v46 }
 0x644   : >> { %v7541_v17 = vadd.f32 %v14877_v41, %v16719_v46  ;;  %v7536_v39 = vadd.f32 %v7535_v23, %v16719_v46  ;;  %v7544_v8 = vadd.f32 %v7543_v19, %v16719_v46  ;;  %v7546_v13 = vadd.f32 %v7545_v36, %v16719_v46 }
 0x645   : >> { %v7551_v30 = vmul.f32 %v14952_v4, %v7529_v20  ;;  %v7552_v34 = vmul.f32 %v14952_v4, %v7531_v18  ;;  %v7555_v57 = vmul.f32 %v14952_v4, %v7539_v54  ;;  %v7553_v44 = vmul.f32 %v14952_v4, %v7534_v59 }
 0x646   : >> { %v7556_v41 = vmul.f32 %v14952_v4, %v7541_v17  ;;  %v7554_v25 = vmul.f32 %v14952_v4, %v7536_v39  ;;  %v7557_v49 = vmul.f32 %v14952_v4, %v7544_v8  ;;  %v7558_v6 = vmul.f32 %v14952_v4, %v7546_v13 }
 0x647   : >> { %v7569_v16 = vadd.f32 %v7561_v0, %v7551_v30  ;;  %v7570_v7 = vadd.f32 %v7562_v11, %v7552_v34  ;;  %v7573_v19 = vadd.f32 %v7565_v10, %v7555_v57  ;;  %v7571_v1 = vadd.f32 %v7563_v15, %v7553_v44 }
 0x648   : >> { %v7574_v5 = vadd.f32 %v7566_v42, %v7556_v41  ;;  %v7572_v52 = vadd.f32 %v7564_v14, %v7554_v25  ;;  %v7575_v47 = vadd.f32 %v7567_v2, %v7557_v49  ;;  %v7576_v60 = vadd.f32 %v7568_v26, %v7558_v6 }
 0x649   : >> { %7578 = vst [vmem:[%s7577_s22] sm:$0xff] %v7569_v16  ;;  %v16722_v39 = vmov %v16717_v9  ;;  %v16723_v2 = vmov %v16716_v3  ;;  %v16726_v42 = vmov %v16713_v38  ;;  %v16729_v10 = vmov %v16710_v28 }
 0x64a   : >> { %7579 = vst [vmem:[%s7577_s22 + $0x8] sm:$0xff] %v7570_v7  ;;  %v16730_v30 = vmov %v14921_v55  ;;  %v16731_v20 = vmov %v16709_v37  ;;  %v7608_v27 = vrot.slane (%p14991_p1), %v16712_v33, 5  ;;  %v7609_v21 = vrot.slane (%p14991_p1), %v16713_v38, 5 }
 0x64b   : >> { %7582 = vst [vmem:[%s7577_s22 + $0x20] sm:$0xff] %v7573_v19  ;;  %v7598_v23 = vrot.slane (%p14991_p1), %v16707_v12, 5  ;;  %v7599_v36 = vrot.slane (%p14991_p1), %v16708_v61, 5  ;;  %v7615_v18 = vsel (%p14991_p1), %vm912_vm5, %v7613_v43, %v7614_v63  ;;  %v7616_v59 = vrot.slane (%p14991_p1), %v16717_v9, 5 }
 0x64c   : >> { %7580 = vst [vmem:[%s7577_s22 + $0x10] sm:$0xff] %v7571_v1  ;;  %3685 = sbr.rel (!%p14991_p1) target bundleno = 607 (0x25f), region = 142  ;;  %v7610_v54 = vsel (%p14991_p1), %vm912_vm5, %v7608_v27, %v7609_v21  ;;  %v7611_v0 = vrot.slane (%p14991_p1), %v16714_v58, 5  ;;  %v7632_v40 = vmul.f32 (%p14991_p1), %v16734_v29, %v7615_v18  ;;  %v7601_v48 = vrot.slane (%p14991_p1), %v16709_v37, 5 }
 0x64d   : >> { %7583 = vst [vmem:[%s7577_s22 + $0x28] sm:$0xff] %v7574_v5  ;;  %v7630_v45 = vmul.f32 (%p14991_p1), %v16734_v29, %v7610_v54  ;;  %v7600_v50 = vsel (%p14991_p1), %vm912_vm5, %v7598_v23, %v7599_v36  ;;  %v7617_v51 = vsel (%p14991_p1), %vm912_vm5, %v7614_v63, %v7616_v59  ;;  %v7603_v38 = vrot.slane (%p14991_p1), %v14921_v55, 5  ;;  %v8942_v59 = vld [vmem:[#allocation8 + $0x38] sm:$0xff] (%p14991_p1) }
 0x64e   : >> { %7581 = vst [vmem:[%s7577_s22 + $0x18] sm:$0xff] %v7572_v52  ;;  %v16733_v52 = vmov %v16707_v12  ;;  %v7626_v56 = vmul.f32 (%p14991_p1), %v16734_v29, %v7600_v50  ;;  %7646 = vadd.xlane.f32.xlu2 (%p14991_p1), %v7632_v40  ;;  %v7612_v31 = vsel (%p14991_p1), %vm912_vm5, %v7609_v21, %v7611_v0  ;;  %v7602_v53 = vsel (%p14991_p1), %vm912_vm5, %v7599_v36, %v7601_v48  ;;  %v8941_v0 = vld [vmem:[#allocation8 + $0x30] sm:$0xff] (%p14991_p1)  ;;  %v8940_v40 = vld [vmem:[#allocation8 + $0x28] sm:$0xff] (%p14991_p1) }
 0x64f   : >> { %7584 = vst [vmem:[%s7577_s22 + $0x30] sm:$0xff] %v7575_v47  ;;  %v16725_v47 = vmov %v16714_v58  ;;  %7642 = vadd.xlane.f32.xlu0 (%p14991_p1), %v7630_v45  ;;  %v7633_v12 = vmul.f32 (%p14991_p1), %v16734_v29, %v7617_v51  ;;  %v7631_v61 = vmul.f32 (%p14991_p1), %v16734_v29, %v7612_v31  ;;  %v7627_v33 = vmul.f32 (%p14991_p1), %v16734_v29, %v7602_v53  ;;  %v8939_v45 = vld [vmem:[#allocation8 + $0x20] sm:$0xff] (%p14991_p1)  ;;  %v8937_v48 = vld [vmem:[#allocation8 + $0x10] sm:$0xff] (%p14991_p1) }
 0x650   : >> { %7585 = vst [vmem:[%s7577_s22 + $0x38] sm:$0xff] %v7576_v60  ;;  %v16724_v60 = vmov %v16715_v24  ;;  %7634 = vadd.xlane.f32.xlu1 (%p14991_p1), %v7626_v56  ;;  %v7604_v37 = vrot.slane (%p14991_p1), %v16710_v28, 5  ;;  %v7606_v58 = vrot.slane (%p14991_p1), %v16711_v22, 5  ;;  %7895 = vmatpush.bf16.msra.mxu0 (%p14991_p1), %v8942_v59  ;;  %v8936_v56 = vld [vmem:[#allocation8 + $0x8] sm:$0xff] (%p14991_p1)  ;;  %s9408_s22 = scalar_lea.hbm (%p14991_p1), %s15578_s10, 512 }
 0x651   : > { %8968 = vmatpush.bf16.msra.mxu2 %v8942_v59  ;;  %p9410_p2 = scmp.lt.s32.totalorder %s9408_s22, %s9404_s26 }
 0x652   : > { %v7605_v24 = vsel %vm912_vm5, %v7603_v38, %v7604_v37  ;;  %v7607_v3 = vsel %vm912_vm5, %v7604_v37, %v7606_v58 }
 0x653   : > { %v7628_v32 = vmul.f32 %v16734_v29, %v7605_v24  ;;  %v7629_v9 = vmul.f32 %v16734_v29, %v7607_v3  ;;  %p9411_p10 = por %p9410_p2, %p9409_p9 }
 0x654   : > { %7896 = vmatpush.bf16.msra.mxu0 %v8941_v0 }
 0x655   : > { %8969 = vmatpush.bf16.msra.mxu2 %v8941_v0  ;;  %p9412_p12 = pnand %p9411_p10, %p9407_p11 }
 0x656   : > { %7648 = vadd.xlane.f32.xlu2 %v7633_v12 }
 0x657   : > { %7644 = vadd.xlane.f32.xlu0 %v7631_v61 }
 0x658   : > { %7636 = vadd.xlane.f32.xlu1 %v7627_v33  ;;  %7897 = vmatpush.bf16.msra.mxu0 %v8940_v40  ;;  %v8935_v33 = vld [vmem:[#allocation8] sm:$0xff] }
 0x659   : > { %8970 = vmatpush.bf16.msra.mxu2 %v8940_v40 }
 0x65c   : > { %7898 = vmatpush.bf16.msra.mxu0 %v8939_v45 }
 0x65d   : > { %8971 = vmatpush.bf16.msra.mxu2 %v8939_v45 }
 0x65f   : > { %7638 = vadd.xlane.f32.xlu0 %v7628_v32 }
 0x660   : > { %7640 = vadd.xlane.f32.xlu1 %v7629_v9 }
 0x6c1   : > { %v7647_v35 = vpop.xlane.xlu2 %7646 }
 0x6c2   : > { %v7643_v20 = vpop.xlane.xlu0 %7642  ;;  %v7656_v57 = vmul.f32 0.03125, %v7647_v35 }
 0x6c3   : > { %v7654_v55 = vmul.f32 0.03125, %v7643_v20  ;;  %v7635_v11 = vpop.xlane.xlu1 %7634 }
 0x6c4   : > { %v7650_v28 = vmul.f32 0.03125, %v7635_v11  ;;  %v15079_v19 = vsub.f32 %v7615_v18, %v7656_v57 }
 0x6c5   : > { %v15063_v10 = vsub.f32 %v7610_v54, %v7654_v55 }
 0x6c6   : > { %v15065_v22 = vsub.f32 %v7600_v50, %v7650_v28  ;;  %v7672_v60 = vmul.f32 %v15079_v19, %v15079_v19  ;;  %v8938_v50 = vld [vmem:[#allocation8 + $0x18] sm:$0xff] }
 0x6c7   : > { %v7670_v17 = vmul.f32 %v15063_v10, %v15063_v10  ;;  %7899 = vmatpush.bf16.msra.mxu0 %v8938_v50  ;;  %8972 = vmatpush.bf16.msra.mxu2 %v8938_v50 }
 0x6c8   : > { %v7666_v39 = vmul.f32 %v15065_v22, %v15065_v22  ;;  %v7680_v21 = vmul.f32 %v16734_v29, %v7672_v60 }
 0x6c9   : > { %v7678_v8 = vmul.f32 %v16734_v29, %v7670_v17  ;;  %v7649_v13 = vpop.xlane.xlu2 %7648 }
 0x6ca   : > { %v7645_v30 = vpop.xlane.xlu0 %7644  ;;  %v7674_v34 = vmul.f32 %v16734_v29, %v7666_v39  ;;  %v7657_v44 = vmul.f32 0.03125, %v7649_v13 }
 0x6cb   : > { %v7655_v15 = vmul.f32 0.03125, %v7645_v30  ;;  %v7637_v41 = vpop.xlane.xlu1 %7636  ;;  %7690 = vadd.xlane.f32.xlu2 %v7678_v8  ;;  %7900 = vmatpush.bf16.msra.mxu0 %v8937_v48 }
 0x6cc   : > { %v7651_v42 = vmul.f32 0.03125, %v7637_v41  ;;  %7682 = vadd.xlane.f32.xlu1 %v7674_v34  ;;  %v15073_v25 = vsub.f32 %v7617_v51, %v7657_v44  ;;  %8973 = vmatpush.bf16.msra.mxu2 %v8937_v48 }
 0x6cd   : > { %v15075_v16 = vsub.f32 %v7612_v31, %v7655_v15 }
 0x6ce   : > { %v15077_v7 = vsub.f32 %v7602_v53, %v7651_v42  ;;  %v7673_v49 = vmul.f32 %v15073_v25, %v15073_v25 }
 0x6cf   : > { %v7671_v14 = vmul.f32 %v15075_v16, %v15075_v16  ;;  %7901 = vmatpush.bf16.msra.mxu0 %v8936_v56 }
 0x6d0   : > { %v7667_v1 = vmul.f32 %v15077_v7, %v15077_v7  ;;  %v7681_v6 = vmul.f32 %v16734_v29, %v7673_v49  ;;  %8974 = vmatpush.bf16.msra.mxu2 %v8936_v56 }
 0x6d1   : > { %v7679_v2 = vmul.f32 %v16734_v29, %v7671_v14 }
 0x6d2   : > { %v7639_v5 = vpop.xlane.xlu0 %7638  ;;  %v7675_v26 = vmul.f32 %v16734_v29, %v7667_v1 }
 0x6d3   : > { %v7652_v52 = vmul.f32 0.03125, %v7639_v5  ;;  %7692 = vadd.xlane.f32.xlu0 %v7679_v2  ;;  %v7641_v47 = vpop.xlane.xlu1 %7640  ;;  %7902 = vmatpush.bf16.msra.mxu0 %v8935_v33 }
 0x6d4   : > { %7696 = vadd.xlane.f32.xlu1 %v7681_v6  ;;  %7684 = vadd.xlane.f32.xlu2 %v7675_v26  ;;  %v7653_v43 = vmul.f32 0.03125, %v7641_v47 }
 0x6d5   : > { %v15092_v63 = vsub.f32 %v7605_v24, %v7652_v52  ;;  %8975 = vmatpush.bf16.msra.mxu2 %v8935_v33 }
 0x6d6   : > { %v15094_v27 = vsub.f32 %v7607_v3, %v7653_v43 }
 0x6d7   : > { %v7668_v23 = vmul.f32 %v15092_v63, %v15092_v63 }
 0x6d8   : > { %v7669_v18 = vmul.f32 %v15094_v27, %v15094_v27 }
 0x6d9   : > { %v7676_v36 = vmul.f32 %v16734_v29, %v7668_v23 }
 0x6da   : > { %v7677_v54 = vmul.f32 %v16734_v29, %v7669_v18 }
 0x6db   : > { %7694 = vadd.xlane.f32.xlu0 %v7680_v21 }
 0x6dc   : > { %7686 = vadd.xlane.f32.xlu2 %v7676_v36 }
 0x6e3   : > { %7688 = vadd.xlane.f32.xlu0 %v7677_v54 }
 0x73e   : > { %v7691_v29 = vpop.xlane.xlu2 %7690 }
 0x73f   : > { %v7702_v51 = vmul.f32 0.03125, %v7691_v29  ;;  %v7683_v31 = vpop.xlane.xlu1 %7682 }
 0x740   : > { %v7698_v53 = vmul.f32 0.03125, %v7683_v31 }
 0x741   : > { %v7710_v12 = vadd.f32 1e-06, %v7702_v51 }
 0x742   : > { %v7706_v61 = vadd.f32 1e-06, %v7698_v53 }
 0x743   : > { %9236 = vrsqrt.f32 %v7710_v12  ;;  %vm7760_vm4 = vweird.f32 %v7710_v12 }
 0x744   : > { %9238 = vrsqrt.f32 %v7706_v61  ;;  %vm7720_vm1 = vweird.f32 %v7706_v61 }
 0x746   : > { %v7693_v38 = vpop.xlane.xlu0 %7692 }
 0x747   : > { %v7703_v37 = vmul.f32 0.03125, %v7693_v38  ;;  %v7685_v58 = vpop.xlane.xlu2 %7684  ;;  %v7697_v24 = vpop.xlane.xlu1 %7696 }
 0x748   : > { %v7699_v3 = vmul.f32 0.03125, %v7685_v58  ;;  %v7705_v32 = vmul.f32 0.03125, %v7697_v24 }
 0x749   : > { %v9237_v9 = vpop.eup %9236  ;;  %v15103_v35 = vadd.f32 1e-06, %v7703_v37 }
 0x74a   : > { %v9239_v20 = vpop.eup %9238  ;;  %v7755_v55 = vmul.f32 %v9237_v9, %v7710_v12  ;;  %v7707_v11 = vadd.f32 1e-06, %v7699_v3  ;;  %v15105_v28 = vadd.f32 1e-06, %v7705_v32  ;;  %vm7761_vm0 = vweird.f32 %v9237_v9 }
 0x74b   : > { %v7715_v17 = vmul.f32 %v9239_v20, %v7706_v61  ;;  %9240 = vrsqrt.f32 %v15103_v35  ;;  %vm7721_vm3 = vweird.f32 %v9239_v20  ;;  %vm15120_vm5 = vmor %vm7760_vm4, %vm7761_vm0  ;;  %vm7770_vm2 = vweird.f32 %v15103_v35 }
 0x74c   : > { %v7756_v39 = vmul.f32 %v9237_v9, %v7755_v55  ;;  %9242 = vrsqrt.f32 %v7707_v11  ;;  %vm15124_vm6 = vmor %vm7720_vm1, %vm7721_vm3  ;;  %vm7730_vm13 = vweird.f32 %v7707_v11  ;;  %vm7790_vm11 = vweird.f32 %v15105_v28 }
 0x74d   : > { %v7716_v8 = vmul.f32 %v9239_v20, %v7715_v17  ;;  %9244 = vrsqrt.f32 %v15105_v28 }
 0x74e   : > { %v7757_v13 = vmul.f32 0.5, %v7756_v39  ;;  %v7695_v30 = vpop.xlane.xlu0 %7694 }
 0x74f   : > { %v7717_v34 = vmul.f32 0.5, %v7716_v8  ;;  %v7704_v57 = vmul.f32 0.03125, %v7695_v30  ;;  %v7687_v44 = vpop.xlane.xlu2 %7686 }
 0x750   : > { %v7758_v15 = vsub.f32 1.5, %v7757_v13  ;;  %v7700_v41 = vmul.f32 0.03125, %v7687_v44  ;;  %v16741_v44 = vld [vmem:[#allocation99_spill] sm:$0xff] }
 0x751   : > { %v9241_v42 = vpop.eup %9240  ;;  %v7718_v14 = vsub.f32 1.5, %v7717_v34  ;;  %v15109_v49 = vadd.f32 1e-06, %v7704_v57 }
 0x752   : > { %v9243_v1 = vpop.eup %9242  ;;  %v7765_v2 = vmul.f32 %v9241_v42, %v15103_v35  ;;  %v15112_v6 = vadd.f32 1e-06, %v7700_v41  ;;  %v7759_v47 = vmul.f32 %v9237_v9, %v7758_v15  ;;  %vm7771_vm15 = vweird.f32 %v9241_v42 }
 0x753   : > { %v15114_v5 = vpop.eup %9244  ;;  %v7725_v26 = vmul.f32 %v9243_v1, %v7707_v11  ;;  %9246 = vrsqrt.f32 %v15109_v49  ;;  %v7719_v21 = vmul.f32 %v9239_v20, %v7718_v14  ;;  %vm7731_vm14 = vweird.f32 %v9243_v1  ;;  %vm7772_vm8 = vmor %vm7770_vm2, %vm7771_vm15 }
 0x754   : > { %v7766_v52 = vmul.f32 %v9241_v42, %v7765_v2  ;;  %9248 = vrsqrt.f32 %v15112_v6  ;;  %v7785_v43 = vmul.f32 %v15114_v5, %v15105_v28  ;;  %v7763_v45 = vsel %vm15120_vm5, %v9237_v9, %v7759_v47  ;;  %vm7732_vm7 = vmor %vm7730_vm13, %vm7731_vm14 }
 0x755   : > { %v7726_v60 = vmul.f32 %v9243_v1, %v7725_v26  ;;  %v7723_v40 = vsel %vm15124_vm6, %v9239_v20, %v7719_v21  ;;  %v7798_v37 = vmul.f32 %v7763_v45, %v15063_v10  ;;  %vm7740_vm9 = vweird.f32 %v15112_v6 }
 0x756   : > { %v7767_v36 = vmul.f32 0.5, %v7766_v52  ;;  %v7689_v18 = vpop.xlane.xlu0 %7688  ;;  %v7786_v56 = vmul.f32 %v15114_v5, %v7785_v43  ;;  %v7794_v61 = vmul.f32 %v7723_v40, %v15065_v22  ;;  %vm7791_vm12 = vweird.f32 %v15114_v5 }
 0x757   : > { %v7727_v59 = vmul.f32 0.5, %v7726_v60  ;;  %v7701_v0 = vmul.f32 0.03125, %v7689_v18  ;;  %v7809_v35 = vmul.f32 %v7798_v37, %v12842_v62  ;;  %vm15170_vm3 = vmor %vm7790_vm11, %vm7791_vm12  ;;  %vm7780_vm4 = vweird.f32 %v15109_v49 }
 0x758   : > { %v7768_v48 = vsub.f32 1.5, %v7767_v36  ;;  %v7787_v58 = vmul.f32 0.5, %v7786_v56  ;;  %v7805_v22 = vmul.f32 %v7794_v61, %v12842_v62 }
 0x759   : > { %v15132_v50 = vpop.eup %9246  ;;  %v7728_v29 = vsub.f32 1.5, %v7727_v59  ;;  %v15135_v51 = vadd.f32 1e-06, %v7701_v0 }
 0x75a   : > { %v9249_v31 = vpop.eup %9248  ;;  %v7775_v53 = vmul.f32 %v15132_v50, %v15109_v49  ;;  %v7769_v3 = vmul.f32 %v9241_v42, %v7768_v48  ;;  %v7788_v8 = vsub.f32 1.5, %v7787_v58  ;;  %vm7781_vm0 = vweird.f32 %v15132_v50 }
 0x75b   : > { %v7735_v12 = vmul.f32 %v9249_v31, %v15112_v6  ;;  %9250 = vrsqrt.f32 %v15135_v51  ;;  %v7729_v38 = vmul.f32 %v9243_v1, %v7728_v29  ;;  %vm7741_vm10 = vweird.f32 %v9249_v31  ;;  %vm7782_vm5 = vmor %vm7780_vm4, %vm7781_vm0 }
 0x75c   : > { %v7776_v33 = vmul.f32 %v15132_v50, %v7775_v53  ;;  %v7773_v11 = vsel %vm7772_vm8, %v9241_v42, %v7769_v3  ;;  %vm15158_vm1 = vmor %vm7740_vm9, %vm7741_vm10  ;;  %v7816_v15 = vadd.f32 %v7805_v22, %v16741_v44  ;;  %v7789_v26 = vmul.f32 %v15114_v5, %v7788_v8  ;;  %v8948_v8 = vld [vmem:[#allocation9 + $0x28] sm:$0xff] }
 0x75d   : > { %v7736_v24 = vmul.f32 %v9249_v31, %v7735_v12  ;;  %v7733_v9 = vsel %vm7732_vm7, %v9243_v1, %v7729_v38  ;;  %v7799_v10 = vmul.f32 %v7773_v11, %v15075_v16  ;;  %v7820_v1 = vadd.f32 %v7809_v35, %v16741_v44 }
 0x75e   : > { %v7777_v32 = vmul.f32 0.5, %v7776_v33  ;;  %v7795_v55 = vmul.f32 %v7733_v9, %v15077_v7  ;;  %vm7750_vm6 = vweird.f32 %v15135_v51  ;;  %v7793_v49 = vsel %vm15170_vm3, %v15114_v5, %v7789_v26  ;;  %v8950_v33 = vld [vmem:[#allocation9 + $0x38] sm:$0xff]  ;;  %v8949_v9 = vld [vmem:[#allocation9 + $0x30] sm:$0xff] }
 0x75f   : > { %v7737_v20 = vmul.f32 0.5, %v7736_v24  ;;  %v7810_v34 = vmul.f32 %v7799_v10, %v12842_v62  ;;  %v7801_v59 = vmul.f32 %v7793_v49, %v15073_v25  ;;  %8347 = vmatpush.bf16.msra.mxu1 %v8950_v33  ;;  %8976 = vmatpush.bf16.msra.mxu3 %v8950_v33 }
 0x760   : > { %v7778_v17 = vsub.f32 1.5, %v7777_v32  ;;  %v7806_v30 = vmul.f32 %v7795_v55, %v12842_v62 }
 0x761   : > { %v9251_v39 = vpop.eup %9250  ;;  %v7738_v13 = vsub.f32 1.5, %v7737_v20  ;;  %v7821_v2 = vadd.f32 %v7810_v34, %v16741_v44 }
 0x762   : > { %v7745_v7 = vmul.f32 %v9251_v39, %v15135_v51  ;;  %v7817_v41 = vadd.f32 %v7806_v30, %v16741_v44  ;;  %v7779_v42 = vmul.f32 %v15132_v50, %v7778_v17  ;;  %vm7751_vm13 = vweird.f32 %v9251_v39  ;;  %v16744_v51 = vld [vmem:[#allocation125_spill] sm:$0xff] }
 0x763   : > { %v7739_v57 = vmul.f32 %v9249_v31, %v7738_v13  ;;  %v7826_v60 = vpack.c.bf16 %v7821_v2, %v7820_v1  ;;  %vm7752_vm14 = vmor %vm7750_vm6, %vm7751_vm13  ;;  %8348 = vmatpush.bf16.msra.mxu1 %v8949_v9  ;;  %8977 = vmatpush.bf16.msra.mxu3 %v8949_v9 }
 0x764   : > { %v7746_v14 = vmul.f32 %v9251_v39, %v7745_v7  ;;  %v7824_v52 = vpack.c.bf16 %v7817_v41, %v7816_v15  ;;  %v7783_v21 = vsel %vm7782_vm5, %v15132_v50, %v7779_v42  ;;  %v8947_v42 = vld [vmem:[#allocation9 + $0x20] sm:$0xff] }
 0x765   : > { %v7743_v43 = vsel %vm15158_vm1, %v9249_v31, %v7739_v57  ;;  %7913 = vmatmul.bf16.vlgmr.msra.gmra.mxu2 %v7826_v60  ;;  %v7800_v18 = vmul.f32 %v7783_v21, %v15079_v19 }
 0x766   : > { %v7747_v47 = vmul.f32 0.5, %v7746_v14  ;;  %7903 = vmatmul.bf16.vlgmr.msra.gmra.mxu0 %v7824_v52  ;;  %v7796_v28 = vmul.f32 %v7743_v43, %v15092_v63  ;;  %v7812_v63 = vmul.f32 %v7801_v59, %v12842_v62 }
 0x767   : > { %v7811_v45 = vmul.f32 %v7800_v18, %v12842_v62  ;;  %8349 = vmatpush.bf16.msra.mxu1 %v8948_v8  ;;  %8978 = vmatpush.bf16.msra.mxu3 %v8948_v8 }
 0x768   : > { %v7748_v23 = vsub.f32 1.5, %v7747_v47  ;;  %v7807_v40 = vmul.f32 %v7796_v28, %v12842_v62  ;;  %v7823_v56 = vadd.f32 %v7812_v63, %v16741_v44 }
 0x769   : > { %v7822_v19 = vadd.f32 %v7811_v45, %v16741_v44 }
 0x76a   : > { %v7749_v36 = vmul.f32 %v9251_v39, %v7748_v23  ;;  %v7818_v48 = vadd.f32 %v7807_v40, %v16741_v44  ;;  %v8946_v23 = vld [vmem:[#allocation9 + $0x18] sm:$0xff] }
 0x76b   : > { %v7827_v25 = vpack.c.bf16 %v7823_v56, %v7822_v19  ;;  %8350 = vmatpush.bf16.msra.mxu1 %v8947_v42  ;;  %8979 = vmatpush.bf16.msra.mxu3 %v8947_v42 }
 0x76c   : > { %v7753_v54 = vsel %vm7752_vm14, %v9251_v39, %v7749_v36 }
 0x76d   : > { %v7797_v0 = vmul.f32 %v7753_v54, %v15094_v27 }
 0x76f   : > { %v7808_v50 = vmul.f32 %v7797_v0, %v12842_v62  ;;  %8351 = vmatpush.bf16.msra.mxu1 %v8946_v23  ;;  %8980 = vmatpush.bf16.msra.mxu3 %v8946_v23 }
 0x771   : > { %v7819_v5 = vadd.f32 %v7808_v50, %v16741_v44  ;;  %v8945_v50 = vld [vmem:[#allocation9 + $0x10] sm:$0xff] }
 0x773   : > { %v7825_v29 = vpack.c.bf16 %v7819_v5, %v7818_v48  ;;  %8352 = vmatpush.bf16.msra.mxu1 %v8945_v50  ;;  %8981 = vmatpush.bf16.msra.mxu3 %v8945_v50 }
 0x775   : > { %7918 = vmatmul.bf16.gmra.mxu2 %v7827_v25 }
 0x776   : > { %7908 = vmatmul.bf16.gmra.mxu0 %v7825_v29 }
 0x7e3   : > { %v7904_v27 = vpop.f32.mrf.mxu0 }
 0x7e4   : > { %v15197_v31 = vadd.f32 %v7904_v27, %v16744_v51 }
 0x7e6   : > { %v15200_v53 = vmul.f32 0.70710677, %v15197_v31 }
 0x7e8   : > { %v7940_v62 = vmul.f32 %v15200_v53, %v15200_v53  ;;  %v7914_v61 = vpop.f32.mrf.mxu2 }
 0x7e9   : > { %v15207_v38 = vadd.f32 %v7914_v61, %v16744_v51  ;;  %v8944_v61 = vld [vmem:[#allocation9 + $0x8] sm:$0xff] }
 0x7ea   : > { %v15204_v12 = vmin.f32 %v7940_v62, 16.0  ;;  %8353 = vmatpush.bf16.msra.mxu1 %v8944_v61  ;;  %8982 = vmatpush.bf16.msra.mxu3 %v8944_v61 }
 0x7eb   : > { %v7906_v37 = vpop.f32.mrf.mxu0  ;;  %v15214_v3 = vmul.f32 0.70710677, %v15207_v38 }
 0x7ec   : > { %v15210_v58 = vadd.f32 %v7906_v37, %v16744_v51  ;;  %v7953_v24 = vmul.f32 3.8918573e-05, %v15204_v12  ;;  %v7942_v11 = vmul.f32 2.1237322e-06, %v15204_v12 }
 0x7ed   : > { %v8100_v20 = vmul.f32 %v15214_v3, %v15214_v3 }
 0x7ee   : > { %v15217_v32 = vmul.f32 0.70710677, %v15210_v58  ;;  %v7954_v55 = vadd.f32 0.001143296, %v7953_v24  ;;  %v7943_v44 = vadd.f32 0.00028619796, %v7942_v11 }
 0x7ef   : > { %v15224_v17 = vmin.f32 %v8100_v20, 16.0 }
 0x7f0   : > { %v7980_v22 = vmul.f32 %v15217_v32, %v15217_v32  ;;  %v7955_v10 = vmul.f32 %v7954_v55, %v15204_v12  ;;  %v7916_v39 = vpop.f32.mrf.mxu2  ;;  %v7944_v52 = vmul.f32 %v7943_v44, %v15204_v12 }
 0x7f1   : > { %v8102_v13 = vmul.f32 2.1237322e-06, %v15224_v17  ;;  %v15231_v30 = vadd.f32 %v7916_v39, %v16744_v51 }
 0x7f2   : > { %v15227_v35 = vmin.f32 %v7980_v22, 16.0  ;;  %v7956_v34 = vadd.f32 0.014752088, %v7955_v10  ;;  %v7945_v59 = vadd.f32 0.0036580483, %v7944_v52 }
 0x7f3   : > { %v7909_v7 = vpop.f32.mrf.mxu0  ;;  %v15238_v15 = vmul.f32 0.70710677, %v15231_v30  ;;  %v8103_v14 = vadd.f32 0.00028619796, %v8102_v13  ;;  %v8113_v10 = vmul.f32 3.8918573e-05, %v15224_v17 }
 0x7f4   : > { %v7982_v57 = vmul.f32 2.1237322e-06, %v15227_v35  ;;  %v15235_v16 = vadd.f32 %v7909_v7, %v16744_v51  ;;  %v7957_v41 = vmul.f32 %v7956_v34, %v15204_v12  ;;  %v7946_v19 = vmul.f32 %v7945_v59, %v15204_v12  ;;  %v8943_v34 = vld [vmem:[#allocation9] sm:$0xff] }
 0x7f5   : > { %v8140_v1 = vmul.f32 %v15238_v15, %v15238_v15  ;;  %v8104_v28 = vmul.f32 %v8103_v14, %v15224_v17  ;;  %v7993_v37 = vmul.f32 3.8918573e-05, %v15227_v35  ;;  %8354 = vmatpush.bf16.msra.mxu1 %v8943_v34  ;;  %8983 = vmatpush.bf16.msra.mxu3 %v8943_v34 }
 0x7f6   : > { %v15244_v2 = vmul.f32 0.70710677, %v15235_v16  ;;  %v7958_v26 = vadd.f32 0.112945676, %v7957_v41  ;;  %v7983_v6 = vadd.f32 0.00028619796, %v7982_v57 }
 0x7f7   : > { %v15247_v47 = vmin.f32 %v8140_v1, 16.0  ;;  %v8105_v45 = vadd.f32 0.0036580483, %v8104_v28  ;;  %v7947_v55 = vadd.f32 0.05243302, %v7946_v19 }
 0x7f8   : > { %v7959_v60 = vmul.f32 %v7958_v26, %v15204_v12  ;;  %v8020_v43 = vmul.f32 %v15244_v2, %v15244_v2  ;;  %v7919_v21 = vpop.f32.mrf.mxu2  ;;  %v7984_v36 = vmul.f32 %v7983_v6, %v15227_v35  ;;  %v7994_v57 = vadd.f32 0.001143296, %v7993_v37 }
 0x7f9   : > { %v8142_v0 = vmul.f32 2.1237322e-06, %v15247_v47  ;;  %v15267_v25 = vadd.f32 %v7919_v21, %v16744_v51  ;;  %v8106_v33 = vmul.f32 %v8105_v45, %v15224_v17  ;;  %v7948_v14 = vmul.f32 %v7947_v55, %v15204_v12 }
 0x7fa   : > { %v7960_v54 = vadd.f32 0.4994258, %v7959_v60  ;;  %v15258_v40 = vmin.f32 %v8020_v43, 16.0  ;;  %v7985_v63 = vadd.f32 0.0036580483, %v7984_v36  ;;  %v7995_v43 = vmul.f32 %v7994_v57, %v15227_v35 }
 0x7fb   : > { %v7911_v49 = vpop.f32.mrf.mxu0  ;;  %v8143_v29 = vadd.f32 0.00028619796, %v8142_v0  ;;  %v15284_v8 = vmul.f32 0.70710677, %v15267_v25  ;;  %v8107_v7 = vadd.f32 0.05243302, %v8106_v33 }
 0x7fc   : > { %v15255_v18 = vadd.f32 %v7911_v49, %v16744_v51  ;;  %v7961_v5 = vmul.f32 %v7960_v54, %v15204_v12  ;;  %v8022_v56 = vmul.f32 2.1237322e-06, %v15258_v40  ;;  %v7986_v24 = vmul.f32 %v7985_v63, %v15227_v35 }
 0x7fd   : > { %v8144_v22 = vmul.f32 %v8143_v29, %v15247_v47  ;;  %v8180_v26 = vmul.f32 %v15284_v8, %v15284_v8  ;;  %v8108_v52 = vmul.f32 %v8107_v7, %v15224_v17  ;;  %v8114_v21 = vadd.f32 0.001143296, %v8113_v10 }
 0x7fe   : > { %v15261_v48 = vmul.f32 0.70710677, %v15255_v18  ;;  %v15276_v20 = vadd.f32 1.0, %v7961_v5  ;;  %v8023_v39 = vadd.f32 0.00028619796, %v8022_v56 }
 0x7ff   : > { %v7987_v44 = vadd.f32 0.05243302, %v7986_v24  ;;  %v8145_v42 = vadd.f32 0.0036580483, %v8144_v22  ;;  %v15306_v0 = vmin.f32 %v8180_v26, 16.0  ;;  %v8115_v19 = vmul.f32 %v8114_v21, %v15224_v17 }
 0x800   : > { %v8060_v27 = vmul.f32 %v15261_v48, %v15261_v48  ;;  %v7921_v62 = vpop.f32.mrf.mxu2  ;;  %9252 = vrcp.f32 %v15276_v20  ;;  %v8024_v1 = vmul.f32 %v8023_v39, %v15258_v40  ;;  %v7949_v50 = vadd.f32 0.18741608, %v7948_v14 }
 0x801   : > { %v15280_v11 = vadd.f32 %v7921_v62, %v16744_v51  ;;  %v7988_v23 = vmul.f32 %v7987_v44, %v15227_v35  ;;  %v8146_v49 = vmul.f32 %v8145_v42, %v15247_v47  ;;  %v8109_v63 = vadd.f32 0.18741608, %v8108_v52 }
 0x802   : > { %v15274_v9 = vmin.f32 %v8060_v27, 16.0  ;;  %v8025_v59 = vadd.f32 0.0036580483, %v8024_v1  ;;  %v7996_v5 = vadd.f32 0.014752088, %v7995_v43  ;;  %v7950_v22 = vmul.f32 %v7949_v50, %v15204_v12 }
 0x803   : > { %v15289_v51 = vmul.f32 0.70710677, %v15280_v11  ;;  %v7989_v29 = vadd.f32 0.18741608, %v7988_v23  ;;  %v8147_v62 = vadd.f32 0.05243302, %v8146_v49  ;;  %v8110_v7 = vmul.f32 %v8109_v63, %v15224_v17 }
 0x804   : > { %v8073_v13 = vmul.f32 3.8918573e-05, %v15274_v9  ;;  %v8026_v33 = vmul.f32 %v8025_v59, %v15258_v40  ;;  %v8182_v37 = vmul.f32 2.1237322e-06, %v15306_v0  ;;  %v8062_v10 = vmul.f32 2.1237322e-06, %v15274_v9 }
 0x805   : > { %v8220_v60 = vmul.f32 %v15289_v51, %v15289_v51  ;;  %v7997_v39 = vmul.f32 %v7996_v5, %v15227_v35  ;;  %v7990_v34 = vmul.f32 %v7989_v29, %v15227_v35  ;;  %v8148_v1 = vmul.f32 %v8147_v62, %v15247_v47 }
 0x806   : > { %v8074_v41 = vadd.f32 0.001143296, %v8073_v13  ;;  %v15304_v54 = vpop.eup %9252  ;;  %v8116_v13 = vadd.f32 0.014752088, %v8115_v19  ;;  %v8027_v12 = vadd.f32 0.05243302, %v8026_v33  ;;  %vm7968_vm15 = vweird.f32 %v15276_v20 }
 0x807   : > { %v15302_v36 = vmin.f32 %v8220_v60, 16.0  ;;  %v7964_v61 = vmul.f32 %v15304_v54, %v15276_v20  ;;  %v7998_v14 = vadd.f32 0.112945676, %v7997_v39  ;;  %v8183_v26 = vadd.f32 0.00028619796, %v8182_v37 }
 0x808   : > { %v8075_v6 = vmul.f32 %v8074_v41, %v15274_v9  ;;  %v15323_v41 = vmul.f32 0.5, %v15197_v31  ;;  %v7951_v52 = vadd.f32 1.1283791, %v7950_v22  ;;  %v8063_v60 = vadd.f32 0.00028619796, %v8062_v10 }
 0x809   : > { %v8233_v27 = vmul.f32 3.8918573e-05, %v15302_v36  ;;  %v7965_v42 = vsub.f32 1.0, %v7964_v61  ;;  %v7999_v43 = vmul.f32 %v7998_v14, %v15227_v35  ;;  %v8117_v21 = vmul.f32 %v8116_v13, %v15224_v17 }
 0x80a   : > { %v8076_v28 = vadd.f32 0.014752088, %v8075_v6  ;;  %v8111_v23 = vadd.f32 1.1283791, %v8110_v7  ;;  %v8222_v59 = vmul.f32 2.1237322e-06, %v15302_v36  ;;  %v8028_v19 = vmul.f32 %v8027_v12, %v15258_v40 }
 0x80b   : > { %v8234_v55 = vadd.f32 0.001143296, %v8233_v27  ;;  %v8000_v50 = vadd.f32 0.4994258, %v7999_v43  ;;  %v8118_v63 = vadd.f32 0.112945676, %v8117_v21  ;;  %v8184_v29 = vmul.f32 %v8183_v26, %v15306_v0 }
 0x80c   : > { %v8077_v45 = vmul.f32 %v8076_v28, %v15274_v9  ;;  %v7991_v28 = vadd.f32 1.1283791, %v7990_v34  ;;  %v8149_v5 = vadd.f32 0.18741608, %v8148_v1  ;;  %v7974_v62 = vand.u32 2147483648, %v15276_v20 }
 0x80d   : > { %v8235_v44 = vmul.f32 %v8234_v55, %v15302_v36  ;;  %v8001_v61 = vmul.f32 %v8000_v50, %v15227_v35  ;;  %vm7969_vm2 = vweird.f32 %v15304_v54  ;;  %v8119_v37 = vmul.f32 %v8118_v63, %v15224_v17 }
 0x80e   : > { %v8078_v56 = vadd.f32 0.112945676, %v8077_v45  ;;  %v7966_v45 = vmul.f32 %v15304_v54, %v7965_v42  ;;  %v8223_v55 = vadd.f32 0.00028619796, %v8222_v59  ;;  %v8150_v13 = vmul.f32 %v8149_v5, %v15247_v47  ;;  %vm15355_vm7 = vmor %vm7968_vm15, %vm7969_vm2 }
 0x80f   : > { %v8236_v6 = vadd.f32 0.014752088, %v8235_v44  ;;  %v15345_v39 = vadd.f32 1.0, %v8001_v61  ;;  %v8185_v7 = vadd.f32 0.0036580483, %v8184_v29  ;;  %v7952_v29 = vmul.f32 %v7951_v52, %v15200_v53 }
 0x810   : > { %v8079_v24 = vmul.f32 %v8078_v56, %v15274_v9  ;;  %v8064_v56 = vmul.f32 %v8063_v60, %v15274_v9  ;;  %v7967_v10 = vadd.f32 %v15304_v54, %v7966_v45  ;;  %v8120_v34 = vadd.f32 0.4994258, %v8119_v37 }
 0x811   : > { %v8237_v31 = vmul.f32 %v8236_v6, %v15302_v36  ;;  %v7972_v42 = vand.u32 2147483647, %v15276_v20  ;;  %9254 = vrcp.f32 %v15345_v39  ;;  %v8033_v26 = vmul.f32 3.8918573e-05, %v15258_v40 }
 0x812   : > { %v8080_v57 = vadd.f32 0.4994258, %v8079_v24  ;;  %v8153_v24 = vmul.f32 3.8918573e-05, %v15247_v47  ;;  %v8121_v1 = vmul.f32 %v8120_v34, %v15224_v17  ;;  %v8029_v6 = vadd.f32 0.18741608, %v8028_v19 }
 0x813   : > { %v8238_v27 = vadd.f32 0.112945676, %v8237_v31  ;;  %v8224_v60 = vmul.f32 %v8223_v55, %v15302_v36  ;;  %v7971_v21 = vsel %vm15355_vm7, %v15304_v54, %v7967_v10  ;;  %v8151_v20 = vadd.f32 1.1283791, %v8150_v13 }
 0x814   : > { %v8081_v49 = vmul.f32 %v8080_v57, %v15274_v9  ;;  %v8154_v35 = vadd.f32 0.001143296, %v8153_v24  ;;  %v8065_v57 = vadd.f32 0.0036580483, %v8064_v56  ;;  %v7975_v31 = vor.u32 1.1754944e-38, %v7974_v62 }
 0x815   : > { %v8239_v22 = vmul.f32 %v8238_v27, %v15302_v36  ;;  %v15368_v59 = vadd.f32 1.0, %v8121_v1  ;;  %v15371_v17 = vmul.f32 0.5, %v15210_v58  ;;  %vm7973_vm8 = vcmp.eq.f32.partialorder %v7972_v42, 8.507059e+37 }
 0x816   : > { %v15338_v33 = vadd.f32 1.0, %v8081_v49  ;;  %v8155_v12 = vmul.f32 %v8154_v35, %v15247_v47  ;;  %v8186_v49 = vmul.f32 %v8185_v7, %v15306_v0  ;;  %v8066_v45 = vmul.f32 %v8065_v57, %v15274_v9 }
 0x817   : > { %v8240_v44 = vadd.f32 0.4994258, %v8239_v22  ;;  %v7976_v5 = vsel %vm7973_vm8, %v7975_v31, %v7971_v21  ;;  %v8034_v19 = vadd.f32 0.001143296, %v8033_v26  ;;  %v9255_v54 = vpop.eup %9254  ;;  %v15379_v56 = vmul.f32 %v8111_v23, %v15214_v3 }
 0x818   : > { %9256 = vrcp.f32 %v15338_v33  ;;  %v8156_v50 = vadd.f32 0.014752088, %v8155_v12  ;;  %v7992_v27 = vmul.f32 %v7991_v28, %v15217_v32  ;;  %v8225_v58 = vadd.f32 0.0036580483, %v8224_v60 }
 0x819   : > { %v8241_v43 = vmul.f32 %v8240_v44, %v15302_v36  ;;  %9258 = vrcp.f32 %v15368_v59  ;;  %v15385_v61 = vmul.f32 %v8151_v20, %v15238_v15  ;;  %v8030_v37 = vmul.f32 %v8029_v6, %v15258_v40 }
 0x81a   : > { %v8187_v24 = vadd.f32 0.05243302, %v8186_v49  ;;  %v8004_v55 = vmul.f32 %v9255_v54, %v15345_v39  ;;  %v8067_v22 = vadd.f32 0.05243302, %v8066_v45  ;;  %v7977_v10 = vmul.f32 %v7976_v5, %v7952_v29 }
 0x81b   : > { %v15374_v63 = vadd.f32 1.0, %v8241_v43  ;;  %v8014_v53 = vand.u32 2147483648, %v15345_v39  ;;  %v8157_v3 = vmul.f32 %v8156_v50, %v15247_v47  ;;  %v8035_v52 = vmul.f32 %v8034_v19, %v15258_v40 }
 0x81c   : > { %v8005_v32 = vsub.f32 1.0, %v8004_v55  ;;  %v8193_v23 = vmul.f32 3.8918573e-05, %v15306_v0  ;;  %v8226_v28 = vmul.f32 %v8225_v58, %v15302_v36  ;;  %v8012_v13 = vand.u32 2147483647, %v15345_v39 }
 0x81d   : > { %9260 = vrcp.f32 %v15374_v63  ;;  %v8158_v7 = vadd.f32 0.112945676, %v8157_v3  ;;  %vm8009_vm9 = vweird.f32 %v9255_v54  ;;  %v8036_v57 = vadd.f32 0.014752088, %v8035_v52 }
 0x81e   : > { %v15382_v62 = vpop.eup %9256  ;;  %v8006_v35 = vmul.f32 %v9255_v54, %v8005_v32  ;;  %v8194_v44 = vadd.f32 0.001143296, %v8193_v23  ;;  %v8068_v42 = vmul.f32 %v8067_v22, %v15274_v9  ;;  %v8850_v14 = vclamps-f32 %v7977_v10, 1.0 }
 0x81f   : > { %v8084_v15 = vmul.f32 %v15382_v62, %v15338_v33  ;;  %v15398_v34 = vpop.eup %9258  ;;  %v8159_v12 = vmul.f32 %v8158_v7, %v15247_v47  ;;  %vm8008_vm10 = vweird.f32 %v15345_v39  ;;  %v8015_v6 = vor.u32 1.1754944e-38, %v8014_v53 }
 0x820   : > { %v8124_v1 = vmul.f32 %v15398_v34, %v15368_v59  ;;  %v8007_v26 = vadd.f32 %v9255_v54, %v8006_v35  ;;  %v8037_v60 = vmul.f32 %v8036_v57, %v15258_v40  ;;  %vm8010_vm11 = vmor %vm8008_vm10, %vm8009_vm9  ;;  %v8195_v49 = vmul.f32 %v8194_v44, %v15306_v0 }
 0x821   : > { %v8085_v43 = vsub.f32 1.0, %v8084_v15  ;;  %v8160_v20 = vadd.f32 0.4994258, %v8159_v12  ;;  %v8227_v45 = vadd.f32 0.05243302, %v8226_v28  ;;  %vm8013_vm12 = vcmp.eq.f32.partialorder %v8012_v13, 8.507059e+37 }
 0x822   : > { %v8125_v21 = vsub.f32 1.0, %v8124_v1  ;;  %v8011_v50 = vsel %vm8010_vm11, %v9255_v54, %v8007_v26  ;;  %v8038_v5 = vadd.f32 0.112945676, %v8037_v60  ;;  %v8260_v29 = vadd.f32 1.0, %v8850_v14 }
 0x823   : > { %v15407_v31 = vpop.eup %9260  ;;  %v8016_v19 = vsel %vm8013_vm12, %v8015_v6, %v8011_v50  ;;  %v8161_v58 = vmul.f32 %v8160_v20, %v15247_v47  ;;  %v8196_v39 = vadd.f32 0.014752088, %v8195_v49  ;;  %v15410_v55 = vadd.f32 1.1283791, %v8030_v37 }
 0x824   : > { %v8017_v22 = vmul.f32 %v8016_v19, %v7992_v27  ;;  %v8126_v10 = vmul.f32 %v15398_v34, %v8125_v21  ;;  %v8039_v53 = vmul.f32 %v8038_v5, %v15258_v40  ;;  %v8188_v3 = vmul.f32 %v8187_v24, %v15306_v0 }
 0x825   : > { %v8086_v32 = vmul.f32 %v15382_v62, %v8085_v43  ;;  %v8244_v54 = vmul.f32 %v15407_v31, %v15374_v63  ;;  %v15418_v52 = vadd.f32 1.0, %v8161_v58  ;;  %v8069_v23 = vadd.f32 0.18741608, %v8068_v42 }
 0x826   : > { %v8851_v15 = vclamps-f32 %v8017_v22, 1.0  ;;  %v8040_v47 = vadd.f32 0.4994258, %v8039_v53  ;;  %v8197_v37 = vmul.f32 %v8196_v39, %v15306_v0  ;;  %v8094_v27 = vand.u32 2147483648, %v15338_v33 }
 0x827   : > { %v8228_v28 = vmul.f32 %v8227_v45, %v15302_v36  ;;  %v8268_v13 = vmul.f32 %v8260_v29, %v15323_v41  ;;  %9262 = vrcp.f32 %v15418_v52  ;;  %vm8089_vm0 = vweird.f32 %v15382_v62 }
 0x828   : > { %v8261_v24 = vadd.f32 1.0, %v8851_v15  ;;  %v8127_v7 = vadd.f32 %v15398_v34, %v8126_v10  ;;  %vm8129_vm1 = vweird.f32 %v15398_v34  ;;  %v8087_v35 = vadd.f32 %v15382_v62, %v8086_v32 }
 0x829   : > { %v8245_v57 = vsub.f32 1.0, %v8244_v54  ;;  %v8134_v44 = vand.u32 2147483648, %v15368_v59  ;;  %v8041_v42 = vmul.f32 %v8040_v47, %v15258_v40  ;;  %vm8128_vm3 = vweird.f32 %v15368_v59 }
 0x82a   : > { %v8269_v14 = vmul.f32 %v8261_v24, %v15371_v17  ;;  %v8132_v41 = vand.u32 2147483647, %v15368_v59  ;;  %v8198_v1 = vadd.f32 0.112945676, %v8197_v37  ;;  %v8070_v12 = vmul.f32 %v8069_v23, %v15274_v9  ;;  %vm15437_vm5 = vmor %vm8128_vm3, %vm8129_vm1 }
 0x82b   : > { %vm8088_vm4 = vweird.f32 %v15338_v33  ;;  %v8092_v26 = vand.u32 2147483647, %v15338_v33  ;;  %v15441_v60 = vadd.f32 1.0, %v8041_v42  ;;  %v8229_v59 = vadd.f32 0.18741608, %v8228_v28 }
 0x82c   : > { %vm15445_vm6 = vmor %vm8088_vm4, %vm8089_vm0  ;;  %v8276_v17 = vpack.c.bf16 %v8269_v14, %v8268_v13  ;;  %v8131_v9 = vsel %vm15437_vm5, %v15398_v34, %v8127_v7  ;;  %v8199_v33 = vmul.f32 %v8198_v1, %v15306_v0  ;;  %v8246_v20 = vmul.f32 %v15407_v31, %v8245_v57 }
 0x82d   : > { %v9263_v43 = vpop.eup %9262  ;;  %v8091_v21 = vsel %vm15445_vm6, %v15382_v62, %v8087_v35  ;;  %v8135_v49 = vor.u32 1.1754944e-38, %v8134_v44  ;;  %9264 = vrcp.f32 %v15441_v60  ;;  %v8095_v45 = vor.u32 1.1754944e-38, %v8094_v27 }
 0x82e   : > { %8355 = vmatmul.bf16.vlgmr.msra.gmra.mxu1 %v8276_v17  ;;  %vm8133_vm13 = vcmp.eq.f32.partialorder %v8132_v41, 8.507059e+37  ;;  %v8164_v50 = vmul.f32 %v9263_v43, %v15418_v52  ;;  %v8200_v5 = vadd.f32 0.4994258, %v8199_v33  ;;  %v8189_v19 = vadd.f32 0.18741608, %v8188_v3 }
 0x82f   : > { %v8071_v34 = vadd.f32 1.1283791, %v8070_v12  ;;  %vm8093_vm14 = vcmp.eq.f32.partialorder %v8092_v26, 8.507059e+37  ;;  %v8136_v29 = vsel %vm8133_vm13, %v8135_v49, %v8131_v9  ;;  %v8230_v39 = vmul.f32 %v8229_v59, %v15302_v36 }
 0x830   : > { %v8096_v58 = vsel %vm8093_vm14, %v8095_v45, %v8091_v21  ;;  %v8165_v22 = vsub.f32 1.0, %v8164_v50  ;;  %v8201_v62 = vmul.f32 %v8200_v5, %v15306_v0  ;;  %v8247_v10 = vadd.f32 %v15407_v31, %v8246_v20 }
 0x831   : > { %vm8249_vm15 = vweird.f32 %v15407_v31  ;;  %v8172_v53 = vand.u32 2147483647, %v15418_v52  ;;  %v8174_v32 = vand.u32 2147483648, %v15418_v52  ;;  %v8137_v54 = vmul.f32 %v8136_v29, %v15379_v56 }
 0x832   : > { %v8166_v3 = vmul.f32 %v9263_v43, %v8165_v22  ;;  %vm8169_vm2 = vweird.f32 %v9263_v43  ;;  %v15466_v23 = vadd.f32 1.0, %v8201_v62  ;;  %v8072_v36 = vmul.f32 %v8071_v34, %v15261_v48 }
 0x833   : > { %v9265_v15 = vpop.eup %9264  ;;  %vm8248_vm7 = vweird.f32 %v15374_v63  ;;  %v8252_v47 = vand.u32 2147483647, %v15374_v63  ;;  %v8254_v37 = vand.u32 2147483648, %v15374_v63  ;;  %vm8168_vm9 = vweird.f32 %v15418_v52 }
 0x834   : > { %vm15472_vm8 = vmor %vm8248_vm7, %vm8249_vm15  ;;  %v8167_v28 = vadd.f32 %v9263_v43, %v8166_v3  ;;  %v8044_v56 = vmul.f32 %v9265_v15, %v15441_v60  ;;  %9266 = vrcp.f32 %v15466_v23  ;;  %v8097_v13 = vmul.f32 %v8096_v58, %v8072_v36 }
 0x835   : > { %v8231_v24 = vadd.f32 1.1283791, %v8230_v39  ;;  %v8251_v48 = vsel %vm15472_vm8, %v15407_v31, %v8247_v10  ;;  %vm8170_vm10 = vmor %vm8168_vm9, %vm8169_vm2  ;;  %v8175_v63 = vor.u32 1.1754944e-38, %v8174_v32  ;;  %v8854_v7 = vclamps-f32 %v8137_v54, 1.0 }
 0x836   : > { %v8171_v35 = vsel %vm8170_vm10, %v9263_v43, %v8167_v28  ;;  %vm8173_vm11 = vcmp.eq.f32.partialorder %v8172_v53, 8.507059e+37  ;;  %v8045_v57 = vsub.f32 1.0, %v8044_v56  ;;  %vm8253_vm12 = vcmp.eq.f32.partialorder %v8252_v47, 8.507059e+37 }
 0x837   : > { %v8255_v44 = vor.u32 1.1754944e-38, %v8254_v37  ;;  %v8176_v52 = vsel %vm8173_vm11, %v8175_v63, %v8171_v35  ;;  %v8054_v42 = vand.u32 2147483648, %v15441_v60  ;;  %vm8049_vm0 = vweird.f32 %v9265_v15 }
 0x838   : > { %v8177_v14 = vmul.f32 %v8176_v52, %v15385_v61  ;;  %v8046_v41 = vmul.f32 %v9265_v15, %v8045_v57  ;;  %v8052_v1 = vand.u32 2147483647, %v15441_v60  ;;  %v7928_v31 = vmul.f32 0.5, %v15207_v38 }
 0x839   : > { %v7929_v12 = vmul.f32 0.5, %v15231_v30  ;;  %v8256_v26 = vsel %vm8253_vm12, %v8255_v44, %v8251_v48  ;;  %v8853_v6 = vclamps-f32 %v8097_v13, 1.0  ;;  %v8264_v17 = vadd.f32 1.0, %v8854_v7  ;;  %v8890_v7 = vld [vmem:[%s9754_s27 + $0xc0] sm:$0xff] }
 0x83a   : > { %v9267_v40 = vpop.eup %9266  ;;  %v8855_v59 = vclamps-f32 %v8177_v14, 1.0  ;;  %v8047_v9 = vadd.f32 %v9265_v15, %v8046_v41  ;;  %vm8048_vm1 = vweird.f32 %v15441_v60  ;;  %v8190_v33 = vmul.f32 %v8189_v19, %v15306_v0 }
 0x83b   : > { %v8232_v61 = vmul.f32 %v8231_v24, %v15289_v51  ;;  %vm8050_vm3 = vmor %vm8048_vm1, %vm8049_vm0  ;;  %v8055_v43 = vor.u32 1.1754944e-38, %v8054_v42  ;;  %v8204_v21 = vmul.f32 %v9267_v40, %v15466_v23  ;;  %v8032_v38 = vmul.f32 %v15410_v55, %v15244_v2 }
 0x83c   : > { %v8265_v30 = vadd.f32 1.0, %v8855_v59  ;;  %v8051_v20 = vsel %vm8050_vm3, %v9265_v15, %v8047_v9  ;;  %vm8053_vm4 = vcmp.eq.f32.partialorder %v8052_v1, 8.507059e+37  ;;  %v8263_v50 = vadd.f32 1.0, %v8853_v6 }
 0x83d   : > { %v8257_v49 = vmul.f32 %v8256_v26, %v8232_v61  ;;  %v8056_v45 = vsel %vm8053_vm4, %v8055_v43, %v8051_v20  ;;  %v8205_v5 = vsub.f32 1.0, %v8204_v21  ;;  %v8272_v34 = vmul.f32 %v8264_v17, %v7928_v31  ;;  %v8892_v26 = vld [vmem:[%s9754_s27 + $0xd0] sm:$0xff]  ;;  %v8895_v21 = vld [vmem:[%s9754_s27 + $0xe8] sm:$0xff] }
 0x83e   : > { %v8273_v60 = vmul.f32 %v8265_v30, %v7929_v12  ;;  %v8057_v29 = vmul.f32 %v8056_v45, %v8032_v38  ;;  %v8214_v0 = vand.u32 2147483648, %v15466_v23  ;;  %v8191_v51 = vadd.f32 1.1283791, %v8190_v33  ;;  %v8894_v12 = vld [vmem:[%s9754_s27 + $0xe0] sm:$0xff]  ;;  %v8893_v38 = vld [vmem:[%s9754_s27 + $0xd8] sm:$0xff] }
 0x83f   : > { %v8206_v19 = vmul.f32 %v9267_v40, %v8205_v5  ;;  %vm8209_vm5 = vweird.f32 %v9267_v40  ;;  %v8212_v58 = vand.u32 2147483647, %v15466_v23  ;;  %v7927_v39 = vmul.f32 0.5, %v15255_v18 }
 0x840   : > { %v8278_v2 = vpack.c.bf16 %v8273_v60, %v8272_v34  ;;  %v8852_v55 = vclamps-f32 %v8057_v29, 1.0  ;;  %v7926_v22 = vmul.f32 0.5, %v15235_v16  ;;  %vm8208_vm6 = vweird.f32 %v15466_v23  ;;  %v8896_v34 = vld [vmem:[%s9754_s27 + $0xf0] sm:$0xff] }
 0x841   : > { %v8207_v62 = vadd.f32 %v9267_v40, %v8206_v19  ;;  %v8271_v53 = vmul.f32 %v8263_v50, %v7927_v39  ;;  %vm8210_vm13 = vmor %vm8208_vm6, %vm8209_vm5  ;;  %v8215_v32 = vor.u32 1.1754944e-38, %v8214_v0  ;;  %v8857_v54 = vclamps-f32 %v8257_v49, 1.0  ;;  %v8897_v19 = vld [vmem:[%s9754_s27 + $0xf8] sm:$0xff] }
 0x842   : > { %8365 = vmatmul.bf16.vlgmr.msra.gmra.mxu3 %v8278_v2  ;;  %v8262_v10 = vadd.f32 1.0, %v8852_v55  ;;  %v8192_v3 = vmul.f32 %v8191_v51, %v15284_v8  ;;  %vm8213_vm14 = vcmp.eq.f32.partialorder %v8212_v58, 8.507059e+37  ;;  %v7931_v23 = vmul.f32 0.5, %v15280_v11 }
 0x843   : > { %v8211_v15 = vsel %vm8210_vm13, %v9267_v40, %v8207_v62  ;;  %v8267_v16 = vadd.f32 1.0, %v8857_v54  ;;  %v7930_v56 = vmul.f32 0.5, %v15267_v25  ;;  %v8891_v25 = vld [vmem:[%s9754_s27 + $0xc8] sm:$0xff] }
 0x844   : > { %v8270_v36 = vmul.f32 %v8262_v10, %v7926_v22  ;;  %v8216_v18 = vsel %vm8213_vm14, %v8215_v32, %v8211_v15 }
 0x845   : > { %v8217_v47 = vmul.f32 %v8216_v18, %v8192_v3  ;;  %v8275_v13 = vmul.f32 %v8267_v16, %v7931_v23 }
 0x846   : > { %v8277_v37 = vpack.c.bf16 %v8271_v53, %v8270_v36 }
 0x847   : > { %v8856_v27 = vclamps-f32 %v8217_v47, 1.0 }
 0x848   : > { %8360 = vmatmul.bf16.gmra.mxu1 %v8277_v37 }
 0x849   : > { %v8266_v28 = vadd.f32 1.0, %v8856_v27 }
 0x84b   : > { %v8274_v8 = vmul.f32 %v8266_v28, %v7930_v56 }
 0x84d   : > { %v8279_v24 = vpack.c.bf16 %v8275_v13, %v8274_v8 }
 0x852   : > { %8370 = vmatmul.bf16.gmra.mxu3 %v8279_v24 }
 0x8ab   : > { %v8356_v48 = vpop.f32.mrf.mxu1 }
 0x8ac   : > { %v8357_v63 = vadd.f32 %v8356_v48, %v16719_v46 }
 0x8ae   : > { %v8379_v35 = vmul.f32 %v8357_v63, %v14952_v4 }
 0x8b0   : > { %v8396_v57 = vadd.f32 %v8890_v7, %v8379_v35 }
 0x8b2   : > { %8898 = vst [vmem:[%s12697_s24 + $0xc0] sm:$0xff] %v8396_v57 }
 0x8b3   : > { %v8358_v11 = vpop.f32.mrf.mxu1 }
 0x8b4   : > { %v8359_v44 = vadd.f32 %v8358_v11, %v16719_v46 }
 0x8b6   : > { %v8380_v52 = vmul.f32 %v8359_v44, %v14952_v4 }
 0x8b8   : > { %v8397_v42 = vadd.f32 %v8891_v25, %v8380_v52 }
 0x8ba   : > { %8899 = vst [vmem:[%s12697_s24 + $0xc8] sm:$0xff] %v8397_v42 }
 0x8c5   : > { %v8366_v14 = vpop.f32.mrf.mxu3  ;;  %v8361_v41 = vpop.f32.mrf.mxu1 }
 0x8c6   : > { %v8367_v1 = vadd.f32 %v8366_v14, %v16719_v46  ;;  %v8362_v31 = vadd.f32 %v8361_v41, %v16719_v46 }
 0x8c8   : > { %v8383_v6 = vmul.f32 %v8367_v1, %v14952_v4  ;;  %v8381_v40 = vmul.f32 %v8362_v31, %v14952_v4 }
 0x8ca   : > { %v8400_v59 = vadd.f32 %v8894_v12, %v8383_v6  ;;  %v8398_v17 = vadd.f32 %v8892_v26, %v8381_v40 }
 0x8cc   : > { %8902 = vst [vmem:[%s12697_s24 + $0xe0] sm:$0xff] %v8400_v59 }
 0x8cd   : > { %8900 = vst [vmem:[%s12697_s24 + $0xd0] sm:$0xff] %v8398_v17  ;;  %v8368_v9 = vpop.f32.mrf.mxu3  ;;  %v8363_v33 = vpop.f32.mrf.mxu1 }
 0x8ce   : > { %v8369_v61 = vadd.f32 %v8368_v9, %v16719_v46  ;;  %v8364_v43 = vadd.f32 %v8363_v33, %v16719_v46 }
 0x8d0   : > { %v8384_v30 = vmul.f32 %v8369_v61, %v14952_v4  ;;  %v8382_v20 = vmul.f32 %v8364_v43, %v14952_v4 }
 0x8d2   : > { %v8401_v49 = vadd.f32 %v8895_v21, %v8384_v30  ;;  %v8399_v45 = vadd.f32 %v8893_v38, %v8382_v20 }
 0x8d4   : > { %8903 = vst [vmem:[%s12697_s24 + $0xe8] sm:$0xff] %v8401_v49 }
 0x8d5   : > { %8901 = vst [vmem:[%s12697_s24 + $0xd8] sm:$0xff] %v8399_v45  ;;  %v8371_v50 = vpop.f32.mrf.mxu3 }
 0x8d6   : > { %v8372_v5 = vadd.f32 %v8371_v50, %v16719_v46 }
 0x8d8   : > { %v8385_v60 = vmul.f32 %v8372_v5, %v14952_v4 }
 0x8da   : > { %v8402_v29 = vadd.f32 %v8896_v34, %v8385_v60 }
 0x8dc   : > { %8904 = vst [vmem:[%s12697_s24 + $0xf0] sm:$0xff] %v8402_v29 }
 0x8dd   : > { %v8373_v0 = vpop.f32.mrf.mxu3 }
 0x8de   : > { %v8374_v51 = vadd.f32 %v8373_v0, %v16719_v46 }
 0x8e0   : > { %v8386_v58 = vmul.f32 %v8374_v51, %v14952_v4 }
 0x8e2   : > { %v8403_v39 = vadd.f32 %v8897_v19, %v8386_v58 }
 0x8e4   : > { %8905 = vst [vmem:[%s12697_s24 + $0xf8] sm:$0xff] %v8403_v39 }
 0x8e5   : > { %9415 = shalt.err (!%p9412_p12)
}
 0x8e6   : > { %s9576_s29 = smov 128   ;;  %s9577_s24 = smov 8  }
 0x8e7   : > { %8998 = dma.vmem_to_hbm [thread:$0]  (%p9718_p3), %s8427_s19, 4096, %s8429_s7, %s8414_s17, %s9576_s29, %s9576_s29, %s9577_s24  }
 0x8e8 PF: > { %s8443_s28 = sand.u32 1, %s9502_s13   ;;  %p16753_p13 = scmp.ge.s32.totalorder %s9514_s16, 2 }
 0x8e9   : > { %s8444_s11 = scalar_lea.sflag [#allocation5], %s8443_s28 }
 0x8ea   : > { %p9015_p0 = pnand %p16753_p13, %p9668_p6 }
 0x8ec   : > { %p9016_p5 = pneg %p9015_p0 }
 0x8ee   : > { %9497 = dma.done.wait (%p9016_p5), %s8444_s11, 4096  }
 0x8ef   : > { %9499 = vsyncadd (%p9016_p5), %s8444_s11, 4294963200  ;;  %s16754_s30 = sld [smem:[#allocation16_spill]]  ;;  %p25_p7 = scmp.ge.s32.totalorder %s9705_s18, 4  }
 0x8f0   : > { %s16755_s13 = smov %s9506_s14  ;;  %s16756_s14 = smov %s9510_s15 }
 0x8f1   : > { %s16758_s16 = smov %s9705_s18  ;;  %27 = sbr.rel (!%p25_p7) target bundleno = 11 (0xb), region = 153 }
 0x8f5   : > { %s16757_s15 = smov %s16754_s30 }
 0x8f6   :  { %8450 = vsyncpa [#allocation4], 1 }
 0x8f7   :  { %8452 = vsyncpa [#allocation4 + $0x1], 1 }
 0x8f8   :  { %8453 = vsyncpa [#allocation7], 1 }
 0x8f9   :  { %8454 = vsyncpa [#allocation10], 1 }
 0x8fa   :  { %8455 = vsyncpa [#allocation5], 1 }
 0x8fb   :  { %8457 = vsyncpa [#allocation5 + $0x1], 1 }

</bundles_post_ra>
